<compile_context>
chip_gen: v7x
topology: tpu7x:2x2x1
jax: 0.10.0
libtpu: 0.0.40
codegen_flags: <defaults>
</compile_context>

<pallas_src>
import functools

import numpy as np
import jax
import jax.numpy as jnp
from jax.experimental import pallas as pl
from jax.experimental.pallas import tpu as pltpu


# ---------------------------------------------------------------------------
# In-kernel helpers (all head-batched 3-D tensors: [H, L, d]; no per-head
# slicing, no in-kernel reshape/transpose).
# ---------------------------------------------------------------------------
_PROJ_DN = (((2,), (1,)), ((0,), (0,)))    # contract lhs[-1] with rhs[1], batch axis 0
_SCORE_DN = (((2,), (2,)), ((0,), (0,)))   # contract lhs[-1] with rhs[-1], batch axis 0


def _bmm(lhs, rhs, dn):
    return jax.lax.dot_general(lhs, rhs, dn, preferred_element_type=jnp.float32)


def _layernorm(z, g, b):
    mean = jnp.mean(z, axis=-1, keepdims=True)
    var = jnp.mean((z - mean) ** 2, axis=-1, keepdims=True)
    return (z - mean) * jax.lax.rsqrt(var + 1e-6) * g + b


def _qkv_heads(x, wq, wk, wv):
    """x: [L, D]; wq/wk: [H, D, dk]; wv: [H, D, dv] -> ([H,L,dk], [H,L,dk], [H,L,dv])."""
    xb = jnp.broadcast_to(x[None], (wq.shape[0],) + x.shape)   # one broadcast per stream
    return (_bmm(xb, wq, _PROJ_DN),
            _bmm(xb, wk, _PROJ_DN),
            _bmm(xb, wv, _PROJ_DN))


def _attention(q, k, v):
    """q:[H,Lq,dk], k:[H,Lk,dk], v:[H,Lk,dv] -> (ctx [H,Lq,dv], probs [H,Lq,Lk])."""
    s = _bmm(q, k, _SCORE_DN)                                  # [H, Lq, Lk]
    s = s - jnp.max(s, axis=-1, keepdims=True)
    e = jnp.exp(s)
    p = e / jnp.sum(e, axis=-1, keepdims=True)                 # exact softmax (probs are outputs)
    o = _bmm(p, v, _PROJ_DN)                                   # [H, Lq, dv]
    return o, p


def _merge_heads(o, fc):
    """o: [H, L, dv], fc: [H, dv, D] -> [L, D]  (== concat-heads @ fc weight)."""
    return jnp.sum(_bmm(o, fc, _PROJ_DN), axis=0)


# ---------------------------------------------------------------------------
# Fused whole-forward kernel (one grid step == one batch element)
# ---------------------------------------------------------------------------
def _fused_forward_kernel(seq_ref, prot_ref, *refs, n_layers, n_weights, n_head):
    w = refs[:n_weights]
    (prot_out_ref, seq_out_ref,
     prot_attn_ref, seq_attn_ref, sp_attn_ref) = refs[n_weights:]

    it = iter(w)
    lin_w, lin_b = next(it), next(it)
    ga = [next(it) for _ in range(6)]      # protein self-attention (wq, wk, wv, fc, ln_g, ln_b)
    sa = [next(it) for _ in range(6)]      # peptide self-attention
    rc = [next(it) for _ in range(12)]     # reciprocal cross-attention
    gf = [next(it) for _ in range(6)]      # protein FFN (w1, b1, w2, b2, ln_g, ln_b)
    sf = [next(it) for _ in range(6)]      # peptide FFN
    H = n_head

    # protein input projection (former separate `input_linear` pallas_call, now fused)
    prot = (jnp.dot(prot_ref[0].astype(jnp.float32), lin_w[...],
                    preferred_element_type=jnp.float32) + lin_b[...])
    seq = seq_ref[0].astype(jnp.float32)

    for l in range(n_layers):                                   # static unroll over layers
        # --- protein (graph) self-attention block -----------------------
        wq, wk, wv, fc, g, b = (r[l] for r in ga)
        o, p = _attention(*_qkv_heads(prot, wq, wk, wv))
        prot_attn_ref[0, l * H:(l + 1) * H] = p.astype(prot_attn_ref.dtype)
        prot = _layernorm(_merge_heads(o, fc) + prot, g, b)

        # --- peptide (sequence) self-attention block --------------------
        wq, wk, wv, fc, g, b = (r[l] for r in sa)
        o, p = _attention(*_qkv_heads(seq, wq, wk, wv))
        seq_attn_ref[0, l * H:(l + 1) * H] = p.astype(seq_attn_ref.dtype)
        seq = _layernorm(_merge_heads(o, fc) + seq, g, b)

        # --- reciprocal cross-attention block ---------------------------
        (wq_p, wk_p, wv_p, fc_p, wq_s, wk_s, wv_s, fc_s,
         g_p, b_p, g_s, b_s) = (r[l] for r in rc)
        q_p, k_p, v_p = _qkv_heads(prot, wq_p, wk_p, wv_p)
        q_s, k_s, v_s = _qkv_heads(seq, wq_s, wk_s, wv_s)
        # protein queries attend to peptide keys/values (probs unused by caller: not stored)
        o_p, _p_ps = _attention(q_p, k_s, v_s)
        # peptide queries attend to protein keys/values (probs are returned)
        o_s, p_sp = _attention(q_s, k_p, v_p)
        sp_attn_ref[0, l * H:(l + 1) * H] = p_sp.astype(sp_attn_ref.dtype)
        prot = _layernorm(_merge_heads(o_p, fc_p) + prot, g_p, b_p)
        seq = _layernorm(_merge_heads(o_s, fc_s) + seq, g_s, b_s)

        # --- position-wise FFN blocks ------------------------------------
        w1, b1, w2, b2, g, b = (r[l] for r in gf)
        h = jnp.maximum(jnp.dot(prot, w1, preferred_element_type=jnp.float32) + b1, 0.0)
        prot = _layernorm(jnp.dot(h, w2, preferred_element_type=jnp.float32) + b2 + prot, g, b)

        w1, b1, w2, b2, g, b = (r[l] for r in sf)
        h = jnp.maximum(jnp.dot(seq, w1, preferred_element_type=jnp.float32) + b1, 0.0)
        seq = _layernorm(jnp.dot(h, w2, preferred_element_type=jnp.float32) + b2 + seq, g, b)

    prot_out_ref[0] = prot.astype(prot_out_ref.dtype)
    seq_out_ref[0] = seq.astype(seq_out_ref.dtype)


# ---------------------------------------------------------------------------
# pallas_call wrapper (grid = (batch,), "parallel" for v7x megacore)
# ---------------------------------------------------------------------------
_GA_KEYS = ('wq', 'wk', 'wv', 'fc', 'g', 'b')
_RC_KEYS = ('wq_p', 'wk_p', 'wv_p', 'fc_p', 'wq_s', 'wk_s', 'wv_s', 'fc_s',
            'g_p', 'b_p', 'g_s', 'b_s')
_FF_KEYS = ('w1', 'b1', 'w2', 'b2', 'g', 'b')


def _flatten_weights(params):
    lyr = params['layers']
    flat = [params['lin_w'], params['lin_b']]
    flat += [lyr['ga'][k] for k in _GA_KEYS]
    flat += [lyr['sa'][k] for k in _GA_KEYS]
    flat += [lyr['rc'][k] for k in _RC_KEYS]
    flat += [lyr['gf'][k] for k in _FF_KEYS]
    flat += [lyr['sf'][k] for k in _FF_KEYS]
    return flat


def _full_spec(a):
    zeros = (0,) * a.ndim
    return pl.BlockSpec(a.shape, lambda b: zeros)


def fused_forward(params, seq_enc, protein_sequence, *, n_layers, n_head):
    B, Lpep, D = seq_enc.shape
    Lprot, F = protein_sequence.shape[1], protein_sequence.shape[2]
    flat_w = _flatten_weights(params)
    HT = n_layers * n_head

    kern = functools.partial(_fused_forward_kernel, n_layers=n_layers,
                             n_weights=len(flat_w), n_head=n_head)

    out_shape = (
        jax.ShapeDtypeStruct((B, Lprot, D), jnp.float32),
        jax.ShapeDtypeStruct((B, Lpep, D), jnp.float32),
        jax.ShapeDtypeStruct((B, HT, Lprot, Lprot), jnp.float32),
        jax.ShapeDtypeStruct((B, HT, Lpep, Lpep), jnp.float32),
        jax.ShapeDtypeStruct((B, HT, Lpep, Lprot), jnp.float32),
    )
    out_specs = (
        pl.BlockSpec((1, Lprot, D), lambda b: (b, 0, 0)),
        pl.BlockSpec((1, Lpep, D), lambda b: (b, 0, 0)),
        pl.BlockSpec((1, HT, Lprot, Lprot), lambda b: (b, 0, 0, 0)),
        pl.BlockSpec((1, HT, Lpep, Lpep), lambda b: (b, 0, 0, 0)),
        pl.BlockSpec((1, HT, Lpep, Lprot), lambda b: (b, 0, 0, 0)),
    )
    in_specs = ([pl.BlockSpec((1, Lpep, D), lambda b: (b, 0, 0)),
                 pl.BlockSpec((1, Lprot, F), lambda b: (b, 0, 0))]
                + [_full_spec(a) for a in flat_w])

    return pl.pallas_call(
        kern,
        grid=(B,),
        out_shape=out_shape,
        in_specs=in_specs,
        out_specs=out_specs,
        compiler_params=pltpu.CompilerParams(
            dimension_semantics=("parallel",),        # B=2 -> one element per TC on v7x
            vmem_limit_bytes=32 * 1024 * 1024),
    )(seq_enc, protein_sequence, *flat_w)


# ---------------------------------------------------------------------------
# Model glue (plain JAX only for the embedding gather / positional table)
# ---------------------------------------------------------------------------
def positional_embedding(number, d_model):
    freqs = jnp.exp(jnp.arange(0, d_model, 2, dtype=jnp.float32)
                    * (-1.0 * (np.log(10000.0) / d_model)))
    nums = jnp.arange(0, number, dtype=jnp.float32)[None, :, None]       # [1, L, 1]
    r = nums * freqs                                                     # [1, L, D/2]
    return jnp.concatenate([jnp.sin(r), jnp.cos(r)], axis=2)             # [1, L, D]


def make_forward(n_layers, d_model, n_head):
    def forward(params, peptide_sequence, protein_sequence):
        B, Lpep = peptide_sequence.shape
        Lprot = protein_sequence.shape[1]

        # TODO(synk): the [20, D] embedding-table gather + sinusoidal positional table stay in
        # plain JAX (tiny, data-dependent row gather; no clean Pallas win at this size).
        seq_enc = params['emb'][peptide_sequence] + positional_embedding(Lpep, d_model)
        # dropout / dropout_2 are identity (inference mode)

        prot_enc, seq_out, prot_attn, seq_attn, sp_attn = fused_forward(
            params, seq_enc, protein_sequence, n_layers=n_layers, n_head=n_head)

        prot_attn = prot_attn.reshape(B, n_layers, n_head, Lprot, Lprot)
        seq_attn = seq_attn.reshape(B, n_layers, n_head, Lpep, Lpep)
        sp_attn = sp_attn.reshape(B, n_layers, n_head, Lpep, Lprot)
        seq_attn_l = [seq_attn[:, l] for l in range(n_layers)]
        prot_attn_l = [prot_attn[:, l] for l in range(n_layers)]
        sp_l = [sp_attn[:, l] for l in range(n_layers)]

        # Faithful to the reference: seq_prot_attention_list is returned twice
        # (prot_seq_attention_list is dropped).
        return (prot_enc, seq_out, seq_attn_l, prot_attn_l, sp_l, sp_l)

    return jax.jit(forward)


# ---------------------------------------------------------------------------
# Deterministic parameter init.  Weights are stored head-shaped and stacked
# along a leading layer axis; the 1/sqrt(d_k) scale is folded into the Q weights.
# ---------------------------------------------------------------------------
def _init_mha_heads(key, n_layers, d_model, n_head, d_k, d_v):
    ks = jax.random.split(key, 4)
    s = 0.05
    scale = 1.0 / float(np.sqrt(d_k))
    return {
        'wq': jax.random.normal(ks[0], (n_layers, n_head, d_model, d_k), jnp.float32) * s * scale,
        'wk': jax.random.normal(ks[1], (n_layers, n_head, d_model, d_k), jnp.float32) * s,
        'wv': jax.random.normal(ks[2], (n_layers, n_head, d_model, d_v), jnp.float32) * s,
        'fc': jax.random.normal(ks[3], (n_layers, n_head, d_v, d_model), jnp.float32) * s,
        'g': jnp.ones((n_layers, 1, d_model), jnp.float32),
        'b': jnp.zeros((n_layers, 1, d_model), jnp.float32),
    }


def _init_recip_heads(key, n_layers, d_model, n_head, d_k, d_v):
    ks = jax.random.split(key, 8)
    s = 0.05
    scale = 1.0 / float(np.sqrt(d_k))

    def w(i, d):
        return jax.random.normal(ks[i], (n_layers, n_head, d_model, d), jnp.float32) * s

    return {
        'wq_p': w(0, d_k) * scale, 'wk_p': w(1, d_k), 'wv_p': w(2, d_v),
        'wq_s': w(3, d_k) * scale, 'wk_s': w(4, d_k), 'wv_s': w(5, d_v),
        'fc_p': jax.random.normal(ks[6], (n_layers, n_head, d_v, d_model), jnp.float32) * s,
        'fc_s': jax.random.normal(ks[7], (n_layers, n_head, d_v, d_model), jnp.float32) * s,
        'g_p': jnp.ones((n_layers, 1, d_model), jnp.float32),
        'b_p': jnp.zeros((n_layers, 1, d_model), jnp.float32),
        'g_s': jnp.ones((n_layers, 1, d_model), jnp.float32),
        'b_s': jnp.zeros((n_layers, 1, d_model), jnp.float32),
    }


def _init_ffn(key, n_layers, d_model, d_inner):
    ks = jax.random.split(key, 2)
    s = 0.05
    return {
        'w1': jax.random.normal(ks[0], (n_layers, d_model, d_inner), jnp.float32) * s,
        'b1': jnp.zeros((n_layers, 1, d_inner), jnp.float32),
        'w2': jax.random.normal(ks[1], (n_layers, d_inner, d_model), jnp.float32) * s,
        'b2': jnp.zeros((n_layers, 1, d_model), jnp.float32),
        'g': jnp.ones((n_layers, 1, d_model), jnp.float32),
        'b': jnp.zeros((n_layers, 1, d_model), jnp.float32),
    }


def init_params(key, n_layers, d_model, n_head, d_k, d_v, d_inner):
    ks = jax.random.split(key, 7)
    return {
        'emb': jax.random.normal(ks[0], (20, d_model), jnp.float32) * 0.05,
        'lin_w': jax.random.normal(ks[1], (1024, d_model), jnp.float32)
                 * (1.0 / np.sqrt(1024.0)),
        'lin_b': jnp.zeros((1, d_model), jnp.float32),
        'layers': {
            'ga': _init_mha_heads(ks[2], n_layers, d_model, n_head, d_k, d_v),
            'sa': _init_mha_heads(ks[3], n_layers, d_model, n_head, d_k, d_v),
            'rc': _init_recip_heads(ks[4], n_layers, d_model, n_head, d_k, d_v),
            'gf': _init_ffn(ks[5], n_layers, d_model, d_inner),
            'sf': _init_ffn(ks[6], n_layers, d_model, d_inner),
        },
    }


# ---------------------------------------------------------------------------
if __name__ == "__main__":
    n_layers, d_model, n_head, d_k, d_v, d_inner = 2, 64, 4, 16, 16, 128
    B, Lpep, Lprot = 2, 8, 16

    key = jax.random.PRNGKey(0)
    kparam, kpep, kprot = jax.random.split(key, 3)

    params = init_params(kparam, n_layers, d_model, n_head, d_k, d_v, d_inner)
    peptide_sequence = jax.random.randint(kpep, (B, Lpep), 0, 20, dtype=jnp.int32)
    protein_sequence = jax.random.normal(kprot, (B, Lprot, 1024), jnp.float32)

    forward = make_forward(n_layers, d_model, n_head)
    out = forward(params, peptide_sequence, protein_sequence)
    jax.block_until_ready(out)

    prot_enc, seq_enc = out[0], out[1]
    assert prot_enc.shape == (B, Lprot, d_model)
    assert seq_enc.shape == (B, Lpep, d_model)
    assert len(out[2]) == n_layers and out[2][0].shape == (B, n_head, Lpep, Lpep)
    assert len(out[3]) == n_layers and out[3][0].shape == (B, n_head, Lprot, Lprot)
    assert len(out[4]) == n_layers and out[4][0].shape == (B, n_head, Lpep, Lprot)
    assert all(bool(jnp.all(jnp.isfinite(t))) for t in (prot_enc, seq_enc))
    # attention rows are exact softmax -> sum to 1
    assert bool(jnp.all(jnp.abs(out[4][0].sum(-1) - 1.0) < 1e-3))
    print("KERNEL_OK")
</pallas_src>

<mosaic_0001>
module attributes {stable_mosaic.version = 11 : i64} {
  func.func @_fused_forward_kernel(%arg0: i32, %arg1: memref<1x8x64xf32, #tpu.memory_space<vmem>>, %arg2: memref<1x16x1024xf32, #tpu.memory_space<vmem>>, %arg3: memref<1024x64xf32, #tpu.memory_space<vmem>>, %arg4: memref<1x64xf32, #tpu.memory_space<vmem>>, %arg5: memref<2x4x64x16xf32, #tpu.memory_space<vmem>>, %arg6: memref<2x4x64x16xf32, #tpu.memory_space<vmem>>, %arg7: memref<2x4x64x16xf32, #tpu.memory_space<vmem>>, %arg8: memref<2x4x16x64xf32, #tpu.memory_space<vmem>>, %arg9: memref<2x1x64xf32, #tpu.memory_space<vmem>>, %arg10: memref<2x1x64xf32, #tpu.memory_space<vmem>>, %arg11: memref<2x4x64x16xf32, #tpu.memory_space<vmem>>, %arg12: memref<2x4x64x16xf32, #tpu.memory_space<vmem>>, %arg13: memref<2x4x64x16xf32, #tpu.memory_space<vmem>>, %arg14: memref<2x4x16x64xf32, #tpu.memory_space<vmem>>, %arg15: memref<2x1x64xf32, #tpu.memory_space<vmem>>, %arg16: memref<2x1x64xf32, #tpu.memory_space<vmem>>, %arg17: memref<2x4x64x16xf32, #tpu.memory_space<vmem>>, %arg18: memref<2x4x64x16xf32, #tpu.memory_space<vmem>>, %arg19: memref<2x4x64x16xf32, #tpu.memory_space<vmem>>, %arg20: memref<2x4x16x64xf32, #tpu.memory_space<vmem>>, %arg21: memref<2x4x64x16xf32, #tpu.memory_space<vmem>>, %arg22: memref<2x4x64x16xf32, #tpu.memory_space<vmem>>, %arg23: memref<2x4x64x16xf32, #tpu.memory_space<vmem>>, %arg24: memref<2x4x16x64xf32, #tpu.memory_space<vmem>>, %arg25: memref<2x1x64xf32, #tpu.memory_space<vmem>>, %arg26: memref<2x1x64xf32, #tpu.memory_space<vmem>>, %arg27: memref<2x1x64xf32, #tpu.memory_space<vmem>>, %arg28: memref<2x1x64xf32, #tpu.memory_space<vmem>>, %arg29: memref<2x64x128xf32, #tpu.memory_space<vmem>>, %arg30: memref<2x1x128xf32, #tpu.memory_space<vmem>>, %arg31: memref<2x128x64xf32, #tpu.memory_space<vmem>>, %arg32: memref<2x1x64xf32, #tpu.memory_space<vmem>>, %arg33: memref<2x1x64xf32, #tpu.memory_space<vmem>>, %arg34: memref<2x1x64xf32, #tpu.memory_space<vmem>>, %arg35: memref<2x64x128xf32, #tpu.memory_space<vmem>>, %arg36: memref<2x1x128xf32, #tpu.memory_space<vmem>>, %arg37: memref<2x128x64xf32, #tpu.memory_space<vmem>>, %arg38: memref<2x1x64xf32, #tpu.memory_space<vmem>>, %arg39: memref<2x1x64xf32, #tpu.memory_space<vmem>>, %arg40: memref<2x1x64xf32, #tpu.memory_space<vmem>>, %arg41: memref<1x16x64xf32, #tpu.memory_space<vmem>>, %arg42: memref<1x8x64xf32, #tpu.memory_space<vmem>>, %arg43: memref<1x8x16x16xf32, #tpu.memory_space<vmem>>, %arg44: memref<1x8x8x8xf32, #tpu.memory_space<vmem>>, %arg45: memref<1x8x8x16xf32, #tpu.memory_space<vmem>>) attributes {dimension_semantics = [#tpu.dimension_semantics<parallel>], iteration_bounds = array<i64: 2>, scalar_prefetch = 0 : i64, scratch_operands = 0 : i64, tpu.core_type = #tpu.core_type<tc>, window_params = [{transform_indices = @transform_0, window_bounds = array<i64: 1, 8, 64>}, {transform_indices = @transform_1, window_bounds = array<i64: 1, 16, 1024>}, {pipeline_mode = #tpu.pipeline_mode<synchronous>, transform_indices = @transform_2, window_bounds = array<i64: 1024, 64>}, {pipeline_mode = #tpu.pipeline_mode<synchronous>, transform_indices = @transform_3, window_bounds = array<i64: 1, 64>}, {pipeline_mode = #tpu.pipeline_mode<synchronous>, transform_indices = @transform_4, window_bounds = array<i64: 2, 4, 64, 16>}, {pipeline_mode = #tpu.pipeline_mode<synchronous>, transform_indices = @transform_5, window_bounds = array<i64: 2, 4, 64, 16>}, {pipeline_mode = #tpu.pipeline_mode<synchronous>, transform_indices = @transform_6, window_bounds = array<i64: 2, 4, 64, 16>}, {pipeline_mode = #tpu.pipeline_mode<synchronous>, transform_indices = @transform_7, window_bounds = array<i64: 2, 4, 16, 64>}, {pipeline_mode = #tpu.pipeline_mode<synchronous>, transform_indices = @transform_8, window_bounds = array<i64: 2, 1, 64>}, {pipeline_mode = #tpu.pipeline_mode<synchronous>, transform_indices = @transform_9, window_bounds = array<i64: 2, 1, 64>}, {pipeline_mode = #tpu.pipeline_mode<synchronous>, transform_indices = @transform_10, window_bounds = array<i64: 2, 4, 64, 16>}, {pipeline_mode = #tpu.pipeline_mode<synchronous>, transform_indices = @transform_11, window_bounds = array<i64: 2, 4, 64, 16>}, {pipeline_mode = #tpu.pipeline_mode<synchronous>, transform_indices = @transform_12, window_bounds = array<i64: 2, 4, 64, 16>}, {pipeline_mode = #tpu.pipeline_mode<synchronous>, transform_indices = @transform_13, window_bounds = array<i64: 2, 4, 16, 64>}, {pipeline_mode = #tpu.pipeline_mode<synchronous>, transform_indices = @transform_14, window_bounds = array<i64: 2, 1, 64>}, {pipeline_mode = #tpu.pipeline_mode<synchronous>, transform_indices = @transform_15, window_bounds = array<i64: 2, 1, 64>}, {pipeline_mode = #tpu.pipeline_mode<synchronous>, transform_indices = @transform_16, window_bounds = array<i64: 2, 4, 64, 16>}, {pipeline_mode = #tpu.pipeline_mode<synchronous>, transform_indices = @transform_17, window_bounds = array<i64: 2, 4, 64, 16>}, {pipeline_mode = #tpu.pipeline_mode<synchronous>, transform_indices = @transform_18, window_bounds = array<i64: 2, 4, 64, 16>}, {pipeline_mode = #tpu.pipeline_mode<synchronous>, transform_indices = @transform_19, window_bounds = array<i64: 2, 4, 16, 64>}, {pipeline_mode = #tpu.pipeline_mode<synchronous>, transform_indices = @transform_20, window_bounds = array<i64: 2, 4, 64, 16>}, {pipeline_mode = #tpu.pipeline_mode<synchronous>, transform_indices = @transform_21, window_bounds = array<i64: 2, 4, 64, 16>}, {pipeline_mode = #tpu.pipeline_mode<synchronous>, transform_indices = @transform_22, window_bounds = array<i64: 2, 4, 64, 16>}, {pipeline_mode = #tpu.pipeline_mode<synchronous>, transform_indices = @transform_23, window_bounds = array<i64: 2, 4, 16, 64>}, {pipeline_mode = #tpu.pipeline_mode<synchronous>, transform_indices = @transform_24, window_bounds = array<i64: 2, 1, 64>}, {pipeline_mode = #tpu.pipeline_mode<synchronous>, transform_indices = @transform_25, window_bounds = array<i64: 2, 1, 64>}, {pipeline_mode = #tpu.pipeline_mode<synchronous>, transform_indices = @transform_26, window_bounds = array<i64: 2, 1, 64>}, {pipeline_mode = #tpu.pipeline_mode<synchronous>, transform_indices = @transform_27, window_bounds = array<i64: 2, 1, 64>}, {pipeline_mode = #tpu.pipeline_mode<synchronous>, transform_indices = @transform_28, window_bounds = array<i64: 2, 64, 128>}, {pipeline_mode = #tpu.pipeline_mode<synchronous>, transform_indices = @transform_29, window_bounds = array<i64: 2, 1, 128>}, {pipeline_mode = #tpu.pipeline_mode<synchronous>, transform_indices = @transform_30, window_bounds = array<i64: 2, 128, 64>}, {pipeline_mode = #tpu.pipeline_mode<synchronous>, transform_indices = @transform_31, window_bounds = array<i64: 2, 1, 64>}, {pipeline_mode = #tpu.pipeline_mode<synchronous>, transform_indices = @transform_32, window_bounds = array<i64: 2, 1, 64>}, {pipeline_mode = #tpu.pipeline_mode<synchronous>, transform_indices = @transform_33, window_bounds = array<i64: 2, 1, 64>}, {pipeline_mode = #tpu.pipeline_mode<synchronous>, transform_indices = @transform_34, window_bounds = array<i64: 2, 64, 128>}, {pipeline_mode = #tpu.pipeline_mode<synchronous>, transform_indices = @transform_35, window_bounds = array<i64: 2, 1, 128>}, {pipeline_mode = #tpu.pipeline_mode<synchronous>, transform_indices = @transform_36, window_bounds = array<i64: 2, 128, 64>}, {pipeline_mode = #tpu.pipeline_mode<synchronous>, transform_indices = @transform_37, window_bounds = array<i64: 2, 1, 64>}, {pipeline_mode = #tpu.pipeline_mode<synchronous>, transform_indices = @transform_38, window_bounds = array<i64: 2, 1, 64>}, {pipeline_mode = #tpu.pipeline_mode<synchronous>, transform_indices = @transform_39, window_bounds = array<i64: 2, 1, 64>}, {transform_indices = @transform_40, window_bounds = array<i64: 1, 16, 64>}, {transform_indices = @transform_41, window_bounds = array<i64: 1, 8, 64>}, {transform_indices = @transform_42, window_bounds = array<i64: 1, 8, 16, 16>}, {transform_indices = @transform_43, window_bounds = array<i64: 1, 8, 8, 8>}, {transform_indices = @transform_44, window_bounds = array<i64: 1, 8, 8, 16>}]} {
    %c0 = arith.constant 0 : index
    %c0_0 = arith.constant 0 : index
    %c0_1 = arith.constant 0 : index
    %0 = vector.load %arg2[%c0, %c0_0, %c0_1] : memref<1x16x1024xf32, #tpu.memory_space<vmem>>, vector<1x16x1024xf32>
    %1 = vector.shape_cast %0 : vector<1x16x1024xf32> to vector<16x1024xf32>
    %c0_2 = arith.constant 0 : index
    %c0_3 = arith.constant 0 : index
    %2 = vector.load %arg3[%c0_2, %c0_3] : memref<1024x64xf32, #tpu.memory_space<vmem>>, vector<1024x64xf32>
    %cst = arith.constant dense<0.000000e+00> : vector<16x64xf32>
    %3 = tpu.matmul %1, %2, %cst {dimension_numbers = #tpu.dot_dimension_numbers<[1], [0], [0], [1], [0, 0, 1, 1], [], []>} : vector<16x1024xf32>, vector<1024x64xf32>, vector<16x64xf32> -> vector<16x64xf32>
    %c0_4 = arith.constant 0 : index
    %c0_5 = arith.constant 0 : index
    %4 = vector.load %arg4[%c0_4, %c0_5] : memref<1x64xf32, #tpu.memory_space<vmem>>, vector<1x64xf32>
    %5 = vector.broadcast %4 : vector<1x64xf32> to vector<16x64xf32>
    %6 = arith.addf %3, %5 : vector<16x64xf32>
    %c0_6 = arith.constant 0 : index
    %c0_7 = arith.constant 0 : index
    %c0_8 = arith.constant 0 : index
    %7 = vector.load %arg1[%c0_6, %c0_7, %c0_8] : memref<1x8x64xf32, #tpu.memory_space<vmem>>, vector<1x8x64xf32>
    %8 = vector.shape_cast %7 : vector<1x8x64xf32> to vector<8x64xf32>
    %c0_9 = arith.constant 0 : index
    %c0_10 = arith.constant 0 : index
    %c0_11 = arith.constant 0 : index
    %c0_12 = arith.constant 0 : index
    %9 = vector.load %arg5[%c0_9, %c0_10, %c0_11, %c0_12] : memref<2x4x64x16xf32, #tpu.memory_space<vmem>>, vector<1x4x64x16xf32>
    %10 = vector.shape_cast %9 : vector<1x4x64x16xf32> to vector<4x64x16xf32>
    %c0_13 = arith.constant 0 : index
    %c0_14 = arith.constant 0 : index
    %c0_15 = arith.constant 0 : index
    %c0_16 = arith.constant 0 : index
    %11 = vector.load %arg6[%c0_13, %c0_14, %c0_15, %c0_16] : memref<2x4x64x16xf32, #tpu.memory_space<vmem>>, vector<1x4x64x16xf32>
    %12 = vector.shape_cast %11 : vector<1x4x64x16xf32> to vector<4x64x16xf32>
    %c0_17 = arith.constant 0 : index
    %c0_18 = arith.constant 0 : index
    %c0_19 = arith.constant 0 : index
    %c0_20 = arith.constant 0 : index
    %13 = vector.load %arg7[%c0_17, %c0_18, %c0_19, %c0_20] : memref<2x4x64x16xf32, #tpu.memory_space<vmem>>, vector<1x4x64x16xf32>
    %14 = vector.shape_cast %13 : vector<1x4x64x16xf32> to vector<4x64x16xf32>
    %c0_21 = arith.constant 0 : index
    %c0_22 = arith.constant 0 : index
    %c0_23 = arith.constant 0 : index
    %c0_24 = arith.constant 0 : index
    %15 = vector.load %arg8[%c0_21, %c0_22, %c0_23, %c0_24] : memref<2x4x16x64xf32, #tpu.memory_space<vmem>>, vector<1x4x16x64xf32>
    %16 = vector.shape_cast %15 : vector<1x4x16x64xf32> to vector<4x16x64xf32>
    %c0_25 = arith.constant 0 : index
    %c0_26 = arith.constant 0 : index
    %c0_27 = arith.constant 0 : index
    %17 = vector.load %arg9[%c0_25, %c0_26, %c0_27] : memref<2x1x64xf32, #tpu.memory_space<vmem>>, vector<1x1x64xf32>
    %18 = vector.shape_cast %17 : vector<1x1x64xf32> to vector<1x64xf32>
    %c0_28 = arith.constant 0 : index
    %c0_29 = arith.constant 0 : index
    %c0_30 = arith.constant 0 : index
    %19 = vector.load %arg10[%c0_28, %c0_29, %c0_30] : memref<2x1x64xf32, #tpu.memory_space<vmem>>, vector<1x1x64xf32>
    %20 = vector.shape_cast %19 : vector<1x1x64xf32> to vector<1x64xf32>
    %21 = vector.shape_cast %6 : vector<16x64xf32> to vector<1x16x64xf32>
    %22 = vector.shape_cast %21 : vector<1x16x64xf32> to vector<1x16x64xf32>
    %23 = vector.broadcast %22 : vector<1x16x64xf32> to vector<4x16x64xf32>
    %cst_31 = arith.constant dense<0.000000e+00> : vector<4x16x16xf32>
    %24 = tpu.matmul %23, %10, %cst_31 {dimension_numbers = #tpu.dot_dimension_numbers<[2], [1], [1], [2], [0, 0, 0, 1, 1, 2], [0], [0]>} : vector<4x16x64xf32>, vector<4x64x16xf32>, vector<4x16x16xf32> -> vector<4x16x16xf32>
    %cst_32 = arith.constant dense<0.000000e+00> : vector<4x16x16xf32>
    %25 = tpu.matmul %23, %12, %cst_32 {dimension_numbers = #tpu.dot_dimension_numbers<[2], [1], [1], [2], [0, 0, 0, 1, 1, 2], [0], [0]>} : vector<4x16x64xf32>, vector<4x64x16xf32>, vector<4x16x16xf32> -> vector<4x16x16xf32>
    %cst_33 = arith.constant dense<0.000000e+00> : vector<4x16x16xf32>
    %26 = tpu.matmul %23, %14, %cst_33 {dimension_numbers = #tpu.dot_dimension_numbers<[2], [1], [1], [2], [0, 0, 0, 1, 1, 2], [0], [0]>} : vector<4x16x64xf32>, vector<4x64x16xf32>, vector<4x16x16xf32> -> vector<4x16x16xf32>
    %cst_34 = arith.constant dense<0.000000e+00> : vector<4x16x16xf32>
    %27 = tpu.matmul %24, %25, %cst_34 {dimension_numbers = #tpu.dot_dimension_numbers<[2], [2], [1], [1], [0, 0, 0, 1, 1, 1], [0], [0]>} : vector<4x16x16xf32>, vector<4x16x16xf32>, vector<4x16x16xf32> -> vector<4x16x16xf32>
    %cst_35 = arith.constant dense<0xFF800000> : vector<4x16xf32>
    %28 = vector.multi_reduction <maximumf>, %27, %cst_35 [2] : vector<4x16x16xf32> to vector<4x16xf32>
    %29 = vector.shape_cast %28 : vector<4x16xf32> to vector<4x16x1xf32>
    %30 = vector.broadcast %29 : vector<4x16x1xf32> to vector<4x16x16xf32>
    %31 = arith.subf %27, %30 : vector<4x16x16xf32>
    %32 = math.exp %31 : vector<4x16x16xf32>
    %cst_36 = arith.constant dense<0.000000e+00> : vector<4x16xf32>
    %33 = vector.multi_reduction <add>, %32, %cst_36 [2] : vector<4x16x16xf32> to vector<4x16xf32>
    %34 = vector.shape_cast %33 : vector<4x16xf32> to vector<4x16x1xf32>
    %35 = vector.broadcast %34 : vector<4x16x1xf32> to vector<4x16x16xf32>
    %36 = arith.divf %32, %35 : vector<4x16x16xf32>
    %cst_37 = arith.constant dense<0.000000e+00> : vector<4x16x16xf32>
    %37 = tpu.matmul %36, %26, %cst_37 {dimension_numbers = #tpu.dot_dimension_numbers<[2], [1], [1], [2], [0, 0, 0, 1, 1, 2], [0], [0]>} : vector<4x16x16xf32>, vector<4x16x16xf32>, vector<4x16x16xf32> -> vector<4x16x16xf32>
    %c0_38 = arith.constant 0 : index
    %c0_39 = arith.constant 0 : index
    %c0_40 = arith.constant 0 : index
    %c0_41 = arith.constant 0 : index
    %38 = vector.load %arg43[%c0_38, %c0_39, %c0_40, %c0_41] : memref<1x8x16x16xf32, #tpu.memory_space<vmem>>, vector<1x4x16x16xf32>
    %39 = vector.shape_cast %38 : vector<1x4x16x16xf32> to vector<4x16x16xf32>
    %40 = vector.shape_cast %36 : vector<4x16x16xf32> to vector<1x4x16x16xf32>
    tpu.vector_store %arg43[%c0_38, %c0_39, %c0_40, %c0_41], %40 {strides = array<i32>} : memref<1x8x16x16xf32, #tpu.memory_space<vmem>>, vector<1x4x16x16xf32>,
    %cst_42 = arith.constant dense<0.000000e+00> : vector<4x16x64xf32>
    %41 = tpu.matmul %37, %16, %cst_42 {dimension_numbers = #tpu.dot_dimension_numbers<[2], [1], [1], [2], [0, 0, 0, 1, 1, 2], [0], [0]>} : vector<4x16x16xf32>, vector<4x16x64xf32>, vector<4x16x64xf32> -> vector<4x16x64xf32>
    %cst_43 = arith.constant dense<0.000000e+00> : vector<16x64xf32>
    %42 = vector.multi_reduction <add>, %41, %cst_43 [0] : vector<4x16x64xf32> to vector<16x64xf32>
    %43 = arith.addf %42, %6 : vector<16x64xf32>
    %cst_44 = arith.constant dense<0.000000e+00> : vector<16xf32>
    %44 = vector.multi_reduction <add>, %43, %cst_44 [1] : vector<16x64xf32> to vector<16xf32>
    %45 = vector.shape_cast %44 : vector<16xf32> to vector<16x1xf32>
    %cst_45 = arith.constant 6.400000e+01 : f32
    %46 = vector.broadcast %cst_45 : f32 to vector<16x1xf32>
    %47 = arith.divf %45, %46 : vector<16x1xf32>
    %48 = vector.broadcast %47 : vector<16x1xf32> to vector<16x64xf32>
    %49 = arith.subf %43, %48 : vector<16x64xf32>
    %50 = arith.mulf %49, %49 : vector<16x64xf32>
    %cst_46 = arith.constant dense<0.000000e+00> : vector<16xf32>
    %51 = vector.multi_reduction <add>, %50, %cst_46 [1] : vector<16x64xf32> to vector<16xf32>
    %52 = vector.shape_cast %51 : vector<16xf32> to vector<16x1xf32>
    %cst_47 = arith.constant 6.400000e+01 : f32
    %53 = vector.broadcast %cst_47 : f32 to vector<16x1xf32>
    %54 = arith.divf %52, %53 : vector<16x1xf32>
    %55 = vector.broadcast %47 : vector<16x1xf32> to vector<16x64xf32>
    %56 = arith.subf %43, %55 : vector<16x64xf32>
    %cst_48 = arith.constant 9.99999997E-7 : f32
    %57 = vector.broadcast %cst_48 : f32 to vector<16x1xf32>
    %58 = arith.addf %54, %57 : vector<16x1xf32>
    %59 = math.rsqrt %58 : vector<16x1xf32>
    %60 = vector.broadcast %59 : vector<16x1xf32> to vector<16x64xf32>
    %61 = arith.mulf %56, %60 : vector<16x64xf32>
    %62 = vector.broadcast %18 : vector<1x64xf32> to vector<16x64xf32>
    %63 = arith.mulf %61, %62 : vector<16x64xf32>
    %64 = vector.broadcast %20 : vector<1x64xf32> to vector<16x64xf32>
    %65 = arith.addf %63, %64 : vector<16x64xf32>
    %c0_49 = arith.constant 0 : index
    %c0_50 = arith.constant 0 : index
    %c0_51 = arith.constant 0 : index
    %c0_52 = arith.constant 0 : index
    %66 = vector.load %arg11[%c0_49, %c0_50, %c0_51, %c0_52] : memref<2x4x64x16xf32, #tpu.memory_space<vmem>>, vector<1x4x64x16xf32>
    %67 = vector.shape_cast %66 : vector<1x4x64x16xf32> to vector<4x64x16xf32>
    %c0_53 = arith.constant 0 : index
    %c0_54 = arith.constant 0 : index
    %c0_55 = arith.constant 0 : index
    %c0_56 = arith.constant 0 : index
    %68 = vector.load %arg12[%c0_53, %c0_54, %c0_55, %c0_56] : memref<2x4x64x16xf32, #tpu.memory_space<vmem>>, vector<1x4x64x16xf32>
    %69 = vector.shape_cast %68 : vector<1x4x64x16xf32> to vector<4x64x16xf32>
    %c0_57 = arith.constant 0 : index
    %c0_58 = arith.constant 0 : index
    %c0_59 = arith.constant 0 : index
    %c0_60 = arith.constant 0 : index
    %70 = vector.load %arg13[%c0_57, %c0_58, %c0_59, %c0_60] : memref<2x4x64x16xf32, #tpu.memory_space<vmem>>, vector<1x4x64x16xf32>
    %71 = vector.shape_cast %70 : vector<1x4x64x16xf32> to vector<4x64x16xf32>
    %c0_61 = arith.constant 0 : index
    %c0_62 = arith.constant 0 : index
    %c0_63 = arith.constant 0 : index
    %c0_64 = arith.constant 0 : index
    %72 = vector.load %arg14[%c0_61, %c0_62, %c0_63, %c0_64] : memref<2x4x16x64xf32, #tpu.memory_space<vmem>>, vector<1x4x16x64xf32>
    %73 = vector.shape_cast %72 : vector<1x4x16x64xf32> to vector<4x16x64xf32>
    %c0_65 = arith.constant 0 : index
    %c0_66 = arith.constant 0 : index
    %c0_67 = arith.constant 0 : index
    %74 = vector.load %arg15[%c0_65, %c0_66, %c0_67] : memref<2x1x64xf32, #tpu.memory_space<vmem>>, vector<1x1x64xf32>
    %75 = vector.shape_cast %74 : vector<1x1x64xf32> to vector<1x64xf32>
    %c0_68 = arith.constant 0 : index
    %c0_69 = arith.constant 0 : index
    %c0_70 = arith.constant 0 : index
    %76 = vector.load %arg16[%c0_68, %c0_69, %c0_70] : memref<2x1x64xf32, #tpu.memory_space<vmem>>, vector<1x1x64xf32>
    %77 = vector.shape_cast %76 : vector<1x1x64xf32> to vector<1x64xf32>
    %78 = vector.shape_cast %8 : vector<8x64xf32> to vector<1x8x64xf32>
    %79 = vector.shape_cast %78 : vector<1x8x64xf32> to vector<1x8x64xf32>
    %80 = vector.broadcast %79 : vector<1x8x64xf32> to vector<4x8x64xf32>
    %cst_71 = arith.constant dense<0.000000e+00> : vector<4x8x16xf32>
    %81 = tpu.matmul %80, %67, %cst_71 {dimension_numbers = #tpu.dot_dimension_numbers<[2], [1], [1], [2], [0, 0, 0, 1, 1, 2], [0], [0]>} : vector<4x8x64xf32>, vector<4x64x16xf32>, vector<4x8x16xf32> -> vector<4x8x16xf32>
    %cst_72 = arith.constant dense<0.000000e+00> : vector<4x8x16xf32>
    %82 = tpu.matmul %80, %69, %cst_72 {dimension_numbers = #tpu.dot_dimension_numbers<[2], [1], [1], [2], [0, 0, 0, 1, 1, 2], [0], [0]>} : vector<4x8x64xf32>, vector<4x64x16xf32>, vector<4x8x16xf32> -> vector<4x8x16xf32>
    %cst_73 = arith.constant dense<0.000000e+00> : vector<4x8x16xf32>
    %83 = tpu.matmul %80, %71, %cst_73 {dimension_numbers = #tpu.dot_dimension_numbers<[2], [1], [1], [2], [0, 0, 0, 1, 1, 2], [0], [0]>} : vector<4x8x64xf32>, vector<4x64x16xf32>, vector<4x8x16xf32> -> vector<4x8x16xf32>
    %cst_74 = arith.constant dense<0.000000e+00> : vector<4x8x8xf32>
    %84 = tpu.matmul %81, %82, %cst_74 {dimension_numbers = #tpu.dot_dimension_numbers<[2], [2], [1], [1], [0, 0, 0, 1, 1, 1], [0], [0]>} : vector<4x8x16xf32>, vector<4x8x16xf32>, vector<4x8x8xf32> -> vector<4x8x8xf32>
    %cst_75 = arith.constant dense<0xFF800000> : vector<4x8xf32>
    %85 = vector.multi_reduction <maximumf>, %84, %cst_75 [2] : vector<4x8x8xf32> to vector<4x8xf32>
    %86 = vector.shape_cast %85 : vector<4x8xf32> to vector<4x8x1xf32>
    %87 = vector.broadcast %86 : vector<4x8x1xf32> to vector<4x8x8xf32>
    %88 = arith.subf %84, %87 : vector<4x8x8xf32>
    %89 = math.exp %88 : vector<4x8x8xf32>
    %cst_76 = arith.constant dense<0.000000e+00> : vector<4x8xf32>
    %90 = vector.multi_reduction <add>, %89, %cst_76 [2] : vector<4x8x8xf32> to vector<4x8xf32>
    %91 = vector.shape_cast %90 : vector<4x8xf32> to vector<4x8x1xf32>
    %92 = vector.broadcast %91 : vector<4x8x1xf32> to vector<4x8x8xf32>
    %93 = arith.divf %89, %92 : vector<4x8x8xf32>
    %cst_77 = arith.constant dense<0.000000e+00> : vector<4x8x16xf32>
    %94 = tpu.matmul %93, %83, %cst_77 {dimension_numbers = #tpu.dot_dimension_numbers<[2], [1], [1], [2], [0, 0, 0, 1, 1, 2], [0], [0]>} : vector<4x8x8xf32>, vector<4x8x16xf32>, vector<4x8x16xf32> -> vector<4x8x16xf32>
    %c0_78 = arith.constant 0 : index
    %c0_79 = arith.constant 0 : index
    %c0_80 = arith.constant 0 : index
    %c0_81 = arith.constant 0 : index
    %95 = vector.load %arg44[%c0_78, %c0_79, %c0_80, %c0_81] : memref<1x8x8x8xf32, #tpu.memory_space<vmem>>, vector<1x4x8x8xf32>
    %96 = vector.shape_cast %95 : vector<1x4x8x8xf32> to vector<4x8x8xf32>
    %97 = vector.shape_cast %93 : vector<4x8x8xf32> to vector<1x4x8x8xf32>
    tpu.vector_store %arg44[%c0_78, %c0_79, %c0_80, %c0_81], %97 {strides = array<i32>} : memref<1x8x8x8xf32, #tpu.memory_space<vmem>>, vector<1x4x8x8xf32>,
    %cst_82 = arith.constant dense<0.000000e+00> : vector<4x8x64xf32>
    %98 = tpu.matmul %94, %73, %cst_82 {dimension_numbers = #tpu.dot_dimension_numbers<[2], [1], [1], [2], [0, 0, 0, 1, 1, 2], [0], [0]>} : vector<4x8x16xf32>, vector<4x16x64xf32>, vector<4x8x64xf32> -> vector<4x8x64xf32>
    %cst_83 = arith.constant dense<0.000000e+00> : vector<8x64xf32>
    %99 = vector.multi_reduction <add>, %98, %cst_83 [0] : vector<4x8x64xf32> to vector<8x64xf32>
    %100 = arith.addf %99, %8 : vector<8x64xf32>
    %cst_84 = arith.constant dense<0.000000e+00> : vector<8xf32>
    %101 = vector.multi_reduction <add>, %100, %cst_84 [1] : vector<8x64xf32> to vector<8xf32>
    %102 = vector.shape_cast %101 : vector<8xf32> to vector<8x1xf32>
    %cst_85 = arith.constant 6.400000e+01 : f32
    %103 = vector.broadcast %cst_85 : f32 to vector<8x1xf32>
    %104 = arith.divf %102, %103 : vector<8x1xf32>
    %105 = vector.broadcast %104 : vector<8x1xf32> to vector<8x64xf32>
    %106 = arith.subf %100, %105 : vector<8x64xf32>
    %107 = arith.mulf %106, %106 : vector<8x64xf32>
    %cst_86 = arith.constant dense<0.000000e+00> : vector<8xf32>
    %108 = vector.multi_reduction <add>, %107, %cst_86 [1] : vector<8x64xf32> to vector<8xf32>
    %109 = vector.shape_cast %108 : vector<8xf32> to vector<8x1xf32>
    %cst_87 = arith.constant 6.400000e+01 : f32
    %110 = vector.broadcast %cst_87 : f32 to vector<8x1xf32>
    %111 = arith.divf %109, %110 : vector<8x1xf32>
    %112 = vector.broadcast %104 : vector<8x1xf32> to vector<8x64xf32>
    %113 = arith.subf %100, %112 : vector<8x64xf32>
    %cst_88 = arith.constant 9.99999997E-7 : f32
    %114 = vector.broadcast %cst_88 : f32 to vector<8x1xf32>
    %115 = arith.addf %111, %114 : vector<8x1xf32>
    %116 = math.rsqrt %115 : vector<8x1xf32>
    %117 = vector.broadcast %116 : vector<8x1xf32> to vector<8x64xf32>
    %118 = arith.mulf %113, %117 : vector<8x64xf32>
    %119 = vector.broadcast %75 : vector<1x64xf32> to vector<8x64xf32>
    %120 = arith.mulf %118, %119 : vector<8x64xf32>
    %121 = vector.broadcast %77 : vector<1x64xf32> to vector<8x64xf32>
    %122 = arith.addf %120, %121 : vector<8x64xf32>
    %c0_89 = arith.constant 0 : index
    %c0_90 = arith.constant 0 : index
    %c0_91 = arith.constant 0 : index
    %c0_92 = arith.constant 0 : index
    %123 = vector.load %arg17[%c0_89, %c0_90, %c0_91, %c0_92] : memref<2x4x64x16xf32, #tpu.memory_space<vmem>>, vector<1x4x64x16xf32>
    %124 = vector.shape_cast %123 : vector<1x4x64x16xf32> to vector<4x64x16xf32>
    %c0_93 = arith.constant 0 : index
    %c0_94 = arith.constant 0 : index
    %c0_95 = arith.constant 0 : index
    %c0_96 = arith.constant 0 : index
    %125 = vector.load %arg18[%c0_93, %c0_94, %c0_95, %c0_96] : memref<2x4x64x16xf32, #tpu.memory_space<vmem>>, vector<1x4x64x16xf32>
    %126 = vector.shape_cast %125 : vector<1x4x64x16xf32> to vector<4x64x16xf32>
    %c0_97 = arith.constant 0 : index
    %c0_98 = arith.constant 0 : index
    %c0_99 = arith.constant 0 : index
    %c0_100 = arith.constant 0 : index
    %127 = vector.load %arg19[%c0_97, %c0_98, %c0_99, %c0_100] : memref<2x4x64x16xf32, #tpu.memory_space<vmem>>, vector<1x4x64x16xf32>
    %128 = vector.shape_cast %127 : vector<1x4x64x16xf32> to vector<4x64x16xf32>
    %c0_101 = arith.constant 0 : index
    %c0_102 = arith.constant 0 : index
    %c0_103 = arith.constant 0 : index
    %c0_104 = arith.constant 0 : index
    %129 = vector.load %arg20[%c0_101, %c0_102, %c0_103, %c0_104] : memref<2x4x16x64xf32, #tpu.memory_space<vmem>>, vector<1x4x16x64xf32>
    %130 = vector.shape_cast %129 : vector<1x4x16x64xf32> to vector<4x16x64xf32>
    %c0_105 = arith.constant 0 : index
    %c0_106 = arith.constant 0 : index
    %c0_107 = arith.constant 0 : index
    %c0_108 = arith.constant 0 : index
    %131 = vector.load %arg21[%c0_105, %c0_106, %c0_107, %c0_108] : memref<2x4x64x16xf32, #tpu.memory_space<vmem>>, vector<1x4x64x16xf32>
    %132 = vector.shape_cast %131 : vector<1x4x64x16xf32> to vector<4x64x16xf32>
    %c0_109 = arith.constant 0 : index
    %c0_110 = arith.constant 0 : index
    %c0_111 = arith.constant 0 : index
    %c0_112 = arith.constant 0 : index
    %133 = vector.load %arg22[%c0_109, %c0_110, %c0_111, %c0_112] : memref<2x4x64x16xf32, #tpu.memory_space<vmem>>, vector<1x4x64x16xf32>
    %134 = vector.shape_cast %133 : vector<1x4x64x16xf32> to vector<4x64x16xf32>
    %c0_113 = arith.constant 0 : index
    %c0_114 = arith.constant 0 : index
    %c0_115 = arith.constant 0 : index
    %c0_116 = arith.constant 0 : index
    %135 = vector.load %arg23[%c0_113, %c0_114, %c0_115, %c0_116] : memref<2x4x64x16xf32, #tpu.memory_space<vmem>>, vector<1x4x64x16xf32>
    %136 = vector.shape_cast %135 : vector<1x4x64x16xf32> to vector<4x64x16xf32>
    %c0_117 = arith.constant 0 : index
    %c0_118 = arith.constant 0 : index
    %c0_119 = arith.constant 0 : index
    %c0_120 = arith.constant 0 : index
    %137 = vector.load %arg24[%c0_117, %c0_118, %c0_119, %c0_120] : memref<2x4x16x64xf32, #tpu.memory_space<vmem>>, vector<1x4x16x64xf32>
    %138 = vector.shape_cast %137 : vector<1x4x16x64xf32> to vector<4x16x64xf32>
    %c0_121 = arith.constant 0 : index
    %c0_122 = arith.constant 0 : index
    %c0_123 = arith.constant 0 : index
    %139 = vector.load %arg25[%c0_121, %c0_122, %c0_123] : memref<2x1x64xf32, #tpu.memory_space<vmem>>, vector<1x1x64xf32>
    %140 = vector.shape_cast %139 : vector<1x1x64xf32> to vector<1x64xf32>
    %c0_124 = arith.constant 0 : index
    %c0_125 = arith.constant 0 : index
    %c0_126 = arith.constant 0 : index
    %141 = vector.load %arg26[%c0_124, %c0_125, %c0_126] : memref<2x1x64xf32, #tpu.memory_space<vmem>>, vector<1x1x64xf32>
    %142 = vector.shape_cast %141 : vector<1x1x64xf32> to vector<1x64xf32>
    %c0_127 = arith.constant 0 : index
    %c0_128 = arith.constant 0 : index
    %c0_129 = arith.constant 0 : index
    %143 = vector.load %arg27[%c0_127, %c0_128, %c0_129] : memref<2x1x64xf32, #tpu.memory_space<vmem>>, vector<1x1x64xf32>
    %144 = vector.shape_cast %143 : vector<1x1x64xf32> to vector<1x64xf32>
    %c0_130 = arith.constant 0 : index
    %c0_131 = arith.constant 0 : index
    %c0_132 = arith.constant 0 : index
    %145 = vector.load %arg28[%c0_130, %c0_131, %c0_132] : memref<2x1x64xf32, #tpu.memory_space<vmem>>, vector<1x1x64xf32>
    %146 = vector.shape_cast %145 : vector<1x1x64xf32> to vector<1x64xf32>
    %147 = vector.shape_cast %65 : vector<16x64xf32> to vector<1x16x64xf32>
    %148 = vector.shape_cast %147 : vector<1x16x64xf32> to vector<1x16x64xf32>
    %149 = vector.broadcast %148 : vector<1x16x64xf32> to vector<4x16x64xf32>
    %cst_133 = arith.constant dense<0.000000e+00> : vector<4x16x16xf32>
    %150 = tpu.matmul %149, %124, %cst_133 {dimension_numbers = #tpu.dot_dimension_numbers<[2], [1], [1], [2], [0, 0, 0, 1, 1, 2], [0], [0]>} : vector<4x16x64xf32>, vector<4x64x16xf32>, vector<4x16x16xf32> -> vector<4x16x16xf32>
    %cst_134 = arith.constant dense<0.000000e+00> : vector<4x16x16xf32>
    %151 = tpu.matmul %149, %126, %cst_134 {dimension_numbers = #tpu.dot_dimension_numbers<[2], [1], [1], [2], [0, 0, 0, 1, 1, 2], [0], [0]>} : vector<4x16x64xf32>, vector<4x64x16xf32>, vector<4x16x16xf32> -> vector<4x16x16xf32>
    %cst_135 = arith.constant dense<0.000000e+00> : vector<4x16x16xf32>
    %152 = tpu.matmul %149, %128, %cst_135 {dimension_numbers = #tpu.dot_dimension_numbers<[2], [1], [1], [2], [0, 0, 0, 1, 1, 2], [0], [0]>} : vector<4x16x64xf32>, vector<4x64x16xf32>, vector<4x16x16xf32> -> vector<4x16x16xf32>
    %153 = vector.shape_cast %122 : vector<8x64xf32> to vector<1x8x64xf32>
    %154 = vector.shape_cast %153 : vector<1x8x64xf32> to vector<1x8x64xf32>
    %155 = vector.broadcast %154 : vector<1x8x64xf32> to vector<4x8x64xf32>
    %cst_136 = arith.constant dense<0.000000e+00> : vector<4x8x16xf32>
    %156 = tpu.matmul %155, %132, %cst_136 {dimension_numbers = #tpu.dot_dimension_numbers<[2], [1], [1], [2], [0, 0, 0, 1, 1, 2], [0], [0]>} : vector<4x8x64xf32>, vector<4x64x16xf32>, vector<4x8x16xf32> -> vector<4x8x16xf32>
    %cst_137 = arith.constant dense<0.000000e+00> : vector<4x8x16xf32>
    %157 = tpu.matmul %155, %134, %cst_137 {dimension_numbers = #tpu.dot_dimension_numbers<[2], [1], [1], [2], [0, 0, 0, 1, 1, 2], [0], [0]>} : vector<4x8x64xf32>, vector<4x64x16xf32>, vector<4x8x16xf32> -> vector<4x8x16xf32>
    %cst_138 = arith.constant dense<0.000000e+00> : vector<4x8x16xf32>
    %158 = tpu.matmul %155, %136, %cst_138 {dimension_numbers = #tpu.dot_dimension_numbers<[2], [1], [1], [2], [0, 0, 0, 1, 1, 2], [0], [0]>} : vector<4x8x64xf32>, vector<4x64x16xf32>, vector<4x8x16xf32> -> vector<4x8x16xf32>
    %cst_139 = arith.constant dense<0.000000e+00> : vector<4x16x8xf32>
    %159 = tpu.matmul %150, %157, %cst_139 {dimension_numbers = #tpu.dot_dimension_numbers<[2], [2], [1], [1], [0, 0, 0, 1, 1, 1], [0], [0]>} : vector<4x16x16xf32>, vector<4x8x16xf32>, vector<4x16x8xf32> -> vector<4x16x8xf32>
    %cst_140 = arith.constant dense<0xFF800000> : vector<4x16xf32>
    %160 = vector.multi_reduction <maximumf>, %159, %cst_140 [2] : vector<4x16x8xf32> to vector<4x16xf32>
    %161 = vector.shape_cast %160 : vector<4x16xf32> to vector<4x16x1xf32>
    %162 = vector.broadcast %161 : vector<4x16x1xf32> to vector<4x16x8xf32>
    %163 = arith.subf %159, %162 : vector<4x16x8xf32>
    %164 = math.exp %163 : vector<4x16x8xf32>
    %cst_141 = arith.constant dense<0.000000e+00> : vector<4x16xf32>
    %165 = vector.multi_reduction <add>, %164, %cst_141 [2] : vector<4x16x8xf32> to vector<4x16xf32>
    %166 = vector.shape_cast %165 : vector<4x16xf32> to vector<4x16x1xf32>
    %167 = vector.broadcast %166 : vector<4x16x1xf32> to vector<4x16x8xf32>
    %168 = arith.divf %164, %167 : vector<4x16x8xf32>
    %cst_142 = arith.constant dense<0.000000e+00> : vector<4x16x16xf32>
    %169 = tpu.matmul %168, %158, %cst_142 {dimension_numbers = #tpu.dot_dimension_numbers<[2], [1], [1], [2], [0, 0, 0, 1, 1, 2], [0], [0]>} : vector<4x16x8xf32>, vector<4x8x16xf32>, vector<4x16x16xf32> -> vector<4x16x16xf32>
    %cst_143 = arith.constant dense<0.000000e+00> : vector<4x8x16xf32>
    %170 = tpu.matmul %156, %151, %cst_143 {dimension_numbers = #tpu.dot_dimension_numbers<[2], [2], [1], [1], [0, 0, 0, 1, 1, 1], [0], [0]>} : vector<4x8x16xf32>, vector<4x16x16xf32>, vector<4x8x16xf32> -> vector<4x8x16xf32>
    %cst_144 = arith.constant dense<0xFF800000> : vector<4x8xf32>
    %171 = vector.multi_reduction <maximumf>, %170, %cst_144 [2] : vector<4x8x16xf32> to vector<4x8xf32>
    %172 = vector.shape_cast %171 : vector<4x8xf32> to vector<4x8x1xf32>
    %173 = vector.broadcast %172 : vector<4x8x1xf32> to vector<4x8x16xf32>
    %174 = arith.subf %170, %173 : vector<4x8x16xf32>
    %175 = math.exp %174 : vector<4x8x16xf32>
    %cst_145 = arith.constant dense<0.000000e+00> : vector<4x8xf32>
    %176 = vector.multi_reduction <add>, %175, %cst_145 [2] : vector<4x8x16xf32> to vector<4x8xf32>
    %177 = vector.shape_cast %176 : vector<4x8xf32> to vector<4x8x1xf32>
    %178 = vector.broadcast %177 : vector<4x8x1xf32> to vector<4x8x16xf32>
    %179 = arith.divf %175, %178 : vector<4x8x16xf32>
    %cst_146 = arith.constant dense<0.000000e+00> : vector<4x8x16xf32>
    %180 = tpu.matmul %179, %152, %cst_146 {dimension_numbers = #tpu.dot_dimension_numbers<[2], [1], [1], [2], [0, 0, 0, 1, 1, 2], [0], [0]>} : vector<4x8x16xf32>, vector<4x16x16xf32>, vector<4x8x16xf32> -> vector<4x8x16xf32>
    %c0_147 = arith.constant 0 : index
    %c0_148 = arith.constant 0 : index
    %c0_149 = arith.constant 0 : index
    %c0_150 = arith.constant 0 : index
    %181 = vector.load %arg45[%c0_147, %c0_148, %c0_149, %c0_150] : memref<1x8x8x16xf32, #tpu.memory_space<vmem>>, vector<1x4x8x16xf32>
    %182 = vector.shape_cast %181 : vector<1x4x8x16xf32> to vector<4x8x16xf32>
    %183 = vector.shape_cast %179 : vector<4x8x16xf32> to vector<1x4x8x16xf32>
    tpu.vector_store %arg45[%c0_147, %c0_148, %c0_149, %c0_150], %183 {strides = array<i32>} : memref<1x8x8x16xf32, #tpu.memory_space<vmem>>, vector<1x4x8x16xf32>,
    %cst_151 = arith.constant dense<0.000000e+00> : vector<4x16x64xf32>
    %184 = tpu.matmul %169, %130, %cst_151 {dimension_numbers = #tpu.dot_dimension_numbers<[2], [1], [1], [2], [0, 0, 0, 1, 1, 2], [0], [0]>} : vector<4x16x16xf32>, vector<4x16x64xf32>, vector<4x16x64xf32> -> vector<4x16x64xf32>
    %cst_152 = arith.constant dense<0.000000e+00> : vector<16x64xf32>
    %185 = vector.multi_reduction <add>, %184, %cst_152 [0] : vector<4x16x64xf32> to vector<16x64xf32>
    %186 = arith.addf %185, %65 : vector<16x64xf32>
    %cst_153 = arith.constant dense<0.000000e+00> : vector<16xf32>
    %187 = vector.multi_reduction <add>, %186, %cst_153 [1] : vector<16x64xf32> to vector<16xf32>
    %188 = vector.shape_cast %187 : vector<16xf32> to vector<16x1xf32>
    %cst_154 = arith.constant 6.400000e+01 : f32
    %189 = vector.broadcast %cst_154 : f32 to vector<16x1xf32>
    %190 = arith.divf %188, %189 : vector<16x1xf32>
    %191 = vector.broadcast %190 : vector<16x1xf32> to vector<16x64xf32>
    %192 = arith.subf %186, %191 : vector<16x64xf32>
    %193 = arith.mulf %192, %192 : vector<16x64xf32>
    %cst_155 = arith.constant dense<0.000000e+00> : vector<16xf32>
    %194 = vector.multi_reduction <add>, %193, %cst_155 [1] : vector<16x64xf32> to vector<16xf32>
    %195 = vector.shape_cast %194 : vector<16xf32> to vector<16x1xf32>
    %cst_156 = arith.constant 6.400000e+01 : f32
    %196 = vector.broadcast %cst_156 : f32 to vector<16x1xf32>
    %197 = arith.divf %195, %196 : vector<16x1xf32>
    %198 = vector.broadcast %190 : vector<16x1xf32> to vector<16x64xf32>
    %199 = arith.subf %186, %198 : vector<16x64xf32>
    %cst_157 = arith.constant 9.99999997E-7 : f32
    %200 = vector.broadcast %cst_157 : f32 to vector<16x1xf32>
    %201 = arith.addf %197, %200 : vector<16x1xf32>
    %202 = math.rsqrt %201 : vector<16x1xf32>
    %203 = vector.broadcast %202 : vector<16x1xf32> to vector<16x64xf32>
    %204 = arith.mulf %199, %203 : vector<16x64xf32>
    %205 = vector.broadcast %140 : vector<1x64xf32> to vector<16x64xf32>
    %206 = arith.mulf %204, %205 : vector<16x64xf32>
    %207 = vector.broadcast %142 : vector<1x64xf32> to vector<16x64xf32>
    %208 = arith.addf %206, %207 : vector<16x64xf32>
    %cst_158 = arith.constant dense<0.000000e+00> : vector<4x8x64xf32>
    %209 = tpu.matmul %180, %138, %cst_158 {dimension_numbers = #tpu.dot_dimension_numbers<[2], [1], [1], [2], [0, 0, 0, 1, 1, 2], [0], [0]>} : vector<4x8x16xf32>, vector<4x16x64xf32>, vector<4x8x64xf32> -> vector<4x8x64xf32>
    %cst_159 = arith.constant dense<0.000000e+00> : vector<8x64xf32>
    %210 = vector.multi_reduction <add>, %209, %cst_159 [0] : vector<4x8x64xf32> to vector<8x64xf32>
    %211 = arith.addf %210, %122 : vector<8x64xf32>
    %cst_160 = arith.constant dense<0.000000e+00> : vector<8xf32>
    %212 = vector.multi_reduction <add>, %211, %cst_160 [1] : vector<8x64xf32> to vector<8xf32>
    %213 = vector.shape_cast %212 : vector<8xf32> to vector<8x1xf32>
    %cst_161 = arith.constant 6.400000e+01 : f32
    %214 = vector.broadcast %cst_161 : f32 to vector<8x1xf32>
    %215 = arith.divf %213, %214 : vector<8x1xf32>
    %216 = vector.broadcast %215 : vector<8x1xf32> to vector<8x64xf32>
    %217 = arith.subf %211, %216 : vector<8x64xf32>
    %218 = arith.mulf %217, %217 : vector<8x64xf32>
    %cst_162 = arith.constant dense<0.000000e+00> : vector<8xf32>
    %219 = vector.multi_reduction <add>, %218, %cst_162 [1] : vector<8x64xf32> to vector<8xf32>
    %220 = vector.shape_cast %219 : vector<8xf32> to vector<8x1xf32>
    %cst_163 = arith.constant 6.400000e+01 : f32
    %221 = vector.broadcast %cst_163 : f32 to vector<8x1xf32>
    %222 = arith.divf %220, %221 : vector<8x1xf32>
    %223 = vector.broadcast %215 : vector<8x1xf32> to vector<8x64xf32>
    %224 = arith.subf %211, %223 : vector<8x64xf32>
    %cst_164 = arith.constant 9.99999997E-7 : f32
    %225 = vector.broadcast %cst_164 : f32 to vector<8x1xf32>
    %226 = arith.addf %222, %225 : vector<8x1xf32>
    %227 = math.rsqrt %226 : vector<8x1xf32>
    %228 = vector.broadcast %227 : vector<8x1xf32> to vector<8x64xf32>
    %229 = arith.mulf %224, %228 : vector<8x64xf32>
    %230 = vector.broadcast %144 : vector<1x64xf32> to vector<8x64xf32>
    %231 = arith.mulf %229, %230 : vector<8x64xf32>
    %232 = vector.broadcast %146 : vector<1x64xf32> to vector<8x64xf32>
    %233 = arith.addf %231, %232 : vector<8x64xf32>
    %c0_165 = arith.constant 0 : index
    %c0_166 = arith.constant 0 : index
    %c0_167 = arith.constant 0 : index
    %234 = vector.load %arg29[%c0_165, %c0_166, %c0_167] : memref<2x64x128xf32, #tpu.memory_space<vmem>>, vector<1x64x128xf32>
    %235 = vector.shape_cast %234 : vector<1x64x128xf32> to vector<64x128xf32>
    %c0_168 = arith.constant 0 : index
    %c0_169 = arith.constant 0 : index
    %c0_170 = arith.constant 0 : index
    %236 = vector.load %arg30[%c0_168, %c0_169, %c0_170] : memref<2x1x128xf32, #tpu.memory_space<vmem>>, vector<1x1x128xf32>
    %237 = vector.shape_cast %236 : vector<1x1x128xf32> to vector<1x128xf32>
    %c0_171 = arith.constant 0 : index
    %c0_172 = arith.constant 0 : index
    %c0_173 = arith.constant 0 : index
    %238 = vector.load %arg31[%c0_171, %c0_172, %c0_173] : memref<2x128x64xf32, #tpu.memory_space<vmem>>, vector<1x128x64xf32>
    %239 = vector.shape_cast %238 : vector<1x128x64xf32> to vector<128x64xf32>
    %c0_174 = arith.constant 0 : index
    %c0_175 = arith.constant 0 : index
    %c0_176 = arith.constant 0 : index
    %240 = vector.load %arg32[%c0_174, %c0_175, %c0_176] : memref<2x1x64xf32, #tpu.memory_space<vmem>>, vector<1x1x64xf32>
    %241 = vector.shape_cast %240 : vector<1x1x64xf32> to vector<1x64xf32>
    %c0_177 = arith.constant 0 : index
    %c0_178 = arith.constant 0 : index
    %c0_179 = arith.constant 0 : index
    %242 = vector.load %arg33[%c0_177, %c0_178, %c0_179] : memref<2x1x64xf32, #tpu.memory_space<vmem>>, vector<1x1x64xf32>
    %243 = vector.shape_cast %242 : vector<1x1x64xf32> to vector<1x64xf32>
    %c0_180 = arith.constant 0 : index
    %c0_181 = arith.constant 0 : index
    %c0_182 = arith.constant 0 : index
    %244 = vector.load %arg34[%c0_180, %c0_181, %c0_182] : memref<2x1x64xf32, #tpu.memory_space<vmem>>, vector<1x1x64xf32>
    %245 = vector.shape_cast %244 : vector<1x1x64xf32> to vector<1x64xf32>
    %cst_183 = arith.constant dense<0.000000e+00> : vector<16x128xf32>
    %246 = tpu.matmul %208, %235, %cst_183 {dimension_numbers = #tpu.dot_dimension_numbers<[1], [0], [0], [1], [0, 0, 1, 1], [], []>} : vector<16x64xf32>, vector<64x128xf32>, vector<16x128xf32> -> vector<16x128xf32>
    %247 = vector.broadcast %237 : vector<1x128xf32> to vector<16x128xf32>
    %248 = arith.addf %246, %247 : vector<16x128xf32>
    %cst_184 = arith.constant 0.000000e+00 : f32
    %249 = vector.broadcast %cst_184 : f32 to vector<16x128xf32>
    %250 = arith.maximumf %248, %249 : vector<16x128xf32>
    %cst_185 = arith.constant dense<0.000000e+00> : vector<16x64xf32>
    %251 = tpu.matmul %250, %239, %cst_185 {dimension_numbers = #tpu.dot_dimension_numbers<[1], [0], [0], [1], [0, 0, 1, 1], [], []>} : vector<16x128xf32>, vector<128x64xf32>, vector<16x64xf32> -> vector<16x64xf32>
    %252 = vector.broadcast %241 : vector<1x64xf32> to vector<16x64xf32>
    %253 = arith.addf %251, %252 : vector<16x64xf32>
    %254 = arith.addf %253, %208 : vector<16x64xf32>
    %cst_186 = arith.constant dense<0.000000e+00> : vector<16xf32>
    %255 = vector.multi_reduction <add>, %254, %cst_186 [1] : vector<16x64xf32> to vector<16xf32>
    %256 = vector.shape_cast %255 : vector<16xf32> to vector<16x1xf32>
    %cst_187 = arith.constant 6.400000e+01 : f32
    %257 = vector.broadcast %cst_187 : f32 to vector<16x1xf32>
    %258 = arith.divf %256, %257 : vector<16x1xf32>
    %259 = vector.broadcast %258 : vector<16x1xf32> to vector<16x64xf32>
    %260 = arith.subf %254, %259 : vector<16x64xf32>
    %261 = arith.mulf %260, %260 : vector<16x64xf32>
    %cst_188 = arith.constant dense<0.000000e+00> : vector<16xf32>
    %262 = vector.multi_reduction <add>, %261, %cst_188 [1] : vector<16x64xf32> to vector<16xf32>
    %263 = vector.shape_cast %262 : vector<16xf32> to vector<16x1xf32>
    %cst_189 = arith.constant 6.400000e+01 : f32
    %264 = vector.broadcast %cst_189 : f32 to vector<16x1xf32>
    %265 = arith.divf %263, %264 : vector<16x1xf32>
    %266 = vector.broadcast %258 : vector<16x1xf32> to vector<16x64xf32>
    %267 = arith.subf %254, %266 : vector<16x64xf32>
    %cst_190 = arith.constant 9.99999997E-7 : f32
    %268 = vector.broadcast %cst_190 : f32 to vector<16x1xf32>
    %269 = arith.addf %265, %268 : vector<16x1xf32>
    %270 = math.rsqrt %269 : vector<16x1xf32>
    %271 = vector.broadcast %270 : vector<16x1xf32> to vector<16x64xf32>
    %272 = arith.mulf %267, %271 : vector<16x64xf32>
    %273 = vector.broadcast %243 : vector<1x64xf32> to vector<16x64xf32>
    %274 = arith.mulf %272, %273 : vector<16x64xf32>
    %275 = vector.broadcast %245 : vector<1x64xf32> to vector<16x64xf32>
    %276 = arith.addf %274, %275 : vector<16x64xf32>
    %c0_191 = arith.constant 0 : index
    %c0_192 = arith.constant 0 : index
    %c0_193 = arith.constant 0 : index
    %277 = vector.load %arg35[%c0_191, %c0_192, %c0_193] : memref<2x64x128xf32, #tpu.memory_space<vmem>>, vector<1x64x128xf32>
    %278 = vector.shape_cast %277 : vector<1x64x128xf32> to vector<64x128xf32>
    %c0_194 = arith.constant 0 : index
    %c0_195 = arith.constant 0 : index
    %c0_196 = arith.constant 0 : index
    %279 = vector.load %arg36[%c0_194, %c0_195, %c0_196] : memref<2x1x128xf32, #tpu.memory_space<vmem>>, vector<1x1x128xf32>
    %280 = vector.shape_cast %279 : vector<1x1x128xf32> to vector<1x128xf32>
    %c0_197 = arith.constant 0 : index
    %c0_198 = arith.constant 0 : index
    %c0_199 = arith.constant 0 : index
    %281 = vector.load %arg37[%c0_197, %c0_198, %c0_199] : memref<2x128x64xf32, #tpu.memory_space<vmem>>, vector<1x128x64xf32>
    %282 = vector.shape_cast %281 : vector<1x128x64xf32> to vector<128x64xf32>
    %c0_200 = arith.constant 0 : index
    %c0_201 = arith.constant 0 : index
    %c0_202 = arith.constant 0 : index
    %283 = vector.load %arg38[%c0_200, %c0_201, %c0_202] : memref<2x1x64xf32, #tpu.memory_space<vmem>>, vector<1x1x64xf32>
    %284 = vector.shape_cast %283 : vector<1x1x64xf32> to vector<1x64xf32>
    %c0_203 = arith.constant 0 : index
    %c0_204 = arith.constant 0 : index
    %c0_205 = arith.constant 0 : index
    %285 = vector.load %arg39[%c0_203, %c0_204, %c0_205] : memref<2x1x64xf32, #tpu.memory_space<vmem>>, vector<1x1x64xf32>
    %286 = vector.shape_cast %285 : vector<1x1x64xf32> to vector<1x64xf32>
    %c0_206 = arith.constant 0 : index
    %c0_207 = arith.constant 0 : index
    %c0_208 = arith.constant 0 : index
    %287 = vector.load %arg40[%c0_206, %c0_207, %c0_208] : memref<2x1x64xf32, #tpu.memory_space<vmem>>, vector<1x1x64xf32>
    %288 = vector.shape_cast %287 : vector<1x1x64xf32> to vector<1x64xf32>
    %cst_209 = arith.constant dense<0.000000e+00> : vector<8x128xf32>
    %289 = tpu.matmul %233, %278, %cst_209 {dimension_numbers = #tpu.dot_dimension_numbers<[1], [0], [0], [1], [0, 0, 1, 1], [], []>} : vector<8x64xf32>, vector<64x128xf32>, vector<8x128xf32> -> vector<8x128xf32>
    %290 = vector.broadcast %280 : vector<1x128xf32> to vector<8x128xf32>
    %291 = arith.addf %289, %290 : vector<8x128xf32>
    %cst_210 = arith.constant 0.000000e+00 : f32
    %292 = vector.broadcast %cst_210 : f32 to vector<8x128xf32>
    %293 = arith.maximumf %291, %292 : vector<8x128xf32>
    %cst_211 = arith.constant dense<0.000000e+00> : vector<8x64xf32>
    %294 = tpu.matmul %293, %282, %cst_211 {dimension_numbers = #tpu.dot_dimension_numbers<[1], [0], [0], [1], [0, 0, 1, 1], [], []>} : vector<8x128xf32>, vector<128x64xf32>, vector<8x64xf32> -> vector<8x64xf32>
    %295 = vector.broadcast %284 : vector<1x64xf32> to vector<8x64xf32>
    %296 = arith.addf %294, %295 : vector<8x64xf32>
    %297 = arith.addf %296, %233 : vector<8x64xf32>
    %cst_212 = arith.constant dense<0.000000e+00> : vector<8xf32>
    %298 = vector.multi_reduction <add>, %297, %cst_212 [1] : vector<8x64xf32> to vector<8xf32>
    %299 = vector.shape_cast %298 : vector<8xf32> to vector<8x1xf32>
    %cst_213 = arith.constant 6.400000e+01 : f32
    %300 = vector.broadcast %cst_213 : f32 to vector<8x1xf32>
    %301 = arith.divf %299, %300 : vector<8x1xf32>
    %302 = vector.broadcast %301 : vector<8x1xf32> to vector<8x64xf32>
    %303 = arith.subf %297, %302 : vector<8x64xf32>
    %304 = arith.mulf %303, %303 : vector<8x64xf32>
    %cst_214 = arith.constant dense<0.000000e+00> : vector<8xf32>
    %305 = vector.multi_reduction <add>, %304, %cst_214 [1] : vector<8x64xf32> to vector<8xf32>
    %306 = vector.shape_cast %305 : vector<8xf32> to vector<8x1xf32>
    %cst_215 = arith.constant 6.400000e+01 : f32
    %307 = vector.broadcast %cst_215 : f32 to vector<8x1xf32>
    %308 = arith.divf %306, %307 : vector<8x1xf32>
    %309 = vector.broadcast %301 : vector<8x1xf32> to vector<8x64xf32>
    %310 = arith.subf %297, %309 : vector<8x64xf32>
    %cst_216 = arith.constant 9.99999997E-7 : f32
    %311 = vector.broadcast %cst_216 : f32 to vector<8x1xf32>
    %312 = arith.addf %308, %311 : vector<8x1xf32>
    %313 = math.rsqrt %312 : vector<8x1xf32>
    %314 = vector.broadcast %313 : vector<8x1xf32> to vector<8x64xf32>
    %315 = arith.mulf %310, %314 : vector<8x64xf32>
    %316 = vector.broadcast %286 : vector<1x64xf32> to vector<8x64xf32>
    %317 = arith.mulf %315, %316 : vector<8x64xf32>
    %318 = vector.broadcast %288 : vector<1x64xf32> to vector<8x64xf32>
    %319 = arith.addf %317, %318 : vector<8x64xf32>
    %c1 = arith.constant 1 : index
    %c0_217 = arith.constant 0 : index
    %c0_218 = arith.constant 0 : index
    %c0_219 = arith.constant 0 : index
    %320 = vector.load %arg5[%c1, %c0_217, %c0_218, %c0_219] : memref<2x4x64x16xf32, #tpu.memory_space<vmem>>, vector<1x4x64x16xf32>
    %321 = vector.shape_cast %320 : vector<1x4x64x16xf32> to vector<4x64x16xf32>
    %c1_220 = arith.constant 1 : index
    %c0_221 = arith.constant 0 : index
    %c0_222 = arith.constant 0 : index
    %c0_223 = arith.constant 0 : index
    %322 = vector.load %arg6[%c1_220, %c0_221, %c0_222, %c0_223] : memref<2x4x64x16xf32, #tpu.memory_space<vmem>>, vector<1x4x64x16xf32>
    %323 = vector.shape_cast %322 : vector<1x4x64x16xf32> to vector<4x64x16xf32>
    %c1_224 = arith.constant 1 : index
    %c0_225 = arith.constant 0 : index
    %c0_226 = arith.constant 0 : index
    %c0_227 = arith.constant 0 : index
    %324 = vector.load %arg7[%c1_224, %c0_225, %c0_226, %c0_227] : memref<2x4x64x16xf32, #tpu.memory_space<vmem>>, vector<1x4x64x16xf32>
    %325 = vector.shape_cast %324 : vector<1x4x64x16xf32> to vector<4x64x16xf32>
    %c1_228 = arith.constant 1 : index
    %c0_229 = arith.constant 0 : index
    %c0_230 = arith.constant 0 : index
    %c0_231 = arith.constant 0 : index
    %326 = vector.load %arg8[%c1_228, %c0_229, %c0_230, %c0_231] : memref<2x4x16x64xf32, #tpu.memory_space<vmem>>, vector<1x4x16x64xf32>
    %327 = vector.shape_cast %326 : vector<1x4x16x64xf32> to vector<4x16x64xf32>
    %c1_232 = arith.constant 1 : index
    %c0_233 = arith.constant 0 : index
    %c0_234 = arith.constant 0 : index
    %328 = vector.load %arg9[%c1_232, %c0_233, %c0_234] : memref<2x1x64xf32, #tpu.memory_space<vmem>>, vector<1x1x64xf32>
    %329 = vector.shape_cast %328 : vector<1x1x64xf32> to vector<1x64xf32>
    %c1_235 = arith.constant 1 : index
    %c0_236 = arith.constant 0 : index
    %c0_237 = arith.constant 0 : index
    %330 = vector.load %arg10[%c1_235, %c0_236, %c0_237] : memref<2x1x64xf32, #tpu.memory_space<vmem>>, vector<1x1x64xf32>
    %331 = vector.shape_cast %330 : vector<1x1x64xf32> to vector<1x64xf32>
    %332 = vector.shape_cast %276 : vector<16x64xf32> to vector<1x16x64xf32>
    %333 = vector.shape_cast %332 : vector<1x16x64xf32> to vector<1x16x64xf32>
    %334 = vector.broadcast %333 : vector<1x16x64xf32> to vector<4x16x64xf32>
    %cst_238 = arith.constant dense<0.000000e+00> : vector<4x16x16xf32>
    %335 = tpu.matmul %334, %321, %cst_238 {dimension_numbers = #tpu.dot_dimension_numbers<[2], [1], [1], [2], [0, 0, 0, 1, 1, 2], [0], [0]>} : vector<4x16x64xf32>, vector<4x64x16xf32>, vector<4x16x16xf32> -> vector<4x16x16xf32>
    %cst_239 = arith.constant dense<0.000000e+00> : vector<4x16x16xf32>
    %336 = tpu.matmul %334, %323, %cst_239 {dimension_numbers = #tpu.dot_dimension_numbers<[2], [1], [1], [2], [0, 0, 0, 1, 1, 2], [0], [0]>} : vector<4x16x64xf32>, vector<4x64x16xf32>, vector<4x16x16xf32> -> vector<4x16x16xf32>
    %cst_240 = arith.constant dense<0.000000e+00> : vector<4x16x16xf32>
    %337 = tpu.matmul %334, %325, %cst_240 {dimension_numbers = #tpu.dot_dimension_numbers<[2], [1], [1], [2], [0, 0, 0, 1, 1, 2], [0], [0]>} : vector<4x16x64xf32>, vector<4x64x16xf32>, vector<4x16x16xf32> -> vector<4x16x16xf32>
    %cst_241 = arith.constant dense<0.000000e+00> : vector<4x16x16xf32>
    %338 = tpu.matmul %335, %336, %cst_241 {dimension_numbers = #tpu.dot_dimension_numbers<[2], [2], [1], [1], [0, 0, 0, 1, 1, 1], [0], [0]>} : vector<4x16x16xf32>, vector<4x16x16xf32>, vector<4x16x16xf32> -> vector<4x16x16xf32>
    %cst_242 = arith.constant dense<0xFF800000> : vector<4x16xf32>
    %339 = vector.multi_reduction <maximumf>, %338, %cst_242 [2] : vector<4x16x16xf32> to vector<4x16xf32>
    %340 = vector.shape_cast %339 : vector<4x16xf32> to vector<4x16x1xf32>
    %341 = vector.broadcast %340 : vector<4x16x1xf32> to vector<4x16x16xf32>
    %342 = arith.subf %338, %341 : vector<4x16x16xf32>
    %343 = math.exp %342 : vector<4x16x16xf32>
    %cst_243 = arith.constant dense<0.000000e+00> : vector<4x16xf32>
    %344 = vector.multi_reduction <add>, %343, %cst_243 [2] : vector<4x16x16xf32> to vector<4x16xf32>
    %345 = vector.shape_cast %344 : vector<4x16xf32> to vector<4x16x1xf32>
    %346 = vector.broadcast %345 : vector<4x16x1xf32> to vector<4x16x16xf32>
    %347 = arith.divf %343, %346 : vector<4x16x16xf32>
    %cst_244 = arith.constant dense<0.000000e+00> : vector<4x16x16xf32>
    %348 = tpu.matmul %347, %337, %cst_244 {dimension_numbers = #tpu.dot_dimension_numbers<[2], [1], [1], [2], [0, 0, 0, 1, 1, 2], [0], [0]>} : vector<4x16x16xf32>, vector<4x16x16xf32>, vector<4x16x16xf32> -> vector<4x16x16xf32>
    %c0_245 = arith.constant 0 : index
    %c4 = arith.constant 4 : index
    %c0_246 = arith.constant 0 : index
    %c0_247 = arith.constant 0 : index
    %349 = vector.load %arg43[%c0_245, %c4, %c0_246, %c0_247] : memref<1x8x16x16xf32, #tpu.memory_space<vmem>>, vector<1x4x16x16xf32>
    %350 = vector.shape_cast %349 : vector<1x4x16x16xf32> to vector<4x16x16xf32>
    %351 = vector.shape_cast %347 : vector<4x16x16xf32> to vector<1x4x16x16xf32>
    tpu.vector_store %arg43[%c0_245, %c4, %c0_246, %c0_247], %351 {strides = array<i32>} : memref<1x8x16x16xf32, #tpu.memory_space<vmem>>, vector<1x4x16x16xf32>,
    %cst_248 = arith.constant dense<0.000000e+00> : vector<4x16x64xf32>
    %352 = tpu.matmul %348, %327, %cst_248 {dimension_numbers = #tpu.dot_dimension_numbers<[2], [1], [1], [2], [0, 0, 0, 1, 1, 2], [0], [0]>} : vector<4x16x16xf32>, vector<4x16x64xf32>, vector<4x16x64xf32> -> vector<4x16x64xf32>
    %cst_249 = arith.constant dense<0.000000e+00> : vector<16x64xf32>
    %353 = vector.multi_reduction <add>, %352, %cst_249 [0] : vector<4x16x64xf32> to vector<16x64xf32>
    %354 = arith.addf %353, %276 : vector<16x64xf32>
    %cst_250 = arith.constant dense<0.000000e+00> : vector<16xf32>
    %355 = vector.multi_reduction <add>, %354, %cst_250 [1] : vector<16x64xf32> to vector<16xf32>
    %356 = vector.shape_cast %355 : vector<16xf32> to vector<16x1xf32>
    %cst_251 = arith.constant 6.400000e+01 : f32
    %357 = vector.broadcast %cst_251 : f32 to vector<16x1xf32>
    %358 = arith.divf %356, %357 : vector<16x1xf32>
    %359 = vector.broadcast %358 : vector<16x1xf32> to vector<16x64xf32>
    %360 = arith.subf %354, %359 : vector<16x64xf32>
    %361 = arith.mulf %360, %360 : vector<16x64xf32>
    %cst_252 = arith.constant dense<0.000000e+00> : vector<16xf32>
    %362 = vector.multi_reduction <add>, %361, %cst_252 [1] : vector<16x64xf32> to vector<16xf32>
    %363 = vector.shape_cast %362 : vector<16xf32> to vector<16x1xf32>
    %cst_253 = arith.constant 6.400000e+01 : f32
    %364 = vector.broadcast %cst_253 : f32 to vector<16x1xf32>
    %365 = arith.divf %363, %364 : vector<16x1xf32>
    %366 = vector.broadcast %358 : vector<16x1xf32> to vector<16x64xf32>
    %367 = arith.subf %354, %366 : vector<16x64xf32>
    %cst_254 = arith.constant 9.99999997E-7 : f32
    %368 = vector.broadcast %cst_254 : f32 to vector<16x1xf32>
    %369 = arith.addf %365, %368 : vector<16x1xf32>
    %370 = math.rsqrt %369 : vector<16x1xf32>
    %371 = vector.broadcast %370 : vector<16x1xf32> to vector<16x64xf32>
    %372 = arith.mulf %367, %371 : vector<16x64xf32>
    %373 = vector.broadcast %329 : vector<1x64xf32> to vector<16x64xf32>
    %374 = arith.mulf %372, %373 : vector<16x64xf32>
    %375 = vector.broadcast %331 : vector<1x64xf32> to vector<16x64xf32>
    %376 = arith.addf %374, %375 : vector<16x64xf32>
    %c1_255 = arith.constant 1 : index
    %c0_256 = arith.constant 0 : index
    %c0_257 = arith.constant 0 : index
    %c0_258 = arith.constant 0 : index
    %377 = vector.load %arg11[%c1_255, %c0_256, %c0_257, %c0_258] : memref<2x4x64x16xf32, #tpu.memory_space<vmem>>, vector<1x4x64x16xf32>
    %378 = vector.shape_cast %377 : vector<1x4x64x16xf32> to vector<4x64x16xf32>
    %c1_259 = arith.constant 1 : index
    %c0_260 = arith.constant 0 : index
    %c0_261 = arith.constant 0 : index
    %c0_262 = arith.constant 0 : index
    %379 = vector.load %arg12[%c1_259, %c0_260, %c0_261, %c0_262] : memref<2x4x64x16xf32, #tpu.memory_space<vmem>>, vector<1x4x64x16xf32>
    %380 = vector.shape_cast %379 : vector<1x4x64x16xf32> to vector<4x64x16xf32>
    %c1_263 = arith.constant 1 : index
    %c0_264 = arith.constant 0 : index
    %c0_265 = arith.constant 0 : index
    %c0_266 = arith.constant 0 : index
    %381 = vector.load %arg13[%c1_263, %c0_264, %c0_265, %c0_266] : memref<2x4x64x16xf32, #tpu.memory_space<vmem>>, vector<1x4x64x16xf32>
    %382 = vector.shape_cast %381 : vector<1x4x64x16xf32> to vector<4x64x16xf32>
    %c1_267 = arith.constant 1 : index
    %c0_268 = arith.constant 0 : index
    %c0_269 = arith.constant 0 : index
    %c0_270 = arith.constant 0 : index
    %383 = vector.load %arg14[%c1_267, %c0_268, %c0_269, %c0_270] : memref<2x4x16x64xf32, #tpu.memory_space<vmem>>, vector<1x4x16x64xf32>
    %384 = vector.shape_cast %383 : vector<1x4x16x64xf32> to vector<4x16x64xf32>
    %c1_271 = arith.constant 1 : index
    %c0_272 = arith.constant 0 : index
    %c0_273 = arith.constant 0 : index
    %385 = vector.load %arg15[%c1_271, %c0_272, %c0_273] : memref<2x1x64xf32, #tpu.memory_space<vmem>>, vector<1x1x64xf32>
    %386 = vector.shape_cast %385 : vector<1x1x64xf32> to vector<1x64xf32>
    %c1_274 = arith.constant 1 : index
    %c0_275 = arith.constant 0 : index
    %c0_276 = arith.constant 0 : index
    %387 = vector.load %arg16[%c1_274, %c0_275, %c0_276] : memref<2x1x64xf32, #tpu.memory_space<vmem>>, vector<1x1x64xf32>
    %388 = vector.shape_cast %387 : vector<1x1x64xf32> to vector<1x64xf32>
    %389 = vector.shape_cast %319 : vector<8x64xf32> to vector<1x8x64xf32>
    %390 = vector.shape_cast %389 : vector<1x8x64xf32> to vector<1x8x64xf32>
    %391 = vector.broadcast %390 : vector<1x8x64xf32> to vector<4x8x64xf32>
    %cst_277 = arith.constant dense<0.000000e+00> : vector<4x8x16xf32>
    %392 = tpu.matmul %391, %378, %cst_277 {dimension_numbers = #tpu.dot_dimension_numbers<[2], [1], [1], [2], [0, 0, 0, 1, 1, 2], [0], [0]>} : vector<4x8x64xf32>, vector<4x64x16xf32>, vector<4x8x16xf32> -> vector<4x8x16xf32>
    %cst_278 = arith.constant dense<0.000000e+00> : vector<4x8x16xf32>
    %393 = tpu.matmul %391, %380, %cst_278 {dimension_numbers = #tpu.dot_dimension_numbers<[2], [1], [1], [2], [0, 0, 0, 1, 1, 2], [0], [0]>} : vector<4x8x64xf32>, vector<4x64x16xf32>, vector<4x8x16xf32> -> vector<4x8x16xf32>
    %cst_279 = arith.constant dense<0.000000e+00> : vector<4x8x16xf32>
    %394 = tpu.matmul %391, %382, %cst_279 {dimension_numbers = #tpu.dot_dimension_numbers<[2], [1], [1], [2], [0, 0, 0, 1, 1, 2], [0], [0]>} : vector<4x8x64xf32>, vector<4x64x16xf32>, vector<4x8x16xf32> -> vector<4x8x16xf32>
    %cst_280 = arith.constant dense<0.000000e+00> : vector<4x8x8xf32>
    %395 = tpu.matmul %392, %393, %cst_280 {dimension_numbers = #tpu.dot_dimension_numbers<[2], [2], [1], [1], [0, 0, 0, 1, 1, 1], [0], [0]>} : vector<4x8x16xf32>, vector<4x8x16xf32>, vector<4x8x8xf32> -> vector<4x8x8xf32>
    %cst_281 = arith.constant dense<0xFF800000> : vector<4x8xf32>
    %396 = vector.multi_reduction <maximumf>, %395, %cst_281 [2] : vector<4x8x8xf32> to vector<4x8xf32>
    %397 = vector.shape_cast %396 : vector<4x8xf32> to vector<4x8x1xf32>
    %398 = vector.broadcast %397 : vector<4x8x1xf32> to vector<4x8x8xf32>
    %399 = arith.subf %395, %398 : vector<4x8x8xf32>
    %400 = math.exp %399 : vector<4x8x8xf32>
    %cst_282 = arith.constant dense<0.000000e+00> : vector<4x8xf32>
    %401 = vector.multi_reduction <add>, %400, %cst_282 [2] : vector<4x8x8xf32> to vector<4x8xf32>
    %402 = vector.shape_cast %401 : vector<4x8xf32> to vector<4x8x1xf32>
    %403 = vector.broadcast %402 : vector<4x8x1xf32> to vector<4x8x8xf32>
    %404 = arith.divf %400, %403 : vector<4x8x8xf32>
    %cst_283 = arith.constant dense<0.000000e+00> : vector<4x8x16xf32>
    %405 = tpu.matmul %404, %394, %cst_283 {dimension_numbers = #tpu.dot_dimension_numbers<[2], [1], [1], [2], [0, 0, 0, 1, 1, 2], [0], [0]>} : vector<4x8x8xf32>, vector<4x8x16xf32>, vector<4x8x16xf32> -> vector<4x8x16xf32>
    %c0_284 = arith.constant 0 : index
    %c4_285 = arith.constant 4 : index
    %c0_286 = arith.constant 0 : index
    %c0_287 = arith.constant 0 : index
    %406 = vector.load %arg44[%c0_284, %c4_285, %c0_286, %c0_287] : memref<1x8x8x8xf32, #tpu.memory_space<vmem>>, vector<1x4x8x8xf32>
    %407 = vector.shape_cast %406 : vector<1x4x8x8xf32> to vector<4x8x8xf32>
    %408 = vector.shape_cast %404 : vector<4x8x8xf32> to vector<1x4x8x8xf32>
    tpu.vector_store %arg44[%c0_284, %c4_285, %c0_286, %c0_287], %408 {strides = array<i32>} : memref<1x8x8x8xf32, #tpu.memory_space<vmem>>, vector<1x4x8x8xf32>,
    %cst_288 = arith.constant dense<0.000000e+00> : vector<4x8x64xf32>
    %409 = tpu.matmul %405, %384, %cst_288 {dimension_numbers = #tpu.dot_dimension_numbers<[2], [1], [1], [2], [0, 0, 0, 1, 1, 2], [0], [0]>} : vector<4x8x16xf32>, vector<4x16x64xf32>, vector<4x8x64xf32> -> vector<4x8x64xf32>
    %cst_289 = arith.constant dense<0.000000e+00> : vector<8x64xf32>
    %410 = vector.multi_reduction <add>, %409, %cst_289 [0] : vector<4x8x64xf32> to vector<8x64xf32>
    %411 = arith.addf %410, %319 : vector<8x64xf32>
    %cst_290 = arith.constant dense<0.000000e+00> : vector<8xf32>
    %412 = vector.multi_reduction <add>, %411, %cst_290 [1] : vector<8x64xf32> to vector<8xf32>
    %413 = vector.shape_cast %412 : vector<8xf32> to vector<8x1xf32>
    %cst_291 = arith.constant 6.400000e+01 : f32
    %414 = vector.broadcast %cst_291 : f32 to vector<8x1xf32>
    %415 = arith.divf %413, %414 : vector<8x1xf32>
    %416 = vector.broadcast %415 : vector<8x1xf32> to vector<8x64xf32>
    %417 = arith.subf %411, %416 : vector<8x64xf32>
    %418 = arith.mulf %417, %417 : vector<8x64xf32>
    %cst_292 = arith.constant dense<0.000000e+00> : vector<8xf32>
    %419 = vector.multi_reduction <add>, %418, %cst_292 [1] : vector<8x64xf32> to vector<8xf32>
    %420 = vector.shape_cast %419 : vector<8xf32> to vector<8x1xf32>
    %cst_293 = arith.constant 6.400000e+01 : f32
    %421 = vector.broadcast %cst_293 : f32 to vector<8x1xf32>
    %422 = arith.divf %420, %421 : vector<8x1xf32>
    %423 = vector.broadcast %415 : vector<8x1xf32> to vector<8x64xf32>
    %424 = arith.subf %411, %423 : vector<8x64xf32>
    %cst_294 = arith.constant 9.99999997E-7 : f32
    %425 = vector.broadcast %cst_294 : f32 to vector<8x1xf32>
    %426 = arith.addf %422, %425 : vector<8x1xf32>
    %427 = math.rsqrt %426 : vector<8x1xf32>
    %428 = vector.broadcast %427 : vector<8x1xf32> to vector<8x64xf32>
    %429 = arith.mulf %424, %428 : vector<8x64xf32>
    %430 = vector.broadcast %386 : vector<1x64xf32> to vector<8x64xf32>
    %431 = arith.mulf %429, %430 : vector<8x64xf32>
    %432 = vector.broadcast %388 : vector<1x64xf32> to vector<8x64xf32>
    %433 = arith.addf %431, %432 : vector<8x64xf32>
    %c1_295 = arith.constant 1 : index
    %c0_296 = arith.constant 0 : index
    %c0_297 = arith.constant 0 : index
    %c0_298 = arith.constant 0 : index
    %434 = vector.load %arg17[%c1_295, %c0_296, %c0_297, %c0_298] : memref<2x4x64x16xf32, #tpu.memory_space<vmem>>, vector<1x4x64x16xf32>
    %435 = vector.shape_cast %434 : vector<1x4x64x16xf32> to vector<4x64x16xf32>
    %c1_299 = arith.constant 1 : index
    %c0_300 = arith.constant 0 : index
    %c0_301 = arith.constant 0 : index
    %c0_302 = arith.constant 0 : index
    %436 = vector.load %arg18[%c1_299, %c0_300, %c0_301, %c0_302] : memref<2x4x64x16xf32, #tpu.memory_space<vmem>>, vector<1x4x64x16xf32>
    %437 = vector.shape_cast %436 : vector<1x4x64x16xf32> to vector<4x64x16xf32>
    %c1_303 = arith.constant 1 : index
    %c0_304 = arith.constant 0 : index
    %c0_305 = arith.constant 0 : index
    %c0_306 = arith.constant 0 : index
    %438 = vector.load %arg19[%c1_303, %c0_304, %c0_305, %c0_306] : memref<2x4x64x16xf32, #tpu.memory_space<vmem>>, vector<1x4x64x16xf32>
    %439 = vector.shape_cast %438 : vector<1x4x64x16xf32> to vector<4x64x16xf32>
    %c1_307 = arith.constant 1 : index
    %c0_308 = arith.constant 0 : index
    %c0_309 = arith.constant 0 : index
    %c0_310 = arith.constant 0 : index
    %440 = vector.load %arg20[%c1_307, %c0_308, %c0_309, %c0_310] : memref<2x4x16x64xf32, #tpu.memory_space<vmem>>, vector<1x4x16x64xf32>
    %441 = vector.shape_cast %440 : vector<1x4x16x64xf32> to vector<4x16x64xf32>
    %c1_311 = arith.constant 1 : index
    %c0_312 = arith.constant 0 : index
    %c0_313 = arith.constant 0 : index
    %c0_314 = arith.constant 0 : index
    %442 = vector.load %arg21[%c1_311, %c0_312, %c0_313, %c0_314] : memref<2x4x64x16xf32, #tpu.memory_space<vmem>>, vector<1x4x64x16xf32>
    %443 = vector.shape_cast %442 : vector<1x4x64x16xf32> to vector<4x64x16xf32>
    %c1_315 = arith.constant 1 : index
    %c0_316 = arith.constant 0 : index
    %c0_317 = arith.constant 0 : index
    %c0_318 = arith.constant 0 : index
    %444 = vector.load %arg22[%c1_315, %c0_316, %c0_317, %c0_318] : memref<2x4x64x16xf32, #tpu.memory_space<vmem>>, vector<1x4x64x16xf32>
    %445 = vector.shape_cast %444 : vector<1x4x64x16xf32> to vector<4x64x16xf32>
    %c1_319 = arith.constant 1 : index
    %c0_320 = arith.constant 0 : index
    %c0_321 = arith.constant 0 : index
    %c0_322 = arith.constant 0 : index
    %446 = vector.load %arg23[%c1_319, %c0_320, %c0_321, %c0_322] : memref<2x4x64x16xf32, #tpu.memory_space<vmem>>, vector<1x4x64x16xf32>
    %447 = vector.shape_cast %446 : vector<1x4x64x16xf32> to vector<4x64x16xf32>
    %c1_323 = arith.constant 1 : index
    %c0_324 = arith.constant 0 : index
    %c0_325 = arith.constant 0 : index
    %c0_326 = arith.constant 0 : index
    %448 = vector.load %arg24[%c1_323, %c0_324, %c0_325, %c0_326] : memref<2x4x16x64xf32, #tpu.memory_space<vmem>>, vector<1x4x16x64xf32>
    %449 = vector.shape_cast %448 : vector<1x4x16x64xf32> to vector<4x16x64xf32>
    %c1_327 = arith.constant 1 : index
    %c0_328 = arith.constant 0 : index
    %c0_329 = arith.constant 0 : index
    %450 = vector.load %arg25[%c1_327, %c0_328, %c0_329] : memref<2x1x64xf32, #tpu.memory_space<vmem>>, vector<1x1x64xf32>
    %451 = vector.shape_cast %450 : vector<1x1x64xf32> to vector<1x64xf32>
    %c1_330 = arith.constant 1 : index
    %c0_331 = arith.constant 0 : index
    %c0_332 = arith.constant 0 : index
    %452 = vector.load %arg26[%c1_330, %c0_331, %c0_332] : memref<2x1x64xf32, #tpu.memory_space<vmem>>, vector<1x1x64xf32>
    %453 = vector.shape_cast %452 : vector<1x1x64xf32> to vector<1x64xf32>
    %c1_333 = arith.constant 1 : index
    %c0_334 = arith.constant 0 : index
    %c0_335 = arith.constant 0 : index
    %454 = vector.load %arg27[%c1_333, %c0_334, %c0_335] : memref<2x1x64xf32, #tpu.memory_space<vmem>>, vector<1x1x64xf32>
    %455 = vector.shape_cast %454 : vector<1x1x64xf32> to vector<1x64xf32>
    %c1_336 = arith.constant 1 : index
    %c0_337 = arith.constant 0 : index
    %c0_338 = arith.constant 0 : index
    %456 = vector.load %arg28[%c1_336, %c0_337, %c0_338] : memref<2x1x64xf32, #tpu.memory_space<vmem>>, vector<1x1x64xf32>
    %457 = vector.shape_cast %456 : vector<1x1x64xf32> to vector<1x64xf32>
    %458 = vector.shape_cast %376 : vector<16x64xf32> to vector<1x16x64xf32>
    %459 = vector.shape_cast %458 : vector<1x16x64xf32> to vector<1x16x64xf32>
    %460 = vector.broadcast %459 : vector<1x16x64xf32> to vector<4x16x64xf32>
    %cst_339 = arith.constant dense<0.000000e+00> : vector<4x16x16xf32>
    %461 = tpu.matmul %460, %435, %cst_339 {dimension_numbers = #tpu.dot_dimension_numbers<[2], [1], [1], [2], [0, 0, 0, 1, 1, 2], [0], [0]>} : vector<4x16x64xf32>, vector<4x64x16xf32>, vector<4x16x16xf32> -> vector<4x16x16xf32>
    %cst_340 = arith.constant dense<0.000000e+00> : vector<4x16x16xf32>
    %462 = tpu.matmul %460, %437, %cst_340 {dimension_numbers = #tpu.dot_dimension_numbers<[2], [1], [1], [2], [0, 0, 0, 1, 1, 2], [0], [0]>} : vector<4x16x64xf32>, vector<4x64x16xf32>, vector<4x16x16xf32> -> vector<4x16x16xf32>
    %cst_341 = arith.constant dense<0.000000e+00> : vector<4x16x16xf32>
    %463 = tpu.matmul %460, %439, %cst_341 {dimension_numbers = #tpu.dot_dimension_numbers<[2], [1], [1], [2], [0, 0, 0, 1, 1, 2], [0], [0]>} : vector<4x16x64xf32>, vector<4x64x16xf32>, vector<4x16x16xf32> -> vector<4x16x16xf32>
    %464 = vector.shape_cast %433 : vector<8x64xf32> to vector<1x8x64xf32>
    %465 = vector.shape_cast %464 : vector<1x8x64xf32> to vector<1x8x64xf32>
    %466 = vector.broadcast %465 : vector<1x8x64xf32> to vector<4x8x64xf32>
    %cst_342 = arith.constant dense<0.000000e+00> : vector<4x8x16xf32>
    %467 = tpu.matmul %466, %443, %cst_342 {dimension_numbers = #tpu.dot_dimension_numbers<[2], [1], [1], [2], [0, 0, 0, 1, 1, 2], [0], [0]>} : vector<4x8x64xf32>, vector<4x64x16xf32>, vector<4x8x16xf32> -> vector<4x8x16xf32>
    %cst_343 = arith.constant dense<0.000000e+00> : vector<4x8x16xf32>
    %468 = tpu.matmul %466, %445, %cst_343 {dimension_numbers = #tpu.dot_dimension_numbers<[2], [1], [1], [2], [0, 0, 0, 1, 1, 2], [0], [0]>} : vector<4x8x64xf32>, vector<4x64x16xf32>, vector<4x8x16xf32> -> vector<4x8x16xf32>
    %cst_344 = arith.constant dense<0.000000e+00> : vector<4x8x16xf32>
    %469 = tpu.matmul %466, %447, %cst_344 {dimension_numbers = #tpu.dot_dimension_numbers<[2], [1], [1], [2], [0, 0, 0, 1, 1, 2], [0], [0]>} : vector<4x8x64xf32>, vector<4x64x16xf32>, vector<4x8x16xf32> -> vector<4x8x16xf32>
    %cst_345 = arith.constant dense<0.000000e+00> : vector<4x16x8xf32>
    %470 = tpu.matmul %461, %468, %cst_345 {dimension_numbers = #tpu.dot_dimension_numbers<[2], [2], [1], [1], [0, 0, 0, 1, 1, 1], [0], [0]>} : vector<4x16x16xf32>, vector<4x8x16xf32>, vector<4x16x8xf32> -> vector<4x16x8xf32>
    %cst_346 = arith.constant dense<0xFF800000> : vector<4x16xf32>
    %471 = vector.multi_reduction <maximumf>, %470, %cst_346 [2] : vector<4x16x8xf32> to vector<4x16xf32>
    %472 = vector.shape_cast %471 : vector<4x16xf32> to vector<4x16x1xf32>
    %473 = vector.broadcast %472 : vector<4x16x1xf32> to vector<4x16x8xf32>
    %474 = arith.subf %470, %473 : vector<4x16x8xf32>
    %475 = math.exp %474 : vector<4x16x8xf32>
    %cst_347 = arith.constant dense<0.000000e+00> : vector<4x16xf32>
    %476 = vector.multi_reduction <add>, %475, %cst_347 [2] : vector<4x16x8xf32> to vector<4x16xf32>
    %477 = vector.shape_cast %476 : vector<4x16xf32> to vector<4x16x1xf32>
    %478 = vector.broadcast %477 : vector<4x16x1xf32> to vector<4x16x8xf32>
    %479 = arith.divf %475, %478 : vector<4x16x8xf32>
    %cst_348 = arith.constant dense<0.000000e+00> : vector<4x16x16xf32>
    %480 = tpu.matmul %479, %469, %cst_348 {dimension_numbers = #tpu.dot_dimension_numbers<[2], [1], [1], [2], [0, 0, 0, 1, 1, 2], [0], [0]>} : vector<4x16x8xf32>, vector<4x8x16xf32>, vector<4x16x16xf32> -> vector<4x16x16xf32>
    %cst_349 = arith.constant dense<0.000000e+00> : vector<4x8x16xf32>
    %481 = tpu.matmul %467, %462, %cst_349 {dimension_numbers = #tpu.dot_dimension_numbers<[2], [2], [1], [1], [0, 0, 0, 1, 1, 1], [0], [0]>} : vector<4x8x16xf32>, vector<4x16x16xf32>, vector<4x8x16xf32> -> vector<4x8x16xf32>
    %cst_350 = arith.constant dense<0xFF800000> : vector<4x8xf32>
    %482 = vector.multi_reduction <maximumf>, %481, %cst_350 [2] : vector<4x8x16xf32> to vector<4x8xf32>
    %483 = vector.shape_cast %482 : vector<4x8xf32> to vector<4x8x1xf32>
    %484 = vector.broadcast %483 : vector<4x8x1xf32> to vector<4x8x16xf32>
    %485 = arith.subf %481, %484 : vector<4x8x16xf32>
    %486 = math.exp %485 : vector<4x8x16xf32>
    %cst_351 = arith.constant dense<0.000000e+00> : vector<4x8xf32>
    %487 = vector.multi_reduction <add>, %486, %cst_351 [2] : vector<4x8x16xf32> to vector<4x8xf32>
    %488 = vector.shape_cast %487 : vector<4x8xf32> to vector<4x8x1xf32>
    %489 = vector.broadcast %488 : vector<4x8x1xf32> to vector<4x8x16xf32>
    %490 = arith.divf %486, %489 : vector<4x8x16xf32>
    %cst_352 = arith.constant dense<0.000000e+00> : vector<4x8x16xf32>
    %491 = tpu.matmul %490, %463, %cst_352 {dimension_numbers = #tpu.dot_dimension_numbers<[2], [1], [1], [2], [0, 0, 0, 1, 1, 2], [0], [0]>} : vector<4x8x16xf32>, vector<4x16x16xf32>, vector<4x8x16xf32> -> vector<4x8x16xf32>
    %c0_353 = arith.constant 0 : index
    %c4_354 = arith.constant 4 : index
    %c0_355 = arith.constant 0 : index
    %c0_356 = arith.constant 0 : index
    %492 = vector.load %arg45[%c0_353, %c4_354, %c0_355, %c0_356] : memref<1x8x8x16xf32, #tpu.memory_space<vmem>>, vector<1x4x8x16xf32>
    %493 = vector.shape_cast %492 : vector<1x4x8x16xf32> to vector<4x8x16xf32>
    %494 = vector.shape_cast %490 : vector<4x8x16xf32> to vector<1x4x8x16xf32>
    tpu.vector_store %arg45[%c0_353, %c4_354, %c0_355, %c0_356], %494 {strides = array<i32>} : memref<1x8x8x16xf32, #tpu.memory_space<vmem>>, vector<1x4x8x16xf32>,
    %cst_357 = arith.constant dense<0.000000e+00> : vector<4x16x64xf32>
    %495 = tpu.matmul %480, %441, %cst_357 {dimension_numbers = #tpu.dot_dimension_numbers<[2], [1], [1], [2], [0, 0, 0, 1, 1, 2], [0], [0]>} : vector<4x16x16xf32>, vector<4x16x64xf32>, vector<4x16x64xf32> -> vector<4x16x64xf32>
    %cst_358 = arith.constant dense<0.000000e+00> : vector<16x64xf32>
    %496 = vector.multi_reduction <add>, %495, %cst_358 [0] : vector<4x16x64xf32> to vector<16x64xf32>
    %497 = arith.addf %496, %376 : vector<16x64xf32>
    %cst_359 = arith.constant dense<0.000000e+00> : vector<16xf32>
    %498 = vector.multi_reduction <add>, %497, %cst_359 [1] : vector<16x64xf32> to vector<16xf32>
    %499 = vector.shape_cast %498 : vector<16xf32> to vector<16x1xf32>
    %cst_360 = arith.constant 6.400000e+01 : f32
    %500 = vector.broadcast %cst_360 : f32 to vector<16x1xf32>
    %501 = arith.divf %499, %500 : vector<16x1xf32>
    %502 = vector.broadcast %501 : vector<16x1xf32> to vector<16x64xf32>
    %503 = arith.subf %497, %502 : vector<16x64xf32>
    %504 = arith.mulf %503, %503 : vector<16x64xf32>
    %cst_361 = arith.constant dense<0.000000e+00> : vector<16xf32>
    %505 = vector.multi_reduction <add>, %504, %cst_361 [1] : vector<16x64xf32> to vector<16xf32>
    %506 = vector.shape_cast %505 : vector<16xf32> to vector<16x1xf32>
    %cst_362 = arith.constant 6.400000e+01 : f32
    %507 = vector.broadcast %cst_362 : f32 to vector<16x1xf32>
    %508 = arith.divf %506, %507 : vector<16x1xf32>
    %509 = vector.broadcast %501 : vector<16x1xf32> to vector<16x64xf32>
    %510 = arith.subf %497, %509 : vector<16x64xf32>
    %cst_363 = arith.constant 9.99999997E-7 : f32
    %511 = vector.broadcast %cst_363 : f32 to vector<16x1xf32>
    %512 = arith.addf %508, %511 : vector<16x1xf32>
    %513 = math.rsqrt %512 : vector<16x1xf32>
    %514 = vector.broadcast %513 : vector<16x1xf32> to vector<16x64xf32>
    %515 = arith.mulf %510, %514 : vector<16x64xf32>
    %516 = vector.broadcast %451 : vector<1x64xf32> to vector<16x64xf32>
    %517 = arith.mulf %515, %516 : vector<16x64xf32>
    %518 = vector.broadcast %453 : vector<1x64xf32> to vector<16x64xf32>
    %519 = arith.addf %517, %518 : vector<16x64xf32>
    %cst_364 = arith.constant dense<0.000000e+00> : vector<4x8x64xf32>
    %520 = tpu.matmul %491, %449, %cst_364 {dimension_numbers = #tpu.dot_dimension_numbers<[2], [1], [1], [2], [0, 0, 0, 1, 1, 2], [0], [0]>} : vector<4x8x16xf32>, vector<4x16x64xf32>, vector<4x8x64xf32> -> vector<4x8x64xf32>
    %cst_365 = arith.constant dense<0.000000e+00> : vector<8x64xf32>
    %521 = vector.multi_reduction <add>, %520, %cst_365 [0] : vector<4x8x64xf32> to vector<8x64xf32>
    %522 = arith.addf %521, %433 : vector<8x64xf32>
    %cst_366 = arith.constant dense<0.000000e+00> : vector<8xf32>
    %523 = vector.multi_reduction <add>, %522, %cst_366 [1] : vector<8x64xf32> to vector<8xf32>
    %524 = vector.shape_cast %523 : vector<8xf32> to vector<8x1xf32>
    %cst_367 = arith.constant 6.400000e+01 : f32
    %525 = vector.broadcast %cst_367 : f32 to vector<8x1xf32>
    %526 = arith.divf %524, %525 : vector<8x1xf32>
    %527 = vector.broadcast %526 : vector<8x1xf32> to vector<8x64xf32>
    %528 = arith.subf %522, %527 : vector<8x64xf32>
    %529 = arith.mulf %528, %528 : vector<8x64xf32>
    %cst_368 = arith.constant dense<0.000000e+00> : vector<8xf32>
    %530 = vector.multi_reduction <add>, %529, %cst_368 [1] : vector<8x64xf32> to vector<8xf32>
    %531 = vector.shape_cast %530 : vector<8xf32> to vector<8x1xf32>
    %cst_369 = arith.constant 6.400000e+01 : f32
    %532 = vector.broadcast %cst_369 : f32 to vector<8x1xf32>
    %533 = arith.divf %531, %532 : vector<8x1xf32>
    %534 = vector.broadcast %526 : vector<8x1xf32> to vector<8x64xf32>
    %535 = arith.subf %522, %534 : vector<8x64xf32>
    %cst_370 = arith.constant 9.99999997E-7 : f32
    %536 = vector.broadcast %cst_370 : f32 to vector<8x1xf32>
    %537 = arith.addf %533, %536 : vector<8x1xf32>
    %538 = math.rsqrt %537 : vector<8x1xf32>
    %539 = vector.broadcast %538 : vector<8x1xf32> to vector<8x64xf32>
    %540 = arith.mulf %535, %539 : vector<8x64xf32>
    %541 = vector.broadcast %455 : vector<1x64xf32> to vector<8x64xf32>
    %542 = arith.mulf %540, %541 : vector<8x64xf32>
    %543 = vector.broadcast %457 : vector<1x64xf32> to vector<8x64xf32>
    %544 = arith.addf %542, %543 : vector<8x64xf32>
    %c1_371 = arith.constant 1 : index
    %c0_372 = arith.constant 0 : index
    %c0_373 = arith.constant 0 : index
    %545 = vector.load %arg29[%c1_371, %c0_372, %c0_373] : memref<2x64x128xf32, #tpu.memory_space<vmem>>, vector<1x64x128xf32>
    %546 = vector.shape_cast %545 : vector<1x64x128xf32> to vector<64x128xf32>
    %c1_374 = arith.constant 1 : index
    %c0_375 = arith.constant 0 : index
    %c0_376 = arith.constant 0 : index
    %547 = vector.load %arg30[%c1_374, %c0_375, %c0_376] : memref<2x1x128xf32, #tpu.memory_space<vmem>>, vector<1x1x128xf32>
    %548 = vector.shape_cast %547 : vector<1x1x128xf32> to vector<1x128xf32>
    %c1_377 = arith.constant 1 : index
    %c0_378 = arith.constant 0 : index
    %c0_379 = arith.constant 0 : index
    %549 = vector.load %arg31[%c1_377, %c0_378, %c0_379] : memref<2x128x64xf32, #tpu.memory_space<vmem>>, vector<1x128x64xf32>
    %550 = vector.shape_cast %549 : vector<1x128x64xf32> to vector<128x64xf32>
    %c1_380 = arith.constant 1 : index
    %c0_381 = arith.constant 0 : index
    %c0_382 = arith.constant 0 : index
    %551 = vector.load %arg32[%c1_380, %c0_381, %c0_382] : memref<2x1x64xf32, #tpu.memory_space<vmem>>, vector<1x1x64xf32>
    %552 = vector.shape_cast %551 : vector<1x1x64xf32> to vector<1x64xf32>
    %c1_383 = arith.constant 1 : index
    %c0_384 = arith.constant 0 : index
    %c0_385 = arith.constant 0 : index
    %553 = vector.load %arg33[%c1_383, %c0_384, %c0_385] : memref<2x1x64xf32, #tpu.memory_space<vmem>>, vector<1x1x64xf32>
    %554 = vector.shape_cast %553 : vector<1x1x64xf32> to vector<1x64xf32>
    %c1_386 = arith.constant 1 : index
    %c0_387 = arith.constant 0 : index
    %c0_388 = arith.constant 0 : index
    %555 = vector.load %arg34[%c1_386, %c0_387, %c0_388] : memref<2x1x64xf32, #tpu.memory_space<vmem>>, vector<1x1x64xf32>
    %556 = vector.shape_cast %555 : vector<1x1x64xf32> to vector<1x64xf32>
    %cst_389 = arith.constant dense<0.000000e+00> : vector<16x128xf32>
    %557 = tpu.matmul %519, %546, %cst_389 {dimension_numbers = #tpu.dot_dimension_numbers<[1], [0], [0], [1], [0, 0, 1, 1], [], []>} : vector<16x64xf32>, vector<64x128xf32>, vector<16x128xf32> -> vector<16x128xf32>
    %558 = vector.broadcast %548 : vector<1x128xf32> to vector<16x128xf32>
    %559 = arith.addf %557, %558 : vector<16x128xf32>
    %cst_390 = arith.constant 0.000000e+00 : f32
    %560 = vector.broadcast %cst_390 : f32 to vector<16x128xf32>
    %561 = arith.maximumf %559, %560 : vector<16x128xf32>
    %cst_391 = arith.constant dense<0.000000e+00> : vector<16x64xf32>
    %562 = tpu.matmul %561, %550, %cst_391 {dimension_numbers = #tpu.dot_dimension_numbers<[1], [0], [0], [1], [0, 0, 1, 1], [], []>} : vector<16x128xf32>, vector<128x64xf32>, vector<16x64xf32> -> vector<16x64xf32>
    %563 = vector.broadcast %552 : vector<1x64xf32> to vector<16x64xf32>
    %564 = arith.addf %562, %563 : vector<16x64xf32>
    %565 = arith.addf %564, %519 : vector<16x64xf32>
    %cst_392 = arith.constant dense<0.000000e+00> : vector<16xf32>
    %566 = vector.multi_reduction <add>, %565, %cst_392 [1] : vector<16x64xf32> to vector<16xf32>
    %567 = vector.shape_cast %566 : vector<16xf32> to vector<16x1xf32>
    %cst_393 = arith.constant 6.400000e+01 : f32
    %568 = vector.broadcast %cst_393 : f32 to vector<16x1xf32>
    %569 = arith.divf %567, %568 : vector<16x1xf32>
    %570 = vector.broadcast %569 : vector<16x1xf32> to vector<16x64xf32>
    %571 = arith.subf %565, %570 : vector<16x64xf32>
    %572 = arith.mulf %571, %571 : vector<16x64xf32>
    %cst_394 = arith.constant dense<0.000000e+00> : vector<16xf32>
    %573 = vector.multi_reduction <add>, %572, %cst_394 [1] : vector<16x64xf32> to vector<16xf32>
    %574 = vector.shape_cast %573 : vector<16xf32> to vector<16x1xf32>
    %cst_395 = arith.constant 6.400000e+01 : f32
    %575 = vector.broadcast %cst_395 : f32 to vector<16x1xf32>
    %576 = arith.divf %574, %575 : vector<16x1xf32>
    %577 = vector.broadcast %569 : vector<16x1xf32> to vector<16x64xf32>
    %578 = arith.subf %565, %577 : vector<16x64xf32>
    %cst_396 = arith.constant 9.99999997E-7 : f32
    %579 = vector.broadcast %cst_396 : f32 to vector<16x1xf32>
    %580 = arith.addf %576, %579 : vector<16x1xf32>
    %581 = math.rsqrt %580 : vector<16x1xf32>
    %582 = vector.broadcast %581 : vector<16x1xf32> to vector<16x64xf32>
    %583 = arith.mulf %578, %582 : vector<16x64xf32>
    %584 = vector.broadcast %554 : vector<1x64xf32> to vector<16x64xf32>
    %585 = arith.mulf %583, %584 : vector<16x64xf32>
    %586 = vector.broadcast %556 : vector<1x64xf32> to vector<16x64xf32>
    %587 = arith.addf %585, %586 : vector<16x64xf32>
    %c1_397 = arith.constant 1 : index
    %c0_398 = arith.constant 0 : index
    %c0_399 = arith.constant 0 : index
    %588 = vector.load %arg35[%c1_397, %c0_398, %c0_399] : memref<2x64x128xf32, #tpu.memory_space<vmem>>, vector<1x64x128xf32>
    %589 = vector.shape_cast %588 : vector<1x64x128xf32> to vector<64x128xf32>
    %c1_400 = arith.constant 1 : index
    %c0_401 = arith.constant 0 : index
    %c0_402 = arith.constant 0 : index
    %590 = vector.load %arg36[%c1_400, %c0_401, %c0_402] : memref<2x1x128xf32, #tpu.memory_space<vmem>>, vector<1x1x128xf32>
    %591 = vector.shape_cast %590 : vector<1x1x128xf32> to vector<1x128xf32>
    %c1_403 = arith.constant 1 : index
    %c0_404 = arith.constant 0 : index
    %c0_405 = arith.constant 0 : index
    %592 = vector.load %arg37[%c1_403, %c0_404, %c0_405] : memref<2x128x64xf32, #tpu.memory_space<vmem>>, vector<1x128x64xf32>
    %593 = vector.shape_cast %592 : vector<1x128x64xf32> to vector<128x64xf32>
    %c1_406 = arith.constant 1 : index
    %c0_407 = arith.constant 0 : index
    %c0_408 = arith.constant 0 : index
    %594 = vector.load %arg38[%c1_406, %c0_407, %c0_408] : memref<2x1x64xf32, #tpu.memory_space<vmem>>, vector<1x1x64xf32>
    %595 = vector.shape_cast %594 : vector<1x1x64xf32> to vector<1x64xf32>
    %c1_409 = arith.constant 1 : index
    %c0_410 = arith.constant 0 : index
    %c0_411 = arith.constant 0 : index
    %596 = vector.load %arg39[%c1_409, %c0_410, %c0_411] : memref<2x1x64xf32, #tpu.memory_space<vmem>>, vector<1x1x64xf32>
    %597 = vector.shape_cast %596 : vector<1x1x64xf32> to vector<1x64xf32>
    %c1_412 = arith.constant 1 : index
    %c0_413 = arith.constant 0 : index
    %c0_414 = arith.constant 0 : index
    %598 = vector.load %arg40[%c1_412, %c0_413, %c0_414] : memref<2x1x64xf32, #tpu.memory_space<vmem>>, vector<1x1x64xf32>
    %599 = vector.shape_cast %598 : vector<1x1x64xf32> to vector<1x64xf32>
    %cst_415 = arith.constant dense<0.000000e+00> : vector<8x128xf32>
    %600 = tpu.matmul %544, %589, %cst_415 {dimension_numbers = #tpu.dot_dimension_numbers<[1], [0], [0], [1], [0, 0, 1, 1], [], []>} : vector<8x64xf32>, vector<64x128xf32>, vector<8x128xf32> -> vector<8x128xf32>
    %601 = vector.broadcast %591 : vector<1x128xf32> to vector<8x128xf32>
    %602 = arith.addf %600, %601 : vector<8x128xf32>
    %cst_416 = arith.constant 0.000000e+00 : f32
    %603 = vector.broadcast %cst_416 : f32 to vector<8x128xf32>
    %604 = arith.maximumf %602, %603 : vector<8x128xf32>
    %cst_417 = arith.constant dense<0.000000e+00> : vector<8x64xf32>
    %605 = tpu.matmul %604, %593, %cst_417 {dimension_numbers = #tpu.dot_dimension_numbers<[1], [0], [0], [1], [0, 0, 1, 1], [], []>} : vector<8x128xf32>, vector<128x64xf32>, vector<8x64xf32> -> vector<8x64xf32>
    %606 = vector.broadcast %595 : vector<1x64xf32> to vector<8x64xf32>
    %607 = arith.addf %605, %606 : vector<8x64xf32>
    %608 = arith.addf %607, %544 : vector<8x64xf32>
    %cst_418 = arith.constant dense<0.000000e+00> : vector<8xf32>
    %609 = vector.multi_reduction <add>, %608, %cst_418 [1] : vector<8x64xf32> to vector<8xf32>
    %610 = vector.shape_cast %609 : vector<8xf32> to vector<8x1xf32>
    %cst_419 = arith.constant 6.400000e+01 : f32
    %611 = vector.broadcast %cst_419 : f32 to vector<8x1xf32>
    %612 = arith.divf %610, %611 : vector<8x1xf32>
    %613 = vector.broadcast %612 : vector<8x1xf32> to vector<8x64xf32>
    %614 = arith.subf %608, %613 : vector<8x64xf32>
    %615 = arith.mulf %614, %614 : vector<8x64xf32>
    %cst_420 = arith.constant dense<0.000000e+00> : vector<8xf32>
    %616 = vector.multi_reduction <add>, %615, %cst_420 [1] : vector<8x64xf32> to vector<8xf32>
    %617 = vector.shape_cast %616 : vector<8xf32> to vector<8x1xf32>
    %cst_421 = arith.constant 6.400000e+01 : f32
    %618 = vector.broadcast %cst_421 : f32 to vector<8x1xf32>
    %619 = arith.divf %617, %618 : vector<8x1xf32>
    %620 = vector.broadcast %612 : vector<8x1xf32> to vector<8x64xf32>
    %621 = arith.subf %608, %620 : vector<8x64xf32>
    %cst_422 = arith.constant 9.99999997E-7 : f32
    %622 = vector.broadcast %cst_422 : f32 to vector<8x1xf32>
    %623 = arith.addf %619, %622 : vector<8x1xf32>
    %624 = math.rsqrt %623 : vector<8x1xf32>
    %625 = vector.broadcast %624 : vector<8x1xf32> to vector<8x64xf32>
    %626 = arith.mulf %621, %625 : vector<8x64xf32>
    %627 = vector.broadcast %597 : vector<1x64xf32> to vector<8x64xf32>
    %628 = arith.mulf %626, %627 : vector<8x64xf32>
    %629 = vector.broadcast %599 : vector<1x64xf32> to vector<8x64xf32>
    %630 = arith.addf %628, %629 : vector<8x64xf32>
    %c0_423 = arith.constant 0 : index
    %c0_424 = arith.constant 0 : index
    %c0_425 = arith.constant 0 : index
    %631 = vector.load %arg41[%c0_423, %c0_424, %c0_425] : memref<1x16x64xf32, #tpu.memory_space<vmem>>, vector<1x16x64xf32>
    %632 = vector.shape_cast %631 : vector<1x16x64xf32> to vector<16x64xf32>
    %633 = vector.shape_cast %587 : vector<16x64xf32> to vector<1x16x64xf32>
    tpu.vector_store %arg41[%c0_423, %c0_424, %c0_425], %633 {strides = array<i32>} : memref<1x16x64xf32, #tpu.memory_space<vmem>>, vector<1x16x64xf32>,
    %c0_426 = arith.constant 0 : index
    %c0_427 = arith.constant 0 : index
    %c0_428 = arith.constant 0 : index
    %634 = vector.load %arg42[%c0_426, %c0_427, %c0_428] : memref<1x8x64xf32, #tpu.memory_space<vmem>>, vector<1x8x64xf32>
    %635 = vector.shape_cast %634 : vector<1x8x64xf32> to vector<8x64xf32>
    %636 = vector.shape_cast %630 : vector<8x64xf32> to vector<1x8x64xf32>
    tpu.vector_store %arg42[%c0_426, %c0_427, %c0_428], %636 {strides = array<i32>} : memref<1x8x64xf32, #tpu.memory_space<vmem>>, vector<1x8x64xf32>,
    return
  }
  func.func @transform_0(%arg0: i32) -> (i32, i32, i32) {
    %c0_i32 = arith.constant 0 : i32
    %c0_i32_0 = arith.constant 0 : i32
    %c0_i32_1 = arith.constant 0 : i32
    return %arg0, %c0_i32, %c0_i32_0 : i32, i32, i32
  }
  func.func @transform_1(%arg0: i32) -> (i32, i32, i32) {
    %c0_i32 = arith.constant 0 : i32
    %c0_i32_0 = arith.constant 0 : i32
    %c0_i32_1 = arith.constant 0 : i32
    return %arg0, %c0_i32, %c0_i32_0 : i32, i32, i32
  }
  func.func @transform_2(%arg0: i32) -> (i32, i32) {
    %c0_i32 = arith.constant 0 : i32
    %c0_i32_0 = arith.constant 0 : i32
    %c0_i32_1 = arith.constant 0 : i32
    return %c0_i32, %c0_i32_0 : i32, i32
  }
  func.func @transform_3(%arg0: i32) -> (i32, i32) {
    %c0_i32 = arith.constant 0 : i32
    %c0_i32_0 = arith.constant 0 : i32
    %c0_i32_1 = arith.constant 0 : i32
    return %c0_i32, %c0_i32_0 : i32, i32
  }
  func.func @transform_4(%arg0: i32) -> (i32, i32, i32, i32) {
    %c0_i32 = arith.constant 0 : i32
    %c0_i32_0 = arith.constant 0 : i32
    %c0_i32_1 = arith.constant 0 : i32
    %c0_i32_2 = arith.constant 0 : i32
    %c0_i32_3 = arith.constant 0 : i32
    return %c0_i32, %c0_i32_0, %c0_i32_1, %c0_i32_2 : i32, i32, i32, i32
  }
  func.func @transform_5(%arg0: i32) -> (i32, i32, i32, i32) {
    %c0_i32 = arith.constant 0 : i32
    %c0_i32_0 = arith.constant 0 : i32
    %c0_i32_1 = arith.constant 0 : i32
    %c0_i32_2 = arith.constant 0 : i32
    %c0_i32_3 = arith.constant 0 : i32
    return %c0_i32, %c0_i32_0, %c0_i32_1, %c0_i32_2 : i32, i32, i32, i32
  }
  func.func @transform_6(%arg0: i32) -> (i32, i32, i32, i32) {
    %c0_i32 = arith.constant 0 : i32
    %c0_i32_0 = arith.constant 0 : i32
    %c0_i32_1 = arith.constant 0 : i32
    %c0_i32_2 = arith.constant 0 : i32
    %c0_i32_3 = arith.constant 0 : i32
    return %c0_i32, %c0_i32_0, %c0_i32_1, %c0_i32_2 : i32, i32, i32, i32
  }
  func.func @transform_7(%arg0: i32) -> (i32, i32, i32, i32) {
    %c0_i32 = arith.constant 0 : i32
    %c0_i32_0 = arith.constant 0 : i32
    %c0_i32_1 = arith.constant 0 : i32
    %c0_i32_2 = arith.constant 0 : i32
    %c0_i32_3 = arith.constant 0 : i32
    return %c0_i32, %c0_i32_0, %c0_i32_1, %c0_i32_2 : i32, i32, i32, i32
  }
  func.func @transform_8(%arg0: i32) -> (i32, i32, i32) {
    %c0_i32 = arith.constant 0 : i32
    %c0_i32_0 = arith.constant 0 : i32
    %c0_i32_1 = arith.constant 0 : i32
    %c0_i32_2 = arith.constant 0 : i32
    return %c0_i32, %c0_i32_0, %c0_i32_1 : i32, i32, i32
  }
  func.func @transform_9(%arg0: i32) -> (i32, i32, i32) {
    %c0_i32 = arith.constant 0 : i32
    %c0_i32_0 = arith.constant 0 : i32
    %c0_i32_1 = arith.constant 0 : i32
    %c0_i32_2 = arith.constant 0 : i32
    return %c0_i32, %c0_i32_0, %c0_i32_1 : i32, i32, i32
  }
  func.func @transform_10(%arg0: i32) -> (i32, i32, i32, i32) {
    %c0_i32 = arith.constant 0 : i32
    %c0_i32_0 = arith.constant 0 : i32
    %c0_i32_1 = arith.constant 0 : i32
    %c0_i32_2 = arith.constant 0 : i32
    %c0_i32_3 = arith.constant 0 : i32
    return %c0_i32, %c0_i32_0, %c0_i32_1, %c0_i32_2 : i32, i32, i32, i32
  }
  func.func @transform_11(%arg0: i32) -> (i32, i32, i32, i32) {
    %c0_i32 = arith.constant 0 : i32
    %c0_i32_0 = arith.constant 0 : i32
    %c0_i32_1 = arith.constant 0 : i32
    %c0_i32_2 = arith.constant 0 : i32
    %c0_i32_3 = arith.constant 0 : i32
    return %c0_i32, %c0_i32_0, %c0_i32_1, %c0_i32_2 : i32, i32, i32, i32
  }
  func.func @transform_12(%arg0: i32) -> (i32, i32, i32, i32) {
    %c0_i32 = arith.constant 0 : i32
    %c0_i32_0 = arith.constant 0 : i32
    %c0_i32_1 = arith.constant 0 : i32
    %c0_i32_2 = arith.constant 0 : i32
    %c0_i32_3 = arith.constant 0 : i32
    return %c0_i32, %c0_i32_0, %c0_i32_1, %c0_i32_2 : i32, i32, i32, i32
  }
  func.func @transform_13(%arg0: i32) -> (i32, i32, i32, i32) {
    %c0_i32 = arith.constant 0 : i32
    %c0_i32_0 = arith.constant 0 : i32
    %c0_i32_1 = arith.constant 0 : i32
    %c0_i32_2 = arith.constant 0 : i32
    %c0_i32_3 = arith.constant 0 : i32
    return %c0_i32, %c0_i32_0, %c0_i32_1, %c0_i32_2 : i32, i32, i32, i32
  }
  func.func @transform_14(%arg0: i32) -> (i32, i32, i32) {
    %c0_i32 = arith.constant 0 : i32
    %c0_i32_0 = arith.constant 0 : i32
    %c0_i32_1 = arith.constant 0 : i32
    %c0_i32_2 = arith.constant 0 : i32
    return %c0_i32, %c0_i32_0, %c0_i32_1 : i32, i32, i32
  }
  func.func @transform_15(%arg0: i32) -> (i32, i32, i32) {
    %c0_i32 = arith.constant 0 : i32
    %c0_i32_0 = arith.constant 0 : i32
    %c0_i32_1 = arith.constant 0 : i32
    %c0_i32_2 = arith.constant 0 : i32
    return %c0_i32, %c0_i32_0, %c0_i32_1 : i32, i32, i32
  }
  func.func @transform_16(%arg0: i32) -> (i32, i32, i32, i32) {
    %c0_i32 = arith.constant 0 : i32
    %c0_i32_0 = arith.constant 0 : i32
    %c0_i32_1 = arith.constant 0 : i32
    %c0_i32_2 = arith.constant 0 : i32
    %c0_i32_3 = arith.constant 0 : i32
    return %c0_i32, %c0_i32_0, %c0_i32_1, %c0_i32_2 : i32, i32, i32, i32
  }
  func.func @transform_17(%arg0: i32) -> (i32, i32, i32, i32) {
    %c0_i32 = arith.constant 0 : i32
    %c0_i32_0 = arith.constant 0 : i32
    %c0_i32_1 = arith.constant 0 : i32
    %c0_i32_2 = arith.constant 0 : i32
    %c0_i32_3 = arith.constant 0 : i32
    return %c0_i32, %c0_i32_0, %c0_i32_1, %c0_i32_2 : i32, i32, i32, i32
  }
  func.func @transform_18(%arg0: i32) -> (i32, i32, i32, i32) {
    %c0_i32 = arith.constant 0 : i32
    %c0_i32_0 = arith.constant 0 : i32
    %c0_i32_1 = arith.constant 0 : i32
    %c0_i32_2 = arith.constant 0 : i32
    %c0_i32_3 = arith.constant 0 : i32
    return %c0_i32, %c0_i32_0, %c0_i32_1, %c0_i32_2 : i32, i32, i32, i32
  }
  func.func @transform_19(%arg0: i32) -> (i32, i32, i32, i32) {
    %c0_i32 = arith.constant 0 : i32
    %c0_i32_0 = arith.constant 0 : i32
    %c0_i32_1 = arith.constant 0 : i32
    %c0_i32_2 = arith.constant 0 : i32
    %c0_i32_3 = arith.constant 0 : i32
    return %c0_i32, %c0_i32_0, %c0_i32_1, %c0_i32_2 : i32, i32, i32, i32
  }
  func.func @transform_20(%arg0: i32) -> (i32, i32, i32, i32) {
    %c0_i32 = arith.constant 0 : i32
    %c0_i32_0 = arith.constant 0 : i32
    %c0_i32_1 = arith.constant 0 : i32
    %c0_i32_2 = arith.constant 0 : i32
    %c0_i32_3 = arith.constant 0 : i32
    return %c0_i32, %c0_i32_0, %c0_i32_1, %c0_i32_2 : i32, i32, i32, i32
  }
  func.func @transform_21(%arg0: i32) -> (i32, i32, i32, i32) {
    %c0_i32 = arith.constant 0 : i32
    %c0_i32_0 = arith.constant 0 : i32
    %c0_i32_1 = arith.constant 0 : i32
    %c0_i32_2 = arith.constant 0 : i32
    %c0_i32_3 = arith.constant 0 : i32
    return %c0_i32, %c0_i32_0, %c0_i32_1, %c0_i32_2 : i32, i32, i32, i32
  }
  func.func @transform_22(%arg0: i32) -> (i32, i32, i32, i32) {
    %c0_i32 = arith.constant 0 : i32
    %c0_i32_0 = arith.constant 0 : i32
    %c0_i32_1 = arith.constant 0 : i32
    %c0_i32_2 = arith.constant 0 : i32
    %c0_i32_3 = arith.constant 0 : i32
    return %c0_i32, %c0_i32_0, %c0_i32_1, %c0_i32_2 : i32, i32, i32, i32
  }
  func.func @transform_23(%arg0: i32) -> (i32, i32, i32, i32) {
    %c0_i32 = arith.constant 0 : i32
    %c0_i32_0 = arith.constant 0 : i32
    %c0_i32_1 = arith.constant 0 : i32
    %c0_i32_2 = arith.constant 0 : i32
    %c0_i32_3 = arith.constant 0 : i32
    return %c0_i32, %c0_i32_0, %c0_i32_1, %c0_i32_2 : i32, i32, i32, i32
  }
  func.func @transform_24(%arg0: i32) -> (i32, i32, i32) {
    %c0_i32 = arith.constant 0 : i32
    %c0_i32_0 = arith.constant 0 : i32
    %c0_i32_1 = arith.constant 0 : i32
    %c0_i32_2 = arith.constant 0 : i32
    return %c0_i32, %c0_i32_0, %c0_i32_1 : i32, i32, i32
  }
  func.func @transform_25(%arg0: i32) -> (i32, i32, i32) {
    %c0_i32 = arith.constant 0 : i32
    %c0_i32_0 = arith.constant 0 : i32
    %c0_i32_1 = arith.constant 0 : i32
    %c0_i32_2 = arith.constant 0 : i32
    return %c0_i32, %c0_i32_0, %c0_i32_1 : i32, i32, i32
  }
  func.func @transform_26(%arg0: i32) -> (i32, i32, i32) {
    %c0_i32 = arith.constant 0 : i32
    %c0_i32_0 = arith.constant 0 : i32
    %c0_i32_1 = arith.constant 0 : i32
    %c0_i32_2 = arith.constant 0 : i32
    return %c0_i32, %c0_i32_0, %c0_i32_1 : i32, i32, i32
  }
  func.func @transform_27(%arg0: i32) -> (i32, i32, i32) {
    %c0_i32 = arith.constant 0 : i32
    %c0_i32_0 = arith.constant 0 : i32
    %c0_i32_1 = arith.constant 0 : i32
    %c0_i32_2 = arith.constant 0 : i32
    return %c0_i32, %c0_i32_0, %c0_i32_1 : i32, i32, i32
  }
  func.func @transform_28(%arg0: i32) -> (i32, i32, i32) {
    %c0_i32 = arith.constant 0 : i32
    %c0_i32_0 = arith.constant 0 : i32
    %c0_i32_1 = arith.constant 0 : i32
    %c0_i32_2 = arith.constant 0 : i32
    return %c0_i32, %c0_i32_0, %c0_i32_1 : i32, i32, i32
  }
  func.func @transform_29(%arg0: i32) -> (i32, i32, i32) {
    %c0_i32 = arith.constant 0 : i32
    %c0_i32_0 = arith.constant 0 : i32
    %c0_i32_1 = arith.constant 0 : i32
    %c0_i32_2 = arith.constant 0 : i32
    return %c0_i32, %c0_i32_0, %c0_i32_1 : i32, i32, i32
  }
  func.func @transform_30(%arg0: i32) -> (i32, i32, i32) {
    %c0_i32 = arith.constant 0 : i32
    %c0_i32_0 = arith.constant 0 : i32
    %c0_i32_1 = arith.constant 0 : i32
    %c0_i32_2 = arith.constant 0 : i32
    return %c0_i32, %c0_i32_0, %c0_i32_1 : i32, i32, i32
  }
  func.func @transform_31(%arg0: i32) -> (i32, i32, i32) {
    %c0_i32 = arith.constant 0 : i32
    %c0_i32_0 = arith.constant 0 : i32
    %c0_i32_1 = arith.constant 0 : i32
    %c0_i32_2 = arith.constant 0 : i32
    return %c0_i32, %c0_i32_0, %c0_i32_1 : i32, i32, i32
  }
  func.func @transform_32(%arg0: i32) -> (i32, i32, i32) {
    %c0_i32 = arith.constant 0 : i32
    %c0_i32_0 = arith.constant 0 : i32
    %c0_i32_1 = arith.constant 0 : i32
    %c0_i32_2 = arith.constant 0 : i32
    return %c0_i32, %c0_i32_0, %c0_i32_1 : i32, i32, i32
  }
  func.func @transform_33(%arg0: i32) -> (i32, i32, i32) {
    %c0_i32 = arith.constant 0 : i32
    %c0_i32_0 = arith.constant 0 : i32
    %c0_i32_1 = arith.constant 0 : i32
    %c0_i32_2 = arith.constant 0 : i32
    return %c0_i32, %c0_i32_0, %c0_i32_1 : i32, i32, i32
  }
  func.func @transform_34(%arg0: i32) -> (i32, i32, i32) {
    %c0_i32 = arith.constant 0 : i32
    %c0_i32_0 = arith.constant 0 : i32
    %c0_i32_1 = arith.constant 0 : i32
    %c0_i32_2 = arith.constant 0 : i32
    return %c0_i32, %c0_i32_0, %c0_i32_1 : i32, i32, i32
  }
  func.func @transform_35(%arg0: i32) -> (i32, i32, i32) {
    %c0_i32 = arith.constant 0 : i32
    %c0_i32_0 = arith.constant 0 : i32
    %c0_i32_1 = arith.constant 0 : i32
    %c0_i32_2 = arith.constant 0 : i32
    return %c0_i32, %c0_i32_0, %c0_i32_1 : i32, i32, i32
  }
  func.func @transform_36(%arg0: i32) -> (i32, i32, i32) {
    %c0_i32 = arith.constant 0 : i32
    %c0_i32_0 = arith.constant 0 : i32
    %c0_i32_1 = arith.constant 0 : i32
    %c0_i32_2 = arith.constant 0 : i32
    return %c0_i32, %c0_i32_0, %c0_i32_1 : i32, i32, i32
  }
  func.func @transform_37(%arg0: i32) -> (i32, i32, i32) {
    %c0_i32 = arith.constant 0 : i32
    %c0_i32_0 = arith.constant 0 : i32
    %c0_i32_1 = arith.constant 0 : i32
    %c0_i32_2 = arith.constant 0 : i32
    return %c0_i32, %c0_i32_0, %c0_i32_1 : i32, i32, i32
  }
  func.func @transform_38(%arg0: i32) -> (i32, i32, i32) {
    %c0_i32 = arith.constant 0 : i32
    %c0_i32_0 = arith.constant 0 : i32
    %c0_i32_1 = arith.constant 0 : i32
    %c0_i32_2 = arith.constant 0 : i32
    return %c0_i32, %c0_i32_0, %c0_i32_1 : i32, i32, i32
  }
  func.func @transform_39(%arg0: i32) -> (i32, i32, i32) {
    %c0_i32 = arith.constant 0 : i32
    %c0_i32_0 = arith.constant 0 : i32
    %c0_i32_1 = arith.constant 0 : i32
    %c0_i32_2 = arith.constant 0 : i32
    return %c0_i32, %c0_i32_0, %c0_i32_1 : i32, i32, i32
  }
  func.func @transform_40(%arg0: i32) -> (i32, i32, i32) {
    %c0_i32 = arith.constant 0 : i32
    %c0_i32_0 = arith.constant 0 : i32
    %c0_i32_1 = arith.constant 0 : i32
    return %arg0, %c0_i32, %c0_i32_0 : i32, i32, i32
  }
  func.func @transform_41(%arg0: i32) -> (i32, i32, i32) {
    %c0_i32 = arith.constant 0 : i32
    %c0_i32_0 = arith.constant 0 : i32
    %c0_i32_1 = arith.constant 0 : i32
    return %arg0, %c0_i32, %c0_i32_0 : i32, i32, i32
  }
  func.func @transform_42(%arg0: i32) -> (i32, i32, i32, i32) {
    %c0_i32 = arith.constant 0 : i32
    %c0_i32_0 = arith.constant 0 : i32
    %c0_i32_1 = arith.constant 0 : i32
    %c0_i32_2 = arith.constant 0 : i32
    return %arg0, %c0_i32, %c0_i32_0, %c0_i32_1 : i32, i32, i32, i32
  }
  func.func @transform_43(%arg0: i32) -> (i32, i32, i32, i32) {
    %c0_i32 = arith.constant 0 : i32
    %c0_i32_0 = arith.constant 0 : i32
    %c0_i32_1 = arith.constant 0 : i32
    %c0_i32_2 = arith.constant 0 : i32
    return %arg0, %c0_i32, %c0_i32_0, %c0_i32_1 : i32, i32, i32, i32
  }
  func.func @transform_44(%arg0: i32) -> (i32, i32, i32, i32) {
    %c0_i32 = arith.constant 0 : i32
    %c0_i32_0 = arith.constant 0 : i32
    %c0_i32_1 = arith.constant 0 : i32
    %c0_i32_2 = arith.constant 0 : i32
    return %arg0, %c0_i32, %c0_i32_0, %c0_i32_1 : i32, i32, i32, i32
  }
}

</mosaic_0001>

<bundles_post_ra>
// kernel: forward.1
= control target key start
LH: loop header
LB: loop body
LE: loop exit
PB: predicated region body
PF: predicated region fallthrough
CT: control target
= control target key end

     0   :  { %s26712_s6 = smov 1   ;;  %s26713_s10 = smov 2   ;;  %s29891_s0 = inlined_call_operand.smem [shape: u32[45], index: -1, kind: input, shape index: {}] }
   0x1   :  { %s26771_s5 = sld [smem:[%s29891_s0]]   ;;  %s26714_s14 = smov 3  }
   0x2   :  { %s26776_s9 = sld [smem:[%s29891_s0 + %s26712_s6]]   ;;  %s26715_s18 = smov 4  }
   0x3   :  { %s26781_s13 = sld [smem:[%s29891_s0 + %s26713_s10]]   ;;  %s26716_s22 = smov 5  }
   0x4   :  { %s26786_s17 = sld [smem:[%s29891_s0 + %s26714_s14]]   ;;  %s26717_s26 = smov 6  }
   0x5   :  { %s26791_s21 = sld [smem:[%s29891_s0 + %s26715_s18]]   ;;  %s26718_s30 = smov 7  }
   0x6   :  { %s26796_s25 = sld [smem:[%s29891_s0 + %s26716_s22]]   ;;  %s26719_s4 = smov 8  }
   0x7   :  { %29947 = sst [smem:[#allocation8_spill]] %s26771_s5  ;;  %s26720_s10 = smov 9  }
   0x8   :  { %29948 = sst [smem:[#allocation9_spill]] %s26776_s9  ;;  %s26721_s15 = smov 10  }
   0x9   :  { %29949 = sst [smem:[#allocation10_spill]] %s26781_s13  ;;  %s26722_s20 = smov 11  }
   0xa   :  { %29950 = sst [smem:[#allocation11_spill]] %s26786_s17  ;;  %s26724_s1 = smov 13  }
   0xb   :  { %29951 = sst [smem:[#allocation12_spill]] %s26791_s21  ;;  %s26725_s7 = smov 14  }
   0xc   :  { %s26801_s29 = sld [smem:[%s29891_s0 + %s26717_s26]]   ;;  %s26723_s26 = smov 12  }
   0xd   :  { %s26806_s3 = sld [smem:[%s29891_s0 + %s26718_s30]]   ;;  %s26727_s22 = smov 16  }
   0xe   :  { %s26811_s8 = sld [smem:[%s29891_s0 + %s26719_s4]]   ;;  %s26728_s28 = smov 17  }
   0xf   :  { %s26816_s14 = sld [smem:[%s29891_s0 + %s26720_s10]]  }
  0x10   :  { %s26821_s19 = sld [smem:[%s29891_s0 + %s26721_s15]]   ;;  %s26726_s15 = smov 15  }
  0x11   :  { %s26826_s24 = sld [smem:[%s29891_s0 + %s26722_s20]]  }
  0x12   :  { %s26831_s30 = sld [smem:[%s29891_s0 + %s26723_s26]]  }
  0x13   :  { %29952 = sst [smem:[#allocation13_spill]] %s26806_s3 }
  0x14   :  { %29953 = sst [smem:[#allocation14_spill]] %s26811_s8 }
  0x15   :  { %29954 = sst [smem:[#allocation15_spill]] %s26816_s14 }
  0x16   :  { %s26836_s6 = sld [smem:[%s29891_s0 + %s26724_s1]]  }
  0x17   :  { %s26841_s12 = sld [smem:[%s29891_s0 + %s26725_s7]]   ;;  %s26729_s7 = smov 18  }
  0x18   :  { %s26846_s20 = sld [smem:[%s29891_s0 + %s26726_s15]]   ;;  %s26730_s15 = smov 19  }
  0x19   :  { %s26851_s27 = sld [smem:[%s29891_s0 + %s26727_s22]]   ;;  %s26731_s22 = smov 20  }
  0x1a   :  { %s26856_s4 = sld [smem:[%s29891_s0 + %s26728_s28]]   ;;  %s26732_s28 = smov 21  }
  0x1b   :  { %s26871_s14 = sld [smem:[%s29891_s0 + %s26731_s22]]   ;;  %s26735_s22 = smov 24  }
  0x1c   :  { %29955 = sst [smem:[#allocation16_spill]] %s26836_s6 }
  0x1d   :  { %29956 = sst [smem:[#allocation17_spill]] %s26841_s12 }
  0x1e   :  { %29957 = sst [smem:[#allocation18_spill]] %s26846_s20 }
  0x1f   :  { %s26861_s12 = sld [smem:[%s29891_s0 + %s26729_s7]]   ;;  %s26733_s7 = smov 22  }
  0x20   :  { %29958 = sst [smem:[#allocation19_spill]] %s26856_s4 }
  0x21   :  { %s26866_s20 = sld [smem:[%s29891_s0 + %s26730_s15]]   ;;  %s26734_s15 = smov 23  }
  0x22   :  { %29961 = sst [smem:[#allocation22_spill]] %s26871_s14 }
  0x23   :  { %s26876_s4 = sld [smem:[%s29891_s0 + %s26732_s28]]   ;;  %s26736_s28 = smov 25  }
  0x24   :  { %s26891_s14 = sld [smem:[%s29891_s0 + %s26735_s22]]   ;;  %s26739_s22 = smov 28  }
  0x25   :  { %29959 = sst [smem:[#allocation20_spill]] %s26861_s12 }
  0x26   :  { %s26881_s12 = sld [smem:[%s29891_s0 + %s26733_s7]]   ;;  %s26737_s7 = smov 26  }
  0x27   :  { %29960 = sst [smem:[#allocation21_spill]] %s26866_s20 }
  0x28   :  { %s26886_s20 = sld [smem:[%s29891_s0 + %s26734_s15]]   ;;  %s26738_s15 = smov 27  }
  0x29   :  { %29962 = sst [smem:[#allocation23_spill]] %s26876_s4 }
  0x2a   :  { %29965 = sst [smem:[#allocation26_spill]] %s26891_s14 }
  0x2b   :  { %s26896_s4 = sld [smem:[%s29891_s0 + %s26736_s28]]   ;;  %s26740_s28 = smov 29  }
  0x2c   :  { %29963 = sst [smem:[#allocation24_spill]] %s26881_s12 }
  0x2d   :  { %s26901_s12 = sld [smem:[%s29891_s0 + %s26737_s7]]   ;;  %s26741_s7 = smov 30  }
  0x2e   :  { %29964 = sst [smem:[#allocation25_spill]] %s26886_s20 }
  0x2f   :  { %s26906_s20 = sld [smem:[%s29891_s0 + %s26738_s15]]   ;;  %s26742_s15 = smov 31  }
  0x30   :  { %s26911_s14 = sld [smem:[%s29891_s0 + %s26739_s22]]   ;;  %s26743_s22 = smov 32  }
  0x31   :  { %29966 = sst [smem:[#allocation27_spill]] %s26896_s4 }
  0x32   :  { %s26916_s4 = sld [smem:[%s29891_s0 + %s26740_s28]]   ;;  %s26744_s28 = smov 33  }
  0x33   :  { %29967 = sst [smem:[#allocation28_spill]] %s26901_s12 }
  0x34   :  { %s26921_s12 = sld [smem:[%s29891_s0 + %s26741_s7]]   ;;  %s26745_s7 = smov 34  }
  0x35   :  { %29968 = sst [smem:[#allocation29_spill]] %s26906_s20 }
  0x36   :  { %29969 = sst [smem:[#allocation30_spill]] %s26911_s14 }
  0x37   :  { %s26926_s20 = sld [smem:[%s29891_s0 + %s26742_s15]]   ;;  %s26746_s15 = smov 35  }
  0x38   :  { %29970 = sst [smem:[#allocation31_spill]] %s26916_s4 }
  0x39   :  { %s26931_s14 = sld [smem:[%s29891_s0 + %s26743_s22]]   ;;  %s26747_s22 = smov 36  }
  0x3a   :  { %29971 = sst [smem:[#allocation32_spill]] %s26921_s12 }
  0x3b   :  { %s26936_s4 = sld [smem:[%s29891_s0 + %s26744_s28]]   ;;  %s26748_s28 = smov 37  }
  0x3c   :  { %s26941_s12 = sld [smem:[%s29891_s0 + %s26745_s7]]   ;;  %s26749_s7 = smov 38  }
  0x3d   :  { %29972 = sst [smem:[#allocation33_spill]] %s26926_s20 }
  0x3e   :  { %s26946_s20 = sld [smem:[%s29891_s0 + %s26746_s15]]   ;;  %s26750_s15 = smov 39  }
  0x3f   :  { %29973 = sst [smem:[#allocation34_spill]] %s26931_s14 }
  0x40   :  { %s26951_s14 = sld [smem:[%s29891_s0 + %s26747_s22]]   ;;  %s26751_s22 = smov 40  }
  0x41   :  { %29974 = sst [smem:[#allocation35_spill]] %s26936_s4 }
  0x42   :  { %29975 = sst [smem:[#allocation36_spill]] %s26941_s12 }
  0x43   :  { %s26956_s4 = sld [smem:[%s29891_s0 + %s26748_s28]]   ;;  %s26752_s28 = smov 41  }
  0x44   :  { %29976 = sst [smem:[#allocation37_spill]] %s26946_s20 }
  0x45   :  { %s26961_s12 = sld [smem:[%s29891_s0 + %s26749_s7]]   ;;  %s26753_s7 = smov 42  }
  0x46   :  { %29977 = sst [smem:[#allocation38_spill]] %s26951_s14 }
  0x47   :  { %s26966_s20 = sld [smem:[%s29891_s0 + %s26750_s15]]   ;;  %s26754_s15 = smov 43  }
  0x48   :  { %s26971_s14 = sld [smem:[%s29891_s0 + %s26751_s22]]   ;;  %s26755_s22 = smov 44  }
  0x49   :  { %29978 = sst [smem:[#allocation39_spill]] %s26956_s4 }
  0x4a   :  { %s26976_s4 = sld [smem:[%s29891_s0 + %s26752_s28]]  }
  0x4b   :  { %29979 = sst [smem:[#allocation40_spill]] %s26961_s12 }
  0x4c   :  { %s26981_s12 = sld [smem:[%s29891_s0 + %s26753_s7]]  }
  0x4d   :  { %29980 = sst [smem:[#allocation41_spill]] %s26966_s20 }
  0x4e   :  { %29981 = sst [smem:[#allocation42_spill]] %s26971_s14 }
  0x4f   :  { %s26986_s20 = sld [smem:[%s29891_s0 + %s26754_s15]]  }
  0x50   :  { %29982 = sst [smem:[#allocation43_spill]] %s26976_s4 }
  0x51   :  { %s26991_s14 = sld [smem:[%s29891_s0 + %s26755_s22]]  }
  0x52   :  { %29983 = sst [smem:[#allocation44_spill]] %s26981_s12 }
  0x55   :  { %29984 = sst [smem:[#allocation45_spill]] %s26986_s20 }
  0x57   :  { %29985 = sst [smem:[#allocation46_spill]] %s26991_s14 }
  0x58   :  { %95 = vsyncpa [#allocation3], 0 }
  0x59   :  { %97 = vsyncpa [#allocation3 + $0x1], 0 }
  0x5a   :  { %98 = vsyncpa [#allocation5], 0 }
  0x5b   :  { %100 = vsyncpa [#allocation5 + $0x1], 0  ;;  %s26993_s28 = smov 0   ;;  %s26995_s1 = smov 0  }
  0x5c   :  { %s26997_s2 = smov 0   ;;  %s26999_s7 = smov 0  }
  0x5d LB: > { %s29986_s8 = sld [smem:[#allocation14_spill]]  ;;  %s29987_s6 = sld [smem:[#allocation16_spill]]  ;;  %s26698_s28 = sphi %s26993_s28, %s30063_s28   ;;  %s26710_s7 = sphi %s26999_s7, %s30062_s7   ;;  %s26706_s2 = sphi %s26997_s2, %s30065_s2   ;;  %s26702_s1 = sphi %s26995_s1, %s30064_s1  }
  0x5e   : > { %s29988_s3 = sld [smem:[#allocation13_spill]]  ;;  %s29989_s21 = sld [smem:[#allocation12_spill]] }
  0x5f   : > { %s29990_s13 = sld [smem:[#allocation10_spill]]  ;;  %29991 = sst [smem:[#allocation47_spill]] %s26698_s28 }
  0x60   : > { %29992 = sst [smem:[#allocation48_spill]] %s26702_s1  ;;  %s27014_s0 = sadd.s32 4294967295, %s26710_s7  }
  0x61   : > { %29993 = sst [smem:[#allocation49_spill]] %s26706_s2  ;;  %s19384_s10 = sadd.s32 4294967294, %s26710_s7  }
  0x62   : > { %29994 = sst [smem:[#allocation50_spill]] %s26710_s7  ;;  %s27018_s11 = sadd.s32 1, %s26710_s7  }
  0x63   : > { %29995 = sst [smem:[#allocation51_spill]] %s27014_s0  ;;  %s963_s15 = sadd.s32 1, %s26706_s2 }
  0x64   : > { %29996 = sst [smem:[#allocation52_spill]] %s27018_s11  ;;  %s960_s16 = ssub.s32 %s26710_s7, %s27018_s11 }
  0x65   : > { %p973_p0 = scmp.ne.s32.totalorder %s26706_s2, %s26702_s1  ;;  %p961_p1 = scmp.eq.s32.totalorder %s960_s16, 0 }
  0x66   : > { %p974_p2 = scmp.eq.s32.totalorder %s27014_s0, 1  ;;  %p979_p3 = scmp.ne.s32.totalorder %s26702_s1, %s26698_s28 }
  0x67   : > { %p980_p4 = scmp.eq.s32.totalorder %s19384_s10, 1  ;;  %p19387_p7 = scmp.ge.s32.totalorder %s26710_s7, 1 }
  0x68   : > { %s27029_s18 = scalar_select %p961_p1, %s26706_s2, %s963_s15  }
  0x69   : > { %p27031_p5 = por %p974_p2, %p973_p0  ;;  %p27035_p6 = por %p980_p4, %p979_p3 }
  0x6a   : > { %29997 = sst [smem:[#allocation53_spill]] %s27029_s18  ;;  %p1231_p8 = scmp.lt.s32.totalorder %s26710_s7, 3 }
  0x6b   : > { %s29998_s22 = scalar_select %p27031_p5, 1, 0 }
  0x6c   : > { %s30000_s23 = scalar_select %p27035_p6, 1, 0 }
  0x6d   : > { %29999 = sst [smem:[#allocation54_spill]] %s29998_s22  ;;  %p1232_p9 = pnand %p19387_p7, %p1231_p8 }
  0x6e   : > { %30001 = sst [smem:[#allocation55_spill]] %s30000_s23  ;;  %v1417_v0 = vld [vmem:[%s29990_s13 + $0x80] sm:$0xff] (!%p1232_p9)  ;;  %v1418_v1 = vld [vmem:[%s29990_s13 + $0x88] sm:$0xff] (!%p1232_p9)  ;;  %v1419_v11 = vld [vmem:[%s29990_s13 + $0x90] sm:$0xff] (!%p1232_p9)  ;;  %p1361_p10 = scmp.lt.s32.totalorder (!%p1232_p9), %s27014_s0, 1  ;;  %vm1943_vm0 = vcmask (!%p1232_p9), 523264  }
  0x6f   : > { %1235 = sbr.rel (%p1232_p9) target bundleno = 11018 (0x2b0a), region = 180  ;;  %v1401_v2 = vld [vmem:[%s29990_s13] sm:$0xff] (!%p1232_p9)  ;;  %v24406_v3 = vpack.c.bf16 (!%p1232_p9), %v1418_v1, %v1417_v0  ;;  %v1402_v4 = vld [vmem:[%s29990_s13 + $0x8] sm:$0xff] (!%p1232_p9)  ;;  %v1420_v13 = vld [vmem:[%s29990_s13 + $0x98] sm:$0xff] (!%p1232_p9)  ;;  %s30002_s9 = sld [smem:[#allocation9_spill]] (!%p1232_p9)  ;;  %vm2850_vm1 = vcmask (!%p1232_p9), 130048  }
  0x70   : > { %v1449_v5 = vld [vmem:[%s29990_s13 + $0x180] sm:$0xff] (!%p1232_p9)  ;;  %v1450_v6 = vld [vmem:[%s29990_s13 + $0x188] sm:$0xff] (!%p1232_p9)  ;;  %v24408_v7 = vpack.c.bf16 (!%p1232_p9), %v1402_v4, %v1401_v2  ;;  %v1403_v14 = vld [vmem:[%s29990_s13 + $0x10] sm:$0xff] (!%p1232_p9)  ;;  %v24410_v16 = vpack.c.bf16 (!%p1232_p9), %v1420_v13, %v1419_v11  ;;  %s30003_s17 = sld [smem:[#allocation11_spill]] (!%p1232_p9)  ;;  %s30006_s12 = sld [smem:[#allocation44_spill]] (!%p1232_p9)  ;;  %vm26757_vm3 = vmmov (!%p1232_p9), 0  }
  0x71   : > { %v24438_v8 = vpack.c.bf16 (!%p1232_p9), %v1450_v6, %v1449_v5  ;;  %v1433_v9 = vld [vmem:[%s29990_s13 + $0x100] sm:$0xff] (!%p1232_p9)  ;;  %v1434_v10 = vld [vmem:[%s29990_s13 + $0x108] sm:$0xff] (!%p1232_p9)  ;;  %24407 = vmatprep.subr.bf16.mxu0 (!%p1232_p9), %v24406_v3  ;;  %v1404_v15 = vld [vmem:[%s29990_s13 + $0x18] sm:$0xff] (!%p1232_p9)  ;;  %s30007_s5 = sld [smem:[#allocation8_spill]] (!%p1232_p9)  ;;  %vm5255_vm4 = vcmask (!%p1232_p9), 64512   ;;  %s30008_s20 = sld [smem:[#allocation45_spill]] (!%p1232_p9) }
  0x72   : > { %v24440_v12 = vpack.c.bf16 (!%p1232_p9), %v1434_v10, %v1433_v9  ;;  %24409 = vmatpush3.bf16.msra.mxu0 (!%p1232_p9), %v24408_v7  ;;  %v24412_v17 = vpack.c.bf16 (!%p1232_p9), %v1404_v15, %v1403_v14  ;;  %v1451_v18 = vld [vmem:[%s29990_s13 + $0x190] sm:$0xff] (!%p1232_p9)  ;;  %v1452_v19 = vld [vmem:[%s29990_s13 + $0x198] sm:$0xff] (!%p1232_p9)  ;;  %v1421_v23 = vld [vmem:[%s29990_s13 + $0xa0] sm:$0xff] (!%p1232_p9)  ;;  %s30016_s18 = sld [smem:[#allocation24_spill]] (!%p1232_p9)  ;;  %s30017_s2 = sld [smem:[#allocation21_spill]] (!%p1232_p9) }
  0x73   : > { %24439 = vmatprep.subr.bf16.mxu1 (!%p1232_p9), %v24438_v8  ;;  %v1435_v20 = vld [vmem:[%s29990_s13 + $0x110] sm:$0xff] (!%p1232_p9)  ;;  %v24442_v21 = vpack.c.bf16 (!%p1232_p9), %v1452_v19, %v1451_v18  ;;  %v1436_v22 = vld [vmem:[%s29990_s13 + $0x118] sm:$0xff] (!%p1232_p9)  ;;  %v1422_v24 = vld [vmem:[%s29990_s13 + $0xa8] sm:$0xff] (!%p1232_p9)  ;;  %24411 = vmatprep.subr.bf16.mxu0 (!%p1232_p9), %v24410_v16  ;;  %s30019_s14 = sld [smem:[#allocation46_spill]] (!%p1232_p9)  ;;  %s30025_s7 = sld [smem:[#allocation27_spill]] (!%p1232_p9) }
  0x74   : > { %24441 = vmatpush3.bf16.msra.mxu1 (!%p1232_p9), %v24440_v12  ;;  %v24444_v25 = vpack.c.bf16 (!%p1232_p9), %v1436_v22, %v1435_v20  ;;  %v24414_v26 = vpack.c.bf16 (!%p1232_p9), %v1422_v24, %v1421_v23  ;;  %v1405_v27 = vld [vmem:[%s29990_s13 + $0x20] sm:$0xff] (!%p1232_p9)  ;;  %v1406_v28 = vld [vmem:[%s29990_s13 + $0x28] sm:$0xff] (!%p1232_p9)  ;;  %v1423_v35 = vld [vmem:[%s29990_s13 + $0xb0] sm:$0xff] (!%p1232_p9)  ;;  %s30026_s22 = sld [smem:[#allocation32_spill]] (!%p1232_p9)  ;;  %s30031_s1 = sld [smem:[#allocation29_spill]] (!%p1232_p9) }
  0x75   : > { %v1453_v29 = vld [vmem:[%s29990_s13 + $0x1a0] sm:$0xff] (!%p1232_p9)  ;;  %24443 = vmatprep.subr.bf16.mxu1 (!%p1232_p9), %v24442_v21  ;;  %v1454_v30 = vld [vmem:[%s29990_s13 + $0x1a8] sm:$0xff] (!%p1232_p9)  ;;  %v24416_v33 = vpack.c.bf16 (!%p1232_p9), %v1406_v28, %v1405_v27  ;;  %v1424_v36 = vld [vmem:[%s29990_s13 + $0xb8] sm:$0xff] (!%p1232_p9) }
  0x76   : > { %v1437_v31 = vld [vmem:[%s29990_s13 + $0x120] sm:$0xff]  ;;  %v1438_v32 = vld [vmem:[%s29990_s13 + $0x128] sm:$0xff]  ;;  %24413 = vmatpush3.bf16.msra.mxu0 %v24412_v17  ;;  %v24446_v34 = vpack.c.bf16 %v1454_v30, %v1453_v29  ;;  %v1407_v37 = vld [vmem:[%s29990_s13 + $0x30] sm:$0xff]  ;;  %v24418_v39 = vpack.c.bf16 %v1424_v36, %v1423_v35  ;;  %s27079_s26 = scalar_select %p1361_p10, %s27014_s0, 1 }
  0x77   : > { %24415 = vmatprep.subr.bf16.mxu0 %v24414_v26  ;;  %v24448_v38 = vpack.c.bf16 %v1438_v32, %v1437_v31  ;;  %v1408_v40 = vld [vmem:[%s29990_s13 + $0x38] sm:$0xff]  ;;  %v1455_v41 = vld [vmem:[%s29990_s13 + $0x1b0] sm:$0xff]  ;;  %v1425_v46 = vld [vmem:[%s29990_s13 + $0xc0] sm:$0xff]  ;;  %s30027_s0 = sld [smem:[#allocation36_spill]] }
  0x78   : > { %24445 = vmatpush3.bf16.msra.mxu1 %v24444_v25  ;;  %v1456_v42 = vld [vmem:[%s29990_s13 + $0x1b8] sm:$0xff]  ;;  %v1439_v44 = vld [vmem:[%s29990_s13 + $0x130] sm:$0xff]  ;;  %v1426_v47 = vld [vmem:[%s29990_s13 + $0xc8] sm:$0xff]  ;;  %v24420_v48 = vpack.c.bf16 %v1408_v40, %v1407_v37  ;;  %s20277_s10 = sshll.u32 %s27079_s26, 7  ;;  %s30018_s11 = smov %s30017_s2 }
  0x79   : > { %24447 = vmatprep.subr.bf16.mxu1 %v24446_v34  ;;  %v24450_v43 = vpack.c.bf16 %v1456_v42, %v1455_v41  ;;  %v1440_v45 = vld [vmem:[%s29990_s13 + $0x138] sm:$0xff]  ;;  %v1457_v49 = vld [vmem:[%s29990_s13 + $0x1c0] sm:$0xff]  ;;  %v1458_v50 = vld [vmem:[%s29990_s13 + $0x1c8] sm:$0xff]  ;;  %v24422_v52 = vpack.c.bf16 %v1426_v47, %v1425_v46  ;;  %s27101_s15 = scalar_lea.vmem %s30002_s9, %s20277_s10  ;;  %s27401_s16 = scalar_lea.vmem %s30006_s12, %s20277_s10 }
  0x7a   : > { %24417 = vmatpush3.bf16.msra.mxu0 %v24416_v33  ;;  %v24452_v51 = vpack.c.bf16 %v1440_v45, %v1439_v44  ;;  %v1409_v53 = vld [vmem:[%s29990_s13 + $0x40] sm:$0xff]  ;;  %v1410_v54 = vld [vmem:[%s29990_s13 + $0x48] sm:$0xff]  ;;  %v24454_v56 = vpack.c.bf16 %v1458_v50, %v1457_v49  ;;  %v1427_v58 = vld [vmem:[%s29990_s13 + $0xd0] sm:$0xff]  ;;  %s19390_s10 = sshll.u32 %s27079_s26, 3  ;;  %s30010_s9 = sld [smem:[#allocation19_spill]] }
  0x7b   : > { %24419 = vmatprep.subr.bf16.mxu0 %v24418_v39  ;;  %v1441_v55 = vld [vmem:[%s29990_s13 + $0x140] sm:$0xff]  ;;  %v1442_v57 = vld [vmem:[%s29990_s13 + $0x148] sm:$0xff]  ;;  %v1428_v59 = vld [vmem:[%s29990_s13 + $0xd8] sm:$0xff]  ;;  %v24424_v62 = vpack.c.bf16 %v1410_v54, %v1409_v53  ;;  %s30011_s12 = sld [smem:[#allocation20_spill]]  ;;  %s30020_s23 = sshll.u32 %s27079_s26, 6 }
  0x7c   : > { %24449 = vmatpush3.bf16.msra.mxu1 %v24448_v38  ;;  %v1459_v60 = vld [vmem:[%s29990_s13 + $0x1d0] sm:$0xff]  ;;  %v1460_v61 = vld [vmem:[%s29990_s13 + $0x1d8] sm:$0xff]  ;;  %v24456_v63 = vpack.c.bf16 %v1442_v57, %v1441_v55  ;;  %v24426_v0 = vpack.c.bf16 %v1428_v59, %v1427_v58  ;;  %v1429_v6 = vld [vmem:[%s29990_s13 + $0xe0] sm:$0xff]  ;;  %s28321_s28 = scalar_lea.vmem %s30019_s14, %s30020_s23  ;;  %s30032_s14 = sld [smem:[#allocation31_spill]] }
  0x7d   : > { %24451 = vmatprep.subr.bf16.mxu1 %v24450_v43  ;;  %v1411_v1 = vld [vmem:[%s29990_s13 + $0x50] sm:$0xff]  ;;  %v1412_v2 = vld [vmem:[%s29990_s13 + $0x58] sm:$0xff]  ;;  %v24458_v4 = vpack.c.bf16 %v1460_v61, %v1459_v60  ;;  %v1430_v7 = vld [vmem:[%s29990_s13 + $0xe8] sm:$0xff] }
  0x7e   : > { %24421 = vmatpush3.bf16.msra.mxu0 %v24420_v48  ;;  %v1443_v3 = vld [vmem:[%s29990_s13 + $0x150] sm:$0xff]  ;;  %v1444_v5 = vld [vmem:[%s29990_s13 + $0x158] sm:$0xff]  ;;  %v1461_v8 = vld [vmem:[%s29990_s13 + $0x1e0] sm:$0xff]  ;;  %v24428_v10 = vpack.c.bf16 %v1412_v2, %v1411_v1  ;;  %v24430_v14 = vpack.c.bf16 %v1430_v7, %v1429_v6 }
  0x7f   : > { %24423 = vmatprep.subr.bf16.mxu0 %v24422_v52  ;;  %v1462_v9 = vld [vmem:[%s29990_s13 + $0x1e8] sm:$0xff]  ;;  %v1413_v11 = vld [vmem:[%s29990_s13 + $0x60] sm:$0xff]  ;;  %v24460_v13 = vpack.c.bf16 %v1444_v5, %v1443_v3  ;;  %v1431_v19 = vld [vmem:[%s29990_s13 + $0xf0] sm:$0xff] }
  0x80   : > { %24453 = vmatpush3.bf16.msra.mxu1 %v24452_v51  ;;  %v1414_v12 = vld [vmem:[%s29990_s13 + $0x68] sm:$0xff]  ;;  %v1445_v15 = vld [vmem:[%s29990_s13 + $0x160] sm:$0xff]  ;;  %v24462_v18 = vpack.c.bf16 %v1462_v9, %v1461_v8  ;;  %v1432_v20 = vld [vmem:[%s29990_s13 + $0xf8] sm:$0xff] }
  0x81   : > { %24455 = vmatprep.subr.bf16.mxu1 %v24454_v56  ;;  %v1446_v16 = vld [vmem:[%s29990_s13 + $0x168] sm:$0xff]  ;;  %v1388_v21 = vld [vmem:[%s27101_s15 + $0x18] sm:$0xff]  ;;  %v1463_v22 = vld [vmem:[%s29990_s13 + $0x1f0] sm:$0xff]  ;;  %v24432_v24 = vpack.c.bf16 %v1414_v12, %v1413_v11  ;;  %v24434_v26 = vpack.c.bf16 %v1432_v20, %v1431_v19 }
  0x82   : > { %24425 = vmatpush3.bf16.msra.mxu0 %v24424_v62  ;;  %v1386_v17 = vld [vmem:[%s27101_s15 + $0x8] sm:$0xff]  ;;  %v1464_v23 = vld [vmem:[%s29990_s13 + $0x1f8] sm:$0xff]  ;;  %1675 = vmatprep.mubr.f32.mxu1 %v1388_v21  ;;  %v24464_v25 = vpack.c.bf16 %v1446_v16, %v1445_v15  ;;  %v1415_v27 = vld [vmem:[%s29990_s13 + $0x70] sm:$0xff] }
  0x83   : > { %24427 = vmatprep.subr.bf16.mxu0 %v24426_v0  ;;  %1600 = vmatprep.mubr.f32.mxu0 %v1386_v17  ;;  %v1416_v28 = vld [vmem:[%s29990_s13 + $0x78] sm:$0xff]  ;;  %v1447_v29 = vld [vmem:[%s29990_s13 + $0x170] sm:$0xff]  ;;  %v24466_v30 = vpack.c.bf16 %v1464_v23, %v1463_v22  ;;  %v1481_v32 = vld [vmem:[%s29990_s13 + $0x280] sm:$0xff] }
  0x84   : > { %24457 = vmatpush3.bf16.msra.mxu1 %v24456_v63  ;;  %v1448_v31 = vld [vmem:[%s29990_s13 + $0x178] sm:$0xff]  ;;  %v1482_v33 = vld [vmem:[%s29990_s13 + $0x288] sm:$0xff]  ;;  %v1513_v34 = vld [vmem:[%s29990_s13 + $0x380] sm:$0xff]  ;;  %v24436_v36 = vpack.c.bf16 %v1416_v28, %v1415_v27 }
  0x85   : > { %24459 = vmatprep.subr.bf16.mxu1 %v24458_v4  ;;  %v1514_v35 = vld [vmem:[%s29990_s13 + $0x388] sm:$0xff]  ;;  %v24468_v37 = vpack.c.bf16 %v1448_v31, %v1447_v29  ;;  %v24470_v38 = vpack.c.bf16 %v1482_v33, %v1481_v32  ;;  %v1465_v39 = vld [vmem:[%s29990_s13 + $0x200] sm:$0xff]  ;;  %v1483_v44 = vld [vmem:[%s29990_s13 + $0x290] sm:$0xff] }
  0x86   : > { %24429 = vmatpush3.bf16.msra.mxu0 %v24428_v10  ;;  %v1466_v40 = vld [vmem:[%s29990_s13 + $0x208] sm:$0xff]  ;;  %v1497_v41 = vld [vmem:[%s29990_s13 + $0x300] sm:$0xff]  ;;  %v24502_v42 = vpack.c.bf16 %v1514_v35, %v1513_v34  ;;  %v1484_v45 = vld [vmem:[%s29990_s13 + $0x298] sm:$0xff] }
  0x87   : > { %24431 = vmatprep.subr.bf16.mxu0 %v24430_v14  ;;  %v1498_v43 = vld [vmem:[%s29990_s13 + $0x308] sm:$0xff]  ;;  %v1515_v46 = vld [vmem:[%s29990_s13 + $0x390] sm:$0xff]  ;;  %v1516_v47 = vld [vmem:[%s29990_s13 + $0x398] sm:$0xff]  ;;  %v24472_v49 = vpack.c.bf16 %v1466_v40, %v1465_v39  ;;  %v24474_v52 = vpack.c.bf16 %v1484_v45, %v1483_v44 }
  0x88   : > { %24461 = vmatpush3.bf16.msra.mxu1 %v24460_v13  ;;  %v1385_v48 = vld [vmem:[%s27101_s15] sm:$0xff]  ;;  %v1387_v50 = vld [vmem:[%s27101_s15 + $0x10] sm:$0xff]  ;;  %v24504_v51 = vpack.c.bf16 %v1498_v43, %v1497_v41  ;;  %v1468_v54 = vld [vmem:[%s29990_s13 + $0x218] sm:$0xff]  ;;  %v24506_v56 = vpack.c.bf16 %v1516_v47, %v1515_v46 }
  0x89   : > { %24463 = vmatprep.subr.bf16.mxu1 %v24462_v18  ;;  %v1467_v53 = vld [vmem:[%s29990_s13 + $0x210] sm:$0xff]  ;;  %v1500_v57 = vld [vmem:[%s29990_s13 + $0x318] sm:$0xff]  ;;  %v1485_v58 = vld [vmem:[%s29990_s13 + $0x2a0] sm:$0xff] }
  0x8a   : > { %24433 = vmatpush3.bf16.msra.mxu0 %v24432_v24  ;;  %v1499_v55 = vld [vmem:[%s29990_s13 + $0x310] sm:$0xff]  ;;  %v1486_v59 = vld [vmem:[%s29990_s13 + $0x2a8] sm:$0xff]  ;;  %v1517_v60 = vld [vmem:[%s29990_s13 + $0x3a0] sm:$0xff]  ;;  %v24476_v62 = vpack.c.bf16 %v1468_v54, %v1467_v53 }
  0x8b   : > { %24435 = vmatprep.subr.bf16.mxu0 %v24434_v26  ;;  %v1518_v61 = vld [vmem:[%s29990_s13 + $0x3a8] sm:$0xff]  ;;  %v24508_v63 = vpack.c.bf16 %v1500_v57, %v1499_v55  ;;  %v24478_v0 = vpack.c.bf16 %v1486_v59, %v1485_v58  ;;  %v1469_v1 = vld [vmem:[%s29990_s13 + $0x220] sm:$0xff]  ;;  %v1487_v6 = vld [vmem:[%s29990_s13 + $0x2b0] sm:$0xff] }
  0x8c   : > { %24465 = vmatpush3.bf16.msra.mxu1 %v24464_v25  ;;  %v1470_v2 = vld [vmem:[%s29990_s13 + $0x228] sm:$0xff]  ;;  %v1501_v3 = vld [vmem:[%s29990_s13 + $0x320] sm:$0xff]  ;;  %v24510_v4 = vpack.c.bf16 %v1518_v61, %v1517_v60  ;;  %v1488_v7 = vld [vmem:[%s29990_s13 + $0x2b8] sm:$0xff] }
  0x8d   : > { %24467 = vmatprep.subr.bf16.mxu1 %v24466_v30  ;;  %v1502_v5 = vld [vmem:[%s29990_s13 + $0x328] sm:$0xff]  ;;  %v1519_v8 = vld [vmem:[%s29990_s13 + $0x3b0] sm:$0xff]  ;;  %v1520_v9 = vld [vmem:[%s29990_s13 + $0x3b8] sm:$0xff]  ;;  %v24480_v10 = vpack.c.bf16 %v1470_v2, %v1469_v1  ;;  %v24482_v15 = vpack.c.bf16 %v1488_v7, %v1487_v6 }
  0x8e   : > { %24437 = vmatpush3.bf16.msra.mxu0 %v24436_v36  ;;  %v1471_v11 = vld [vmem:[%s29990_s13 + $0x230] sm:$0xff]  ;;  %v1472_v12 = vld [vmem:[%s29990_s13 + $0x238] sm:$0xff]  ;;  %v1394_v13 = vld [vmem:[%s27101_s15 + $0x48] sm:$0xff]  ;;  %v24512_v14 = vpack.c.bf16 %v1502_v5, %v1501_v3  ;;  %v24514_v19 = vpack.c.bf16 %v1520_v9, %v1519_v8 }
  0x8f   : > { %24471 = vmatprep.subr.bf16.mxu0 %v24470_v38  ;;  %v1503_v16 = vld [vmem:[%s29990_s13 + $0x330] sm:$0xff]  ;;  %v1504_v17 = vld [vmem:[%s29990_s13 + $0x338] sm:$0xff]  ;;  %v1393_v18 = vld [vmem:[%s27101_s15 + $0x40] sm:$0xff]  ;;  %v24484_v26 = vpack.c.bf16 %v1472_v12, %v1471_v11 }
  0x90   : > { %24469 = vmatpush3.bf16.msra.mxu1 %v24468_v37  ;;  %v1489_v20 = vld [vmem:[%s29990_s13 + $0x2c0] sm:$0xff]  ;;  %v1490_v21 = vld [vmem:[%s29990_s13 + $0x2c8] sm:$0xff]  ;;  %v1396_v22 = vld [vmem:[%s27101_s15 + $0x58] sm:$0xff]  ;;  %v24516_v29 = vpack.c.bf16 %v1504_v17, %v1503_v16 }
  0x91   : > { %24503 = vmatprep.subr.bf16.mxu1 %v24502_v42  ;;  %1601 = vmatmul.mubr.f32.vlgmr.msra.gmra.mrb[0].mxu0 %v1385_v48  ;;  %v1521_v23 = vld [vmem:[%s29990_s13 + $0x3c0] sm:$0xff]  ;;  %v1522_v24 = vld [vmem:[%s29990_s13 + $0x3c8] sm:$0xff]  ;;  %v1395_v25 = vld [vmem:[%s27101_s15 + $0x50] sm:$0xff]  ;;  %v24486_v30 = vpack.c.bf16 %v1490_v21, %v1489_v20 }
  0x92   : > { %24473 = vmatpush3.bf16.msra.mxu0 %v24472_v49  ;;  %1605 = vmatprep.mubr.f32.mxu0 %v1394_v13  ;;  %v1473_v27 = vld [vmem:[%s29990_s13 + $0x240] sm:$0xff]  ;;  %v1474_v28 = vld [vmem:[%s29990_s13 + $0x248] sm:$0xff]  ;;  %v24518_v34 = vpack.c.bf16 %v1522_v24, %v1521_v23  ;;  %v1491_v35 = vld [vmem:[%s29990_s13 + $0x2d0] sm:$0xff] }
  0x93   : > { %1676 = vmatmul.mubr.f32.vlgmr.msra.gmra.mrb[0].mxu1 %v1387_v50  ;;  %24475 = vmatprep.subr.bf16.mxu0 %v24474_v52  ;;  %v1505_v31 = vld [vmem:[%s29990_s13 + $0x340] sm:$0xff]  ;;  %v1506_v32 = vld [vmem:[%s29990_s13 + $0x348] sm:$0xff]  ;;  %v1492_v36 = vld [vmem:[%s29990_s13 + $0x2d8] sm:$0xff]  ;;  %v24488_v40 = vpack.c.bf16 %v1474_v28, %v1473_v27 }
  0x94   : > { %24505 = vmatpush3.bf16.msra.mxu1 %v24504_v51  ;;  %1680 = vmatprep.mubr.f32.mxu1 %v1396_v22  ;;  %v1390_v33 = vld [vmem:[%s27101_s15 + $0x28] sm:$0xff]  ;;  %v1392_v37 = vld [vmem:[%s27101_s15 + $0x38] sm:$0xff]  ;;  %v1523_v38 = vld [vmem:[%s29990_s13 + $0x3d0] sm:$0xff]  ;;  %v24520_v41 = vpack.c.bf16 %v1506_v32, %v1505_v31  ;;  %v24490_v42 = vpack.c.bf16 %v1492_v36, %v1491_v35 }
  0x95   : > { %24507 = vmatprep.subr.bf16.mxu1 %v24506_v56  ;;  %1606 = vmatmul.mubr.f32.gmra.mrb[2].mxu0 %v1393_v18  ;;  %v1524_v39 = vld [vmem:[%s29990_s13 + $0x3d8] sm:$0xff]  ;;  %v1475_v43 = vld [vmem:[%s29990_s13 + $0x250] sm:$0xff]  ;;  %v1493_v48 = vld [vmem:[%s29990_s13 + $0x2e0] sm:$0xff] }
  0x96   : > { %24477 = vmatpush3.bf16.msra.mxu0 %v24476_v62  ;;  %1750 = vmatprep.mubr.f32.mxu0 %v1390_v33  ;;  %v1476_v44 = vld [vmem:[%s29990_s13 + $0x258] sm:$0xff]  ;;  %v1507_v45 = vld [vmem:[%s29990_s13 + $0x350] sm:$0xff]  ;;  %v24522_v46 = vpack.c.bf16 %v1524_v39, %v1523_v38  ;;  %v1494_v49 = vld [vmem:[%s29990_s13 + $0x2e8] sm:$0xff] }
  0x97   : > { %24479 = vmatprep.subr.bf16.mxu0 %v24478_v0  ;;  %1681 = vmatmul.mubr.f32.gmra.mrb[2].mxu1 %v1395_v25  ;;  %v1508_v47 = vld [vmem:[%s29990_s13 + $0x358] sm:$0xff]  ;;  %v1525_v50 = vld [vmem:[%s29990_s13 + $0x3e0] sm:$0xff]  ;;  %v1526_v51 = vld [vmem:[%s29990_s13 + $0x3e8] sm:$0xff]  ;;  %v24492_v52 = vpack.c.bf16 %v1476_v44, %v1475_v43  ;;  %v24494_v54 = vpack.c.bf16 %v1494_v49, %v1493_v48 }
  0x98   : > { %24509 = vmatpush3.bf16.msra.mxu1 %v24508_v63  ;;  %1825 = vmatprep.mubr.f32.mxu1 %v1392_v37  ;;  %v24524_v53 = vpack.c.bf16 %v1508_v47, %v1507_v45  ;;  %v1477_v55 = vld [vmem:[%s29990_s13 + $0x260] sm:$0xff]  ;;  %v1478_v56 = vld [vmem:[%s29990_s13 + $0x268] sm:$0xff]  ;;  %v24526_v58 = vpack.c.bf16 %v1526_v51, %v1525_v50  ;;  %v1495_v60 = vld [vmem:[%s29990_s13 + $0x2f0] sm:$0xff] }
  0x99   : > { %24511 = vmatprep.subr.bf16.mxu1 %v24510_v4  ;;  %v1509_v57 = vld [vmem:[%s29990_s13 + $0x360] sm:$0xff]  ;;  %v1510_v59 = vld [vmem:[%s29990_s13 + $0x368] sm:$0xff]  ;;  %v1496_v61 = vld [vmem:[%s29990_s13 + $0x2f8] sm:$0xff]  ;;  %v24496_v0 = vpack.c.bf16 %v1478_v56, %v1477_v55 }
  0x9a   : > { %24481 = vmatpush3.bf16.msra.mxu0 %v24480_v10  ;;  %v1527_v62 = vld [vmem:[%s29990_s13 + $0x3f0] sm:$0xff]  ;;  %v1528_v63 = vld [vmem:[%s29990_s13 + $0x3f8] sm:$0xff]  ;;  %v24528_v1 = vpack.c.bf16 %v1510_v59, %v1509_v57  ;;  %v24498_v2 = vpack.c.bf16 %v1496_v61, %v1495_v60  ;;  %v1389_v10 = vld [vmem:[%s27101_s15 + $0x20] sm:$0xff] }
  0x9b   : > { %24483 = vmatprep.subr.bf16.mxu0 %v24482_v15  ;;  %v1479_v3 = vld [vmem:[%s29990_s13 + $0x270] sm:$0xff]  ;;  %v1480_v4 = vld [vmem:[%s29990_s13 + $0x278] sm:$0xff]  ;;  %v24530_v5 = vpack.c.bf16 %v1528_v63, %v1527_v62  ;;  %v1398_v12 = vld [vmem:[%s27101_s15 + $0x68] sm:$0xff] }
  0x9c   : > { %24513 = vmatpush3.bf16.msra.mxu1 %v24512_v14  ;;  %v1511_v6 = vld [vmem:[%s29990_s13 + $0x370] sm:$0xff]  ;;  %v1512_v7 = vld [vmem:[%s29990_s13 + $0x378] sm:$0xff]  ;;  %v24500_v8 = vpack.c.bf16 %v1480_v4, %v1479_v3  ;;  %v1397_v14 = vld [vmem:[%s27101_s15 + $0x60] sm:$0xff]  ;;  %s30013_s13 = sld [smem:[#allocation17_spill]] }
  0x9d   : > { %24515 = vmatprep.subr.bf16.mxu1 %v24514_v19  ;;  %v24532_v9 = vpack.c.bf16 %v1512_v7, %v1511_v6  ;;  %v1391_v11 = vld [vmem:[%s27101_s15 + $0x30] sm:$0xff]  ;;  %v1400_v13 = vld [vmem:[%s27101_s15 + $0x78] sm:$0xff]  ;;  %v1837_v16 = vld [vmem:[%s29989_s21] sm:$0xff] }
  0x9e   : > { %24485 = vmatpush3.bf16.msra.mxu0 %v24484_v26  ;;  %v1399_v15 = vld [vmem:[%s27101_s15 + $0x70] sm:$0xff]  ;;  %v1838_v17 = vld [vmem:[%s29989_s21 + $0x8] sm:$0xff]  ;;  %v1853_v18 = vld [vmem:[%s29989_s21 + $0x80] sm:$0xff]  ;;  %s27466_s15 = scalar_lea.vmem %s30007_s5, %s19390_s10  ;;  %s29919_s10 = sshll.u32 %s27079_s26, 6 }
  0x9f   : > { %24487 = vmatprep.subr.bf16.mxu0 %v24486_v30  ;;  %v24534_v19 = vpack.c.bf16 %v1838_v17, %v1837_v16  ;;  %v1854_v20 = vld [vmem:[%s29989_s21 + $0x88] sm:$0xff]  ;;  %v1839_v22 = vld [vmem:[%s29989_s21 + $0x10] sm:$0xff]  ;;  %v1840_v23 = vld [vmem:[%s29989_s21 + $0x18] sm:$0xff]  ;;  %s27706_s5 = scalar_lea.vmem %s30008_s20, %s29919_s10  ;;  %s30009_s10 = sld [smem:[#allocation15_spill]] }
  0xa0   : > { %24517 = vmatpush3.bf16.msra.mxu1 %v24516_v29  ;;  %v24566_v21 = vpack.c.bf16 %v1854_v20, %v1853_v18  ;;  %v1855_v24 = vld [vmem:[%s29989_s21 + $0x90] sm:$0xff]  ;;  %v24538_v25 = vpack.c.bf16 %v1840_v23, %v1839_v22  ;;  %v1856_v26 = vld [vmem:[%s29989_s21 + $0x98] sm:$0xff]  ;;  %v1841_v28 = vld [vmem:[%s29989_s21 + $0x20] sm:$0xff]  ;;  %s30015_s20 = sld [smem:[#allocation23_spill]]  ;;  %s30023_s26 = sld [smem:[#allocation30_spill]] }
  0xa1   : > { %24519 = vmatprep.subr.bf16.mxu1 %v24518_v34  ;;  %v24570_v27 = vpack.c.bf16 %v1856_v26, %v1855_v24  ;;  %v1842_v29 = vld [vmem:[%s29989_s21 + $0x28] sm:$0xff]  ;;  %v1857_v30 = vld [vmem:[%s29989_s21 + $0xa0] sm:$0xff]  ;;  %v1843_v34 = vld [vmem:[%s29989_s21 + $0x30] sm:$0xff] }
  0xa2   : > { %24489 = vmatpush3.bf16.msra.mxu0 %v24488_v40  ;;  %v24542_v31 = vpack.c.bf16 %v1842_v29, %v1841_v28  ;;  %v1858_v32 = vld [vmem:[%s29989_s21 + $0xa8] sm:$0xff]  ;;  %v1844_v35 = vld [vmem:[%s29989_s21 + $0x38] sm:$0xff]  ;;  %v1859_v36 = vld [vmem:[%s29989_s21 + $0xb0] sm:$0xff] }
  0xa3   : > { %24491 = vmatprep.subr.bf16.mxu0 %v24490_v42  ;;  %v24574_v33 = vpack.c.bf16 %v1858_v32, %v1857_v30  ;;  %v24546_v37 = vpack.c.bf16 %v1844_v35, %v1843_v34  ;;  %v1860_v38 = vld [vmem:[%s29989_s21 + $0xb8] sm:$0xff]  ;;  %v1845_v40 = vld [vmem:[%s29989_s21 + $0x40] sm:$0xff]  ;;  %v1870_v44 = vld [vmem:[%s26796_s25 + $0x8] sm:$0xff] }
  0xa4   : > { %24521 = vmatpush3.bf16.msra.mxu1 %v24520_v41  ;;  %v24578_v39 = vpack.c.bf16 %v1860_v38, %v1859_v36  ;;  %v1846_v41 = vld [vmem:[%s29989_s21 + $0x48] sm:$0xff]  ;;  %v1869_v42 = vld [vmem:[%s26796_s25] sm:$0xff]  ;;  %v1871_v16 = vld [vmem:[%s26796_s25 + $0x10] sm:$0xff] }
  0xa5   : > { %24523 = vmatprep.subr.bf16.mxu1 %v24522_v46  ;;  %v24550_v43 = vpack.c.bf16 %v1846_v41, %v1845_v40  ;;  %v24598_v45 = vpack.c.bf16 %v1870_v44, %v1869_v42  ;;  %v19399_v47 = vld [vmem:[%s30003_s17] ss:$0 sm:$0xff]  ;;  %v1872_v17 = vld [vmem:[%s26796_s25 + $0x18] sm:$0xff]  ;;  %v1850_v22 = vld [vmem:[%s29989_s21 + $0x68] sm:$0xff]  ;;  %s30014_s17 = sld [smem:[#allocation18_spill]] }
  0xa6   : > { %24493 = vmatpush3.bf16.msra.mxu0 %v24492_v52  ;;  %v1873_v23 = vld [vmem:[%s26796_s25 + $0x20] sm:$0xff]  ;;  %v1874_v24 = vld [vmem:[%s26796_s25 + $0x28] sm:$0xff]  ;;  %v1852_v28 = vld [vmem:[%s29989_s21 + $0x78] sm:$0xff] }
  0xa7   : > { %24495 = vmatprep.subr.bf16.mxu0 %v24494_v54  ;;  %v24606_v26 = vpack.c.bf16 %v1874_v24, %v1873_v23  ;;  %v1875_v29 = vld [vmem:[%s26796_s25 + $0x30] sm:$0xff]  ;;  %v1876_v30 = vld [vmem:[%s26796_s25 + $0x38] sm:$0xff]  ;;  %v1862_v34 = vld [vmem:[%s29989_s21 + $0xc8] sm:$0xff] }
  0xa8   : > { %24525 = vmatpush3.bf16.msra.mxu1 %v24524_v53  ;;  %v24610_v32 = vpack.c.bf16 %v1876_v30, %v1875_v29  ;;  %v1885_v35 = vld [vmem:[%s26796_s25 + $0x80] sm:$0xff]  ;;  %v1886_v36 = vld [vmem:[%s26796_s25 + $0x88] sm:$0xff]  ;;  %v1864_v40 = vld [vmem:[%s29989_s21 + $0xd8] sm:$0xff] }
  0xa9   : > { %24527 = vmatprep.subr.bf16.mxu1 %v24526_v58  ;;  %v24630_v38 = vpack.c.bf16 %v1886_v36, %v1885_v35  ;;  %v1887_v41 = vld [vmem:[%s26796_s25 + $0x90] sm:$0xff]  ;;  %v1888_v42 = vld [vmem:[%s26796_s25 + $0x98] sm:$0xff]  ;;  %v1897_v30 = vld [vmem:[%s26796_s25 + $0xe0] sm:$0xff] }
  0xaa   : > { %24497 = vmatpush3.bf16.msra.mxu0 %v24496_v0  ;;  %v24634_v44 = vpack.c.bf16 %v1888_v42, %v1887_v41  ;;  %vm27349_vm2 = vmpackc.low %vm2850_vm1, %vm2850_vm1 }
  0xab   : > { %24499 = vmatprep.subr.bf16.mxu0 %v24498_v2 }
  0xac   : > { %24529 = vmatpush3.bf16.msra.mxu1 %v24528_v1 }
  0xad   : > { %24531 = vmatprep.subr.bf16.mxu1 %v24530_v5 }
  0xae   : > { %24501 = vmatpush3.bf16.msra.mxu0 %v24500_v8 }
  0xaf   : > { %24567 = vmatprep.subr.bf16.mxu0 %v24566_v21 }
  0xb0   : > { %24533 = vmatpush3.bf16.msra.mxu1 %v24532_v9 }
  0xb1   : > { %1751 = vmatmul.mubr.f32.vlgmr.msra.gmra.mrb[4].mxu0 %v1389_v10  ;;  %24535 = vmatprep.subr.bf16.mxu1 %v24534_v19 }
  0xb2   : > { %1755 = vmatprep.mubr.f32.mxu0 %v1398_v12  ;;  %24569 = vmatpush3.bf16.msra.mxu0 %v24566_v21  ;;  %v24602_v21 = vpack.c.bf16 %v1872_v17, %v1871_v16 }
  0xb3   : > { %1826 = vmatmul.mubr.f32.vlgmr.msra.gmra.mrb[4].mxu1 %v1391_v11  ;;  %24571 = vmatprep.subr.bf16.mxu0 %v24570_v27 }
  0xb4   : > { %1830 = vmatprep.mubr.f32.mxu1 %v1400_v13  ;;  %24537 = vmatpush3.bf16.msra.mxu1 %v24534_v19  ;;  %v1847_v13 = vld [vmem:[%s29989_s21 + $0x50] sm:$0xff]  ;;  %v1849_v19 = vld [vmem:[%s29989_s21 + $0x60] sm:$0xff] }
  0xb5   : > { %1756 = vmatmul.mubr.f32.gmra.mrb[6].mxu0 %v1397_v14  ;;  %24539 = vmatprep.subr.bf16.mxu1 %v24538_v25 }
  0xb6   : > { %24573 = vmatpush3.bf16.msra.mxu0 %v24570_v27  ;;  %v1851_v27 = vld [vmem:[%s29989_s21 + $0x70] sm:$0xff] }
  0xb7   : > { %1831 = vmatmul.mubr.f32.gmra.mrb[6].mxu1 %v1399_v15  ;;  %24575 = vmatprep.subr.bf16.mxu0 %v24574_v33  ;;  %v1848_v15 = vld [vmem:[%s29989_s21 + $0x58] sm:$0xff] }
  0xb8   : > { %24541 = vmatpush3.bf16.msra.mxu1 %v24538_v25  ;;  %v24554_v20 = vpack.c.bf16 %v1848_v15, %v1847_v13  ;;  %v24558_v25 = vpack.c.bf16 %v1850_v22, %v1849_v19  ;;  %v1884_v13 = vld [vmem:[%s26796_s25 + $0x78] sm:$0xff]  ;;  %v1893_v19 = vld [vmem:[%s26796_s25 + $0xc0] sm:$0xff]  ;;  %v1918_v22 = vld [vmem:[%s26801_s29 + $0x88] sm:$0xff] }
  0xb9   : > { %24543 = vmatprep.subr.bf16.mxu1 %v24542_v31  ;;  %v1908_v15 = vld [vmem:[%s26801_s29 + $0x38] sm:$0xff] }
  0xba   : > { %24577 = vmatpush3.bf16.msra.mxu0 %v24574_v33  ;;  %v1861_v33 = vld [vmem:[%s29989_s21 + $0xc0] sm:$0xff] }
  0xbb   : > { %24579 = vmatprep.subr.bf16.mxu0 %v24578_v39 }
  0xbc   : > { %24545 = vmatpush3.bf16.msra.mxu1 %v24542_v31  ;;  %v24562_v31 = vpack.c.bf16 %v1852_v28, %v1851_v27  ;;  %v1919_v27 = vld [vmem:[%s26801_s29 + $0x90] sm:$0xff]  ;;  %v1920_v28 = vld [vmem:[%s26801_s29 + $0x98] sm:$0xff] }
  0xbd   : > { %24547 = vmatprep.subr.bf16.mxu1 %v24546_v37 }
  0xbe   : > { %24581 = vmatpush3.bf16.msra.mxu0 %v24578_v39  ;;  %v1863_v39 = vld [vmem:[%s29989_s21 + $0xd0] sm:$0xff] }
  0xbf   : > { %24599 = vmatprep.subr.bf16.mxu0 %v24598_v45 }
  0xc0   : > { %24549 = vmatpush3.bf16.msra.mxu1 %v24546_v37  ;;  %v24582_v37 = vpack.c.bf16 %v1862_v34, %v1861_v33  ;;  %v1921_v33 = vld [vmem:[%s26801_s29 + $0xa0] sm:$0xff]  ;;  %v1922_v34 = vld [vmem:[%s26801_s29 + $0xa8] sm:$0xff] }
  0xc1   : > { %24551 = vmatprep.subr.bf16.mxu1 %v24550_v43  ;;  %v24702_v36 = vpack.c.bf16 %v1922_v34, %v1921_v33 }
 0x164   : > { %v20314_v46 = vpop.f32.mrb[0].mxu0 }
 0x165   : > { %v20315_v48 = vpop.f32.mrb[1].mxu0 }
 0x166   : > { %v20352_v49 = vpop.f32.mrb[0].mxu1  ;;  %v20316_v50 = vadd.f32 %v20315_v48, %v20314_v46  ;;  %v1866_v46 = vld [vmem:[%s29989_s21 + $0xe8] sm:$0xff] }
 0x167   : > { %v20353_v51 = vpop.f32.mrb[1].mxu1  ;;  %v1890_v48 = vld [vmem:[%s26796_s25 + $0xa8] sm:$0xff] }
 0x168   : > { %v20354_v52 = vadd.f32 %v20353_v51, %v20352_v49  ;;  %v1603_v53 = vadd.f32 %v20316_v50, %v19399_v47  ;;  %v20317_v55 = vpop.f32.mrb[2].mxu0  ;;  %v1867_v51 = vld [vmem:[%s29989_s21 + $0xf0] sm:$0xff] }
 0x169   : > { %v20318_v56 = vpop.f32.mrb[3].mxu0 }
 0x16a   : > { %v1678_v54 = vadd.f32 %v20354_v52, %v1603_v53  ;;  %v20355_v57 = vpop.f32.mrb[2].mxu1  ;;  %v20319_v58 = vadd.f32 %v20318_v56, %v20317_v55  ;;  %v1868_v52 = vld [vmem:[%s29989_s21 + $0xf8] sm:$0xff]  ;;  %v1891_v53 = vld [vmem:[%s26796_s25 + $0xb0] sm:$0xff] }
 0x16b   : > { %v20356_v59 = vpop.f32.mrb[3].mxu1  ;;  %v24594_v55 = vpack.c.bf16 %v1868_v52, %v1867_v51  ;;  %v1915_v52 = vld [vmem:[%s26801_s29 + $0x70] sm:$0xff] }
 0x16c   : > { %v20357_v60 = vadd.f32 %v20356_v59, %v20355_v57  ;;  %v1608_v61 = vadd.f32 %v20319_v58, %v19399_v47  ;;  %v1889_v47 = vld [vmem:[%s26796_s25 + $0xa0] sm:$0xff]  ;;  %v1878_v58 = vld [vmem:[%s26796_s25 + $0x48] sm:$0xff] }
 0x16d   : > { %v24638_v50 = vpack.c.bf16 %v1890_v48, %v1889_v47  ;;  %v1877_v57 = vld [vmem:[%s26796_s25 + $0x40] sm:$0xff]  ;;  %v1912_v47 = vld [vmem:[%s26801_s29 + $0x58] sm:$0xff] }
 0x16e   : > { %v1683_v62 = vadd.f32 %v20357_v60, %v1608_v61  ;;  %v1901_v59 = vld [vmem:[%s26801_s29] sm:$0xff]  ;;  %v1902_v60 = vld [vmem:[%s26801_s29 + $0x8] sm:$0xff]  ;;  %v24614_v61 = vpack.c.bf16 %v1878_v58, %v1877_v57  ;;  %v1927_v58 = vld [vmem:[%s26801_s29 + $0xd0] sm:$0xff] }
 0x184   : > { %v20390_v63 = vpop.f32.mrb[4].mxu0 }
 0x185   : > { %v20391_v0 = vpop.f32.mrb[5].mxu0 }
 0x186   : > { %v20428_v1 = vpop.f32.mrb[4].mxu1  ;;  %v20392_v2 = vadd.f32 %v20391_v0, %v20390_v63  ;;  %v1879_v63 = vld [vmem:[%s26796_s25 + $0x50] sm:$0xff]  ;;  %v1880_v0 = vld [vmem:[%s26796_s25 + $0x58] sm:$0xff] }
 0x187   : > { %v20429_v3 = vpop.f32.mrb[5].mxu1 }
 0x188   : > { %v20430_v4 = vadd.f32 %v20429_v3, %v20428_v1  ;;  %v1753_v5 = vadd.f32 %v20392_v2, %v1678_v54  ;;  %v20393_v6 = vpop.f32.mrb[6].mxu0  ;;  %v1892_v54 = vld [vmem:[%s26796_s25 + $0xb8] sm:$0xff]  ;;  %v1903_v1 = vld [vmem:[%s26801_s29 + $0x10] sm:$0xff]  ;;  %v24618_v3 = vpack.c.bf16 %v1880_v0, %v1879_v63 }
 0x189   : > { %v20394_v7 = vpop.f32.mrb[7].mxu0  ;;  %v24642_v56 = vpack.c.bf16 %v1892_v54, %v1891_v53  ;;  %v1904_v2 = vld [vmem:[%s26801_s29 + $0x18] sm:$0xff]  ;;  %v1931_v0 = vld [vmem:[%s26801_s29 + $0xf0] sm:$0xff] }
 0x18a   : > { %v20431_v8 = vpop.f32.mrb[6].mxu1  ;;  %v27218_v9 = vadd.f32 %v20430_v4, %v1753_v5  ;;  %v20395_v10 = vadd.f32 %v20394_v7, %v20393_v6  ;;  %v1881_v4 = vld [vmem:[%s26796_s25 + $0x60] sm:$0xff]  ;;  %v1882_v5 = vld [vmem:[%s26796_s25 + $0x68] sm:$0xff]  ;;  %v24666_v6 = vpack.c.bf16 %v1904_v2, %v1903_v1  ;;  %v1916_v53 = vld [vmem:[%s26801_s29 + $0x78] sm:$0xff] }
 0x18b   : > { %v20432_v11 = vpop.f32.mrb[7].mxu1  ;;  %v1905_v7 = vld [vmem:[%s26801_s29 + $0x20] sm:$0xff]  ;;  %v24690_v54 = vpack.c.bf16 %v1916_v53, %v1915_v52  ;;  %v1932_v1 = vld [vmem:[%s26801_s29 + $0xf8] sm:$0xff] }
 0x18c   : > { %v20433_v12 = vadd.f32 %v20432_v11, %v20431_v8  ;;  %v1758_v14 = vadd.f32 %v20395_v10, %v1683_v62  ;;  %21774 = vmatprep.mubr.msk.f32.mxu1 %vm1943_vm0, %v27218_v9  ;;  %21812 = vmatprep.mubr.msk.f32.mxu0 %vm1943_vm0, %v27218_v9  ;;  %v24662_v62 = vpack.c.bf16 %v1902_v60, %v1901_v59  ;;  %v1906_v8 = vld [vmem:[%s26801_s29 + $0x28] sm:$0xff]  ;;  %v1928_v59 = vld [vmem:[%s26801_s29 + $0xd8] sm:$0xff] }
 0x18d   : > { %v24622_v10 = vpack.c.bf16 %v1882_v5, %v1881_v4  ;;  %v24670_v11 = vpack.c.bf16 %v1906_v8, %v1905_v7  ;;  %v24714_v60 = vpack.c.bf16 %v1928_v59, %v1927_v58  ;;  %v24722_v2 = vpack.c.bf16 %v1932_v1, %v1931_v0 }
 0x18e   : > { %v27228_v18 = vadd.f32 %v20433_v12, %v1758_v14  ;;  %v1883_v12 = vld [vmem:[%s26796_s25 + $0x70] sm:$0xff] }
 0x18f   : > { %v1907_v14 = vld [vmem:[%s26801_s29 + $0x30] sm:$0xff]  ;;  %v24626_v16 = vpack.c.bf16 %v1884_v13, %v1883_v12 }
 0x190   : > { %21775 = vmatmul.mubr.msk.f32.vlgmr.msra.gmra.mrb[8].mxu1 %vm1943_vm0, %v27228_v18  ;;  %21813 = vmatmul.mubr.msk.f32.vlgmr.msra.gmra.mrb[8].mxu0 %vm1943_vm0, %v27228_v18  ;;  %v24674_v17 = vpack.c.bf16 %v1908_v15, %v1907_v14 }
 0x191   : > { %24553 = vmatpush3.bf16.msra.mxu1 %v24550_v43  ;;  %24601 = vmatpush3.bf16.msra.mxu0 %v24598_v45  ;;  %v24586_v43 = vpack.c.bf16 %v1864_v40, %v1863_v39  ;;  %v1865_v45 = vld [vmem:[%s29989_s21 + $0xe0] sm:$0xff]  ;;  %v1923_v39 = vld [vmem:[%s26801_s29 + $0xb0] sm:$0xff]  ;;  %v1924_v40 = vld [vmem:[%s26801_s29 + $0xb8] sm:$0xff] }
 0x192   : > { %21793 = vmatprep.mubr.msk.f32.mxu1 %vm1943_vm0, %v27218_v9  ;;  %21850 = vmatprep.mubr.msk.f32.mxu0 %vm1943_vm0, %v27218_v9  ;;  %v24590_v49 = vpack.c.bf16 %v1866_v46, %v1865_v45  ;;  %v24706_v42 = vpack.c.bf16 %v1924_v40, %v1923_v39  ;;  %v1911_v46 = vld [vmem:[%s26801_s29 + $0x50] sm:$0xff] }
 0x193   : > { %24555 = vmatprep.subr.bf16.mxu1 %v24554_v20  ;;  %24603 = vmatprep.subr.bf16.mxu0 %v24602_v21  ;;  %v24682_v48 = vpack.c.bf16 %v1912_v47, %v1911_v46 }
 0x195   : > { %24557 = vmatpush3.bf16.msra.mxu1 %v24554_v20  ;;  %24605 = vmatpush3.bf16.msra.mxu0 %v24602_v21  ;;  %v1894_v20 = vld [vmem:[%s26796_s25 + $0xc8] sm:$0xff]  ;;  %v1917_v21 = vld [vmem:[%s26801_s29 + $0x80] sm:$0xff] }
 0x196   : > { %24559 = vmatprep.subr.bf16.mxu1 %v24558_v25  ;;  %24607 = vmatprep.subr.bf16.mxu0 %v24606_v26  ;;  %v24646_v23 = vpack.c.bf16 %v1894_v20, %v1893_v19  ;;  %v24694_v24 = vpack.c.bf16 %v1918_v22, %v1917_v21 }
 0x199   : > { %24561 = vmatpush3.bf16.msra.mxu1 %v24558_v25  ;;  %24609 = vmatpush3.bf16.msra.mxu0 %v24606_v26  ;;  %v1895_v25 = vld [vmem:[%s26796_s25 + $0xd0] sm:$0xff]  ;;  %v1896_v26 = vld [vmem:[%s26796_s25 + $0xd8] sm:$0xff] }
 0x19a   : > { %24563 = vmatprep.subr.bf16.mxu1 %v24562_v31  ;;  %24611 = vmatprep.subr.bf16.mxu0 %v24610_v32  ;;  %v24650_v29 = vpack.c.bf16 %v1896_v26, %v1895_v25 }
 0x19d   : > { %24565 = vmatpush3.bf16.msra.mxu1 %v24562_v31  ;;  %24613 = vmatpush3.bf16.msra.mxu0 %v24610_v32  ;;  %v1898_v31 = vld [vmem:[%s26796_s25 + $0xe8] sm:$0xff]  ;;  %v24698_v32 = vpack.c.bf16 %v1920_v28, %v1919_v27 }
 0x19e   : > { %24583 = vmatprep.subr.bf16.mxu1 %v24582_v37  ;;  %24631 = vmatprep.subr.bf16.mxu0 %v24630_v38  ;;  %v24654_v35 = vpack.c.bf16 %v1898_v31, %v1897_v30 }
 0x1a0   : > { %21794 = vmatmul.mubr.msk.f32.vlgmr.msra.gmra.mrb[10].mxu1 %vm1943_vm0, %v27228_v18  ;;  %21851 = vmatmul.mubr.msk.f32.vlgmr.msra.gmra.mrb[10].mxu0 %vm1943_vm0, %v27228_v18 }
 0x1a1   : > { %24585 = vmatpush3.bf16.msra.mxu1 %v24582_v37  ;;  %21831 = vmatprep.mubr.msk.f32.mxu1 %vm1943_vm0, %v27218_v9  ;;  %v1899_v37 = vld [vmem:[%s26796_s25 + $0xf0] sm:$0xff] }
 0x1a2   : > { %24633 = vmatpush3.bf16.msra.mxu0 %v24630_v38  ;;  %21888 = vmatprep.mubr.msk.f32.mxu0 %vm1943_vm0, %v27218_v9  ;;  %v1900_v38 = vld [vmem:[%s26796_s25 + $0xf8] sm:$0xff] }
 0x1a3   : > { %24587 = vmatprep.subr.bf16.mxu1 %v24586_v43  ;;  %24635 = vmatprep.subr.bf16.mxu0 %v24634_v44  ;;  %v24658_v41 = vpack.c.bf16 %v1900_v38, %v1899_v37 }
 0x1a5   : > { %24589 = vmatpush3.bf16.msra.mxu1 %v24586_v43  ;;  %v1909_v43 = vld [vmem:[%s26801_s29 + $0x40] sm:$0xff] }
 0x1a6   : > { %24637 = vmatpush3.bf16.msra.mxu0 %v24634_v44  ;;  %24591 = vmatprep.subr.bf16.mxu1 %v24590_v49  ;;  %v1910_v44 = vld [vmem:[%s26801_s29 + $0x48] sm:$0xff] }
 0x1a7   : > { %24639 = vmatprep.subr.bf16.mxu0 %v24638_v50  ;;  %v24678_v45 = vpack.c.bf16 %v1910_v44, %v1909_v43 }
 0x1a9   : > { %24593 = vmatpush3.bf16.msra.mxu1 %v24590_v49  ;;  %v1913_v49 = vld [vmem:[%s26801_s29 + $0x60] sm:$0xff] }
 0x1aa   : > { %24641 = vmatpush3.bf16.msra.mxu0 %v24638_v50  ;;  %24595 = vmatprep.subr.bf16.mxu1 %v24594_v55  ;;  %v1914_v50 = vld [vmem:[%s26801_s29 + $0x68] sm:$0xff] }
 0x1ab   : > { %24643 = vmatprep.subr.bf16.mxu0 %v24642_v56  ;;  %v24686_v51 = vpack.c.bf16 %v1914_v50, %v1913_v49 }
 0x1ad   : > { %24597 = vmatpush3.bf16.msra.mxu1 %v24594_v55  ;;  %v1925_v55 = vld [vmem:[%s26801_s29 + $0xc0] sm:$0xff] }
 0x1ae   : > { %24645 = vmatpush3.bf16.msra.mxu0 %v24642_v56  ;;  %24615 = vmatprep.subr.bf16.mxu1 %v24614_v61  ;;  %v1926_v56 = vld [vmem:[%s26801_s29 + $0xc8] sm:$0xff] }
 0x1af   : > { %24663 = vmatprep.subr.bf16.mxu0 %v24662_v62  ;;  %v24710_v57 = vpack.c.bf16 %v1926_v56, %v1925_v55 }
 0x1b0   : > { %21832 = vmatmul.mubr.msk.f32.vlgmr.msra.gmra.mrb[12].mxu1 %vm1943_vm0, %v27228_v18 }
 0x1b1   : > { %21889 = vmatmul.mubr.msk.f32.vlgmr.msra.gmra.mrb[12].mxu0 %vm1943_vm0, %v27228_v18  ;;  %24617 = vmatpush3.bf16.msra.mxu1 %v24614_v61  ;;  %v1929_v61 = vld [vmem:[%s26801_s29 + $0xe0] sm:$0xff] }
 0x1b2   : > { %21869 = vmatprep.mubr.msk.f32.mxu1 %vm1943_vm0, %v27218_v9  ;;  %24665 = vmatpush3.bf16.msra.mxu0 %v24662_v62  ;;  %v1930_v62 = vld [vmem:[%s26801_s29 + $0xe8] sm:$0xff] }
 0x1b3   : > { %21926 = vmatprep.mubr.msk.f32.mxu0 %vm1943_vm0, %v27218_v9  ;;  %24619 = vmatprep.subr.bf16.mxu1 %v24618_v3  ;;  %v24718_v63 = vpack.c.bf16 %v1930_v62, %v1929_v61 }
 0x1b4   : > { %24667 = vmatprep.subr.bf16.mxu0 %v24666_v6 }
 0x1b5   : > { %24621 = vmatpush3.bf16.msra.mxu1 %v24618_v3 }
 0x1b6   : > { %24669 = vmatpush3.bf16.msra.mxu0 %v24666_v6  ;;  %24623 = vmatprep.subr.bf16.mxu1 %v24622_v10 }
 0x1b7   : > { %24671 = vmatprep.subr.bf16.mxu0 %v24670_v11 }
 0x1b9   : > { %24625 = vmatpush3.bf16.msra.mxu1 %v24622_v10 }
 0x1ba   : > { %24673 = vmatpush3.bf16.msra.mxu0 %v24670_v11  ;;  %24627 = vmatprep.subr.bf16.mxu1 %v24626_v16 }
 0x1bb   : > { %24675 = vmatprep.subr.bf16.mxu0 %v24674_v17 }
 0x1bd   : > { %24629 = vmatpush3.bf16.msra.mxu1 %v24626_v16 }
 0x1be   : > { %24677 = vmatpush3.bf16.msra.mxu0 %v24674_v17  ;;  %24647 = vmatprep.subr.bf16.mxu1 %v24646_v23 }
 0x1bf   : > { %24695 = vmatprep.subr.bf16.mxu0 %v24694_v24 }
 0x1c0   : > { %21870 = vmatmul.mubr.msk.f32.vlgmr.msra.gmra.mrb[14].mxu1 %vm1943_vm0, %v27228_v18 }
 0x1c1   : > { %21927 = vmatmul.mubr.msk.f32.vlgmr.msra.gmra.mrb[14].mxu0 %vm1943_vm0, %v27228_v18  ;;  %24649 = vmatpush3.bf16.msra.mxu1 %v24646_v23 }
 0x1c2   : > { %21907 = vmatprep.mubr.msk.f32.mxu1 %vm1943_vm0, %v27218_v9  ;;  %24697 = vmatpush3.bf16.msra.mxu0 %v24694_v24 }
 0x1c3   : > { %21964 = vmatprep.mubr.msk.f32.mxu0 %vm1943_vm0, %v27218_v9  ;;  %24651 = vmatprep.subr.bf16.mxu1 %v24650_v29 }
 0x1c4   : > { %24699 = vmatprep.subr.bf16.mxu0 %v24698_v32 }
 0x1c5   : > { %24653 = vmatpush3.bf16.msra.mxu1 %v24650_v29 }
 0x1c6   : > { %24701 = vmatpush3.bf16.msra.mxu0 %v24698_v32  ;;  %24655 = vmatprep.subr.bf16.mxu1 %v24654_v35 }
 0x1c7   : > { %24703 = vmatprep.subr.bf16.mxu0 %v24702_v36 }
 0x1c9   : > { %24657 = vmatpush3.bf16.msra.mxu1 %v24654_v35 }
 0x1ca   : > { %24705 = vmatpush3.bf16.msra.mxu0 %v24702_v36  ;;  %24659 = vmatprep.subr.bf16.mxu1 %v24658_v41 }
 0x1cb   : > { %24707 = vmatprep.subr.bf16.mxu0 %v24706_v42 }
 0x1cd   : > { %24661 = vmatpush3.bf16.msra.mxu1 %v24658_v41 }
 0x1ce   : > { %24709 = vmatpush3.bf16.msra.mxu0 %v24706_v42  ;;  %24679 = vmatprep.subr.bf16.mxu1 %v24678_v45 }
 0x1d0   : > { %21908 = vmatmul.mubr.msk.f32.vlgmr.msra.gmra.mrb[16].mxu1 %vm1943_vm0, %v27228_v18 }
 0x1d1   : > { %21965 = vmatmul.mubr.msk.f32.vlgmr.msra.gmra.mrb[16].mxu0 %vm1943_vm0, %v27228_v18  ;;  %24681 = vmatpush3.bf16.msra.mxu1 %v24678_v45 }
 0x1d2   : > { %21945 = vmatprep.mubr.msk.f32.mxu1 %vm1943_vm0, %v27218_v9  ;;  %24683 = vmatprep.subr.bf16.mxu1 %v24682_v48 }
 0x1d5   : > { %24685 = vmatpush3.bf16.msra.mxu1 %v24682_v48 }
 0x1d6   : > { %24687 = vmatprep.subr.bf16.mxu1 %v24686_v51 }
 0x1d9   : > { %24689 = vmatpush3.bf16.msra.mxu1 %v24686_v51 }
 0x1da   : > { %24691 = vmatprep.subr.bf16.mxu1 %v24690_v54 }
 0x1dd   : > { %24693 = vmatpush3.bf16.msra.mxu1 %v24690_v54 }
 0x1de   : > { %24711 = vmatprep.subr.bf16.mxu1 %v24710_v57 }
 0x1e0   : > { %21946 = vmatmul.mubr.msk.f32.vlgmr.msra.gmra.mrb[18].mxu1 %vm1943_vm0, %v27228_v18 }
 0x1e1   : > { %24713 = vmatpush3.bf16.msra.mxu1 %v24710_v57  ;;  %21983 = vmatprep.mubr.msk.f32.mxu1 %vm1943_vm0, %v27218_v9 }
 0x1e2   : > { %24715 = vmatprep.subr.bf16.mxu1 %v24714_v60 }
 0x1e5   : > { %24717 = vmatpush3.bf16.msra.mxu1 %v24714_v60 }
 0x1e6   : > { %24719 = vmatprep.subr.bf16.mxu1 %v24718_v63 }
 0x1e9   : > { %24721 = vmatpush3.bf16.msra.mxu1 %v24718_v63 }
 0x1ea   : > { %24723 = vmatprep.subr.bf16.mxu1 %v24722_v2 }
 0x1ed   : > { %24725 = vmatpush3.bf16.msra.mxu1 %v24722_v2 }
 0x1f0   : > { %21984 = vmatmul.mubr.msk.f32.vlgmr.msra.gmra.mrb[20].mxu1 %vm1943_vm0, %v27228_v18 }
 0x263   : > { %v21776_v3 = vpop.f32.mrb[8].mxu1  ;;  %v21814_v4 = vpop.f32.mrb[8].mxu0 }
 0x264   : > { %v2016_v5 = vpop.f32.mrb[9].mxu1  ;;  %v2166_v6 = vpop.f32.mrb[9].mxu0 }
 0x265   : > { %21990 = vmatprep.mubr.msk.f32.mxu0 %vm2850_vm1, %v2016_v5 }
 0x273   : > { %v21795_v7 = vpop.f32.mrb[10].mxu1  ;;  %v21852_v8 = vpop.f32.mrb[10].mxu0 }
 0x274   : > { %v2091_v10 = vpop.f32.mrb[11].mxu1  ;;  %v2316_v11 = vpop.f32.mrb[11].mxu0 }
 0x275   : > { %v24726_v13 = vpack.c.bf16 %v21852_v8, %v2316_v11  ;;  %21997 = vmatprep.mubr.msk.f32.mxu1 %vm2850_vm1, %v2091_v10 }
 0x277   : > { %24728 = vmatprep.subr.msk.bf16.mxu0 %vm27349_vm2, %v24726_v13 }
 0x278   : > { %24731 = vmatpush3.bf16.xpose.msk.msra.mxu0 %vm27349_vm2, %v24726_v13 }
 0x27f   : > { %21991 = vmatmul.mubr.msk.f32.vlgmr.msra.gmra.mrb[18].mxu0 %vm2850_vm1, %v21776_v3 }
 0x280   : > { %22004 = vmatprep.mubr.msk.f32.mxu0 %vm2850_vm1, %v2166_v6 }
 0x283   : > { %v21833_v14 = vpop.f32.mrb[12].mxu1 }
 0x284   : > { %v21890_v15 = vpop.f32.mrb[12].mxu0  ;;  %v2241_v16 = vpop.f32.mrb[13].mxu1 }
 0x285   : > { %v2466_v17 = vpop.f32.mrb[13].mxu0 }
 0x286   : > { %v24738_v19 = vpack.c.bf16 %v21890_v15, %v2466_v17 }
 0x288   : > { %24740 = vmatprep.subr.msk.bf16.mxu0 %vm27349_vm2, %v24738_v19 }
 0x289   : > { %24743 = vmatpush3.bf16.xpose.msk.msra.mxu0 %vm27349_vm2, %v24738_v19 }
 0x290   : > { %22005 = vmatmul.mubr.msk.f32.vlgmr.msra.gmra.mrb[20].mxu0 %vm2850_vm1, %v21814_v4 }
 0x293   : > { %v21871_v20 = vpop.f32.mrb[14].mxu1 }
 0x294   : > { %v21928_v21 = vpop.f32.mrb[14].mxu0  ;;  %v2391_v22 = vpop.f32.mrb[15].mxu1 }
 0x295   : > { %v24732_v23 = vpack.c.bf16 %v21871_v20, %v2391_v22  ;;  %v2616_v24 = vpop.f32.mrb[15].mxu0 }
 0x296   : > { %v24750_v25 = vpack.c.bf16 %v21928_v21, %v2616_v24 }
 0x297   : > { %24734 = vmatprep.subr.msk.bf16.mxu1 %vm27349_vm2, %v24732_v23 }
 0x298   : > { %24751 = vmatprep.subr.bf16.mxu0 %v24750_v25  ;;  %24737 = vmatpush3.bf16.xpose.msk.msra.mxu1 %vm27349_vm2, %v24732_v23 }
 0x299   : > { %24753 = vmatpush3.bf16.msra.mxu0 %v24750_v25 }
 0x29f   : > { %21998 = vmatmul.mubr.msk.f32.vlgmr.msra.gmra.mrb[22].mxu1 %vm2850_vm1, %v21795_v7 }
 0x2a0   : > { %22011 = vmatprep.mubr.msk.f32.mxu1 %vm2850_vm1, %v2241_v16 }
 0x2a3   : > { %v21909_v26 = vpop.f32.mrb[16].mxu1 }
 0x2a4   : > { %v21966_v27 = vpop.f32.mrb[16].mxu0  ;;  %v2541_v28 = vpop.f32.mrb[17].mxu1 }
 0x2a5   : > { %v24744_v29 = vpack.c.bf16 %v21909_v26, %v2541_v28  ;;  %v2766_v30 = vpop.f32.mrb[17].mxu0 }
 0x2a6   : > { %v27371_v31 = vpack.c.bf16 %v21966_v27, %v2766_v30 }
 0x2a7   : > { %24746 = vmatprep.subr.msk.bf16.mxu1 %vm27349_vm2, %v24744_v29 }
 0x2a8   : > { %24759 = vmatprep.subr.bf16.mxu0 %v27371_v31  ;;  %24749 = vmatpush3.bf16.xpose.msk.msra.mxu1 %vm27349_vm2, %v24744_v29 }
 0x2af   : > { %22012 = vmatmul.mubr.msk.f32.vlgmr.msra.gmra.mrb[24].mxu1 %vm2850_vm1, %v21833_v14 }
 0x2b3   : > { %v21947_v32 = vpop.f32.mrb[18].mxu1 }
 0x2b4   : > { %v2691_v33 = vpop.f32.mrb[19].mxu1 }
 0x2b5   : > { %v24754_v34 = vpack.c.bf16 %v21947_v32, %v2691_v33 }
 0x2b7   : > { %24755 = vmatprep.subr.bf16.mxu1 %v24754_v34 }
 0x2b8   : > { %24757 = vmatpush3.bf16.msra.mxu1 %v24754_v34 }
 0x2c3   : > { %v21985_v35 = vpop.f32.mrb[20].mxu1 }
 0x2c4   : > { %v2841_v36 = vpop.f32.mrb[21].mxu1 }
 0x2c5   : > { %v27379_v37 = vpack.c.bf16 %v21985_v35, %v2841_v36 }
 0x2c7   : > { %24763 = vmatprep.subr.bf16.mxu1 %v27379_v37 }
 0x352   : > { %v21992_v38 = vpop.f32.mrb[18].mxu0 }
 0x353   : > { %v2929_v39 = vpop.f32.mrb[19].mxu0  ;;  %v3202_v40 = vsel %vm2850_vm1, %v21992_v38, -inf }
 0x354   : > { %3203 = vmax.xlane.f32.xlu0 %v3202_v40  ;;  %v3199_v41 = vsel %vm2850_vm1, %v2929_v39, -inf  ;;  %v1934_v40 = vld [vmem:[%s29988_s3 + $0x8] sm:$0xff] }
 0x358   : > { %3200 = vmax.xlane.f32.xlu0 %v3199_v41 }
 0x363   : > { %v22006_v42 = vpop.f32.mrb[20].mxu0 }
 0x364   : > { %v3103_v43 = vpop.f32.mrb[21].mxu0  ;;  %v3214_v49 = vsel %vm2850_vm1, %v22006_v42, -inf }
 0x365   : > { %v3211_v44 = vsel %vm2850_vm1, %v3103_v43, -inf }
 0x366   : > { %3212 = vmax.xlane.f32.xlu0 %v3211_v44 }
 0x372   : > { %v21999_v45 = vpop.f32.mrb[22].mxu1 }
 0x373   : > { %v3016_v46 = vpop.f32.mrb[23].mxu1  ;;  %v3208_v47 = vsel %vm2850_vm1, %v21999_v45, -inf }
 0x374   : > { %3209 = vmax.xlane.f32.xlu1 %v3208_v47  ;;  %v3205_v48 = vsel %vm2850_vm1, %v3016_v46, -inf }
 0x378   : > { %3206 = vmax.xlane.f32.xlu1 %v3205_v48 }
 0x37c   : > { %3215 = vmax.xlane.f32.xlu1 %v3214_v49 }
 0x382   : > { %v22013_v50 = vpop.f32.mrb[24].mxu1 }
 0x383   : > { %v3190_v51 = vpop.f32.mrb[25].mxu1  ;;  %v3220_v52 = vsel %vm2850_vm1, %v22013_v50, -inf }
 0x384   : > { %3221 = vmax.xlane.f32.xlu1 %v3220_v52  ;;  %v3217_v53 = vsel %vm2850_vm1, %v3190_v51, -inf }
 0x385   : > { %3218 = vmax.xlane.f32.xlu0 %v3217_v53 }
 0x3e1   : > { %v3204_v54 = vpop.xlane.xlu0 %3203 }
 0x3e2   : > { %v3224_v55 = vsub.f32 %v21992_v38, %v3204_v54 }
 0x3e4   : > { %v3233_v56 = vmul.f32 1.442695, %v3224_v55 }
 0x3e5   : > { %v3201_v57 = vpop.xlane.xlu0 %3200 }
 0x3e6   : > { %26387 = vpow2.f32 %v3233_v56  ;;  %v3223_v58 = vsub.f32 %v2929_v39, %v3201_v57  ;;  %v1933_v39 = vld [vmem:[%s29988_s3] sm:$0xff] }
 0x3e8   : > { %v3231_v59 = vmul.f32 1.442695, %v3223_v58 }
 0x3ea   : > { %26389 = vpow2.f32 %v3231_v59 }
 0x3f0   : > { %v26388_v60 = vpop.eup %26387 }
 0x3f1   : > { %v3250_v61 = vsel %vm2850_vm1, %v26388_v60, 0.0 }
 0x3f2   : > { %3251 = vadd.xlane.f32.xlu1 %v3250_v61  ;;  %v1937_v61 = vld [vmem:[%s29988_s3 + $0x20] sm:$0xff] }
 0x3f3   : > { %v3213_v62 = vpop.xlane.xlu0 %3212 }
 0x3f4   : > { %v26390_v63 = vpop.eup %26389  ;;  %v3227_v0 = vsub.f32 %v3103_v43, %v3213_v62  ;;  %v24766_v43 = vpack.c.bf16 %v1934_v40, %v1933_v39  ;;  %v1938_v62 = vld [vmem:[%s29988_s3 + $0x28] sm:$0xff]  ;;  %v4014_v40 = vld [vmem:[%s26821_s19 + $0x60] sm:$0xff] }
 0x3f5   : > { %v3247_v1 = vsel %vm2850_vm1, %v26390_v63, 0.0 }
 0x3f6   : > { %v3239_v2 = vmul.f32 1.442695, %v3227_v0  ;;  %3248 = vadd.xlane.f32.xlu0 %v3247_v1  ;;  %v1935_v0 = vld [vmem:[%s29988_s3 + $0x10] sm:$0xff] }
 0x3f8   : > { %26391 = vpow2.f32 %v3239_v2  ;;  %v1939_v2 = vld [vmem:[%s29988_s3 + $0x30] sm:$0xff] }
 0x401   : > { %v3210_v3 = vpop.xlane.xlu1 %3209 }
 0x402   : > { %v26392_v4 = vpop.eup %26391  ;;  %v3226_v8 = vsub.f32 %v21999_v45, %v3210_v3  ;;  %v1940_v3 = vld [vmem:[%s29988_s3 + $0x38] sm:$0xff] }
 0x403   : > { %v3259_v5 = vsel %vm2850_vm1, %v26392_v4, 0.0 }
 0x404   : > { %3260 = vadd.xlane.f32.xlu0 %v3259_v5  ;;  %v3237_v14 = vmul.f32 1.442695, %v3226_v8  ;;  %v4002_v8 = vld [vmem:[%s26821_s19] sm:$0xff] }
 0x405   : > { %v3207_v6 = vpop.xlane.xlu1 %3206 }
 0x406   : > { %v3225_v7 = vsub.f32 %v3016_v46, %v3207_v6 }
 0x408   : > { %v3235_v10 = vmul.f32 1.442695, %v3225_v7  ;;  %v26756_v7 = vmov 0.0|0.0  }
 0x409   : > { %v3216_v11 = vpop.xlane.xlu1 %3215 }
 0x40a   : > { %26393 = vpow2.f32 %v3235_v10  ;;  %v3228_v13 = vsub.f32 %v22006_v42, %v3216_v11  ;;  %v4003_v10 = vld [vmem:[%s26821_s19 + $0x8] sm:$0xff] }
 0x40c   : > { %v3241_v15 = vmul.f32 1.442695, %v3228_v13  ;;  %v24783_v13 = vpack.c.bf16 %v4003_v10, %v4002_v8  ;;  %v4038_v10 = vld [vmem:[%s26826_s24 + $0x20] sm:$0xff] }
 0x40e   : > { %26395 = vpow2.f32 %v3241_v15  ;;  %v4004_v15 = vld [vmem:[%s26821_s19 + $0x10] sm:$0xff] }
 0x40f   : > { %26397 = vpow2.f32 %v3237_v14 }
 0x411   : > { %v3222_v16 = vpop.xlane.xlu1 %3221 }
 0x412   : > { %v3230_v17 = vsub.f32 %v22013_v50, %v3222_v16  ;;  %v3219_v19 = vpop.xlane.xlu0 %3218  ;;  %v4005_v16 = vld [vmem:[%s26821_s19 + $0x18] sm:$0xff] }
 0x413   : > { %v3229_v20 = vsub.f32 %v3190_v51, %v3219_v19  ;;  %v24786_v19 = vpack.c.bf16 %v4005_v16, %v4004_v15  ;;  %v4043_v15 = vld [vmem:[%s26826_s24 + $0x48] sm:$0xff] }
 0x414   : > { %v26394_v21 = vpop.eup %26393  ;;  %v3245_v22 = vmul.f32 1.442695, %v3230_v17 }
 0x415   : > { %v3243_v23 = vmul.f32 1.442695, %v3229_v20  ;;  %v3253_v24 = vsel %vm2850_vm1, %v26394_v21, 0.0  ;;  %v26758_v20 = vmov 0.0  }
 0x416   : > { %26399 = vpow2.f32 %v3245_v22  ;;  %3254 = vadd.xlane.f32.xlu0 %v3253_v24  ;;  %v4006_v22 = vld [vmem:[%s26821_s19 + $0x20] sm:$0xff] }
 0x417   : > { %26401 = vpow2.f32 %v3243_v23  ;;  %v4007_v23 = vld [vmem:[%s26821_s19 + $0x28] sm:$0xff]  ;;  %v4010_v24 = vld [vmem:[%s26821_s19 + $0x40] sm:$0xff] }
 0x418   : > { %v26396_v25 = vpop.eup %26395 }
 0x419   : > { %v3262_v26 = vsel %vm2850_vm1, %v26396_v25, 0.0  ;;  %v26398_v27 = vpop.eup %26397 }
 0x41a   : > { %3263 = vadd.xlane.f32.xlu1 %v3262_v26  ;;  %v3256_v28 = vsel %vm2850_vm1, %v26398_v27, 0.0  ;;  %v24789_v26 = vpack.c.bf16 %v4007_v23, %v4006_v22  ;;  %v4044_v22 = vld [vmem:[%s26826_s24 + $0x50] sm:$0xff]  ;;  %v4045_v23 = vld [vmem:[%s26826_s24 + $0x58] sm:$0xff] }
 0x41e   : > { %3257 = vadd.xlane.f32.xlu1 %v3256_v28  ;;  %v4009_v28 = vld [vmem:[%s26821_s19 + $0x38] sm:$0xff] }
 0x420   : > { %v26400_v29 = vpop.eup %26399 }
 0x421   : > { %v26402_v30 = vpop.eup %26401  ;;  %v3268_v32 = vsel %vm2850_vm1, %v26400_v29, 0.0 }
 0x422   : > { %3269 = vadd.xlane.f32.xlu1 %v3268_v32  ;;  %v3265_v33 = vsel %vm2850_vm1, %v26402_v30, 0.0 }
 0x423   : > { %3266 = vadd.xlane.f32.xlu0 %v3265_v33  ;;  %v4012_v33 = vld [vmem:[%s26821_s19 + $0x50] sm:$0xff] }
 0x47f   : > { %v3252_v34 = vpop.xlane.xlu1 %3251 }
 0x480   : > { %26403 = vrcp.f32 %v3252_v34  ;;  %v4013_v34 = vld [vmem:[%s26821_s19 + $0x58] sm:$0xff] }
 0x481   : > { %v24798_v39 = vpack.c.bf16 %v4013_v34, %v4012_v33  ;;  %v4053_v33 = vld [vmem:[%s26826_s24 + $0x98] sm:$0xff] }
 0x483   : > { %v3249_v35 = vpop.xlane.xlu0 %3248 }
 0x484   : > { %26405 = vrcp.f32 %v3249_v35 }
 0x48a   : > { %v26404_v36 = vpop.eup %26403 }
 0x48b   : > { %v3274_v38 = vmul.f32 %v26404_v36, %v26388_v60  ;;  %v4018_v36 = vld [vmem:[%s26821_s19 + $0x80] sm:$0xff] }
 0x48d   : > { %3612 = vst.msk [vmem:[%s27401_s16 + $0x8] sm:$0xff] %vm2850_vm1, %v3274_v38 }
 0x48e   : > { %v26406_v41 = vpop.eup %26405 }
 0x48f   : > { %v3272_v42 = vmul.f32 %v26406_v41, %v26390_v63  ;;  %v24774_v63 = vpack.c.bf16 %v1938_v62, %v1937_v61  ;;  %v4015_v41 = vld [vmem:[%s26821_s19 + $0x68] sm:$0xff]  ;;  %v4034_v61 = vld [vmem:[%s26826_s24] sm:$0xff] }
 0x490   : > { %v4035_v62 = vld [vmem:[%s26826_s24 + $0x8] sm:$0xff] }
 0x491   : > { %v3261_v44 = vpop.xlane.xlu0 %3260  ;;  %22018 = vmatprep.mubr.msk.f32.mxu0 %vm2850_vm1, %v3272_v42  ;;  %3611 = vst.msk [vmem:[%s27401_s16] sm:$0xff] %vm2850_vm1, %v3272_v42  ;;  %v27476_v42 = vld [vmem:[%s27466_s15] sm:$0xff] }
 0x492   : > { %26407 = vrcp.f32 %v3261_v44  ;;  %22019 = vmatmul.mubr.msk.f32.vlgmr.msra.gmra.mrb[22].mxu0 %vm2850_vm1, %v3274_v38  ;;  %v4019_v38 = vld [vmem:[%s26821_s19 + $0x88] sm:$0xff]  ;;  %v4020_v44 = vld [vmem:[%s26821_s19 + $0x90] sm:$0xff] }
 0x493   : > { %24761 = vmatpush3.bf16.msra.mxu0 %v27371_v31 }
 0x494   : > { %24767 = vmatprep.subr.bf16.mxu0 %v24766_v43 }
 0x49c   : > { %v26408_v45 = vpop.eup %26407 }
 0x49d   : > { %v3280_v46 = vmul.f32 %v26408_v45, %v26392_v4  ;;  %v24778_v4 = vpack.c.bf16 %v1940_v3, %v1939_v2  ;;  %v4021_v45 = vld [vmem:[%s26821_s19 + $0x98] sm:$0xff]  ;;  %v4036_v2 = vld [vmem:[%s26826_s24 + $0x10] sm:$0xff] }
 0x49e   : > { %v4037_v3 = vld [vmem:[%s26826_s24 + $0x18] sm:$0xff] }
 0x49f   : > { %22032 = vmatprep.mubr.msk.f32.mxu0 %vm2850_vm1, %v3280_v46  ;;  %3615 = vst.msk [vmem:[%s27401_s16 + $0x20] sm:$0xff] %vm2850_vm1, %v3280_v46  ;;  %v24801_v46 = vpack.c.bf16 %v4015_v41, %v4014_v40  ;;  %v24834_v8 = vpack.c.bf16 %v4037_v3, %v4036_v2  ;;  %v4055_v40 = vld [vmem:[%s26826_s24 + $0xa8] sm:$0xff] }
 0x4a0   : > { %v4075_v2 = vld [vmem:[%s26831_s30 + $0x48] sm:$0xff] }
 0x4a3   : > { %v3255_v47 = vpop.xlane.xlu0 %3254 }
 0x4a4   : > { %26409 = vrcp.f32 %v3255_v47  ;;  %v4016_v47 = vld [vmem:[%s26821_s19 + $0x70] sm:$0xff] }
 0x4a7   : > { %v3264_v48 = vpop.xlane.xlu1 %3263 }
 0x4a8   : > { %26411 = vrcp.f32 %v3264_v48  ;;  %v4017_v48 = vld [vmem:[%s26821_s19 + $0x78] sm:$0xff] }
 0x4ab   : > { %v3258_v49 = vpop.xlane.xlu1 %3257 }
 0x4ac   : > { %26413 = vrcp.f32 %v3258_v49  ;;  %v24810_v49 = vpack.c.bf16 %v4021_v45, %v4020_v44  ;;  %v4059_v44 = vld [vmem:[%s26826_s24 + $0xc8] sm:$0xff] }
 0x4ae   : > { %v26410_v50 = vpop.eup %26409 }
 0x4af   : > { %v3270_v51 = vpop.xlane.xlu1 %3269  ;;  %v3276_v52 = vmul.f32 %v26410_v50, %v26394_v21  ;;  %v4022_v50 = vld [vmem:[%s26821_s19 + $0xa0] sm:$0xff] }
 0x4b0   : > { %26415 = vrcp.f32 %v3270_v51  ;;  %v3267_v31 = vpop.xlane.xlu0 %3266  ;;  %v4023_v51 = vld [vmem:[%s26821_s19 + $0xa8] sm:$0xff] }
 0x4b1   : > { %26417 = vrcp.f32 %v3267_v31  ;;  %22025 = vmatprep.mubr.msk.f32.mxu1 %vm2850_vm1, %v3276_v52  ;;  %3613 = vst.msk [vmem:[%s27401_s16 + $0x10] sm:$0xff] %vm2850_vm1, %v3276_v52  ;;  %v24804_v52 = vpack.c.bf16 %v4017_v48, %v4016_v47  ;;  %v4026_v31 = vld [vmem:[%s26821_s19 + $0xc0] sm:$0xff]  ;;  %v4057_v47 = vld [vmem:[%s26826_s24 + $0xb8] sm:$0xff] }
 0x4b2   : > { %v26412_v53 = vpop.eup %26411 }
 0x4b3   : > { %v3282_v54 = vmul.f32 %v26412_v53, %v26396_v25  ;;  %v4011_v25 = vld [vmem:[%s26821_s19 + $0x48] sm:$0xff] }
 0x4b4   : > { %v4027_v53 = vld [vmem:[%s26821_s19 + $0xc8] sm:$0xff] }
 0x4b5   : > { %22033 = vmatmul.mubr.msk.f32.vlgmr.msra.gmra.mrb[24].mxu0 %vm2850_vm1, %v3282_v54  ;;  %3616 = vst.msk [vmem:[%s27401_s16 + $0x28] sm:$0xff] %vm2850_vm1, %v3282_v54  ;;  %v24813_v54 = vpack.c.bf16 %v4023_v51, %v4022_v50  ;;  %v4061_v50 = vld [vmem:[%s26826_s24 + $0xd8] sm:$0xff] }
 0x4b6   : > { %v26414_v55 = vpop.eup %26413  ;;  %24769 = vmatpush3.bf16.msra.mxu0 %v24766_v43  ;;  %v24807_v43 = vpack.c.bf16 %v4019_v38, %v4018_v36  ;;  %v4049_v36 = vld [vmem:[%s26826_s24 + $0x78] sm:$0xff] }
 0x4b7   : > { %v3278_v56 = vmul.f32 %v26414_v55, %v26398_v27  ;;  %24775 = vmatprep.subr.bf16.mxu0 %v24774_v63  ;;  %v4008_v27 = vld [vmem:[%s26821_s19 + $0x30] sm:$0xff] }
 0x4b8   : > { %v24792_v35 = vpack.c.bf16 %v4009_v28, %v4008_v27  ;;  %v4024_v55 = vld [vmem:[%s26821_s19 + $0xb0] sm:$0xff]  ;;  %v24846_v27 = vpack.c.bf16 %v4045_v23, %v4044_v22  ;;  %v4046_v28 = vld [vmem:[%s26826_s24 + $0x60] sm:$0xff]  ;;  %v4085_v23 = vld [vmem:[%s26831_s30 + $0x98] sm:$0xff] }
 0x4b9   : > { %22026 = vmatmul.mubr.msk.f32.vlgmr.msra.gmra.mrb[26].mxu1 %vm2850_vm1, %v3278_v56  ;;  %3614 = vst.msk [vmem:[%s27401_s16 + $0x18] sm:$0xff] %vm2850_vm1, %v3278_v56  ;;  %v4025_v56 = vld [vmem:[%s26821_s19 + $0xb8] sm:$0xff] }
 0x4ba   : > { %v26416_v57 = vpop.eup %26415  ;;  %24765 = vmatpush3.bf16.msra.mxu1 %v27379_v37  ;;  %v1936_v37 = vld [vmem:[%s29988_s3 + $0x18] sm:$0xff] }
 0x4bb   : > { %v26418_v58 = vpop.eup %26417  ;;  %v3286_v59 = vmul.f32 %v26416_v57, %v26400_v29  ;;  %v24770_v1 = vpack.c.bf16 %v1936_v37, %v1935_v0  ;;  %v24819_v57 = vpack.c.bf16 %v4027_v53, %v4026_v31  ;;  %v4030_v0 = vld [vmem:[%s26821_s19 + $0xe0] sm:$0xff]  ;;  %v4031_v37 = vld [vmem:[%s26821_s19 + $0xe8] sm:$0xff] }
 0x4bc   : > { %v3284_v60 = vmul.f32 %v26418_v58, %v26402_v30  ;;  %v24795_v30 = vpack.c.bf16 %v4011_v25, %v4010_v24  ;;  %v4028_v58 = vld [vmem:[%s26821_s19 + $0xd0] sm:$0xff]  ;;  %v4050_v25 = vld [vmem:[%s26826_s24 + $0x80] sm:$0xff]  ;;  %v4063_v53 = vld [vmem:[%s26826_s24 + $0xe8] sm:$0xff] }
 0x4bd   : > { %3618 = vst.msk [vmem:[%s27401_s16 + $0x38] sm:$0xff] %vm2850_vm1, %v3286_v59  ;;  %24771 = vmatprep.subr.bf16.mxu1 %v24770_v1  ;;  %v4062_v31 = vld [vmem:[%s26826_s24 + $0xe0] sm:$0xff] }
 0x4be   : > { %22039 = vmatprep.mubr.msk.f32.mxu1 %vm2850_vm1, %v3284_v60  ;;  %3617 = vst.msk [vmem:[%s27401_s16 + $0x30] sm:$0xff] %vm2850_vm1, %v3284_v60  ;;  %v24816_v60 = vpack.c.bf16 %v4025_v56, %v4024_v55  ;;  %v4064_v55 = vld [vmem:[%s26826_s24 + $0xf0] sm:$0xff]  ;;  %v4065_v56 = vld [vmem:[%s26826_s24 + $0xf8] sm:$0xff] }
 0x4bf   : > { %22040 = vmatmul.mubr.msk.f32.vlgmr.msra.gmra.mrb[28].mxu1 %vm2850_vm1, %v3286_v59  ;;  %v4029_v59 = vld [vmem:[%s26821_s19 + $0xd8] sm:$0xff] }
 0x4c0   : > { %24773 = vmatpush3.bf16.msra.mxu1 %v24770_v1  ;;  %v24831_v1 = vpack.c.bf16 %v4035_v62, %v4034_v61  ;;  %v4068_v61 = vld [vmem:[%s26831_s30 + $0x10] sm:$0xff]  ;;  %v4069_v62 = vld [vmem:[%s26831_s30 + $0x18] sm:$0xff] }
 0x4c1   : > { %24779 = vmatprep.subr.bf16.mxu1 %v24778_v4 }
 0x565   : > { %v22020_v5 = vpop.f32.mrb[22].mxu0 }
 0x566   : > { %v3359_v6 = vpop.f32.mrb[23].mxu0 }
 0x567   : > { %22046 = vmatprep.mubr.msk.f32.mxu0 %vm2850_vm1, %v3359_v6  ;;  %v4033_v6 = vld [vmem:[%s26821_s19 + $0xf8] sm:$0xff] }
 0x568   : > { %22047 = vmatmul.mubr.msk.f32.vlgmr.msra.gmra.mrb[26].mxu0 %vm2850_vm1, %v22020_v5  ;;  %v4032_v5 = vld [vmem:[%s26821_s19 + $0xf0] sm:$0xff] }
 0x569   : > { %24777 = vmatpush3.bf16.msra.mxu0 %v24774_v63  ;;  %v24822_v63 = vpack.c.bf16 %v4029_v59, %v4028_v58  ;;  %v4066_v58 = vld [vmem:[%s26831_s30] sm:$0xff]  ;;  %v4067_v59 = vld [vmem:[%s26831_s30 + $0x8] sm:$0xff] }
 0x56a   : > { %24782 = vmatprep.subr.bf16.mxu0 %v26756_v7 }
 0x588   : > { %v22034_v11 = vpop.f32.mrb[24].mxu0 }
 0x589   : > { %v3521_v14 = vpop.f32.mrb[25].mxu0 }
 0x58a   : > { %22060 = vmatprep.mubr.msk.f32.mxu0 %vm2850_vm1, %v3521_v14  ;;  %v4042_v14 = vld [vmem:[%s26826_s24 + $0x40] sm:$0xff] }
 0x58b   : > { %22061 = vmatmul.mubr.msk.f32.vlgmr.msra.gmra.mrb[28].mxu0 %vm2850_vm1, %v22034_v11  ;;  %v4039_v11 = vld [vmem:[%s26826_s24 + $0x28] sm:$0xff] }
 0x58c   : > { %24784 = vmatpush3.bf16.msra.mxu0 %v24783_v13  ;;  %v22027_v17 = vpop.f32.mrb[26].mxu1  ;;  %22086 = vmatprep.mubr.msk.f32.mxu0 %vm26757_vm3, %v26758_v20  ;;  %v24828_v13 = vpack.c.bf16 %v4033_v6, %v4032_v5  ;;  %v24837_v16 = vpack.c.bf16 %v4039_v11, %v4038_v10  ;;  %v4072_v5 = vld [vmem:[%s26831_s30 + $0x30] sm:$0xff]  ;;  %v4073_v6 = vld [vmem:[%s26831_s30 + $0x38] sm:$0xff] }
 0x58d   : > { %v3440_v21 = vpop.f32.mrb[27].mxu1  ;;  %24785 = vmatprep.subr.bf16.mxu0 %v26756_v7  ;;  %v4076_v10 = vld [vmem:[%s26831_s30 + $0x50] sm:$0xff]  ;;  %v4077_v11 = vld [vmem:[%s26831_s30 + $0x58] sm:$0xff] }
 0x58e   : > { %22053 = vmatprep.mubr.msk.f32.mxu1 %vm2850_vm1, %v3440_v21  ;;  %v24843_v21 = vpack.c.bf16 %v4043_v15, %v4042_v14  ;;  %v4082_v14 = vld [vmem:[%s26831_s30 + $0x80] sm:$0xff]  ;;  %v4083_v15 = vld [vmem:[%s26831_s30 + $0x88] sm:$0xff] }
 0x58f   : > { %22054 = vmatmul.mubr.msk.f32.vlgmr.msra.gmra.mrb[30].mxu1 %vm2850_vm1, %v22027_v17  ;;  %v4040_v17 = vld [vmem:[%s26826_s24 + $0x30] sm:$0xff] }
 0x590   : > { %24787 = vmatpush3.bf16.msra.mxu0 %v24786_v19  ;;  %24781 = vmatpush3.bf16.msra.mxu1 %v24778_v4  ;;  %v24825_v4 = vpack.c.bf16 %v4031_v37, %v4030_v0  ;;  %v4041_v19 = vld [vmem:[%s26826_s24 + $0x38] sm:$0xff]  ;;  %v24882_v0 = vpack.c.bf16 %v4069_v62, %v4068_v61  ;;  %v4071_v37 = vld [vmem:[%s26831_s30 + $0x28] sm:$0xff] }
 0x591   : > { %24788 = vmatprep.subr.bf16.mxu0 %v26756_v7  ;;  %24794 = vmatprep.subr.bf16.mxu1 %v26756_v7  ;;  %v24840_v24 = vpack.c.bf16 %v4041_v19, %v4040_v17  ;;  %v4078_v17 = vld [vmem:[%s26831_s30 + $0x60] sm:$0xff]  ;;  %v4079_v19 = vld [vmem:[%s26831_s30 + $0x68] sm:$0xff] }
 0x592   : > { %v22041_v29 = vpop.f32.mrb[28].mxu1  ;;  %v24897_v22 = vpack.c.bf16 %v4079_v19, %v4078_v17 }
 0x593   : > { %v3602_v32 = vpop.f32.mrb[29].mxu1 }
 0x594   : > { %24790 = vmatpush3.bf16.msra.mxu0 %v24789_v26  ;;  %22067 = vmatprep.mubr.msk.f32.mxu1 %vm2850_vm1, %v3602_v32  ;;  %v4051_v26 = vld [vmem:[%s26826_s24 + $0x88] sm:$0xff]  ;;  %v4052_v32 = vld [vmem:[%s26826_s24 + $0x90] sm:$0xff] }
 0x595   : > { %22068 = vmatmul.mubr.msk.f32.vlgmr.msra.gmra.mrb[32].mxu1 %vm2850_vm1, %v22041_v29  ;;  %24791 = vmatprep.subr.bf16.mxu0 %v26756_v7  ;;  %v4047_v29 = vld [vmem:[%s26826_s24 + $0x68] sm:$0xff]  ;;  %v24858_v38 = vpack.c.bf16 %v4053_v33, %v4052_v32 }
 0x596   : > { %24796 = vmatpush3.bf16.msra.mxu1 %v24795_v30  ;;  %22105 = vmatprep.mubr.msk.f32.mxu1 %vm26757_vm3, %v26758_v20  ;;  %v24855_v30 = vpack.c.bf16 %v4051_v26, %v4050_v25  ;;  %v24849_v34 = vpack.c.bf16 %v4047_v29, %v4046_v28  ;;  %v4081_v25 = vld [vmem:[%s26831_s30 + $0x78] sm:$0xff]  ;;  %v4087_v28 = vld [vmem:[%s26831_s30 + $0xa8] sm:$0xff] }
 0x597   : > { %24797 = vmatprep.subr.bf16.mxu1 %v26756_v7  ;;  %v4091_v32 = vld [vmem:[%s26831_s30 + $0xc8] sm:$0xff] }
 0x598   : > { %24793 = vmatpush3.bf16.msra.mxu0 %v24792_v35  ;;  %v4048_v35 = vld [vmem:[%s26826_s24 + $0x70] sm:$0xff] }
 0x599   : > { %24806 = vmatprep.subr.bf16.mxu0 %v26756_v7  ;;  %v24852_v41 = vpack.c.bf16 %v4049_v36, %v4048_v35  ;;  %v4089_v35 = vld [vmem:[%s26831_s30 + $0xb8] sm:$0xff] }
 0x59a   : > { %24799 = vmatpush3.bf16.msra.mxu1 %v24798_v39  ;;  %v4054_v39 = vld [vmem:[%s26826_s24 + $0xa0] sm:$0xff] }
 0x59b   : > { %22087 = vmatmul.mubr.msk.f32.vlgmr.msra.gmra.mrb[30].mxu0 %vm1943_vm0, %v27476_v42  ;;  %24800 = vmatprep.subr.bf16.mxu1 %v26756_v7  ;;  %v24861_v45 = vpack.c.bf16 %v4055_v40, %v4054_v39  ;;  %v4092_v39 = vld [vmem:[%s26831_s30 + $0xd0] sm:$0xff]  ;;  %v4093_v40 = vld [vmem:[%s26831_s30 + $0xd8] sm:$0xff] }
 0x59c   : > { %24808 = vmatpush3.bf16.msra.mxu0 %v24807_v43  ;;  %22124 = vmatprep.mubr.msk.f32.mxu0 %vm26757_vm3, %v26758_v20  ;;  %v4058_v43 = vld [vmem:[%s26826_s24 + $0xc0] sm:$0xff] }
 0x59d   : > { %24809 = vmatprep.subr.bf16.mxu0 %v26756_v7  ;;  %v24867_v48 = vpack.c.bf16 %v4059_v44, %v4058_v43  ;;  %v4094_v43 = vld [vmem:[%s26831_s30 + $0xe0] sm:$0xff]  ;;  %v4095_v44 = vld [vmem:[%s26831_s30 + $0xe8] sm:$0xff] }
 0x59e   : > { %24802 = vmatpush3.bf16.msra.mxu1 %v24801_v46  ;;  %v4056_v46 = vld [vmem:[%s26826_s24 + $0xb0] sm:$0xff] }
 0x59f   : > { %24803 = vmatprep.subr.bf16.mxu1 %v26756_v7  ;;  %v24864_v51 = vpack.c.bf16 %v4057_v47, %v4056_v46  ;;  %v4096_v46 = vld [vmem:[%s26831_s30 + $0xf0] sm:$0xff]  ;;  %v4097_v47 = vld [vmem:[%s26831_s30 + $0xf8] sm:$0xff] }
 0x5a0   : > { %24811 = vmatpush3.bf16.msra.mxu0 %v24810_v49  ;;  %v4060_v49 = vld [vmem:[%s26826_s24 + $0xd0] sm:$0xff] }
 0x5a1   : > { %24812 = vmatprep.subr.bf16.mxu0 %v26756_v7 }
 0x5a2   : > { %24805 = vmatpush3.bf16.msra.mxu1 %v24804_v52  ;;  %v24870_v52 = vpack.c.bf16 %v4061_v50, %v4060_v49 }
 0x5a3   : > { %24818 = vmatprep.subr.bf16.mxu1 %v26756_v7 }
 0x5a4   : > { %24814 = vmatpush3.bf16.msra.mxu0 %v24813_v54  ;;  %v24873_v54 = vpack.c.bf16 %v4063_v53, %v4062_v31 }
 0x5a5   : > { %22106 = vmatmul.mubr.msk.f32.vlgmr.msra.gmra.mrb[34].mxu1 %vm1943_vm0, %v27476_v42  ;;  %24815 = vmatprep.subr.bf16.mxu0 %v26756_v7 }
 0x5a6   : > { %24820 = vmatpush3.bf16.msra.mxu1 %v24819_v57  ;;  %22143 = vmatprep.mubr.msk.f32.mxu1 %vm26757_vm3, %v26758_v20  ;;  %v24876_v57 = vpack.c.bf16 %v4065_v56, %v4064_v55 }
 0x5a7   : > { %24821 = vmatprep.subr.bf16.mxu1 %v26756_v7 }
 0x5a8   : > { %24817 = vmatpush3.bf16.msra.mxu0 %v24816_v60  ;;  %v24879_v60 = vpack.c.bf16 %v4067_v59, %v4066_v58 }
 0x5a9   : > { %24830 = vmatprep.subr.bf16.mxu0 %v26756_v7 }
 0x5aa   : > { %24823 = vmatpush3.bf16.msra.mxu1 %v24822_v63  ;;  %v4070_v63 = vld [vmem:[%s26831_s30 + $0x20] sm:$0xff] }
 0x5ab   : > { %22125 = vmatmul.mubr.msk.f32.vlgmr.msra.gmra.mrb[32].mxu0 %vm1943_vm0, %v27476_v42  ;;  %24824 = vmatprep.subr.bf16.mxu1 %v26756_v7 }
 0x5ac   : > { %24832 = vmatpush3.bf16.msra.mxu0 %v24831_v1  ;;  %22162 = vmatprep.mubr.msk.f32.mxu0 %vm26757_vm3, %v26758_v20  ;;  %v4074_v1 = vld [vmem:[%s26831_s30 + $0x40] sm:$0xff] }
 0x5ad   : > { %24833 = vmatprep.subr.bf16.mxu0 %v26756_v7  ;;  %v24891_v3 = vpack.c.bf16 %v4075_v2, %v4074_v1 }
 0x5ae   : > { %24826 = vmatpush3.bf16.msra.mxu1 %v24825_v4  ;;  %v24885_v4 = vpack.c.bf16 %v4071_v37, %v4070_v63 }
 0x5af   : > { %24827 = vmatprep.subr.bf16.mxu1 %v26756_v7 }
 0x5b0   : > { %24835 = vmatpush3.bf16.msra.mxu0 %v24834_v8  ;;  %v24888_v8 = vpack.c.bf16 %v4073_v6, %v4072_v5 }
 0x5b1   : > { %24836 = vmatprep.subr.bf16.mxu0 %v26756_v7 }
 0x5b2   : > { %24829 = vmatpush3.bf16.msra.mxu1 %v24828_v13  ;;  %v24894_v13 = vpack.c.bf16 %v4077_v11, %v4076_v10 }
 0x5b3   : > { %24842 = vmatprep.subr.bf16.mxu1 %v26756_v7 }
 0x5b4   : > { %24838 = vmatpush3.bf16.msra.mxu0 %v24837_v16  ;;  %v24903_v16 = vpack.c.bf16 %v4083_v15, %v4082_v14 }
 0x5b5   : > { %22144 = vmatmul.mubr.msk.f32.vlgmr.msra.gmra.mrb[36].mxu1 %vm1943_vm0, %v27476_v42  ;;  %24839 = vmatprep.subr.bf16.mxu0 %v26756_v7 }
 0x5b6   : > { %24844 = vmatpush3.bf16.msra.mxu1 %v24843_v21  ;;  %22181 = vmatprep.mubr.msk.f32.mxu1 %vm26757_vm3, %v26758_v20  ;;  %v4084_v21 = vld [vmem:[%s26831_s30 + $0x90] sm:$0xff] }
 0x5b7   : > { %24845 = vmatprep.subr.bf16.mxu1 %v26756_v7  ;;  %v24906_v26 = vpack.c.bf16 %v4085_v23, %v4084_v21 }
 0x5b8   : > { %24841 = vmatpush3.bf16.msra.mxu0 %v24840_v24  ;;  %v4080_v24 = vld [vmem:[%s26831_s30 + $0x70] sm:$0xff] }
 0x5b9   : > { %24854 = vmatprep.subr.bf16.mxu0 %v26756_v7  ;;  %v24900_v29 = vpack.c.bf16 %v4081_v25, %v4080_v24 }
 0x5ba   : > { %24847 = vmatpush3.bf16.msra.mxu1 %v24846_v27  ;;  %v4086_v27 = vld [vmem:[%s26831_s30 + $0xa0] sm:$0xff] }
 0x5bb   : > { %22163 = vmatmul.mubr.msk.f32.vlgmr.msra.gmra.mrb[34].mxu0 %vm1943_vm0, %v27476_v42  ;;  %24848 = vmatprep.subr.bf16.mxu1 %v26756_v7  ;;  %v24909_v33 = vpack.c.bf16 %v4087_v28, %v4086_v27 }
 0x5bc   : > { %24856 = vmatpush3.bf16.msra.mxu0 %v24855_v30  ;;  %22200 = vmatprep.mubr.msk.f32.mxu0 %vm26757_vm3, %v26758_v20  ;;  %v4090_v30 = vld [vmem:[%s26831_s30 + $0xc0] sm:$0xff] }
 0x5bd   : > { %24857 = vmatprep.subr.bf16.mxu0 %v26756_v7  ;;  %v24915_v36 = vpack.c.bf16 %v4091_v32, %v4090_v30 }
 0x5be   : > { %24850 = vmatpush3.bf16.msra.mxu1 %v24849_v34  ;;  %v4088_v34 = vld [vmem:[%s26831_s30 + $0xb0] sm:$0xff] }
 0x5bf   : > { %24851 = vmatprep.subr.bf16.mxu1 %v26756_v7 }
 0x5c0   : > { %24859 = vmatpush3.bf16.msra.mxu0 %v24858_v38  ;;  %v24912_v38 = vpack.c.bf16 %v4089_v35, %v4088_v34 }
 0x5c1   : > { %24860 = vmatprep.subr.bf16.mxu0 %v26756_v7 }
 0x5c2   : > { %24853 = vmatpush3.bf16.msra.mxu1 %v24852_v41  ;;  %v24918_v41 = vpack.c.bf16 %v4093_v40, %v4092_v39 }
 0x5c3   : > { %24866 = vmatprep.subr.bf16.mxu1 %v26756_v7 }
 0x5c4   : > { %24862 = vmatpush3.bf16.msra.mxu0 %v24861_v45  ;;  %v24921_v45 = vpack.c.bf16 %v4095_v44, %v4094_v43 }
 0x5c5   : > { %22182 = vmatmul.mubr.msk.f32.vlgmr.msra.gmra.mrb[38].mxu1 %vm1943_vm0, %v27476_v42  ;;  %24863 = vmatprep.subr.bf16.mxu0 %v26756_v7 }
 0x5c6   : > { %24868 = vmatpush3.bf16.msra.mxu1 %v24867_v48  ;;  %22219 = vmatprep.mubr.msk.f32.mxu1 %vm26757_vm3, %v26758_v20  ;;  %v24924_v48 = vpack.c.bf16 %v4097_v47, %v4096_v46 }
 0x5c7   : > { %24869 = vmatprep.subr.bf16.mxu1 %v26756_v7 }
 0x5c8   : > { %24865 = vmatpush3.bf16.msra.mxu0 %v24864_v51 }
 0x5c9   : > { %24878 = vmatprep.subr.bf16.mxu0 %v26756_v7 }
 0x5ca   : > { %24871 = vmatpush3.bf16.msra.mxu1 %v24870_v52 }
 0x5cb   : > { %22201 = vmatmul.mubr.msk.f32.vlgmr.msra.gmra.mrb[36].mxu0 %vm1943_vm0, %v27476_v42  ;;  %24872 = vmatprep.subr.bf16.mxu1 %v26756_v7 }
 0x5cc   : > { %22238 = vmatprep.mubr.msk.f32.mxu0 %vm26757_vm3, %v26758_v20  ;;  %24880 = vmatpush3.bf16.msra.mxu0 %v24879_v60 }
 0x5cd   : > { %24881 = vmatprep.subr.bf16.mxu0 %v26756_v7 }
 0x5ce   : > { %24874 = vmatpush3.bf16.msra.mxu1 %v24873_v54 }
 0x5cf   : > { %24875 = vmatprep.subr.bf16.mxu1 %v26756_v7 }
 0x5d0   : > { %24883 = vmatpush3.bf16.msra.mxu0 %v24882_v0 }
 0x5d1   : > { %24884 = vmatprep.subr.bf16.mxu0 %v26756_v7 }
 0x5d2   : > { %24877 = vmatpush3.bf16.msra.mxu1 %v24876_v57 }
 0x5d3   : > { %24890 = vmatprep.subr.bf16.mxu1 %v26756_v7 }
 0x5d4   : > { %24886 = vmatpush3.bf16.msra.mxu0 %v24885_v4 }
 0x5d5   : > { %22220 = vmatmul.mubr.msk.f32.vlgmr.msra.gmra.mrb[40].mxu1 %vm1943_vm0, %v27476_v42  ;;  %24887 = vmatprep.subr.bf16.mxu0 %v26756_v7 }
 0x5d6   : > { %22257 = vmatprep.mubr.msk.f32.mxu1 %vm26757_vm3, %v26758_v20  ;;  %24892 = vmatpush3.bf16.msra.mxu1 %v24891_v3 }
 0x5d7   : > { %24893 = vmatprep.subr.bf16.mxu1 %v26756_v7 }
 0x5d8   : > { %24889 = vmatpush3.bf16.msra.mxu0 %v24888_v8 }
 0x5d9   : > { %24902 = vmatprep.subr.bf16.mxu0 %v26756_v7 }
 0x5da   : > { %24895 = vmatpush3.bf16.msra.mxu1 %v24894_v13 }
 0x5db   : > { %22239 = vmatmul.mubr.msk.f32.vlgmr.msra.gmra.mrb[38].mxu0 %vm1943_vm0, %v27476_v42  ;;  %24896 = vmatprep.subr.bf16.mxu1 %v26756_v7 }
 0x5dc   : > { %24904 = vmatpush3.bf16.msra.mxu0 %v24903_v16  ;;  %22276 = vmatprep.mubr.msk.f32.mxu0 %vm26757_vm3, %v26758_v20 }
 0x5dd   : > { %24905 = vmatprep.subr.bf16.mxu0 %v26756_v7 }
 0x5de   : > { %24898 = vmatpush3.bf16.msra.mxu1 %v24897_v22 }
 0x5df   : > { %24899 = vmatprep.subr.bf16.mxu1 %v26756_v7 }
 0x5e0   : > { %24907 = vmatpush3.bf16.msra.mxu0 %v24906_v26 }
 0x5e1   : > { %24908 = vmatprep.subr.bf16.mxu0 %v26756_v7 }
 0x5e2   : > { %24901 = vmatpush3.bf16.msra.mxu1 %v24900_v29 }
 0x5e3   : > { %24914 = vmatprep.subr.bf16.mxu1 %v26756_v7 }
 0x5e4   : > { %24910 = vmatpush3.bf16.msra.mxu0 %v24909_v33 }
 0x5e5   : > { %22258 = vmatmul.mubr.msk.f32.vlgmr.msra.gmra.mrb[42].mxu1 %vm1943_vm0, %v27476_v42  ;;  %24911 = vmatprep.subr.bf16.mxu0 %v26756_v7 }
 0x5e6   : > { %24916 = vmatpush3.bf16.msra.mxu1 %v24915_v36  ;;  %22295 = vmatprep.mubr.msk.f32.mxu1 %vm26757_vm3, %v26758_v20 }
 0x5e7   : > { %24917 = vmatprep.subr.bf16.mxu1 %v26756_v7 }
 0x5e8   : > { %24913 = vmatpush3.bf16.msra.mxu0 %v24912_v38 }
 0x5e9   : > { %22298 = vmatprep.subr.mxu0 %v26758_v20 }
 0x5ea   : > { %24919 = vmatpush3.bf16.msra.mxu1 %v24918_v41 }
 0x5eb   : > { %24920 = vmatprep.subr.bf16.mxu1 %v26756_v7  ;;  %22277 = vmatmul.mubr.msk.f32.vlgmr.msra.gmra.mrb[40].mxu0 %vm1943_vm0, %v27476_v42 }
 0x5ec   : > { %22300 = vmatprep.mubr.msk.f32.mxu0 %vm26757_vm3, %v26758_v20 }
 0x5ee   : > { %24922 = vmatpush3.bf16.msra.mxu1 %v24921_v45 }
 0x5ef   : > { %24923 = vmatprep.subr.bf16.mxu1 %v26756_v7 }
 0x5f2   : > { %24925 = vmatpush3.bf16.msra.mxu1 %v24924_v48 }
 0x5f3   : > { %22303 = vmatprep.subr.mxu1 %v26758_v20 }
 0x5f5   : > { %22296 = vmatmul.mubr.msk.f32.vlgmr.msra.gmra.mrb[44].mxu1 %vm1943_vm0, %v27476_v42 }
 0x5f6   : > { %22305 = vmatprep.mubr.msk.f32.mxu1 %vm26757_vm3, %v26758_v20 }
 0x63b   : > { %v22048_v49 = vpop.f32.mrb[26].mxu0 }
 0x63c   : > { %v3691_v50 = vpop.f32.mrb[27].mxu0  ;;  %v3950_v53 = vsel %vm1943_vm0, %v22048_v49, 0.0 }
 0x63d   : > { %v3943_v56 = vsel %vm1943_vm0, %v3691_v50, 0.0 }
 0x65e   : > { %v22062_v51 = vpop.f32.mrb[28].mxu0 }
 0x65f   : > { %v3853_v52 = vpop.f32.mrb[29].mxu0  ;;  %v3953_v42 = vsel %vm1943_vm0, %v22062_v51, 0.0 }
 0x660   : > { %v3946_v60 = vsel %vm1943_vm0, %v3853_v52, 0.0 }
 0x662   : > { %v22055_v31 = vpop.f32.mrb[30].mxu1 }
 0x663   : > { %v3951_v54 = vsel %vm1943_vm0, %v22055_v31, 0.0  ;;  %v3772_v55 = vpop.f32.mrb[31].mxu1 }
 0x664   : > { %v3952_v57 = vadd.f32 %v3951_v54, %v3950_v53  ;;  %v3944_v58 = vsel %vm1943_vm0, %v3772_v55, 0.0 }
 0x665   : > { %v3945_v59 = vadd.f32 %v3944_v58, %v3943_v56 }
 0x666   : > { %v3954_v61 = vadd.f32 %v3953_v42, %v3952_v57 }
 0x667   : > { %v3947_v62 = vadd.f32 %v3946_v60, %v3945_v59 }
 0x668   : > { %v22069_v63 = vpop.f32.mrb[32].mxu1 }
 0x669   : > { %v3955_v0 = vsel %vm1943_vm0, %v22069_v63, 0.0  ;;  %v3934_v37 = vpop.f32.mrb[33].mxu1 }
 0x66a   : > { %v27657_v1 = vadd.f32 %v3955_v0, %v3954_v61  ;;  %v3948_v2 = vsel %vm1943_vm0, %v3934_v37, 0.0 }
 0x66b   : > { %v27660_v3 = vadd.f32 %v3948_v2, %v3947_v62 }
 0x66d   : > { %v3957_v0 = vadd.f32 %v27660_v3, %v27218_v9 }
 0x66e   : > { %v4177_v4 = vpop.f32.mrb[30].mxu0 }
 0x66f   : > { %v22088_v5 = vpop.f32.mrb[31].mxu0  ;;  %v3959_v37 = vsel %vm1943_vm0, %v3957_v0, 0.0 }
 0x670   : > { %v3958_v5 = vadd.f32 %v27657_v1, %v27228_v18 }
 0x678   : > { %v4247_v6 = vpop.f32.mrb[34].mxu1 }
 0x679   : > { %v22107_v8 = vpop.f32.mrb[35].mxu1 }
 0x67e   : > { %v4317_v10 = vpop.f32.mrb[32].mxu0 }
 0x67f   : > { %v22126_v11 = vpop.f32.mrb[33].mxu0 }
 0x688   : > { %v4387_v13 = vpop.f32.mrb[36].mxu1 }
 0x689   : > { %v22145_v14 = vpop.f32.mrb[37].mxu1 }
 0x68e   : > { %v4457_v15 = vpop.f32.mrb[34].mxu0 }
 0x68f   : > { %22299 = vmatpush3.xpose.msk.msra.mxu0 %vm2850_vm1, %v4457_v15  ;;  %v22164_v16 = vpop.f32.mrb[35].mxu0 }
 0x690   : > { %22308 = vmatprep.subr.mxu0 %v26758_v20 }
 0x692   : > { %22301 = vmatmul.mubr.msk.f32.vlgmr.msra.gmra.mrb[42].mxu0 %vm2850_vm1, %v4177_v4 }
 0x693   : > { %22310 = vmatprep.mubr.msk.f32.mxu0 %vm26757_vm3, %v26758_v20 }
 0x698   : > { %v4527_v17 = vpop.f32.mrb[38].mxu1 }
 0x699   : > { %v22183_v19 = vpop.f32.mrb[39].mxu1  ;;  %22304 = vmatpush3.xpose.msk.msra.mxu1 %vm2850_vm1, %v4527_v17 }
 0x69a   : > { %22313 = vmatprep.subr.mxu1 %v26758_v20 }
 0x69c   : > { %22306 = vmatmul.mubr.msk.f32.vlgmr.msra.gmra.mrb[46].mxu1 %vm2850_vm1, %v4247_v6  ;;  %v3962_v6 = vsel %vm1943_vm0, %v3958_v5, 0.0 }
 0x69d   : > { %22315 = vmatprep.mubr.msk.f32.mxu1 %vm26757_vm3, %v26758_v20 }
 0x69e   : > { %v4597_v21 = vpop.f32.mrb[36].mxu0 }
 0x69f   : > { %22309 = vmatpush3.xpose.msk.msra.mxu0 %vm2850_vm1, %v4597_v21  ;;  %v22202_v22 = vpop.f32.mrb[37].mxu0 }
 0x6a0   : > { %22318 = vmatprep.subr.mxu0 %v26758_v20 }
 0x6a2   : > { %22311 = vmatmul.mubr.msk.f32.vlgmr.msra.gmra.mrb[44].mxu0 %vm2850_vm1, %v4317_v10 }
 0x6a3   : > { %22320 = vmatprep.mubr.msk.f32.mxu0 %vm26757_vm3, %v26758_v20 }
 0x6a8   : > { %v4667_v23 = vpop.f32.mrb[40].mxu1 }
 0x6a9   : > { %v22221_v24 = vpop.f32.mrb[41].mxu1  ;;  %22314 = vmatpush3.xpose.msk.msra.mxu1 %vm2850_vm1, %v4667_v23 }
 0x6aa   : > { %22323 = vmatprep.subr.mxu1 %v26758_v20 }
 0x6ac   : > { %22316 = vmatmul.mubr.msk.f32.vlgmr.msra.gmra.mrb[48].mxu1 %vm2850_vm1, %v4387_v13 }
 0x6ad   : > { %22325 = vmatprep.mubr.msk.f32.mxu1 %vm26757_vm3, %v26758_v20 }
 0x6ae   : > { %v4737_v25 = vpop.f32.mrb[38].mxu0 }
 0x6af   : > { %v22240_v26 = vpop.f32.mrb[39].mxu0  ;;  %22319 = vmatpush3.msra.mxu0 %v4737_v25 }
 0x6b0   : > { %22328 = vmatprep.subr.mxu0 %v26758_v20 }
 0x6b8   : > { %v4807_v27 = vpop.f32.mrb[42].mxu1 }
 0x6b9   : > { %v22259_v28 = vpop.f32.mrb[43].mxu1  ;;  %22324 = vmatpush3.msra.mxu1 %v4807_v27 }
 0x6ba   : > { %22333 = vmatprep.subr.mxu1 %v26758_v20 }
 0x6be   : > { %v27684_v29 = vpop.f32.mrb[40].mxu0 }
 0x6bf   : > { %v22278_v30 = vpop.f32.mrb[41].mxu0 }
 0x6c0   : > { %v4098_v30 = vld [vmem:[%s29987_s6] sm:$0xff] }
 0x6c8   : > { %v27686_v32 = vpop.f32.mrb[44].mxu1 }
 0x6c9   : > { %v22297_v33 = vpop.f32.mrb[45].mxu1 }
 0x765   : > { %v5023_v34 = vpop.f32.mrb[42].mxu0 }
 0x766   : > { %v22302_v35 = vpop.f32.mrb[43].mxu0  ;;  %v5256_v36 = vsel %vm5255_vm4, %v5023_v34, -inf }
 0x767   : > { %5257 = vmax.xlane.f32.xlu0 %v5256_v36  ;;  %v4101_v35 = vld [vmem:[%s29987_s6 + $0x18] sm:$0xff] }
 0x76f   : > { %v5099_v38 = vpop.f32.mrb[46].mxu1 }
 0x770   : > { %v22307_v39 = vpop.f32.mrb[47].mxu1  ;;  %v5259_v40 = vsel %vm5255_vm4, %v5099_v38, -inf }
 0x771   : > { %5260 = vmax.xlane.f32.xlu1 %v5259_v40 }
 0x775   : > { %v5175_v41 = vpop.f32.mrb[44].mxu0 }
 0x776   : > { %v22312_v43 = vpop.f32.mrb[45].mxu0  ;;  %v5262_v44 = vsel %vm5255_vm4, %v5175_v41, -inf }
 0x777   : > { %5263 = vmax.xlane.f32.xlu0 %v5262_v44  ;;  %v4103_v43 = vld [vmem:[%s29987_s6 + $0x28] sm:$0xff]  ;;  %v5923_v44 = vld [vmem:[%s26851_s27] sm:$0xff] }
 0x77f   : > { %v5251_v45 = vpop.f32.mrb[48].mxu1 }
 0x780   : > { %v22317_v46 = vpop.f32.mrb[49].mxu1  ;;  %v5265_v47 = vsel %vm5255_vm4, %v5251_v45, -inf }
 0x781   : > { %5266 = vmax.xlane.f32.xlu1 %v5265_v47 }
 0x7f4   : > { %v5258_v48 = vpop.xlane.xlu0 %5257 }
 0x7f5   : > { %v5268_v49 = vsub.f32 %v5023_v34, %v5258_v48  ;;  %v4100_v34 = vld [vmem:[%s29987_s6 + $0x10] sm:$0xff] }
 0x7f6   : > { %v24930_v36 = vpack.c.bf16 %v4101_v35, %v4100_v34  ;;  %v5943_v35 = vld [vmem:[%s26851_s27 + $0xa0] sm:$0xff] }
 0x7f7   : > { %v5272_v50 = vmul.f32 1.442695, %v5268_v49 }
 0x7f9   : > { %26419 = vpow2.f32 %v5272_v50 }
 0x7fe   : > { %v5261_v51 = vpop.xlane.xlu1 %5260 }
 0x7ff   : > { %v5269_v52 = vsub.f32 %v5099_v38, %v5261_v51 }
 0x801   : > { %v5274_v31 = vmul.f32 1.442695, %v5269_v52 }
 0x803   : > { %v26420_v53 = vpop.eup %26419  ;;  %26421 = vpow2.f32 %v5274_v31  ;;  %v4104_v31 = vld [vmem:[%s29987_s6 + $0x30] sm:$0xff] }
 0x804   : > { %v5264_v54 = vpop.xlane.xlu0 %5263  ;;  %v5280_v55 = vsel %vm5255_vm4, %v26420_v53, 0.0 }
 0x805   : > { %v5270_v56 = vsub.f32 %v5175_v41, %v5264_v54  ;;  %5281 = vadd.xlane.f32.xlu0 %v5280_v55  ;;  %v4102_v41 = vld [vmem:[%s29987_s6 + $0x20] sm:$0xff] }
 0x806   : > { %v24933_v46 = vpack.c.bf16 %v4103_v43, %v4102_v41  ;;  %v5931_v55 = vld [vmem:[%s26851_s27 + $0x40] sm:$0xff]  ;;  %v5945_v43 = vld [vmem:[%s26851_s27 + $0xb0] sm:$0xff] }
 0x807   : > { %v5276_v57 = vmul.f32 1.442695, %v5270_v56  ;;  %v5932_v56 = vld [vmem:[%s26851_s27 + $0x48] sm:$0xff] }
 0x809   : > { %26423 = vpow2.f32 %v5276_v57 }
 0x80d   : > { %v26422_v58 = vpop.eup %26421 }
 0x80e   : > { %v5267_v42 = vpop.xlane.xlu1 %5266  ;;  %v5283_v59 = vsel %vm5255_vm4, %v26422_v58, 0.0 }
 0x80f   : > { %v5271_v60 = vsub.f32 %v5251_v45, %v5267_v42  ;;  %5284 = vadd.xlane.f32.xlu1 %v5283_v59  ;;  %v5924_v45 = vld [vmem:[%s26851_s27 + $0x8] sm:$0xff]  ;;  %v19456_v42 = vld [vmem:[%s29986_s8] ss:$0 sm:$0xff]  ;;  %v24954_v59 = vpack.c.bf16 %v5932_v56, %v5931_v55  ;;  %v5958_v55 = vld [vmem:[%s30010_s9 + $0x18] sm:$0xff] }
 0x810   : > { %v24938_v48 = vpack.c.bf16 %v5924_v45, %v5923_v44  ;;  %v5946_v44 = vld [vmem:[%s26851_s27 + $0xb8] sm:$0xff] }
 0x811   : > { %v5278_v61 = vmul.f32 1.442695, %v5271_v60 }
 0x813   : > { %v26424_v62 = vpop.eup %26423  ;;  %26425 = vpow2.f32 %v5278_v61 }
 0x814   : > { %v5286_v63 = vsel %vm5255_vm4, %v26424_v62, 0.0 }
 0x815   : > { %5287 = vadd.xlane.f32.xlu0 %v5286_v63  ;;  %v5925_v63 = vld [vmem:[%s26851_s27 + $0x10] sm:$0xff] }
 0x819   : > { %3960 = vadd.xlane.f32.xlu0 %v3959_v37  ;;  %v19457_v37 = vld [vmem:[%s30009_s10] ss:$0 sm:$0xff] }
 0x81d   : > { %v26426_v2 = vpop.eup %26425 }
 0x81e   : > { %v5289_v4 = vsel %vm5255_vm4, %v26426_v2, 0.0 }
 0x81f   : > { %5290 = vadd.xlane.f32.xlu1 %v5289_v4 }
 0x823   : > { %3963 = vadd.xlane.f32.xlu1 %v3962_v6  ;;  %v5927_v6 = vld [vmem:[%s26851_s27 + $0x20] sm:$0xff] }
 0x892   : > { %v5282_v8 = vpop.xlane.xlu0 %5281 }
 0x893   : > { %26427 = vrcp.f32 %v5282_v8  ;;  %v5928_v8 = vld [vmem:[%s26851_s27 + $0x28] sm:$0xff] }
 0x89c   : > { %v5285_v9 = vpop.xlane.xlu1 %5284 }
 0x89d   : > { %v26428_v3 = vpop.eup %26427  ;;  %26429 = vrcp.f32 %v5285_v9 }
 0x89e   : > { %v5293_v10 = vmul.f32 %v26428_v3, %v26420_v53  ;;  %v4105_v53 = vld [vmem:[%s29987_s6 + $0x38] sm:$0xff]  ;;  %v24946_v3 = vpack.c.bf16 %v5928_v8, %v5927_v6  ;;  %v5965_v6 = vld [vmem:[%s30010_s9 + $0x50] sm:$0xff] }
 0x89f   : > { %v5966_v8 = vld [vmem:[%s30010_s9 + $0x58] sm:$0xff] }
 0x8a0   : > { %22321 = vmatmul.mubr.msk.f32.vlgmr.msra.gmra.mrb[46].mxu0 %vm5255_vm4, %v5293_v10  ;;  %5592 = vst.msk [vmem:[%s27706_s5] sm:$0xff] %vm5255_vm4, %v5293_v10 }
 0x8a1   : > { %22329 = vmatpush3.msra.mxu0 %v27684_v29  ;;  %22330 = vmatprep.mubr.msk.f32.mxu0 %vm26757_vm3, %v26758_v20 }
 0x8a2   : > { %v5288_v18 = vpop.xlane.xlu0 %5287  ;;  %24926 = vmatprep.subr.bf16.mxu0 %v26756_v7 }
 0x8a3   : > { %26431 = vrcp.f32 %v5288_v18  ;;  %v5929_v18 = vld [vmem:[%s26851_s27 + $0x30] sm:$0xff] }
 0x8a6   : > { %v3961_v1 = vpop.xlane.xlu0 %3960 }
 0x8a7   : > { %v26430_v11 = vpop.eup %26429  ;;  %v3966_v13 = vmul.f32 0.015625, %v3961_v1  ;;  %v5930_v1 = vld [vmem:[%s26851_s27 + $0x38] sm:$0xff] }
 0x8a8   : > { %v5295_v14 = vmul.f32 %v26430_v11, %v26422_v58  ;;  %v24936_v58 = vpack.c.bf16 %v4105_v53, %v4104_v31  ;;  %v5933_v11 = vld [vmem:[%s26851_s27 + $0x50] sm:$0xff]  ;;  %v5952_v31 = vld [vmem:[%s26851_s27 + $0xe8] sm:$0xff] }
 0x8a9   : > { %v3968_v15 = vsub.f32 %v3957_v0, %v3966_v13  ;;  %v5926_v0 = vld [vmem:[%s26851_s27 + $0x18] sm:$0xff] }
 0x8aa   : > { %22326 = vmatmul.mubr.msk.f32.vlgmr.msra.gmra.mrb[50].mxu1 %vm5255_vm4, %v5295_v14  ;;  %5593 = vst.msk [vmem:[%s27706_s5 + $0x8] sm:$0xff] %vm5255_vm4, %v5295_v14  ;;  %v5934_v13 = vld [vmem:[%s26851_s27 + $0x58] sm:$0xff] }
 0x8ab   : > { %22334 = vmatpush3.msra.mxu1 %v27686_v32  ;;  %v3970_v16 = vmul.f32 %v3968_v15, %v3968_v15  ;;  %22335 = vmatprep.mubr.msk.f32.mxu1 %vm26757_vm3, %v26758_v20  ;;  %v4099_v32 = vld [vmem:[%s29987_s6 + $0x8] sm:$0xff] }
 0x8ac   : > { %v5291_v17 = vpop.xlane.xlu1 %5290  ;;  %24929 = vmatprep.subr.bf16.mxu1 %v26756_v7  ;;  %v24927_v33 = vpack.c.bf16 %v4099_v32, %v4098_v30  ;;  %v5937_v30 = vld [vmem:[%s26851_s27 + $0x70] sm:$0xff]  ;;  %v5938_v32 = vld [vmem:[%s26851_s27 + $0x78] sm:$0xff] }
 0x8ad   : > { %v26432_v19 = vpop.eup %26431  ;;  %26433 = vrcp.f32 %v5291_v17  ;;  %v3972_v21 = vsel %vm1943_vm0, %v3970_v16, 0.0  ;;  %v5939_v16 = vld [vmem:[%s26851_s27 + $0x80] sm:$0xff]  ;;  %v5940_v17 = vld [vmem:[%s26851_s27 + $0x88] sm:$0xff] }
 0x8ae   : > { %3973 = vadd.xlane.f32.xlu0 %v3972_v21  ;;  %v5297_v22 = vmul.f32 %v26432_v19, %v26424_v62  ;;  %v24958_v19 = vpack.c.bf16 %v5934_v13, %v5933_v11  ;;  %v5968_v11 = vld [vmem:[%s30010_s9 + $0x68] sm:$0xff] }
 0x8b0   : > { %v3964_v23 = vpop.xlane.xlu1 %3963  ;;  %22331 = vmatmul.mubr.msk.f32.vlgmr.msra.gmra.mrb[48].mxu0 %vm5255_vm4, %v5297_v22  ;;  %5594 = vst.msk [vmem:[%s27706_s5 + $0x10] sm:$0xff] %vm5255_vm4, %v5297_v22  ;;  %v5935_v22 = vld [vmem:[%s26851_s27 + $0x60] sm:$0xff] }
 0x8b1   : > { %v3967_v24 = vmul.f32 0.015625, %v3964_v23  ;;  %22342 = vmatprep.mubr.msk.f32.mxu0 %vm26757_vm3, %v26758_v20  ;;  %24928 = vmatpush3.bf16.msra.mxu0 %v24927_v33  ;;  %v5936_v23 = vld [vmem:[%s26851_s27 + $0x68] sm:$0xff] }
 0x8b2   : > { %24932 = vmatprep.subr.bf16.mxu0 %v26756_v7 }
 0x8b3   : > { %v27728_v25 = vsub.f32 %v3958_v5, %v3967_v24 }
 0x8b5   : > { %v3971_v26 = vmul.f32 %v27728_v25, %v27728_v25 }
 0x8b7   : > { %v26434_v27 = vpop.eup %26433  ;;  %v3975_v28 = vsel %vm1943_vm0, %v3971_v26, 0.0 }
 0x8b8   : > { %3976 = vadd.xlane.f32.xlu1 %v3975_v28  ;;  %v5299_v29 = vmul.f32 %v26434_v27, %v26426_v2  ;;  %v24942_v2 = vpack.c.bf16 %v5926_v0, %v5925_v63  ;;  %v5941_v27 = vld [vmem:[%s26851_s27 + $0x90] sm:$0xff]  ;;  %v5942_v28 = vld [vmem:[%s26851_s27 + $0x98] sm:$0xff]  ;;  %v5964_v63 = vld [vmem:[%s30010_s9 + $0x48] sm:$0xff] }
 0x8b9   : > { %v24974_v34 = vpack.c.bf16 %v5942_v28, %v5941_v27  ;;  %v5977_v28 = vld [vmem:[%s30010_s9 + $0xb0] sm:$0xff] }
 0x8ba   : > { %22336 = vmatmul.mubr.msk.f32.vlgmr.msra.gmra.mrb[52].mxu1 %vm5255_vm4, %v5299_v29  ;;  %5595 = vst.msk [vmem:[%s27706_s5 + $0x18] sm:$0xff] %vm5255_vm4, %v5299_v29  ;;  %v24962_v29 = vpack.c.bf16 %v5936_v23, %v5935_v22  ;;  %v5975_v22 = vld [vmem:[%s30010_s9 + $0xa0] sm:$0xff]  ;;  %v5976_v23 = vld [vmem:[%s30010_s9 + $0xa8] sm:$0xff] }
 0x8bb   : > { %22349 = vmatprep.mubr.msk.f32.mxu1 %vm26757_vm3, %v26758_v20  ;;  %24931 = vmatpush3.bf16.msra.mxu1 %v24930_v36  ;;  %v5944_v36 = vld [vmem:[%s26851_s27 + $0xa8] sm:$0xff]  ;;  %v25042_v27 = vpack.c.bf16 %v5976_v23, %v5975_v22 }
 0x8bc   : > { %24935 = vmatprep.subr.bf16.mxu1 %v26756_v7  ;;  %v24978_v41 = vpack.c.bf16 %v5944_v36, %v5943_v35  ;;  %v5987_v36 = vld [vmem:[%s30011_s12] sm:$0xff] }
 0x93b   : > { %v3974_v38 = vpop.xlane.xlu0 %3973 }
 0x93c   : > { %v3978_v39 = vmul.f32 0.015625, %v3974_v38  ;;  %v24966_v38 = vpack.c.bf16 %v5938_v32, %v5937_v30  ;;  %v5981_v32 = vld [vmem:[%s30010_s9 + $0xd0] sm:$0xff] }
 0x93e   : > { %v3980_v40 = vadd.f32 1e-06, %v3978_v39  ;;  %v5947_v39 = vld [vmem:[%s26851_s27 + $0xc0] sm:$0xff] }
 0x940   : > { %26435 = vrsqrt.f32 %v3980_v40  ;;  %v5948_v40 = vld [vmem:[%s26851_s27 + $0xc8] sm:$0xff] }
 0x941   : > { %v24986_v45 = vpack.c.bf16 %v5948_v40, %v5947_v39  ;;  %v5983_v40 = vld [vmem:[%s30010_s9 + $0xe0] sm:$0xff] }
 0x945   : > { %v3977_v47 = vpop.xlane.xlu1 %3976 }
 0x946   : > { %v3979_v51 = vmul.f32 0.015625, %v3977_v47  ;;  %v5950_v47 = vld [vmem:[%s26851_s27 + $0xd8] sm:$0xff] }
 0x948   : > { %v3981_v54 = vadd.f32 1e-06, %v3979_v51 }
 0x94a   : > { %v26436_v52 = vpop.eup %26435  ;;  %26437 = vrsqrt.f32 %v3981_v54  ;;  %v5957_v54 = vld [vmem:[%s30010_s9 + $0x10] sm:$0xff] }
 0x94b   : > { %v3984_v57 = vmul.f32 %v26436_v52, %v3968_v15  ;;  %v24950_v15 = vpack.c.bf16 %v5930_v1, %v5929_v18  ;;  %v5951_v52 = vld [vmem:[%s26851_s27 + $0xe0] sm:$0xff]  ;;  %v25022_v18 = vpack.c.bf16 %v5966_v8, %v5965_v6  ;;  %v6001_v8 = vld [vmem:[%s30011_s12 + $0x70] sm:$0xff] }
 0x94c   : > { %v24994_v56 = vpack.c.bf16 %v5952_v31, %v5951_v52  ;;  %v5967_v1 = vld [vmem:[%s30010_s9 + $0x60] sm:$0xff] }
 0x94d   : > { %v3992_v62 = vmul.f32 %v19456_v42, %v3984_v57  ;;  %v5953_v57 = vld [vmem:[%s26851_s27 + $0xf0] sm:$0xff]  ;;  %v5995_v31 = vld [vmem:[%s30011_s12 + $0x40] sm:$0xff] }
 0x94f   : > { %v27762_v4 = vadd.f32 %v19457_v37, %v3992_v62  ;;  %v5963_v62 = vld [vmem:[%s30010_s9 + $0x40] sm:$0xff] }
 0x954   : > { %v26438_v10 = vpop.eup %26437 }
 0x955   : > { %v3985_v14 = vmul.f32 %v26438_v10, %v27728_v25  ;;  %v24970_v25 = vpack.c.bf16 %v5940_v17, %v5939_v16  ;;  %v5972_v10 = vld [vmem:[%s30010_s9 + $0x88] sm:$0xff]  ;;  %v25026_v16 = vpack.c.bf16 %v5968_v11, %v5967_v1  ;;  %v5969_v17 = vld [vmem:[%s30010_s9 + $0x70] sm:$0xff]  ;;  %v6011_v11 = vld [vmem:[%s30011_s12 + $0xc0] sm:$0xff] }
 0x957   : > { %v3993_v24 = vmul.f32 %v19456_v42, %v3985_v14  ;;  %v25006_v42 = vpack.c.bf16 %v5958_v55, %v5957_v54  ;;  %v5973_v14 = vld [vmem:[%s30010_s9 + $0x90] sm:$0xff] }
 0x958   : > { %v5993_v55 = vld [vmem:[%s30011_s12 + $0x30] sm:$0xff] }
 0x959   : > { %v27785_v33 = vadd.f32 %v19457_v37, %v3993_v24  ;;  %v5961_v37 = vld [vmem:[%s30010_s9 + $0x30] sm:$0xff] }
 0x973   : > { %v5369_v49 = vpop.f32.mrb[46].mxu0 }
 0x974   : > { %v22322_v50 = vpop.f32.mrb[47].mxu0  ;;  %22343 = vmatmul.mubr.msk.f32.vlgmr.msra.gmra.mrb[50].mxu0 %vm2850_vm1, %v5369_v49  ;;  %v5955_v49 = vld [vmem:[%s30010_s9] sm:$0xff] }
 0x975   : > { %24934 = vmatpush3.bf16.msra.mxu0 %v24933_v46  ;;  %22356 = vmatprep.mubr.msk.f32.mxu0 %vm26757_vm3, %v26758_v20  ;;  %v5949_v46 = vld [vmem:[%s26851_s27 + $0xd0] sm:$0xff]  ;;  %v5956_v50 = vld [vmem:[%s30010_s9 + $0x8] sm:$0xff] }
 0x976   : > { %24939 = vmatprep.subr.bf16.mxu0 %v24938_v48  ;;  %v24990_v51 = vpack.c.bf16 %v5950_v47, %v5949_v46  ;;  %v25002_v53 = vpack.c.bf16 %v5956_v50, %v5955_v49  ;;  %v5985_v47 = vld [vmem:[%s30010_s9 + $0xf0] sm:$0xff]  ;;  %v5991_v50 = vld [vmem:[%s30011_s12 + $0x20] sm:$0xff] }
 0x97d   : > { %v5442_v60 = vpop.f32.mrb[50].mxu1 }
 0x97e   : > { %v22327_v61 = vpop.f32.mrb[51].mxu1  ;;  %22350 = vmatmul.mubr.msk.f32.vlgmr.msra.gmra.mrb[54].mxu1 %vm2850_vm1, %v5442_v60  ;;  %v5960_v60 = vld [vmem:[%s30010_s9 + $0x28] sm:$0xff] }
 0x97f   : > { %24937 = vmatpush3.bf16.msra.mxu1 %v24936_v58  ;;  %22363 = vmatprep.mubr.msk.f32.mxu1 %vm26757_vm3, %v26758_v20  ;;  %v5954_v58 = vld [vmem:[%s26851_s27 + $0xf8] sm:$0xff] }
 0x980   : > { %24955 = vmatprep.subr.bf16.mxu1 %v24954_v59  ;;  %v24998_v61 = vpack.c.bf16 %v5954_v58, %v5953_v57  ;;  %v5997_v58 = vld [vmem:[%s30011_s12 + $0x50] sm:$0xff] }
 0x983   : > { %v5515_v5 = vpop.f32.mrb[48].mxu0 }
 0x984   : > { %v22332_v9 = vpop.f32.mrb[49].mxu0  ;;  %22357 = vmatmul.mubr.msk.f32.vlgmr.msra.gmra.mrb[52].mxu0 %vm2850_vm1, %v5515_v5  ;;  %v25018_v5 = vpack.c.bf16 %v5964_v63, %v5963_v62  ;;  %v5999_v63 = vld [vmem:[%s30011_s12 + $0x60] sm:$0xff] }
 0x985   : > { %24941 = vmatpush3.bf16.msra.mxu0 %v24938_v48  ;;  %22382 = vmatprep.mubr.msk.f32.mxu0 %vm1943_vm0, %v27762_v4  ;;  %v24982_v48 = vpack.c.bf16 %v5946_v44, %v5945_v43  ;;  %v5989_v44 = vld [vmem:[%s30011_s12 + $0x10] sm:$0xff] }
 0x986   : > { %24943 = vmatprep.subr.bf16.mxu0 %v24942_v2 }
 0x989   : > { %24945 = vmatpush3.bf16.msra.mxu0 %v24942_v2  ;;  %v5962_v2 = vld [vmem:[%s30010_s9 + $0x38] sm:$0xff] }
 0x98a   : > { %24947 = vmatprep.subr.bf16.mxu0 %v24946_v3  ;;  %v25014_v9 = vpack.c.bf16 %v5962_v2, %v5961_v37  ;;  %v6005_v2 = vld [vmem:[%s30011_s12 + $0x90] sm:$0xff] }
 0x98d   : > { %24949 = vmatpush3.bf16.msra.mxu0 %v24946_v3  ;;  %v5588_v21 = vpop.f32.mrb[52].mxu1  ;;  %v5971_v3 = vld [vmem:[%s30010_s9 + $0x80] sm:$0xff] }
 0x98e   : > { %v22337_v26 = vpop.f32.mrb[53].mxu1  ;;  %22364 = vmatmul.mubr.msk.f32.vlgmr.msra.gmra.mrb[56].mxu1 %vm2850_vm1, %v5588_v21  ;;  %24951 = vmatprep.subr.bf16.mxu0 %v24950_v15  ;;  %v25034_v13 = vpack.c.bf16 %v5972_v10, %v5971_v3  ;;  %v6007_v10 = vld [vmem:[%s30011_s12 + $0xa0] sm:$0xff] }
 0x98f   : > { %24957 = vmatpush3.bf16.msra.mxu1 %v24954_v59  ;;  %22401 = vmatprep.mubr.msk.f32.mxu1 %vm1943_vm0, %v27762_v4  ;;  %v5959_v59 = vld [vmem:[%s30010_s9 + $0x20] sm:$0xff] }
 0x990   : > { %24959 = vmatprep.subr.bf16.mxu1 %v24958_v19  ;;  %v25010_v0 = vpack.c.bf16 %v5960_v60, %v5959_v59  ;;  %v5979_v26 = vld [vmem:[%s30010_s9 + $0xc0] sm:$0xff] }
 0x991   : > { %24953 = vmatpush3.bf16.msra.mxu0 %v24950_v15  ;;  %v5974_v15 = vld [vmem:[%s30010_s9 + $0x98] sm:$0xff]  ;;  %v6003_v60 = vld [vmem:[%s30011_s12 + $0x80] sm:$0xff] }
 0x992   : > { %24971 = vmatprep.subr.bf16.mxu0 %v24970_v25  ;;  %v25038_v21 = vpack.c.bf16 %v5974_v15, %v5973_v14  ;;  %v6009_v15 = vld [vmem:[%s30011_s12 + $0xb0] sm:$0xff] }
 0x993   : > { %24961 = vmatpush3.bf16.msra.mxu1 %v24958_v19  ;;  %v5970_v19 = vld [vmem:[%s30010_s9 + $0x78] sm:$0xff] }
 0x994   : > { %22383 = vmatmul.mubr.msk.f32.vlgmr.msra.gmra.mrb[54].mxu0 %vm1943_vm0, %v27785_v33  ;;  %24963 = vmatprep.subr.bf16.mxu1 %v24962_v29  ;;  %v25030_v24 = vpack.c.bf16 %v5970_v19, %v5969_v17  ;;  %v6013_v19 = vld [vmem:[%s30011_s12 + $0xd0] sm:$0xff] }
 0x995   : > { %24973 = vmatpush3.bf16.msra.mxu0 %v24970_v25  ;;  %22420 = vmatprep.mubr.msk.f32.mxu0 %vm1943_vm0, %v27762_v4  ;;  %v5980_v25 = vld [vmem:[%s30010_s9 + $0xc8] sm:$0xff] }
 0x996   : > { %24975 = vmatprep.subr.bf16.mxu0 %v24974_v34  ;;  %v25050_v30 = vpack.c.bf16 %v5980_v25, %v5979_v26  ;;  %v6016_v26 = vld [vmem:[%s30011_s12 + $0xe8] sm:$0xff] }
 0x997   : > { %24965 = vmatpush3.bf16.msra.mxu1 %v24962_v29  ;;  %v5978_v29 = vld [vmem:[%s30010_s9 + $0xb8] sm:$0xff] }
 0x998   : > { %24967 = vmatprep.subr.bf16.mxu1 %v24966_v38  ;;  %v25046_v35 = vpack.c.bf16 %v5978_v29, %v5977_v28  ;;  %v6018_v28 = vld [vmem:[%s30011_s12 + $0xf8] sm:$0xff] }
 0x999   : > { %24977 = vmatpush3.bf16.msra.mxu0 %v24974_v34  ;;  %v5982_v34 = vld [vmem:[%s30010_s9 + $0xd8] sm:$0xff] }
 0x99a   : > { %24979 = vmatprep.subr.bf16.mxu0 %v24978_v41  ;;  %v25054_v39 = vpack.c.bf16 %v5982_v34, %v5981_v32 }
 0x99b   : > { %24969 = vmatpush3.bf16.msra.mxu1 %v24966_v38  ;;  %v5988_v38 = vld [vmem:[%s30011_s12 + $0x8] sm:$0xff] }
 0x99c   : > { %24987 = vmatprep.subr.bf16.mxu1 %v24986_v45  ;;  %v25066_v43 = vpack.c.bf16 %v5988_v38, %v5987_v36 }
 0x99d   : > { %24981 = vmatpush3.bf16.msra.mxu0 %v24978_v41  ;;  %v5984_v41 = vld [vmem:[%s30010_s9 + $0xe8] sm:$0xff] }
 0x99e   : > { %22402 = vmatmul.mubr.msk.f32.vlgmr.msra.gmra.mrb[58].mxu1 %vm1943_vm0, %v27785_v33  ;;  %24983 = vmatprep.subr.bf16.mxu0 %v24982_v48  ;;  %v25058_v46 = vpack.c.bf16 %v5984_v41, %v5983_v40 }
 0x99f   : > { %24989 = vmatpush3.bf16.msra.mxu1 %v24986_v45  ;;  %22439 = vmatprep.mubr.msk.f32.mxu1 %vm1943_vm0, %v27762_v4  ;;  %v5990_v45 = vld [vmem:[%s30011_s12 + $0x18] sm:$0xff] }
 0x9a0   : > { %24991 = vmatprep.subr.bf16.mxu1 %v24990_v51  ;;  %v25070_v49 = vpack.c.bf16 %v5990_v45, %v5989_v44 }
 0x9a1   : > { %24985 = vmatpush3.bf16.msra.mxu0 %v24982_v48  ;;  %v5986_v48 = vld [vmem:[%s30010_s9 + $0xf8] sm:$0xff] }
 0x9a2   : > { %25003 = vmatprep.subr.bf16.mxu0 %v25002_v53  ;;  %v25062_v52 = vpack.c.bf16 %v5986_v48, %v5985_v47 }
 0x9a3   : > { %24993 = vmatpush3.bf16.msra.mxu1 %v24990_v51  ;;  %v5992_v51 = vld [vmem:[%s30011_s12 + $0x28] sm:$0xff] }
 0x9a4   : > { %22421 = vmatmul.mubr.msk.f32.vlgmr.msra.gmra.mrb[56].mxu0 %vm1943_vm0, %v27785_v33  ;;  %24995 = vmatprep.subr.bf16.mxu1 %v24994_v56  ;;  %v25074_v54 = vpack.c.bf16 %v5992_v51, %v5991_v50 }
 0x9a5   : > { %25005 = vmatpush3.bf16.msra.mxu0 %v25002_v53  ;;  %22458 = vmatprep.mubr.msk.f32.mxu0 %vm1943_vm0, %v27762_v4  ;;  %v5996_v53 = vld [vmem:[%s30011_s12 + $0x48] sm:$0xff] }
 0x9a6   : > { %25007 = vmatprep.subr.bf16.mxu0 %v25006_v42  ;;  %v25082_v57 = vpack.c.bf16 %v5996_v53, %v5995_v31 }
 0x9a7   : > { %24997 = vmatpush3.bf16.msra.mxu1 %v24994_v56  ;;  %v5994_v56 = vld [vmem:[%s30011_s12 + $0x38] sm:$0xff] }
 0x9a8   : > { %24999 = vmatprep.subr.bf16.mxu1 %v24998_v61  ;;  %v25078_v59 = vpack.c.bf16 %v5994_v56, %v5993_v55 }
 0x9a9   : > { %25009 = vmatpush3.bf16.msra.mxu0 %v25006_v42  ;;  %v5998_v42 = vld [vmem:[%s30011_s12 + $0x58] sm:$0xff] }
 0x9aa   : > { %25011 = vmatprep.subr.bf16.mxu0 %v25010_v0  ;;  %v25086_v62 = vpack.c.bf16 %v5998_v42, %v5997_v58 }
 0x9ab   : > { %25001 = vmatpush3.bf16.msra.mxu1 %v24998_v61  ;;  %v6004_v61 = vld [vmem:[%s30011_s12 + $0x88] sm:$0xff] }
 0x9ac   : > { %25019 = vmatprep.subr.bf16.mxu1 %v25018_v5  ;;  %v25098_v37 = vpack.c.bf16 %v6004_v61, %v6003_v60 }
 0x9ad   : > { %25013 = vmatpush3.bf16.msra.mxu0 %v25010_v0  ;;  %v6000_v0 = vld [vmem:[%s30011_s12 + $0x68] sm:$0xff] }
 0x9ae   : > { %22440 = vmatmul.mubr.msk.f32.vlgmr.msra.gmra.mrb[60].mxu1 %vm1943_vm0, %v27785_v33  ;;  %25015 = vmatprep.subr.bf16.mxu0 %v25014_v9  ;;  %v25090_v6 = vpack.c.bf16 %v6000_v0, %v5999_v63 }
 0x9af   : > { %25021 = vmatpush3.bf16.msra.mxu1 %v25018_v5  ;;  %22477 = vmatprep.mubr.msk.f32.mxu1 %vm1943_vm0, %v27762_v4  ;;  %v6006_v5 = vld [vmem:[%s30011_s12 + $0x98] sm:$0xff] }
 0x9b0   : > { %25023 = vmatprep.subr.bf16.mxu1 %v25022_v18  ;;  %v25102_v3 = vpack.c.bf16 %v6006_v5, %v6005_v2 }
 0x9b1   : > { %25017 = vmatpush3.bf16.msra.mxu0 %v25014_v9  ;;  %v6002_v9 = vld [vmem:[%s30011_s12 + $0x78] sm:$0xff] }
 0x9b2   : > { %25035 = vmatprep.subr.bf16.mxu0 %v25034_v13  ;;  %v25094_v1 = vpack.c.bf16 %v6002_v9, %v6001_v8 }
 0x9b3   : > { %25025 = vmatpush3.bf16.msra.mxu1 %v25022_v18  ;;  %v6008_v18 = vld [vmem:[%s30011_s12 + $0xa8] sm:$0xff] }
 0x9b4   : > { %22459 = vmatmul.mubr.msk.f32.vlgmr.msra.gmra.mrb[58].mxu0 %vm1943_vm0, %v27785_v33  ;;  %25027 = vmatprep.subr.bf16.mxu1 %v25026_v16  ;;  %v25106_v14 = vpack.c.bf16 %v6008_v18, %v6007_v10 }
 0x9b5   : > { %25037 = vmatpush3.bf16.msra.mxu0 %v25034_v13  ;;  %22496 = vmatprep.mubr.msk.f32.mxu0 %vm1943_vm0, %v27762_v4  ;;  %v6012_v13 = vld [vmem:[%s30011_s12 + $0xc8] sm:$0xff] }
 0x9b6   : > { %25039 = vmatprep.subr.bf16.mxu0 %v25038_v21  ;;  %v25114_v17 = vpack.c.bf16 %v6012_v13, %v6011_v11 }
 0x9b7   : > { %25029 = vmatpush3.bf16.msra.mxu1 %v25026_v16  ;;  %v6010_v16 = vld [vmem:[%s30011_s12 + $0xb8] sm:$0xff] }
 0x9b8   : > { %25031 = vmatprep.subr.bf16.mxu1 %v25030_v24  ;;  %v25110_v22 = vpack.c.bf16 %v6010_v16, %v6009_v15 }
 0x9b9   : > { %25041 = vmatpush3.bf16.msra.mxu0 %v25038_v21  ;;  %v6014_v21 = vld [vmem:[%s30011_s12 + $0xd8] sm:$0xff] }
 0x9ba   : > { %25043 = vmatprep.subr.bf16.mxu0 %v25042_v27  ;;  %v25118_v23 = vpack.c.bf16 %v6014_v21, %v6013_v19 }
 0x9bb   : > { %25033 = vmatpush3.bf16.msra.mxu1 %v25030_v24  ;;  %v6015_v24 = vld [vmem:[%s30011_s12 + $0xe0] sm:$0xff] }
 0x9bc   : > { %25051 = vmatprep.subr.bf16.mxu1 %v25050_v30  ;;  %v25122_v25 = vpack.c.bf16 %v6016_v26, %v6015_v24 }
 0x9bd   : > { %25045 = vmatpush3.bf16.msra.mxu0 %v25042_v27  ;;  %v6017_v27 = vld [vmem:[%s30011_s12 + $0xf0] sm:$0xff] }
 0x9be   : > { %22478 = vmatmul.mubr.msk.f32.vlgmr.msra.gmra.mrb[62].mxu1 %vm1943_vm0, %v27785_v33  ;;  %25047 = vmatprep.subr.bf16.mxu0 %v25046_v35  ;;  %v25126_v29 = vpack.c.bf16 %v6018_v28, %v6017_v27 }
 0x9bf   : > { %25053 = vmatpush3.bf16.msra.mxu1 %v25050_v30  ;;  %22515 = vmatprep.mubr.msk.f32.mxu1 %vm1943_vm0, %v27762_v4 }
 0x9c0   : > { %25055 = vmatprep.subr.bf16.mxu1 %v25054_v39 }
 0x9c1   : > { %25049 = vmatpush3.bf16.msra.mxu0 %v25046_v35 }
 0x9c2   : > { %25067 = vmatprep.subr.bf16.mxu0 %v25066_v43 }
 0x9c3   : > { %25057 = vmatpush3.bf16.msra.mxu1 %v25054_v39 }
 0x9c4   : > { %22497 = vmatmul.mubr.msk.f32.vlgmr.msra.gmra.mrb[60].mxu0 %vm1943_vm0, %v27785_v33  ;;  %25059 = vmatprep.subr.bf16.mxu1 %v25058_v46 }
 0x9c5   : > { %25069 = vmatpush3.bf16.msra.mxu0 %v25066_v43  ;;  %22534 = vmatprep.mubr.msk.f32.mxu0 %vm1943_vm0, %v27762_v4 }
 0x9c6   : > { %25071 = vmatprep.subr.bf16.mxu0 %v25070_v49 }
 0x9c7   : > { %25061 = vmatpush3.bf16.msra.mxu1 %v25058_v46 }
 0x9c8   : > { %25063 = vmatprep.subr.bf16.mxu1 %v25062_v52 }
 0x9c9   : > { %25073 = vmatpush3.bf16.msra.mxu0 %v25070_v49  ;;  %v26615_v49 = vld [vmem:[%s27466_s15] sm:$0xff]  ;;  %s30012_s15 = sld [smem:[#allocation22_spill]] }
 0x9ca   : > { %25075 = vmatprep.subr.bf16.mxu0 %v25074_v54 }
 0x9cb   : > { %25065 = vmatpush3.bf16.msra.mxu1 %v25062_v52 }
 0x9cc   : > { %25083 = vmatprep.subr.bf16.mxu1 %v25082_v57 }
 0x9cd   : > { %25077 = vmatpush3.bf16.msra.mxu0 %v25074_v54 }
 0x9ce   : > { %22516 = vmatmul.mubr.msk.f32.vlgmr.msra.gmra.mrb[64].mxu1 %vm1943_vm0, %v27785_v33  ;;  %25079 = vmatprep.subr.bf16.mxu0 %v25078_v59 }
 0x9cf   : > { %25085 = vmatpush3.bf16.msra.mxu1 %v25082_v57  ;;  %22553 = vmatprep.mubr.msk.f32.mxu1 %vm1943_vm0, %v27762_v4  ;;  %v6028_v27 = vld [vmem:[%s30012_s15 + $0x8] sm:$0xff]  ;;  %v6035_v28 = vld [vmem:[%s30012_s15 + $0x40] sm:$0xff] }
 0x9d0   : > { %25087 = vmatprep.subr.bf16.mxu1 %v25086_v62 }
 0x9d1   : > { %25081 = vmatpush3.bf16.msra.mxu0 %v25078_v59 }
 0x9d2   : > { %25099 = vmatprep.subr.bf16.mxu0 %v25098_v37 }
 0x9d3   : > { %25089 = vmatpush3.bf16.msra.mxu1 %v25086_v62 }
 0x9d4   : > { %22535 = vmatmul.mubr.msk.f32.vlgmr.msra.gmra.mrb[62].mxu0 %vm1943_vm0, %v27785_v33  ;;  %25091 = vmatprep.subr.bf16.mxu1 %v25090_v6 }
 0x9d5   : > { %25101 = vmatpush3.bf16.msra.mxu0 %v25098_v37  ;;  %22572 = vmatprep.mubr.msk.f32.mxu0 %vm1943_vm0, %v27762_v4 }
 0x9d6   : > { %25103 = vmatprep.subr.bf16.mxu0 %v25102_v3 }
 0x9d7   : > { %25093 = vmatpush3.bf16.msra.mxu1 %v25090_v6 }
 0x9d8   : > { %25095 = vmatprep.subr.bf16.mxu1 %v25094_v1 }
 0x9d9   : > { %25105 = vmatpush3.bf16.msra.mxu0 %v25102_v3 }
 0x9da   : > { %25107 = vmatprep.subr.bf16.mxu0 %v25106_v14 }
 0x9db   : > { %25097 = vmatpush3.bf16.msra.mxu1 %v25094_v1 }
 0x9dc   : > { %25115 = vmatprep.subr.bf16.mxu1 %v25114_v17 }
 0x9dd   : > { %25109 = vmatpush3.bf16.msra.mxu0 %v25106_v14 }
 0x9de   : > { %22554 = vmatmul.mubr.msk.f32.vlgmr.msra.gmra.mrb[66].mxu1 %vm1943_vm0, %v27785_v33  ;;  %25111 = vmatprep.subr.bf16.mxu0 %v25110_v22 }
 0x9df   : > { %25117 = vmatpush3.bf16.msra.mxu1 %v25114_v17  ;;  %22591 = vmatprep.mubr.msk.f32.mxu1 %vm1943_vm0, %v27762_v4 }
 0x9e0   : > { %25119 = vmatprep.subr.bf16.mxu1 %v25118_v23 }
 0x9e1   : > { %25113 = vmatpush3.bf16.msra.mxu0 %v25110_v22 }
 0x9e2   : > { %25130 = vmatprep.subr.bf16.mxu0 %v26756_v7 }
 0x9e3   : > { %25121 = vmatpush3.bf16.msra.mxu1 %v25118_v23 }
 0x9e4   : > { %22573 = vmatmul.mubr.msk.f32.vlgmr.msra.gmra.mrb[64].mxu0 %vm1943_vm0, %v27785_v33  ;;  %25123 = vmatprep.subr.bf16.mxu1 %v25122_v25 }
 0x9e5   : > { %22610 = vmatprep.mubr.msk.f32.mxu0 %vm26757_vm3, %v26758_v20 }
 0x9e7   : > { %25125 = vmatpush3.bf16.msra.mxu1 %v25122_v25  ;;  %v6027_v25 = vld [vmem:[%s30012_s15] sm:$0xff] }
 0x9e8   : > { %25127 = vmatprep.subr.bf16.mxu1 %v25126_v29 }
 0x9eb   : > { %25129 = vmatpush3.bf16.msra.mxu1 %v25126_v29  ;;  %v25131_v29 = vpack.c.bf16 %v6028_v27, %v6027_v25 }
 0x9ec   : > { %25142 = vmatprep.subr.bf16.mxu1 %v26756_v7 }
 0x9ed   : > { %25132 = vmatpush3.bf16.msra.mxu0 %v25131_v29  ;;  %v6043_v29 = vld [vmem:[%s30012_s15 + $0x80] sm:$0xff] }
 0x9ee   : > { %22592 = vmatmul.mubr.msk.f32.vlgmr.msra.gmra.mrb[68].mxu1 %vm1943_vm0, %v27785_v33  ;;  %25133 = vmatprep.subr.bf16.mxu0 %v26756_v7 }
 0x9ef   : > { %22629 = vmatprep.mubr.msk.f32.mxu1 %vm26757_vm3, %v26758_v20 }
 0xa47   : > { %v5665_v30 = vpop.f32.mrb[50].mxu0 }
 0xa48   : > { %v22344_v32 = vpop.f32.mrb[51].mxu0  ;;  %v5888_v35 = vsel %vm1943_vm0, %v5665_v30, 0.0  ;;  %v6036_v30 = vld [vmem:[%s30012_s15 + $0x48] sm:$0xff] }
 0xa49   : > { %v25143_v32 = vpack.c.bf16 %v6036_v30, %v6035_v28  ;;  %v19486_v28 = vld [vmem:[%s30013_s13] ss:$0 sm:$0xff] }
 0xa4b   : > { %25144 = vmatpush3.bf16.msra.mxu1 %v25143_v32  ;;  %v6044_v32 = vld [vmem:[%s30012_s15 + $0x88] sm:$0xff] }
 0xa4c   : > { %25145 = vmatprep.subr.bf16.mxu1 %v26756_v7 }
 0xa51   : > { %v5738_v34 = vpop.f32.mrb[54].mxu1 }
 0xa52   : > { %v5889_v36 = vsel %vm1943_vm0, %v5738_v34, 0.0  ;;  %v22351_v38 = vpop.f32.mrb[55].mxu1  ;;  %v6029_v34 = vld [vmem:[%s30012_s15 + $0x10] sm:$0xff] }
 0xa53   : > { %v5890_v39 = vadd.f32 %v5889_v36, %v5888_v35  ;;  %v6030_v35 = vld [vmem:[%s30012_s15 + $0x18] sm:$0xff]  ;;  %v6037_v36 = vld [vmem:[%s30012_s15 + $0x50] sm:$0xff] }
 0xa54   : > { %v25134_v38 = vpack.c.bf16 %v6030_v35, %v6029_v34  ;;  %v6051_v34 = vld [vmem:[%s30012_s15 + $0xc0] sm:$0xff]  ;;  %v6052_v35 = vld [vmem:[%s30012_s15 + $0xc8] sm:$0xff] }
 0xa56   : > { %25135 = vmatpush3.bf16.msra.mxu0 %v25134_v38 }
 0xa57   : > { %v5811_v40 = vpop.f32.mrb[52].mxu0  ;;  %25136 = vmatprep.subr.bf16.mxu0 %v26756_v7 }
 0xa58   : > { %v5891_v41 = vsel %vm1943_vm0, %v5811_v40, 0.0  ;;  %v22358_v43 = vpop.f32.mrb[53].mxu0 }
 0xa59   : > { %v5892_v44 = vadd.f32 %v5891_v41, %v5890_v39  ;;  %v6038_v39 = vld [vmem:[%s30012_s15 + $0x58] sm:$0xff]  ;;  %v6031_v41 = vld [vmem:[%s30012_s15 + $0x20] sm:$0xff]  ;;  %v6032_v43 = vld [vmem:[%s30012_s15 + $0x28] sm:$0xff] }
 0xa5a   : > { %v25146_v40 = vpack.c.bf16 %v6038_v39, %v6037_v36  ;;  %v19487_v36 = vld [vmem:[%s30014_s17] ss:$0 sm:$0xff]  ;;  %v25155_v39 = vpack.c.bf16 %v6044_v32, %v6043_v29  ;;  %v6060_v32 = vld [vmem:[%s30015_s20 + $0x8] sm:$0xff] }
 0xa5c   : > { %25147 = vmatpush3.bf16.msra.mxu1 %v25146_v40  ;;  %v25167_v40 = vpack.c.bf16 %v6052_v35, %v6051_v34  ;;  %v6067_v34 = vld [vmem:[%s30015_s20 + $0x40] sm:$0xff]  ;;  %v6068_v35 = vld [vmem:[%s30015_s20 + $0x48] sm:$0xff] }
 0xa5d   : > { %25148 = vmatprep.subr.bf16.mxu1 %v26756_v7 }
 0xa61   : > { %v5884_v45 = vpop.f32.mrb[56].mxu1 }
 0xa62   : > { %v5893_v46 = vsel %vm1943_vm0, %v5884_v45, 0.0  ;;  %v22365_v47 = vpop.f32.mrb[57].mxu1  ;;  %v25137_v45 = vpack.c.bf16 %v6032_v43, %v6031_v41  ;;  %v6045_v41 = vld [vmem:[%s30012_s15 + $0x90] sm:$0xff] }
 0xa63   : > { %v5894_v48 = vadd.f32 %v5893_v46, %v5892_v44  ;;  %v6039_v44 = vld [vmem:[%s30012_s15 + $0x60] sm:$0xff]  ;;  %v6040_v46 = vld [vmem:[%s30012_s15 + $0x68] sm:$0xff] }
 0xa64   : > { %v25149_v47 = vpack.c.bf16 %v6040_v46, %v6039_v44  ;;  %25138 = vmatpush3.bf16.msra.mxu0 %v25137_v45  ;;  %v6046_v44 = vld [vmem:[%s30012_s15 + $0x98] sm:$0xff]  ;;  %v6053_v45 = vld [vmem:[%s30012_s15 + $0xd0] sm:$0xff] }
 0xa65   : > { %v5895_v50 = vadd.f32 %v26615_v49, %v5894_v48  ;;  %25139 = vmatprep.subr.bf16.mxu0 %v26756_v7  ;;  %v6033_v48 = vld [vmem:[%s30012_s15 + $0x30] sm:$0xff]  ;;  %v6034_v49 = vld [vmem:[%s30012_s15 + $0x38] sm:$0xff] }
 0xa66   : > { %25150 = vmatpush3.bf16.msra.mxu1 %v25149_v47  ;;  %v6054_v46 = vld [vmem:[%s30012_s15 + $0xd8] sm:$0xff] }
 0xa67   : > { %v27918_v51 = vpop.f32.mrb[54].mxu0  ;;  %v5896_v52 = vsel %vm1943_vm0, %v5895_v50, 0.0  ;;  %25151 = vmatprep.subr.bf16.mxu1 %v26756_v7  ;;  %v25170_v47 = vpack.c.bf16 %v6054_v46, %v6053_v45 }
 0xa68   : > { %v27921_v31 = vpop.f32.mrb[55].mxu0  ;;  %5897 = vadd.xlane.f32.xlu0 %v5896_v52  ;;  %v25140_v52 = vpack.c.bf16 %v6034_v49, %v6033_v48  ;;  %v6047_v48 = vld [vmem:[%s30012_s15 + $0xa0] sm:$0xff]  ;;  %v6048_v49 = vld [vmem:[%s30012_s15 + $0xa8] sm:$0xff] }
 0xa6a   : > { %25141 = vmatpush3.bf16.msra.mxu0 %v25140_v52  ;;  %v6056_v52 = vld [vmem:[%s30012_s15 + $0xe8] sm:$0xff] }
 0xa6b   : > { %25154 = vmatprep.subr.bf16.mxu0 %v26756_v7 }
 0xa71   : > { %v27923_v53 = vpop.f32.mrb[58].mxu1 }
 0xa72   : > { %v27925_v54 = vpop.f32.mrb[59].mxu1 }
 0xa77   : > { %v27927_v55 = vpop.f32.mrb[56].mxu0 }
 0xa78   : > { %v27929_v56 = vpop.f32.mrb[57].mxu0 }
 0xa81   : > { %v27931_v57 = vpop.f32.mrb[60].mxu1 }
 0xa82   : > { %v27933_v58 = vpop.f32.mrb[61].mxu1 }
 0xa87   : > { %v27935_v42 = vpop.f32.mrb[58].mxu0 }
 0xa88   : > { %v27937_v59 = vpop.f32.mrb[59].mxu0 }
 0xa89   : > { %v25275_v60 = vpack.c.bf16 %v27935_v42, %v27937_v59 }
 0xa91   : > { %v27941_v61 = vpop.f32.mrb[62].mxu1 }
 0xa92   : > { %v27943_v62 = vpop.f32.mrb[63].mxu1 }
 0xa93   : > { %v25279_v63 = vpack.c.bf16 %v27941_v61, %v27943_v62 }
 0xa97   : > { %v27947_v0 = vpop.f32.mrb[60].mxu0 }
 0xa98   : > { %v27949_v37 = vpop.f32.mrb[61].mxu0 }
 0xa99   : > { %v25283_v2 = vpack.c.bf16 %v27947_v0, %v27949_v37 }
 0xaa1   : > { %v27953_v5 = vpop.f32.mrb[64].mxu1 }
 0xaa2   : > { %v27955_v6 = vpop.f32.mrb[65].mxu1 }
 0xaa3   : > { %v25287_v8 = vpack.c.bf16 %v27953_v5, %v27955_v6 }
 0xaa7   : > { %v27959_v9 = vpop.f32.mrb[62].mxu0 }
 0xaa8   : > { %v27961_v3 = vpop.f32.mrb[63].mxu0 }
 0xaa9   : > { %v25291_v10 = vpack.c.bf16 %v27959_v9, %v27961_v3 }
 0xab1   : > { %v27965_v18 = vpop.f32.mrb[66].mxu1 }
 0xab2   : > { %v27967_v1 = vpop.f32.mrb[67].mxu1 }
 0xab3   : > { %v25294_v11 = vpack.c.bf16 %v27965_v18, %v27967_v1 }
 0xab7   : > { %v27971_v13 = vpop.f32.mrb[64].mxu0 }
 0xab8   : > { %v27973_v14 = vpop.f32.mrb[65].mxu0 }
 0xab9   : > { %v25297_v15 = vpack.c.bf16 %v27971_v13, %v27973_v14 }
 0xac1   : > { %v27977_v16 = vpop.f32.mrb[68].mxu1 }
 0xac2   : > { %v27979_v17 = vpop.f32.mrb[69].mxu1 }
 0xac3   : > { %v25300_v19 = vpack.c.bf16 %v27977_v16, %v27979_v17 }
 0xaf5   : > { %v5898_v21 = vpop.xlane.xlu0 %5897 }
 0xaf6   : > { %v5899_v22 = vmul.f32 0.015625, %v5898_v21  ;;  %v6042_v21 = vld [vmem:[%s30012_s15 + $0x78] sm:$0xff] }
 0xaf8   : > { %v5900_v23 = vsub.f32 %v5895_v50, %v5899_v22  ;;  %v6041_v50 = vld [vmem:[%s30012_s15 + $0x70] sm:$0xff] }
 0xaf9   : > { %v25152_v22 = vpack.c.bf16 %v6042_v21, %v6041_v50  ;;  %v6055_v50 = vld [vmem:[%s30012_s15 + $0xe0] sm:$0xff]  ;;  %v25161_v21 = vpack.c.bf16 %v6048_v49, %v6047_v48  ;;  %v6072_v49 = vld [vmem:[%s30015_s20 + $0x68] sm:$0xff] }
 0xafa   : > { %v5901_v24 = vmul.f32 %v5900_v23, %v5900_v23  ;;  %v6071_v48 = vld [vmem:[%s30015_s20 + $0x60] sm:$0xff] }
 0xafb   : > { %25153 = vmatpush3.bf16.msra.mxu1 %v25152_v22  ;;  %v25173_v22 = vpack.c.bf16 %v6056_v52, %v6055_v50  ;;  %v25197_v52 = vpack.c.bf16 %v6072_v49, %v6071_v48 }
 0xafc   : > { %v5902_v26 = vsel %vm1943_vm0, %v5901_v24, 0.0  ;;  %25166 = vmatprep.subr.bf16.mxu1 %v26756_v7 }
 0xafd   : > { %5903 = vadd.xlane.f32.xlu1 %v5902_v26 }
 0xb8a   : > { %v5904_v24 = vpop.xlane.xlu1 %5903 }
 0xb8b   : > { %v5905_v26 = vmul.f32 0.015625, %v5904_v24  ;;  %v6049_v24 = vld [vmem:[%s30012_s15 + $0xb0] sm:$0xff] }
 0xb8d   : > { %v5906_v25 = vadd.f32 1e-06, %v5905_v26  ;;  %v6050_v26 = vld [vmem:[%s30012_s15 + $0xb8] sm:$0xff] }
 0xb8f   : > { %26439 = vrsqrt.f32 %v5906_v25  ;;  %v6057_v25 = vld [vmem:[%s30012_s15 + $0xf0] sm:$0xff] }
 0xb99   : > { %v26440_v27 = vpop.eup %26439 }
 0xb9a   : > { %v5908_v30 = vmul.f32 %v26440_v27, %v5900_v23  ;;  %v25158_v23 = vpack.c.bf16 %v6046_v44, %v6045_v41  ;;  %v6058_v27 = vld [vmem:[%s30012_s15 + $0xf8] sm:$0xff]  ;;  %v6069_v41 = vld [vmem:[%s30015_s20 + $0x50] sm:$0xff] }
 0xb9b   : > { %v25176_v29 = vpack.c.bf16 %v6058_v27, %v6057_v25  ;;  %v6070_v44 = vld [vmem:[%s30015_s20 + $0x58] sm:$0xff] }
 0xb9c   : > { %v5915_v38 = vmul.f32 %v19486_v28, %v5908_v30  ;;  %v25164_v28 = vpack.c.bf16 %v6050_v26, %v6049_v24  ;;  %v6059_v30 = vld [vmem:[%s30015_s20] sm:$0xff]  ;;  %v25194_v46 = vpack.c.bf16 %v6070_v44, %v6069_v41  ;;  %v6073_v24 = vld [vmem:[%s30015_s20 + $0x70] sm:$0xff]  ;;  %v6074_v26 = vld [vmem:[%s30015_s20 + $0x78] sm:$0xff] }
 0xb9d   : > { %v25200_v27 = vpack.c.bf16 %v6074_v26, %v6073_v24 }
 0xb9e   : > { %v28015_v43 = vadd.f32 %v19487_v36, %v5915_v38  ;;  %v25179_v36 = vpack.c.bf16 %v6060_v32, %v6059_v30  ;;  %v25191_v38 = vpack.c.bf16 %v6068_v35, %v6067_v34  ;;  %v6083_v30 = vld [vmem:[%s30015_s20 + $0xc0] sm:$0xff]  ;;  %v6084_v32 = vld [vmem:[%s30015_s20 + $0xc8] sm:$0xff] }
 0xb9f   : > { %v25215_v35 = vpack.c.bf16 %v6084_v32, %v6083_v30 }
 0xba0   : > { %22611 = vmatmul.mubr.msk.f32.vlgmr.msra.gmra.mrb[66].mxu0 %vm1943_vm0, %v28015_v43  ;;  %22630 = vmatmul.mubr.msk.f32.vlgmr.msra.gmra.mrb[70].mxu1 %vm1943_vm0, %v28015_v43 }
 0xba1   : > { %25156 = vmatpush3.bf16.msra.mxu0 %v25155_v39  ;;  %25168 = vmatpush3.bf16.msra.mxu1 %v25167_v40  ;;  %v6061_v39 = vld [vmem:[%s30015_s20 + $0x10] sm:$0xff]  ;;  %v6062_v40 = vld [vmem:[%s30015_s20 + $0x18] sm:$0xff] }
 0xba2   : > { %25157 = vmatprep.subr.bf16.mxu0 %v26756_v7  ;;  %25169 = vmatprep.subr.bf16.mxu1 %v26756_v7  ;;  %v25182_v45 = vpack.c.bf16 %v6062_v40, %v6061_v39  ;;  %v6085_v39 = vld [vmem:[%s30015_s20 + $0xd0] sm:$0xff]  ;;  %v6086_v40 = vld [vmem:[%s30015_s20 + $0xd8] sm:$0xff] }
 0xba3   : > { %22648 = vmatprep.mubr.msk.f32.mxu0 %vm26757_vm3, %v26758_v20  ;;  %22667 = vmatprep.mubr.msk.f32.mxu1 %vm26757_vm3, %v26758_v20  ;;  %v25218_v44 = vpack.c.bf16 %v6086_v40, %v6085_v39 }
 0xba5   : > { %25159 = vmatpush3.bf16.msra.mxu0 %v25158_v23  ;;  %25171 = vmatpush3.bf16.msra.mxu1 %v25170_v47  ;;  %v6063_v23 = vld [vmem:[%s30015_s20 + $0x20] sm:$0xff]  ;;  %v6064_v47 = vld [vmem:[%s30015_s20 + $0x28] sm:$0xff] }
 0xba6   : > { %25160 = vmatprep.subr.bf16.mxu0 %v26756_v7  ;;  %25172 = vmatprep.subr.bf16.mxu1 %v26756_v7  ;;  %v25185_v50 = vpack.c.bf16 %v6064_v47, %v6063_v23  ;;  %v6087_v23 = vld [vmem:[%s30015_s20 + $0xe0] sm:$0xff]  ;;  %v6088_v47 = vld [vmem:[%s30015_s20 + $0xe8] sm:$0xff] }
 0xba7   : > { %v25221_v49 = vpack.c.bf16 %v6088_v47, %v6087_v23 }
 0xba9   : > { %25162 = vmatpush3.bf16.msra.mxu0 %v25161_v21  ;;  %25174 = vmatpush3.bf16.msra.mxu1 %v25173_v22  ;;  %v6065_v21 = vld [vmem:[%s30015_s20 + $0x30] sm:$0xff]  ;;  %v6066_v22 = vld [vmem:[%s30015_s20 + $0x38] sm:$0xff] }
 0xbaa   : > { %25163 = vmatprep.subr.bf16.mxu0 %v26756_v7  ;;  %25175 = vmatprep.subr.bf16.mxu1 %v26756_v7  ;;  %v25188_v25 = vpack.c.bf16 %v6066_v22, %v6065_v21  ;;  %v6089_v21 = vld [vmem:[%s30015_s20 + $0xf0] sm:$0xff]  ;;  %v6090_v22 = vld [vmem:[%s30015_s20 + $0xf8] sm:$0xff] }
 0xbab   : > { %v25224_v26 = vpack.c.bf16 %v6090_v22, %v6089_v21 }
 0xbad   : > { %25165 = vmatpush3.bf16.msra.mxu0 %v25164_v28  ;;  %25177 = vmatpush3.bf16.msra.mxu1 %v25176_v29  ;;  %v6075_v28 = vld [vmem:[%s30015_s20 + $0x80] sm:$0xff]  ;;  %v6076_v29 = vld [vmem:[%s30015_s20 + $0x88] sm:$0xff] }
 0xbae   : > { %25178 = vmatprep.subr.bf16.mxu0 %v26756_v7  ;;  %25190 = vmatprep.subr.bf16.mxu1 %v26756_v7  ;;  %v25203_v34 = vpack.c.bf16 %v6076_v29, %v6075_v28  ;;  %v6099_v28 = vld [vmem:[%s30016_s18 + $0x40] sm:$0xff]  ;;  %v6100_v29 = vld [vmem:[%s30016_s18 + $0x48] sm:$0xff] }
 0xbaf   : > { %v25239_v32 = vpack.c.bf16 %v6100_v29, %v6099_v28 }
 0xbb0   : > { %22649 = vmatmul.mubr.msk.f32.vlgmr.msra.gmra.mrb[68].mxu0 %vm1943_vm0, %v28015_v43  ;;  %22668 = vmatmul.mubr.msk.f32.vlgmr.msra.gmra.mrb[72].mxu1 %vm1943_vm0, %v28015_v43 }
 0xbb1   : > { %25180 = vmatpush3.bf16.msra.mxu0 %v25179_v36  ;;  %25192 = vmatpush3.bf16.msra.mxu1 %v25191_v38  ;;  %v6077_v36 = vld [vmem:[%s30015_s20 + $0x90] sm:$0xff]  ;;  %v6078_v38 = vld [vmem:[%s30015_s20 + $0x98] sm:$0xff] }
 0xbb2   : > { %25181 = vmatprep.subr.bf16.mxu0 %v26756_v7  ;;  %25193 = vmatprep.subr.bf16.mxu1 %v26756_v7  ;;  %v25206_v41 = vpack.c.bf16 %v6078_v38, %v6077_v36  ;;  %v6101_v36 = vld [vmem:[%s30016_s18 + $0x50] sm:$0xff]  ;;  %v6102_v38 = vld [vmem:[%s30016_s18 + $0x58] sm:$0xff] }
 0xbb3   : > { %22686 = vmatprep.mubr.msk.f32.mxu0 %vm26757_vm3, %v26758_v20  ;;  %22705 = vmatprep.mubr.msk.f32.mxu1 %vm26757_vm3, %v26758_v20  ;;  %v25242_v40 = vpack.c.bf16 %v6102_v38, %v6101_v36 }
 0xbb5   : > { %25183 = vmatpush3.bf16.msra.mxu0 %v25182_v45  ;;  %25195 = vmatpush3.bf16.msra.mxu1 %v25194_v46  ;;  %v6079_v45 = vld [vmem:[%s30015_s20 + $0xa0] sm:$0xff]  ;;  %v6080_v46 = vld [vmem:[%s30015_s20 + $0xa8] sm:$0xff] }
 0xbb6   : > { %25184 = vmatprep.subr.bf16.mxu0 %v26756_v7  ;;  %25196 = vmatprep.subr.bf16.mxu1 %v26756_v7  ;;  %v25209_v48 = vpack.c.bf16 %v6080_v46, %v6079_v45  ;;  %v6103_v45 = vld [vmem:[%s30016_s18 + $0x60] sm:$0xff]  ;;  %v6104_v46 = vld [vmem:[%s30016_s18 + $0x68] sm:$0xff] }
 0xbb7   : > { %v25245_v47 = vpack.c.bf16 %v6104_v46, %v6103_v45 }
 0xbb9   : > { %25186 = vmatpush3.bf16.msra.mxu0 %v25185_v50  ;;  %25198 = vmatpush3.bf16.msra.mxu1 %v25197_v52  ;;  %v6081_v50 = vld [vmem:[%s30015_s20 + $0xb0] sm:$0xff]  ;;  %v6082_v52 = vld [vmem:[%s30015_s20 + $0xb8] sm:$0xff] }
 0xbba   : > { %25187 = vmatprep.subr.bf16.mxu0 %v26756_v7  ;;  %25199 = vmatprep.subr.bf16.mxu1 %v26756_v7  ;;  %v25212_v24 = vpack.c.bf16 %v6082_v52, %v6081_v50  ;;  %v6105_v50 = vld [vmem:[%s30016_s18 + $0x70] sm:$0xff]  ;;  %v6106_v52 = vld [vmem:[%s30016_s18 + $0x78] sm:$0xff] }
 0xbbb   : > { %v25248_v22 = vpack.c.bf16 %v6106_v52, %v6105_v50 }
 0xbbd   : > { %25189 = vmatpush3.bf16.msra.mxu0 %v25188_v25  ;;  %25201 = vmatpush3.bf16.msra.mxu1 %v25200_v27  ;;  %v6091_v25 = vld [vmem:[%s30016_s18] sm:$0xff]  ;;  %v6092_v27 = vld [vmem:[%s30016_s18 + $0x8] sm:$0xff] }
 0xbbe   : > { %25202 = vmatprep.subr.bf16.mxu0 %v26756_v7  ;;  %25214 = vmatprep.subr.bf16.mxu1 %v26756_v7  ;;  %v25227_v30 = vpack.c.bf16 %v6092_v27, %v6091_v25  ;;  %v6115_v25 = vld [vmem:[%s30016_s18 + $0xc0] sm:$0xff]  ;;  %v6116_v27 = vld [vmem:[%s30016_s18 + $0xc8] sm:$0xff] }
 0xbbf   : > { %v25263_v29 = vpack.c.bf16 %v6116_v27, %v6115_v25 }
 0xbc0   : > { %22687 = vmatmul.mubr.msk.f32.vlgmr.msra.gmra.mrb[70].mxu0 %vm1943_vm0, %v28015_v43  ;;  %22706 = vmatmul.mubr.msk.f32.vlgmr.msra.gmra.mrb[74].mxu1 %vm1943_vm0, %v28015_v43 }
 0xbc1   : > { %25204 = vmatpush3.bf16.msra.mxu0 %v25203_v34  ;;  %25216 = vmatpush3.bf16.msra.mxu1 %v25215_v35  ;;  %v6093_v34 = vld [vmem:[%s30016_s18 + $0x10] sm:$0xff]  ;;  %v6094_v35 = vld [vmem:[%s30016_s18 + $0x18] sm:$0xff] }
 0xbc2   : > { %25205 = vmatprep.subr.bf16.mxu0 %v26756_v7  ;;  %25217 = vmatprep.subr.bf16.mxu1 %v26756_v7  ;;  %v25230_v39 = vpack.c.bf16 %v6094_v35, %v6093_v34  ;;  %v6117_v34 = vld [vmem:[%s30016_s18 + $0xd0] sm:$0xff]  ;;  %v6118_v35 = vld [vmem:[%s30016_s18 + $0xd8] sm:$0xff] }
 0xbc3   : > { %22724 = vmatprep.mubr.msk.f32.mxu0 %vm26757_vm3, %v26758_v20  ;;  %22743 = vmatprep.mubr.msk.f32.mxu1 %vm26757_vm3, %v26758_v20  ;;  %v25266_v38 = vpack.c.bf16 %v6118_v35, %v6117_v34 }
 0xbc5   : > { %25207 = vmatpush3.bf16.msra.mxu0 %v25206_v41  ;;  %25219 = vmatpush3.bf16.msra.mxu1 %v25218_v44  ;;  %v6095_v41 = vld [vmem:[%s30016_s18 + $0x20] sm:$0xff]  ;;  %v6096_v44 = vld [vmem:[%s30016_s18 + $0x28] sm:$0xff] }
 0xbc6   : > { %25208 = vmatprep.subr.bf16.mxu0 %v26756_v7  ;;  %25220 = vmatprep.subr.bf16.mxu1 %v26756_v7  ;;  %v25233_v23 = vpack.c.bf16 %v6096_v44, %v6095_v41  ;;  %v6119_v41 = vld [vmem:[%s30016_s18 + $0xe0] sm:$0xff]  ;;  %v6120_v44 = vld [vmem:[%s30016_s18 + $0xe8] sm:$0xff] }
 0xbc7   : > { %v25269_v46 = vpack.c.bf16 %v6120_v44, %v6119_v41 }
 0xbc9   : > { %25210 = vmatpush3.bf16.msra.mxu0 %v25209_v48  ;;  %25222 = vmatpush3.bf16.msra.mxu1 %v25221_v49  ;;  %v6097_v48 = vld [vmem:[%s30016_s18 + $0x30] sm:$0xff]  ;;  %v6098_v49 = vld [vmem:[%s30016_s18 + $0x38] sm:$0xff] }
 0xbca   : > { %25211 = vmatprep.subr.bf16.mxu0 %v26756_v7  ;;  %25223 = vmatprep.subr.bf16.mxu1 %v26756_v7  ;;  %v25236_v21 = vpack.c.bf16 %v6098_v49, %v6097_v48  ;;  %v6121_v48 = vld [vmem:[%s30016_s18 + $0xf0] sm:$0xff]  ;;  %v6122_v49 = vld [vmem:[%s30016_s18 + $0xf8] sm:$0xff] }
 0xbcb   : > { %v25272_v52 = vpack.c.bf16 %v6122_v49, %v6121_v48 }
 0xbcd   : > { %25213 = vmatpush3.bf16.msra.mxu0 %v25212_v24  ;;  %25225 = vmatpush3.bf16.msra.mxu1 %v25224_v26  ;;  %v6107_v24 = vld [vmem:[%s30016_s18 + $0x80] sm:$0xff]  ;;  %v6108_v26 = vld [vmem:[%s30016_s18 + $0x88] sm:$0xff] }
 0xbce   : > { %25226 = vmatprep.subr.bf16.mxu0 %v26756_v7  ;;  %25238 = vmatprep.subr.bf16.mxu1 %v26756_v7  ;;  %v25251_v28 = vpack.c.bf16 %v6108_v26, %v6107_v24 }
 0xbd0   : > { %22725 = vmatmul.mubr.msk.f32.vlgmr.msra.gmra.mrb[72].mxu0 %vm1943_vm0, %v28015_v43  ;;  %22744 = vmatmul.mubr.msk.f32.vlgmr.msra.gmra.mrb[76].mxu1 %vm1943_vm0, %v28015_v43 }
 0xbd1   : > { %25228 = vmatpush3.bf16.msra.mxu0 %v25227_v30  ;;  %25240 = vmatpush3.bf16.msra.mxu1 %v25239_v32  ;;  %v6109_v30 = vld [vmem:[%s30016_s18 + $0x90] sm:$0xff]  ;;  %v6110_v32 = vld [vmem:[%s30016_s18 + $0x98] sm:$0xff] }
 0xbd2   : > { %25229 = vmatprep.subr.bf16.mxu0 %v26756_v7  ;;  %25241 = vmatprep.subr.bf16.mxu1 %v26756_v7  ;;  %v25254_v36 = vpack.c.bf16 %v6110_v32, %v6109_v30 }
 0xbd3   : > { %22762 = vmatprep.mubr.msk.f32.mxu0 %vm26757_vm3, %v26758_v20  ;;  %22781 = vmatprep.mubr.msk.f32.mxu1 %vm26757_vm3, %v26758_v20 }
 0xbd5   : > { %25231 = vmatpush3.bf16.msra.mxu0 %v25230_v39  ;;  %25243 = vmatpush3.bf16.msra.mxu1 %v25242_v40  ;;  %v6111_v39 = vld [vmem:[%s30016_s18 + $0xa0] sm:$0xff]  ;;  %v6112_v40 = vld [vmem:[%s30016_s18 + $0xa8] sm:$0xff] }
 0xbd6   : > { %25232 = vmatprep.subr.bf16.mxu0 %v26756_v7  ;;  %25244 = vmatprep.subr.bf16.mxu1 %v26756_v7  ;;  %v25257_v45 = vpack.c.bf16 %v6112_v40, %v6111_v39 }
 0xbd9   : > { %25234 = vmatpush3.bf16.msra.mxu0 %v25233_v23  ;;  %25246 = vmatpush3.bf16.msra.mxu1 %v25245_v47  ;;  %v6113_v23 = vld [vmem:[%s30016_s18 + $0xb0] sm:$0xff]  ;;  %v6114_v47 = vld [vmem:[%s30016_s18 + $0xb8] sm:$0xff] }
 0xbda   : > { %25235 = vmatprep.subr.bf16.mxu0 %v26756_v7  ;;  %25247 = vmatprep.subr.bf16.mxu1 %v26756_v7  ;;  %v25260_v50 = vpack.c.bf16 %v6114_v47, %v6113_v23 }
 0xbdd   : > { %25237 = vmatpush3.bf16.msra.mxu0 %v25236_v21  ;;  %25249 = vmatpush3.bf16.msra.mxu1 %v25248_v22 }
 0xbde   : > { %25250 = vmatprep.subr.bf16.mxu0 %v26756_v7  ;;  %25262 = vmatprep.subr.bf16.mxu1 %v26756_v7 }
 0xbe0   : > { %22763 = vmatmul.mubr.msk.f32.vlgmr.msra.gmra.mrb[74].mxu0 %vm1943_vm0, %v28015_v43  ;;  %22782 = vmatmul.mubr.msk.f32.vlgmr.msra.gmra.mrb[78].mxu1 %vm1943_vm0, %v28015_v43 }
 0xbe1   : > { %25252 = vmatpush3.bf16.msra.mxu0 %v25251_v28  ;;  %25264 = vmatpush3.bf16.msra.mxu1 %v25263_v29 }
 0xbe2   : > { %25253 = vmatprep.subr.bf16.mxu0 %v26756_v7  ;;  %25265 = vmatprep.subr.bf16.mxu1 %v26756_v7 }
 0xbe3   : > { %22800 = vmatprep.mubr.msk.f32.mxu0 %vm26757_vm3, %v26758_v20  ;;  %22819 = vmatprep.mubr.msk.f32.mxu1 %vm26757_vm3, %v26758_v20 }
 0xbe5   : > { %25255 = vmatpush3.bf16.msra.mxu0 %v25254_v36  ;;  %25267 = vmatpush3.bf16.msra.mxu1 %v25266_v38 }
 0xbe6   : > { %25256 = vmatprep.subr.bf16.mxu0 %v26756_v7  ;;  %25268 = vmatprep.subr.bf16.mxu1 %v26756_v7 }
 0xbe9   : > { %25258 = vmatpush3.bf16.msra.mxu0 %v25257_v45  ;;  %25270 = vmatpush3.bf16.msra.mxu1 %v25269_v46 }
 0xbea   : > { %25259 = vmatprep.subr.bf16.mxu0 %v26756_v7  ;;  %25271 = vmatprep.subr.bf16.mxu1 %v26756_v7 }
 0xbed   : > { %25261 = vmatpush3.bf16.msra.mxu0 %v25260_v50  ;;  %25273 = vmatpush3.bf16.msra.mxu1 %v25272_v52 }
 0xbf0   : > { %22801 = vmatmul.mubr.msk.f32.vlgmr.msra.gmra.mrb[76].mxu0 %vm1943_vm0, %v28015_v43  ;;  %22820 = vmatmul.mubr.msk.f32.vlgmr.msra.gmra.mrb[80].mxu1 %vm1943_vm0, %v28015_v43 }
 0xbf1   : > { %22824 = vmatprep.mubr.msk.f32.mxu0 %vm2850_vm1, %v27921_v31  ;;  %22829 = vmatprep.mubr.msk.f32.mxu1 %vm2850_vm1, %v27925_v54 }
 0xc73   : > { %v28178_v21 = vpop.f32.mrb[66].mxu0  ;;  %v28180_v22 = vpop.f32.mrb[70].mxu1 }
 0xc74   : > { %v22612_v24 = vpop.f32.mrb[67].mxu0  ;;  %v22631_v26 = vpop.f32.mrb[71].mxu1 }
 0xc83   : > { %v28182_v25 = vpop.f32.mrb[68].mxu0  ;;  %v28184_v27 = vpop.f32.mrb[72].mxu1 }
 0xc84   : > { %v22650_v28 = vpop.f32.mrb[69].mxu0  ;;  %v22669_v29 = vpop.f32.mrb[73].mxu1 }
 0xc93   : > { %v7390_v30 = vpop.f32.mrb[70].mxu0  ;;  %v7460_v32 = vpop.f32.mrb[74].mxu1 }
 0xc94   : > { %v22688_v34 = vpop.f32.mrb[71].mxu0  ;;  %v22707_v35 = vpop.f32.mrb[75].mxu1  ;;  %22822 = vmatprep.subr.msk.mxu0 %vm2850_vm1, %v7390_v30  ;;  %22827 = vmatprep.subr.msk.mxu1 %vm2850_vm1, %v7460_v32 }
 0xc95   : > { %22823 = vmatpush3.xpose.msk.msra.mxu0 %vm2850_vm1, %v7390_v30  ;;  %22828 = vmatpush3.xpose.msk.msra.mxu1 %vm2850_vm1, %v7460_v32 }
 0xc98   : > { %22825 = vmatmul.mubr.msk.f32.vlgmr.msra.gmra.mrb[78].mxu0 %vm2850_vm1, %v27918_v51  ;;  %22830 = vmatmul.mubr.msk.f32.vlgmr.msra.gmra.mrb[82].mxu1 %vm2850_vm1, %v27923_v53 }
 0xc99   : > { %22834 = vmatprep.mubr.msk.f32.mxu0 %vm2850_vm1, %v27929_v56  ;;  %22839 = vmatprep.mubr.msk.f32.mxu1 %vm2850_vm1, %v27933_v58 }
 0xca3   : > { %v7530_v31 = vpop.f32.mrb[72].mxu0  ;;  %v7600_v54 = vpop.f32.mrb[76].mxu1 }
 0xca4   : > { %v22726_v36 = vpop.f32.mrb[73].mxu0  ;;  %v22745_v38 = vpop.f32.mrb[77].mxu1  ;;  %22832 = vmatprep.subr.msk.mxu0 %vm2850_vm1, %v7530_v31  ;;  %22837 = vmatprep.subr.msk.mxu1 %vm2850_vm1, %v7600_v54 }
 0xca5   : > { %22833 = vmatpush3.xpose.msk.msra.mxu0 %vm2850_vm1, %v7530_v31  ;;  %22838 = vmatpush3.xpose.msk.msra.mxu1 %vm2850_vm1, %v7600_v54 }
 0xca8   : > { %22835 = vmatmul.mubr.msk.f32.vlgmr.msra.gmra.mrb[80].mxu0 %vm2850_vm1, %v27927_v55  ;;  %22840 = vmatmul.mubr.msk.f32.vlgmr.msra.gmra.mrb[84].mxu1 %vm2850_vm1, %v27931_v57 }
 0xcb3   : > { %v7670_v51 = vpop.f32.mrb[74].mxu0  ;;  %v7740_v53 = vpop.f32.mrb[78].mxu1 }
 0xcb4   : > { %v22764_v56 = vpop.f32.mrb[75].mxu0  ;;  %v22783_v58 = vpop.f32.mrb[79].mxu1  ;;  %22842 = vmatprep.subr.mxu0 %v7670_v51  ;;  %22847 = vmatprep.subr.mxu1 %v7740_v53 }
 0xcb5   : > { %22843 = vmatpush3.msra.mxu0 %v7670_v51  ;;  %22848 = vmatpush3.msra.mxu1 %v7740_v53 }
 0xcc3   : > { %v28206_v39 = vpop.f32.mrb[76].mxu0  ;;  %v28208_v40 = vpop.f32.mrb[80].mxu1 }
 0xcc4   : > { %v22802_v41 = vpop.f32.mrb[77].mxu0  ;;  %v22821_v44 = vpop.f32.mrb[81].mxu1  ;;  %22852 = vmatprep.subr.mxu0 %v28206_v39  ;;  %22857 = vmatprep.subr.mxu1 %v28208_v40 }
 0xd6b   : > { %v22826_v55 = vpop.f32.mrb[78].mxu0  ;;  %v22831_v57 = vpop.f32.mrb[82].mxu1 }
 0xd6c   : > { %v7959_v45 = vpop.f32.mrb[79].mxu0  ;;  %v8043_v46 = vpop.f32.mrb[83].mxu1  ;;  %v8223_v23 = vsel %vm5255_vm4, %v22826_v55, -inf  ;;  %v8229_v48 = vsel %vm5255_vm4, %v22831_v57, -inf }
 0xd6d   : > { %8224 = vmax.xlane.f32.xlu1 %v8223_v23  ;;  %v8220_v47 = vsel %vm5255_vm4, %v7959_v45, -inf  ;;  %v8226_v49 = vsel %vm5255_vm4, %v8043_v46, -inf }
 0xd6e   : > { %8221 = vmax.xlane.f32.xlu0 %v8220_v47 }
 0xd71   : > { %8230 = vmax.xlane.f32.xlu1 %v8229_v48 }
 0xd72   : > { %8227 = vmax.xlane.f32.xlu0 %v8226_v49 }
 0xd7b   : > { %v22836_v50 = vpop.f32.mrb[80].mxu0  ;;  %v22841_v52 = vpop.f32.mrb[84].mxu1 }
 0xd7c   : > { %v8127_v24 = vpop.f32.mrb[81].mxu0  ;;  %v8211_v26 = vpop.f32.mrb[85].mxu1  ;;  %v8235_v28 = vsel %vm5255_vm4, %v22836_v50, -inf  ;;  %v8241_v30 = vsel %vm5255_vm4, %v22841_v52, -inf }
 0xd7d   : > { %8236 = vmax.xlane.f32.xlu1 %v8235_v28  ;;  %v8232_v29 = vsel %vm5255_vm4, %v8127_v24, -inf  ;;  %v8238_v32 = vsel %vm5255_vm4, %v8211_v26, -inf }
 0xd7e   : > { %8233 = vmax.xlane.f32.xlu0 %v8232_v29 }
 0xd81   : > { %8242 = vmax.xlane.f32.xlu1 %v8241_v30 }
 0xd82   : > { %8239 = vmax.xlane.f32.xlu0 %v8238_v32 }
 0xdfa   : > { %v8225_v34 = vpop.xlane.xlu1 %8224 }
 0xdfb   : > { %v8245_v35 = vsub.f32 %v22826_v55, %v8225_v34  ;;  %v8222_v31 = vpop.xlane.xlu0 %8221 }
 0xdfc   : > { %v8244_v54 = vsub.f32 %v7959_v45, %v8222_v31 }
 0xdfd   : > { %v8254_v36 = vmul.f32 1.442695, %v8245_v35 }
 0xdfe   : > { %v8252_v38 = vmul.f32 1.442695, %v8244_v54  ;;  %v8231_v51 = vpop.xlane.xlu1 %8230 }
 0xdff   : > { %26441 = vpow2.f32 %v8254_v36  ;;  %v8247_v53 = vsub.f32 %v22831_v57, %v8231_v51  ;;  %v8228_v56 = vpop.xlane.xlu0 %8227 }
 0xe00   : > { %26443 = vpow2.f32 %v8252_v38  ;;  %v8246_v58 = vsub.f32 %v8043_v46, %v8228_v56 }
 0xe01   : > { %v8258_v41 = vmul.f32 1.442695, %v8247_v53 }
 0xe02   : > { %v8256_v44 = vmul.f32 1.442695, %v8246_v58 }
 0xe03   : > { %26445 = vpow2.f32 %v8258_v41 }
 0xe04   : > { %26447 = vpow2.f32 %v8256_v44 }
 0xe09   : > { %v26442_v23 = vpop.eup %26441 }
 0xe0a   : > { %v26444_v47 = vpop.eup %26443  ;;  %v8237_v48 = vpop.xlane.xlu1 %8236  ;;  %v8271_v49 = vsel %vm5255_vm4, %v26442_v23, 0.0 }
 0xe0b   : > { %v8249_v55 = vsub.f32 %v22836_v50, %v8237_v48  ;;  %8272 = vadd.xlane.f32.xlu1 %v8271_v49  ;;  %v8234_v45 = vpop.xlane.xlu0 %8233  ;;  %v8268_v28 = vsel %vm5255_vm4, %v26444_v47, 0.0 }
 0xe0c   : > { %v8248_v29 = vsub.f32 %v8127_v24, %v8234_v45  ;;  %8269 = vadd.xlane.f32.xlu0 %v8268_v28 }
 0xe0d   : > { %v26446_v57 = vpop.eup %26445  ;;  %v8262_v30 = vmul.f32 1.442695, %v8249_v55 }
 0xe0e   : > { %v26448_v32 = vpop.eup %26447  ;;  %v8260_v46 = vmul.f32 1.442695, %v8248_v29  ;;  %v8243_v34 = vpop.xlane.xlu1 %8242  ;;  %v8277_v35 = vsel %vm5255_vm4, %v26446_v57, 0.0 }
 0xe0f   : > { %26449 = vpow2.f32 %v8262_v30  ;;  %v8251_v31 = vsub.f32 %v22841_v52, %v8243_v34  ;;  %8278 = vadd.xlane.f32.xlu1 %v8277_v35  ;;  %v8240_v54 = vpop.xlane.xlu0 %8239  ;;  %v8274_v36 = vsel %vm5255_vm4, %v26448_v32, 0.0 }
 0xe10   : > { %26451 = vpow2.f32 %v8260_v46  ;;  %v8250_v50 = vsub.f32 %v8211_v26, %v8240_v54  ;;  %8275 = vadd.xlane.f32.xlu0 %v8274_v36 }
 0xe11   : > { %v8266_v38 = vmul.f32 1.442695, %v8251_v31 }
 0xe12   : > { %v8264_v51 = vmul.f32 1.442695, %v8250_v50 }
 0xe13   : > { %26453 = vpow2.f32 %v8266_v38 }
 0xe14   : > { %26455 = vpow2.f32 %v8264_v51 }
 0xe19   : > { %v26450_v24 = vpop.eup %26449 }
 0xe1a   : > { %v26452_v53 = vpop.eup %26451  ;;  %v8283_v56 = vsel %vm5255_vm4, %v26450_v24, 0.0 }
 0xe1b   : > { %8284 = vadd.xlane.f32.xlu1 %v8283_v56  ;;  %v8280_v58 = vsel %vm5255_vm4, %v26452_v53, 0.0 }
 0xe1c   : > { %8281 = vadd.xlane.f32.xlu0 %v8280_v58 }
 0xe1d   : > { %v26454_v52 = vpop.eup %26453 }
 0xe1e   : > { %v26456_v41 = vpop.eup %26455  ;;  %v8289_v44 = vsel %vm5255_vm4, %v26454_v52, 0.0 }
 0xe1f   : > { %8290 = vadd.xlane.f32.xlu1 %v8289_v44  ;;  %v8286_v26 = vsel %vm5255_vm4, %v26456_v41, 0.0 }
 0xe20   : > { %8287 = vadd.xlane.f32.xlu0 %v8286_v26 }
 0xe98   : > { %v8273_v48 = vpop.xlane.xlu1 %8272 }
 0xe99   : > { %26457 = vrcp.f32 %v8273_v48  ;;  %v8270_v49 = vpop.xlane.xlu0 %8269 }
 0xe9a   : > { %26459 = vrcp.f32 %v8270_v49 }
 0xe9c   : > { %v8279_v55 = vpop.xlane.xlu1 %8278 }
 0xe9d   : > { %26461 = vrcp.f32 %v8279_v55  ;;  %v8276_v45 = vpop.xlane.xlu0 %8275 }
 0xe9e   : > { %26463 = vrcp.f32 %v8276_v45 }
 0xea3   : > { %v26458_v28 = vpop.eup %26457 }
 0xea4   : > { %v26460_v29 = vpop.eup %26459  ;;  %v8295_v46 = vmul.f32 %v26458_v28, %v26442_v23 }
 0xea5   : > { %v8293_v30 = vmul.f32 %v26460_v29, %v26444_v47 }
 0xea7   : > { %v26462_v34 = vpop.eup %26461  ;;  %22844 = vmatprep.mubr.msk.f32.mxu0 %vm5255_vm4, %v8293_v30 }
 0xea8   : > { %v26464_v35 = vpop.eup %26463  ;;  %v8285_v31 = vpop.xlane.xlu1 %8284  ;;  %22845 = vmatmul.mubr.msk.f32.vlgmr.msra.gmra.mrb[82].mxu0 %vm5255_vm4, %v8295_v46  ;;  %v8299_v50 = vmul.f32 %v26462_v34, %v26446_v57 }
 0xea9   : > { %26465 = vrcp.f32 %v8285_v31  ;;  %22853 = vmatpush3.msra.mxu0 %v28206_v39  ;;  %v8282_v54 = vpop.xlane.xlu0 %8281  ;;  %v8297_v36 = vmul.f32 %v26464_v35, %v26448_v32 }
 0xeaa   : > { %26467 = vrcp.f32 %v8282_v54  ;;  %25274 = vmatprep.subr.bf16.mxu0 %v26756_v7 }
 0xeab   : > { %22849 = vmatprep.mubr.msk.f32.mxu1 %vm5255_vm4, %v8297_v36 }
 0xeac   : > { %v8291_v47 = vpop.xlane.xlu1 %8290  ;;  %22850 = vmatmul.mubr.msk.f32.vlgmr.msra.gmra.mrb[86].mxu1 %vm5255_vm4, %v8299_v50 }
 0xead   : > { %26469 = vrcp.f32 %v8291_v47  ;;  %22858 = vmatpush3.msra.mxu1 %v28208_v40  ;;  %v8288_v23 = vpop.xlane.xlu0 %8287 }
 0xeae   : > { %26471 = vrcp.f32 %v8288_v23  ;;  %25278 = vmatprep.subr.bf16.mxu1 %v26756_v7  ;;  %v6019_v23 = vld [vmem:[%s30017_s2] sm:$0xff]  ;;  %s30021_s2 = sld [smem:[#allocation25_spill]] }
 0xeb3   : > { %v26466_v38 = vpop.eup %26465 }
 0xeb4   : > { %v26468_v39 = vpop.eup %26467  ;;  %v8303_v32 = vmul.f32 %v26466_v38, %v26450_v24  ;;  %v6020_v38 = vld [vmem:[%s30018_s11 + $0x8] sm:$0xff]  ;;  %s30022_s23 = smov %s30021_s2 }
 0xeb5   : > { %v8301_v51 = vmul.f32 %v26468_v39, %v26452_v53 }
 0xeb7   : > { %v26470_v57 = vpop.eup %26469  ;;  %22854 = vmatprep.mubr.msk.f32.mxu0 %vm5255_vm4, %v8301_v51 }
 0xeb8   : > { %v26472_v56 = vpop.eup %26471  ;;  %22855 = vmatmul.mubr.msk.f32.vlgmr.msra.gmra.mrb[84].mxu0 %vm5255_vm4, %v8303_v32  ;;  %v8307_v58 = vmul.f32 %v26470_v57, %v26454_v52  ;;  %v25302_v57 = vpack.c.bf16 %v6020_v38, %v6019_v23 }
 0xeb9   : > { %25277 = vmatpush3.bf16.xpose.msk.msra.mxu0 %vm27349_vm2, %v25275_v60  ;;  %v8305_v40 = vmul.f32 %v26472_v56, %v26456_v41  ;;  %22866 = vmatprep.mubr.msk.f32.mxu0 %vm26757_vm3, %v26758_v20  ;;  %v6021_v56 = vld [vmem:[%s30018_s11 + $0x10] sm:$0xff] }
 0xeba   : > { %25282 = vmatprep.subr.bf16.mxu0 %v26756_v7 }
 0xebb   : > { %22859 = vmatprep.mubr.msk.f32.mxu1 %vm5255_vm4, %v8305_v40  ;;  %v6022_v40 = vld [vmem:[%s30018_s11 + $0x18] sm:$0xff] }
 0xebc   : > { %22860 = vmatmul.mubr.msk.f32.vlgmr.msra.gmra.mrb[88].mxu1 %vm5255_vm4, %v8307_v58 }
 0xebd   : > { %25281 = vmatpush3.bf16.xpose.msk.msra.mxu1 %vm27349_vm2, %v25279_v63  ;;  %22873 = vmatprep.mubr.msk.f32.mxu1 %vm26757_vm3, %v26758_v20 }
 0xebe   : > { %25286 = vmatprep.subr.bf16.mxu1 %v26756_v7 }
 0xec0   : > { %22867 = vmatmul.mubr.msk.f32.vlgmr.msra.gmra.mrb[86].mxu0 %vm2850_vm1, %v28178_v21 }
 0xec1   : > { %25285 = vmatpush3.bf16.xpose.msk.msra.mxu0 %vm27349_vm2, %v25283_v2  ;;  %22880 = vmatprep.mubr.msk.f32.mxu0 %vm26757_vm3, %v26758_v20 }
 0xec2   : > { %25290 = vmatprep.subr.bf16.mxu0 %v26756_v7 }
 0xec4   : > { %22874 = vmatmul.mubr.msk.f32.vlgmr.msra.gmra.mrb[90].mxu1 %vm2850_vm1, %v28180_v22 }
 0xec5   : > { %25289 = vmatpush3.bf16.xpose.msk.msra.mxu1 %vm27349_vm2, %v25287_v8  ;;  %22887 = vmatprep.mubr.msk.f32.mxu1 %vm26757_vm3, %v26758_v20 }
 0xec6   : > { %25293 = vmatprep.subr.bf16.mxu1 %v26756_v7 }
 0xec8   : > { %22881 = vmatmul.mubr.msk.f32.vlgmr.msra.gmra.mrb[88].mxu0 %vm2850_vm1, %v28182_v25 }
 0xec9   : > { %25292 = vmatpush3.bf16.msra.mxu0 %v25291_v10  ;;  %22894 = vmatprep.mubr.msk.f32.mxu0 %vm26757_vm3, %v26758_v20 }
 0xeca   : > { %25296 = vmatprep.subr.bf16.mxu0 %v26756_v7 }
 0xecc   : > { %22888 = vmatmul.mubr.msk.f32.vlgmr.msra.gmra.mrb[92].mxu1 %vm2850_vm1, %v28184_v27 }
 0xecd   : > { %25295 = vmatpush3.bf16.msra.mxu1 %v25294_v11  ;;  %22901 = vmatprep.mubr.msk.f32.mxu1 %vm26757_vm3, %v26758_v20 }
 0xece   : > { %25299 = vmatprep.subr.bf16.mxu1 %v26756_v7 }
 0xf7b   : > { %v28292_v42 = vpop.f32.mrb[82].mxu0 }
 0xf7c   : > { %v28294_v59 = vpop.f32.mrb[83].mxu0 }
 0xf7f   : > { %v28296_v60 = vpop.f32.mrb[86].mxu1 }
 0xf80   : > { %v28298_v61 = vpop.f32.mrb[87].mxu1 }
 0xf8b   : > { %v28300_v62 = vpop.f32.mrb[84].mxu0 }
 0xf8c   : > { %v28302_v63 = vpop.f32.mrb[85].mxu0 }
 0xf8f   : > { %v28304_v0 = vpop.f32.mrb[88].mxu1 }
 0xf90   : > { %v28306_v37 = vpop.f32.mrb[89].mxu1 }
 0xf93   : > { %v8707_v2 = vpop.f32.mrb[86].mxu0 }
 0xf94   : > { %v22868_v5 = vpop.f32.mrb[87].mxu0  ;;  %v8948_v6 = vsel %vm2850_vm1, %v8707_v2, -inf }
 0xf95   : > { %8949 = vmax.xlane.f32.xlu0 %v8948_v6  ;;  %v25306_v5 = vpack.c.bf16 %v6022_v40, %v6021_v56  ;;  %v6023_v6 = vld [vmem:[%s30018_s11 + $0x20] sm:$0xff] }
 0xf97   : > { %v8786_v8 = vpop.f32.mrb[90].mxu1 }
 0xf98   : > { %v22875_v9 = vpop.f32.mrb[91].mxu1  ;;  %v8951_v3 = vsel %vm2850_vm1, %v8786_v8, -inf }
 0xf99   : > { %8952 = vmax.xlane.f32.xlu1 %v8951_v3  ;;  %v6026_v3 = vld [vmem:[%s30018_s11 + $0x38] sm:$0xff] }
 0xf9b   : > { %v8865_v10 = vpop.f32.mrb[88].mxu0 }
 0xf9c   : > { %v22882_v18 = vpop.f32.mrb[89].mxu0  ;;  %v8954_v1 = vsel %vm2850_vm1, %v8865_v10, -inf }
 0xf9d   : > { %8955 = vmax.xlane.f32.xlu0 %v8954_v1  ;;  %v6124_v18 = vld [vmem:[%s30022_s23 + $0x8] sm:$0xff]  ;;  %v6129_v1 = vld [vmem:[%s30022_s23 + $0x30] sm:$0xff] }
 0xf9f   : > { %v8944_v11 = vpop.f32.mrb[92].mxu1 }
 0xfa0   : > { %v22889_v21 = vpop.f32.mrb[93].mxu1  ;;  %v8957_v22 = vsel %vm2850_vm1, %v8944_v11, -inf }
 0xfa1   : > { %8958 = vmax.xlane.f32.xlu1 %v8957_v22 }
0x1022   : > { %v8950_v25 = vpop.xlane.xlu0 %8949 }
0x1023   : > { %v8960_v27 = vsub.f32 %v8707_v2, %v8950_v25 }
0x1025   : > { %v8964_v24 = vmul.f32 1.442695, %v8960_v27 }
0x1026   : > { %v8953_v53 = vpop.xlane.xlu1 %8952 }
0x1027   : > { %26473 = vpow2.f32 %v8964_v24  ;;  %v8961_v52 = vsub.f32 %v8786_v8, %v8953_v53  ;;  %v6024_v8 = vld [vmem:[%s30018_s11 + $0x28] sm:$0xff] }
0x1028   : > { %v25310_v14 = vpack.c.bf16 %v6024_v8, %v6023_v6 }
0x1029   : > { %v8966_v41 = vmul.f32 1.442695, %v8961_v52 }
0x102a   : > { %v8956_v44 = vpop.xlane.xlu0 %8955 }
0x102b   : > { %26475 = vpow2.f32 %v8966_v41  ;;  %v8962_v26 = vsub.f32 %v8865_v10, %v8956_v44 }
0x102d   : > { %v8968_v48 = vmul.f32 1.442695, %v8962_v26 }
0x102e   : > { %v8959_v49 = vpop.xlane.xlu1 %8958 }
0x102f   : > { %26477 = vpow2.f32 %v8968_v48  ;;  %v8963_v55 = vsub.f32 %v8944_v11, %v8959_v49  ;;  %v6130_v11 = vld [vmem:[%s30022_s23 + $0x38] sm:$0xff] }
0x1031   : > { %v26474_v45 = vpop.eup %26473  ;;  %v8970_v28 = vmul.f32 1.442695, %v8963_v55 }
0x1032   : > { %v8972_v29 = vsel %vm2850_vm1, %v26474_v45, 0.0 }
0x1033   : > { %26479 = vpow2.f32 %v8970_v28  ;;  %8973 = vadd.xlane.f32.xlu0 %v8972_v29 }
0x1035   : > { %v26476_v30 = vpop.eup %26475 }
0x1036   : > { %v8975_v46 = vsel %vm2850_vm1, %v26476_v30, 0.0 }
0x1037   : > { %8976 = vadd.xlane.f32.xlu1 %v8975_v46 }
0x1039   : > { %v26478_v34 = vpop.eup %26477 }
0x103a   : > { %v8978_v35 = vsel %vm2850_vm1, %v26478_v34, 0.0 }
0x103b   : > { %8979 = vadd.xlane.f32.xlu0 %v8978_v35 }
0x103d   : > { %v26480_v31 = vpop.eup %26479 }
0x103e   : > { %v8981_v54 = vsel %vm2850_vm1, %v26480_v31, 0.0 }
0x103f   : > { %8982 = vadd.xlane.f32.xlu1 %v8981_v54 }
0x10c0   : > { %v8974_v36 = vpop.xlane.xlu0 %8973 }
0x10c1   : > { %26481 = vrcp.f32 %v8974_v36 }
0x10c4   : > { %v8977_v50 = vpop.xlane.xlu1 %8976 }
0x10c5   : > { %26483 = vrcp.f32 %v8977_v50 }
0x10c8   : > { %v8980_v47 = vpop.xlane.xlu0 %8979 }
0x10c9   : > { %26485 = vrcp.f32 %v8980_v47 }
0x10cb   : > { %v26482_v39 = vpop.eup %26481 }
0x10cc   : > { %v8985_v51 = vmul.f32 %v26482_v39, %v26474_v45  ;;  %v8983_v32 = vpop.xlane.xlu1 %8982 }
0x10cd   : > { %26487 = vrcp.f32 %v8983_v32 }
0x10ce   : > { %9284 = vst.msk [vmem:[%s28321_s28] sm:$0xff] %vm2850_vm1, %v8985_v51  ;;  %22895 = vmatmul.mubr.msk.f32.vlgmr.msra.gmra.mrb[90].mxu0 %vm2850_vm1, %v8985_v51 }
0x10cf   : > { %v26484_v58 = vpop.eup %26483  ;;  %25298 = vmatpush3.bf16.msra.mxu0 %v25297_v15  ;;  %22908 = vmatprep.mubr.msk.f32.mxu0 %vm26757_vm3, %v26758_v20  ;;  %v6025_v15 = vld [vmem:[%s30018_s11 + $0x30] sm:$0xff] }
0x10d0   : > { %v8987_v2 = vmul.f32 %v26484_v58, %v26476_v30  ;;  %25303 = vmatprep.subr.bf16.mxu0 %v25302_v57  ;;  %v25314_v17 = vpack.c.bf16 %v6026_v3, %v6025_v15  ;;  %v9997_v3 = vld [vmem:[%s30023_s26] sm:$0xff] }
0x10d2   : > { %9285 = vst.msk [vmem:[%s28321_s28 + $0x8] sm:$0xff] %vm2850_vm1, %v8987_v2  ;;  %22902 = vmatmul.mubr.msk.f32.vlgmr.msra.gmra.mrb[94].mxu1 %vm2850_vm1, %v8987_v2 }
0x10d3   : > { %v26486_v9 = vpop.eup %26485  ;;  %25301 = vmatpush3.bf16.msra.mxu1 %v25300_v19  ;;  %22915 = vmatprep.mubr.msk.f32.mxu1 %vm26757_vm3, %v26758_v20  ;;  %v6123_v19 = vld [vmem:[%s30021_s2] sm:$0xff]  ;;  %s30024_s2 = sld [smem:[#allocation26_spill]] }
0x10d4   : > { %v8989_v13 = vmul.f32 %v26486_v9, %v26478_v34  ;;  %25307 = vmatprep.subr.bf16.mxu1 %v25306_v5 }
0x10d6   : > { %9286 = vst.msk [vmem:[%s28321_s28 + $0x10] sm:$0xff] %vm2850_vm1, %v8989_v13  ;;  %22909 = vmatmul.mubr.msk.f32.vlgmr.msra.gmra.mrb[92].mxu0 %vm2850_vm1, %v8989_v13 }
0x10d7   : > { %v26488_v10 = vpop.eup %26487  ;;  %25305 = vmatpush3.bf16.msra.mxu0 %v25302_v57  ;;  %22922 = vmatprep.mubr.msk.f32.mxu0 %vm2850_vm1, %v28294_v59  ;;  %v25319_v59 = vpack.c.bf16 %v6124_v18, %v6123_v19  ;;  %v10000_v19 = vld [vmem:[%s30023_s26 + $0x18] sm:$0xff] }
0x10d8   : > { %v8991_v16 = vmul.f32 %v26488_v10, %v26480_v31  ;;  %25311 = vmatprep.subr.bf16.mxu0 %v25310_v14  ;;  %v9998_v10 = vld [vmem:[%s30023_s26 + $0x8] sm:$0xff] }
0x10da   : > { %9287 = vst.msk [vmem:[%s28321_s28 + $0x18] sm:$0xff] %vm2850_vm1, %v8991_v16  ;;  %22916 = vmatmul.mubr.msk.f32.vlgmr.msra.gmra.mrb[96].mxu1 %vm2850_vm1, %v8991_v16  ;;  %22923 = vmatmul.mubr.msk.f32.vlgmr.msra.gmra.mrb[94].mxu0 %vm2850_vm1, %v28292_v42  ;;  %v6125_v42 = vld [vmem:[%s30022_s23 + $0x10] sm:$0xff]  ;;  %v25330_v16 = vpack.c.bf16 %v9998_v10, %v9997_v3  ;;  %v10010_v10 = vld [vmem:[%s30026_s22 + $0x20] sm:$0xff] }
0x10db   : > { %25309 = vmatpush3.bf16.msra.mxu1 %v25306_v5  ;;  %22929 = vmatprep.mubr.msk.f32.mxu1 %vm2850_vm1, %v28298_v61 }
0x10dc   : > { %25313 = vmatpush3.bf16.msra.mxu0 %v25310_v14  ;;  %22936 = vmatprep.mubr.msk.f32.mxu0 %vm2850_vm1, %v28302_v63  ;;  %v6128_v63 = vld [vmem:[%s30022_s23 + $0x28] sm:$0xff] }
0x10dd   : > { %25315 = vmatprep.subr.bf16.mxu1 %v25314_v17  ;;  %25318 = vmatprep.subr.bf16.mxu0 %v26756_v7 }
0x10de   : > { %22930 = vmatmul.mubr.msk.f32.vlgmr.msra.gmra.mrb[98].mxu1 %vm2850_vm1, %v28296_v60  ;;  %v6126_v60 = vld [vmem:[%s30022_s23 + $0x18] sm:$0xff] }
0x10df   : > { %22937 = vmatmul.mubr.msk.f32.vlgmr.msra.gmra.mrb[96].mxu0 %vm2850_vm1, %v28300_v62  ;;  %25317 = vmatpush3.bf16.msra.mxu1 %v25314_v17  ;;  %v25322_v61 = vpack.c.bf16 %v6126_v60, %v6125_v42  ;;  %v6127_v62 = vld [vmem:[%s30022_s23 + $0x20] sm:$0xff]  ;;  %v9999_v17 = vld [vmem:[%s30023_s26 + $0x10] sm:$0xff]  ;;  %v10002_v42 = vld [vmem:[%s30023_s26 + $0x28] sm:$0xff] }
0x10e0   : > { %22943 = vmatprep.mubr.msk.f32.mxu1 %vm2850_vm1, %v28306_v37  ;;  %25320 = vmatpush3.bf16.msra.mxu0 %v25319_v59  ;;  %v25325_v37 = vpack.c.bf16 %v6128_v63, %v6127_v62  ;;  %v25334_v18 = vpack.c.bf16 %v10000_v19, %v9999_v17  ;;  %v10001_v59 = vld [vmem:[%s30023_s26 + $0x20] sm:$0xff]  ;;  %v10004_v62 = vld [vmem:[%s30023_s26 + $0x38] sm:$0xff] }
0x10e1   : > { %22950 = vmatprep.mubr.msk.f32.mxu0 %vm26757_vm3, %v26758_v20  ;;  %25321 = vmatprep.subr.bf16.mxu1 %v26756_v7  ;;  %v25338_v60 = vpack.c.bf16 %v10002_v42, %v10001_v59  ;;  %v10243_v19 = vld [vmem:[%s30027_s0 + $0x20] sm:$0xff]  ;;  %v10012_v42 = vld [vmem:[%s30026_s22 + $0x30] sm:$0xff] }
0x10e2   : > { %22944 = vmatmul.mubr.msk.f32.vlgmr.msra.gmra.mrb[100].mxu1 %vm2850_vm1, %v28304_v0  ;;  %25324 = vmatprep.subr.bf16.mxu0 %v26756_v7  ;;  %v25328_v0 = vpack.c.bf16 %v6130_v11, %v6129_v1 }
0x10e3   : > { %22957 = vmatprep.mubr.msk.f32.mxu1 %vm26757_vm3, %v26758_v20  ;;  %25323 = vmatpush3.bf16.msra.mxu1 %v25322_v61  ;;  %v10003_v61 = vld [vmem:[%s30023_s26 + $0x30] sm:$0xff] }
0x10e4   : > { %25327 = vmatprep.subr.bf16.mxu1 %v26756_v7  ;;  %v25342_v63 = vpack.c.bf16 %v10004_v62, %v10003_v61  ;;  %v10245_v61 = vld [vmem:[%s30027_s0 + $0x30] sm:$0xff] }
0x11a1   : > { %v9061_v21 = vpop.f32.mrb[90].mxu0 }
0x11a2   : > { %v22896_v22 = vpop.f32.mrb[91].mxu0  ;;  %22951 = vmatmul.mubr.msk.f32.vlgmr.msra.gmra.mrb[98].mxu0 %vm2850_vm1, %v9061_v21 }
0x11a3   : > { %25326 = vmatpush3.bf16.msra.mxu0 %v25325_v37  ;;  %22964 = vmatprep.mubr.msk.f32.mxu0 %vm26757_vm3, %v26758_v20 }
0x11a4   : > { %25331 = vmatprep.subr.bf16.mxu0 %v25330_v16 }
0x11a5   : > { %v9134_v25 = vpop.f32.mrb[94].mxu1 }
0x11a6   : > { %v22903_v27 = vpop.f32.mrb[95].mxu1  ;;  %22958 = vmatmul.mubr.msk.f32.vlgmr.msra.gmra.mrb[102].mxu1 %vm2850_vm1, %v9134_v25 }
0x11a7   : > { %25329 = vmatpush3.bf16.msra.mxu1 %v25328_v0  ;;  %22971 = vmatprep.mubr.msk.f32.mxu1 %vm26757_vm3, %v26758_v20 }
0x11a9   : > { %v9207_v24 = vpop.f32.mrb[92].mxu0 }
0x11aa   : > { %v22910_v53 = vpop.f32.mrb[93].mxu0  ;;  %22965 = vmatmul.mubr.msk.f32.vlgmr.msra.gmra.mrb[100].mxu0 %vm2850_vm1, %v9207_v24 }
0x11ab   : > { %25333 = vmatpush3.bf16.msra.mxu0 %v25330_v16  ;;  %v10011_v16 = vld [vmem:[%s30026_s22 + $0x28] sm:$0xff] }
0x11ac   : > { %25335 = vmatprep.subr.bf16.mxu0 %v25334_v18  ;;  %v25354_v17 = vpack.c.bf16 %v10011_v16, %v10010_v10 }
0x11ad   : > { %v9280_v52 = vpop.f32.mrb[96].mxu1  ;;  %v22924_v41 = vpop.f32.mrb[94].mxu0 }
0x11ae   : > { %v22917_v44 = vpop.f32.mrb[97].mxu1  ;;  %v9360_v26 = vpop.f32.mrb[95].mxu0  ;;  %22972 = vmatmul.mubr.msk.f32.vlgmr.msra.gmra.mrb[104].mxu1 %vm2850_vm1, %v9280_v52  ;;  %v9619_v49 = vsel %vm1943_vm0, %v22924_v41, 0.0 }
0x11af   : > { %v9612_v29 = vsel %vm1943_vm0, %v9360_v26, 0.0  ;;  %25337 = vmatpush3.bf16.msra.mxu0 %v25334_v18  ;;  %v10244_v18 = vld [vmem:[%s30027_s0 + $0x28] sm:$0xff] }
0x11b0   : > { %25339 = vmatprep.subr.bf16.mxu0 %v25338_v60  ;;  %v25385_v59 = vpack.c.bf16 %v10244_v18, %v10243_v19 }
0x11b1   : > { %v22931_v48 = vpop.f32.mrb[98].mxu1 }
0x11b2   : > { %v9620_v55 = vsel %vm1943_vm0, %v22931_v48, 0.0  ;;  %v22938_v45 = vpop.f32.mrb[96].mxu0  ;;  %v9441_v28 = vpop.f32.mrb[99].mxu1 }
0x11b3   : > { %v9621_v30 = vadd.f32 %v9620_v55, %v9619_v49  ;;  %v9613_v46 = vsel %vm1943_vm0, %v9441_v28, 0.0  ;;  %v9522_v34 = vpop.f32.mrb[97].mxu0  ;;  %v9622_v35 = vsel %vm1943_vm0, %v22938_v45, 0.0  ;;  %25341 = vmatpush3.bf16.msra.mxu0 %v25338_v60  ;;  %v10013_v60 = vld [vmem:[%s30026_s22 + $0x38] sm:$0xff] }
0x11b4   : > { %v9614_v31 = vadd.f32 %v9613_v46, %v9612_v29  ;;  %v9615_v36 = vsel %vm1943_vm0, %v9522_v34, 0.0  ;;  %25343 = vmatprep.subr.bf16.mxu0 %v25342_v63  ;;  %v25358_v62 = vpack.c.bf16 %v10013_v60, %v10012_v42 }
0x11b5   : > { %v9623_v54 = vadd.f32 %v9622_v35, %v9621_v30  ;;  %v22945_v50 = vpop.f32.mrb[100].mxu1 }
0x11b6   : > { %v9616_v47 = vadd.f32 %v9615_v36, %v9614_v31  ;;  %v9624_v23 = vsel %vm1943_vm0, %v22945_v50, 0.0  ;;  %v9603_v38 = vpop.f32.mrb[101].mxu1  ;;  %v19568_v31 = vld [vmem:[%s30024_s2] ss:$0 sm:$0xff]  ;;  %s30029_s2 = sld [smem:[#allocation38_spill]] }
0x11b7   : > { %v9625_v39 = vadd.f32 %v9624_v23, %v9623_v54  ;;  %v9617_v51 = vsel %vm1943_vm0, %v9603_v38, 0.0  ;;  %25345 = vmatpush3.bf16.msra.mxu0 %v25342_v63  ;;  %v10246_v63 = vld [vmem:[%s30027_s0 + $0x38] sm:$0xff] }
0x11b8   : > { %v9618_v32 = vadd.f32 %v9617_v51, %v9616_v47  ;;  %25378 = vmatprep.subr.bf16.mxu0 %v26756_v7 }
0x11b9   : > { %v9627_v57 = vadd.f32 %v9625_v39, %v27785_v33 }
0x11ba   : > { %v9626_v56 = vadd.f32 %v9618_v32, %v27762_v4 }
0x11bb   : > { %v9631_v40 = vsel %vm1943_vm0, %v9627_v57, 0.0 }
0x11bc   : > { %9632 = vadd.xlane.f32.xlu1 %v9631_v40  ;;  %v9628_v58 = vsel %vm1943_vm0, %v9626_v56, 0.0 }
0x11bd   : > { %9629 = vadd.xlane.f32.xlu0 %v9628_v58  ;;  %v10006_v58 = vld [vmem:[%s30026_s22] sm:$0xff] }
0x1249   : > { %v9633_v2 = vpop.xlane.xlu1 %9632 }
0x124a   : > { %v9635_v5 = vmul.f32 0.015625, %v9633_v2  ;;  %v9630_v6 = vpop.xlane.xlu0 %9629  ;;  %v10007_v2 = vld [vmem:[%s30026_s22 + $0x8] sm:$0xff] }
0x124b   : > { %v9634_v8 = vmul.f32 0.015625, %v9630_v6  ;;  %v10239_v6 = vld [vmem:[%s30027_s0] sm:$0xff] }
0x124c   : > { %v9637_v9 = vsub.f32 %v9627_v57, %v9635_v5  ;;  %v25346_v5 = vpack.c.bf16 %v10007_v2, %v10006_v58 }
0x124d   : > { %v9636_v13 = vsub.f32 %v9626_v56, %v9634_v8  ;;  %v10240_v8 = vld [vmem:[%s30027_s0 + $0x8] sm:$0xff] }
0x124e   : > { %v9639_v14 = vmul.f32 %v9637_v9, %v9637_v9  ;;  %25347 = vmatprep.subr.bf16.mxu1 %v25346_v5 }
0x124f   : > { %v9638_v33 = vmul.f32 %v9636_v13, %v9636_v13  ;;  %25349 = vmatpush3.bf16.msra.mxu1 %v25346_v5 }
0x1250   : > { %v9643_v4 = vsel %vm1943_vm0, %v9639_v14, 0.0  ;;  %v10009_v14 = vld [vmem:[%s30026_s22 + $0x18] sm:$0xff] }
0x1251   : > { %9644 = vadd.xlane.f32.xlu1 %v9643_v4  ;;  %v9640_v15 = vsel %vm1943_vm0, %v9638_v33, 0.0  ;;  %v10241_v4 = vld [vmem:[%s30027_s0 + $0x10] sm:$0xff] }
0x1252   : > { %9641 = vadd.xlane.f32.xlu0 %v9640_v15  ;;  %v10242_v15 = vld [vmem:[%s30027_s0 + $0x18] sm:$0xff]  ;;  %s30030_s0 = smov %s30029_s2 }
0x1253   : > { %v25382_v3 = vpack.c.bf16 %v10242_v15, %v10241_v4  ;;  %v10256_v5 = vld [vmem:[%s30030_s0 + $0x40] sm:$0xff]  ;;  %v10259_v4 = vld [vmem:[%s30030_s0 + $0x58] sm:$0xff]  ;;  %v10261_v10 = vld [vmem:[%s30030_s0 + $0x68] sm:$0xff] }
0x1254   : > { %v10263_v19 = vld [vmem:[%s30030_s0 + $0x78] sm:$0xff] }
0x1275   : > { %v9739_v37 = vpop.f32.mrb[98].mxu0 }
0x1276   : > { %v22952_v1 = vpop.f32.mrb[99].mxu0  ;;  %v9962_v21 = vsel %vm1943_vm0, %v9739_v37, 0.0  ;;  %v10014_v37 = vld [vmem:[%s30026_s22 + $0x40] sm:$0xff] }
0x1277   : > { %v10015_v1 = vld [vmem:[%s30026_s22 + $0x48] sm:$0xff] }
0x1279   : > { %v9812_v11 = vpop.f32.mrb[102].mxu1 }
0x127a   : > { %v9963_v22 = vsel %vm1943_vm0, %v9812_v11, 0.0  ;;  %v22959_v0 = vpop.f32.mrb[103].mxu1  ;;  %v25388_v11 = vpack.c.bf16 %v10246_v63, %v10245_v61 }
0x127b   : > { %v9964_v25 = vadd.f32 %v9963_v22, %v9962_v21  ;;  %v25362_v21 = vpack.c.bf16 %v10015_v1, %v10014_v37  ;;  %v10016_v22 = vld [vmem:[%s30026_s22 + $0x50] sm:$0xff]  ;;  %v10017_v0 = vld [vmem:[%s30026_s22 + $0x58] sm:$0xff] }
0x127d   : > { %v9885_v27 = vpop.f32.mrb[100].mxu0 }
0x127e   : > { %v9965_v24 = vsel %vm1943_vm0, %v9885_v27, 0.0  ;;  %v22966_v53 = vpop.f32.mrb[101].mxu0  ;;  %v25366_v27 = vpack.c.bf16 %v10017_v0, %v10016_v22 }
0x127f   : > { %v9966_v52 = vadd.f32 %v9965_v24, %v9964_v25  ;;  %v10018_v25 = vld [vmem:[%s30026_s22 + $0x60] sm:$0xff]  ;;  %v10019_v24 = vld [vmem:[%s30026_s22 + $0x68] sm:$0xff] }
0x1280   : > { %v25370_v53 = vpack.c.bf16 %v10019_v24, %v10018_v25 }
0x1281   : > { %v9958_v41 = vpop.f32.mrb[104].mxu1 }
0x1282   : > { %v9967_v44 = vsel %vm1943_vm0, %v9958_v41, 0.0  ;;  %v22973_v26 = vpop.f32.mrb[105].mxu1  ;;  %v10021_v41 = vld [vmem:[%s30026_s22 + $0x78] sm:$0xff] }
0x1283   : > { %v9968_v48 = vadd.f32 %v9967_v44, %v9966_v52  ;;  %v10020_v52 = vld [vmem:[%s30026_s22 + $0x70] sm:$0xff] }
0x1284   : > { %v25374_v44 = vpack.c.bf16 %v10021_v41, %v10020_v52 }
0x1285   : > { %v9969_v49 = vadd.f32 %v9968_v48, %v28015_v43  ;;  %v19569_v43 = vld [vmem:[%s30025_s7] ss:$0 sm:$0xff]  ;;  %s30028_s7 = sld [smem:[#allocation28_spill]] }
0x1287   : > { %v9970_v55 = vsel %vm1943_vm0, %v9969_v49, 0.0 }
0x1288   : > { %9971 = vadd.xlane.f32.xlu0 %v9970_v55 }
0x12de   : > { %v9645_v45 = vpop.xlane.xlu1 %9644 }
0x12df   : > { %v9647_v28 = vmul.f32 0.015625, %v9645_v45  ;;  %v9642_v29 = vpop.xlane.xlu0 %9641  ;;  %v19574_v45 = vld [vmem:[%s30028_s7] ss:$0 sm:$0xff]  ;;  %s30034_s7 = sld [smem:[#allocation33_spill]] }
0x12e0   : > { %v9646_v30 = vmul.f32 0.015625, %v9642_v29  ;;  %v10248_v29 = vld [vmem:[%s30029_s2] sm:$0xff]  ;;  %s30035_s2 = sld [smem:[#allocation34_spill]] }
0x12e1   : > { %v9649_v46 = vadd.f32 1e-06, %v9647_v28 }
0x12e2   : > { %v9648_v34 = vadd.f32 1e-06, %v9646_v30  ;;  %v10249_v30 = vld [vmem:[%s30030_s0 + $0x8] sm:$0xff] }
0x12e3   : > { %26489 = vrsqrt.f32 %v9649_v46  ;;  %v19575_v46 = vld [vmem:[%s30031_s1] ss:$0 sm:$0xff]  ;;  %s30033_s1 = sld [smem:[#allocation37_spill]] }
0x12e4   : > { %26491 = vrsqrt.f32 %v9648_v34 }
0x12e5   : > { %v19579_v63 = vld [vmem:[%s30034_s7] ss:$0 sm:$0xff]  ;;  %s30039_s7 = sld [smem:[#allocation39_spill]] }
0x12e6   : > { %s30036_s4 = smov %s30035_s2 }
0x12ed   : > { %v26490_v35 = vpop.eup %26489 }
0x12ee   : > { %v26492_v54 = vpop.eup %26491  ;;  %v9653_v36 = vmul.f32 %v26490_v35, %v9637_v9  ;;  %v25379_v9 = vpack.c.bf16 %v10240_v8, %v10239_v6  ;;  %v25391_v35 = vpack.c.bf16 %v10249_v30, %v10248_v29  ;;  %v10257_v6 = vld [vmem:[%s30030_s0 + $0x48] sm:$0xff] }
0x12ef   : > { %v9652_v50 = vmul.f32 %v26492_v54, %v9636_v13  ;;  %v10008_v13 = vld [vmem:[%s30026_s22 + $0x10] sm:$0xff]  ;;  %v19604_v30 = vld [vmem:[%s29989_s21 + $0x188] sm:$0xff] }
0x12f0   : > { %v9661_v47 = vmul.f32 %v19568_v31, %v9653_v36  ;;  %v25350_v33 = vpack.c.bf16 %v10009_v14, %v10008_v13  ;;  %v10250_v54 = vld [vmem:[%s30030_s0 + $0x10] sm:$0xff]  ;;  %v10251_v36 = vld [vmem:[%s30030_s0 + $0x18] sm:$0xff]  ;;  %v25403_v13 = vpack.c.bf16 %v10257_v6, %v10256_v5 }
0x12f1   : > { %v9660_v23 = vmul.f32 %v19568_v31, %v9652_v50  ;;  %v25394_v50 = vpack.c.bf16 %v10251_v36, %v10250_v54  ;;  %v19605_v54 = vld [vmem:[%s29989_s21 + $0x190] sm:$0xff]  ;;  %v19610_v6 = vld [vmem:[%s29989_s21 + $0x1b8] sm:$0xff] }
0x12f2   : > { %v28424_v39 = vadd.f32 %v19569_v43, %v9661_v47  ;;  %25351 = vmatprep.subr.bf16.mxu1 %v25350_v33  ;;  %v10253_v47 = vld [vmem:[%s30030_s0 + $0x28] sm:$0xff] }
0x12f3   : > { %v28422_v38 = vadd.f32 %v19569_v43, %v9660_v23  ;;  %25353 = vmatpush3.bf16.msra.mxu1 %v25350_v33  ;;  %v10252_v43 = vld [vmem:[%s30030_s0 + $0x20] sm:$0xff]  ;;  %v10258_v33 = vld [vmem:[%s30030_s0 + $0x50] sm:$0xff] }
0x12f4   : > { %25355 = vmatprep.subr.bf16.mxu1 %v25354_v17  ;;  %v25397_v23 = vpack.c.bf16 %v10253_v47, %v10252_v43  ;;  %v25406_v15 = vpack.c.bf16 %v10259_v4, %v10258_v33  ;;  %v19591_v47 = vld [vmem:[%s29989_s21 + $0x120] sm:$0xff]  ;;  %v19620_v4 = vld [vmem:[%s26796_s25 + $0x108] sm:$0xff] }
0x12f5   : > { %22990 = vmatprep.mubr.msk.f32.mxu0 %vm1943_vm0, %v28422_v38 }
0x12f6   : > { %22991 = vmatmul.mubr.msk.f32.vlgmr.msra.gmra.mrb[102].mxu0 %vm1943_vm0, %v28424_v39 }
0x12f7   : > { %23044 = vmatprep.mubr.msk.f32.mxu0 %vm26757_vm3, %v26758_v20  ;;  %25380 = vmatpush3.bf16.msra.mxu0 %v25379_v9 }
0x12f8   : > { %25381 = vmatprep.subr.bf16.mxu0 %v26756_v7  ;;  %25357 = vmatpush3.bf16.msra.mxu1 %v25354_v17  ;;  %v10262_v17 = vld [vmem:[%s30030_s0 + $0x70] sm:$0xff] }
0x12f9   : > { %25359 = vmatprep.subr.bf16.mxu1 %v25358_v62  ;;  %v25412_v18 = vpack.c.bf16 %v10263_v19, %v10262_v17 }
0x12fb   : > { %25383 = vmatpush3.bf16.msra.mxu0 %v25382_v3  ;;  %v10260_v3 = vld [vmem:[%s30030_s0 + $0x60] sm:$0xff] }
0x12fc   : > { %25384 = vmatprep.subr.bf16.mxu0 %v26756_v7  ;;  %25361 = vmatpush3.bf16.msra.mxu1 %v25358_v62  ;;  %v25409_v16 = vpack.c.bf16 %v10261_v10, %v10260_v3 }
0x12fd   : > { %25363 = vmatprep.subr.bf16.mxu1 %v25362_v21 }
0x12ff   : > { %25386 = vmatpush3.bf16.msra.mxu0 %v25385_v59  ;;  %v19582_v59 = vld [vmem:[%s30033_s1] ss:$0 sm:$0xff]  ;;  %s30037_s1 = sld [smem:[#allocation35_spill]] }
0x1300   : > { %25387 = vmatprep.subr.bf16.mxu0 %v26756_v7  ;;  %25365 = vmatpush3.bf16.msra.mxu1 %v25362_v21 }
0x1301   : > { %25367 = vmatprep.subr.bf16.mxu1 %v25366_v27 }
0x1303   : > { %25389 = vmatpush3.bf16.msra.mxu0 %v25388_v11 }
0x1304   : > { %25390 = vmatprep.subr.bf16.mxu0 %v26756_v7  ;;  %25369 = vmatpush3.bf16.msra.mxu1 %v25366_v27 }
0x1305   : > { %25371 = vmatprep.subr.bf16.mxu1 %v25370_v53 }
0x1308   : > { %25373 = vmatpush3.bf16.msra.mxu1 %v25370_v53 }
0x1309   : > { %25375 = vmatprep.subr.bf16.mxu1 %v25374_v44 }
0x130c   : > { %25377 = vmatpush3.bf16.msra.mxu1 %v25374_v44 }
0x1315   : > { %v9972_v51 = vpop.xlane.xlu0 %9971 }
0x1316   : > { %v9973_v32 = vmul.f32 0.015625, %v9972_v51  ;;  %v10254_v51 = vld [vmem:[%s30030_s0 + $0x30] sm:$0xff] }
0x1318   : > { %v28432_v57 = vsub.f32 %v9969_v49, %v9973_v32  ;;  %v10255_v32 = vld [vmem:[%s30030_s0 + $0x38] sm:$0xff] }
0x131a   : > { %v9975_v56 = vmul.f32 %v28432_v57, %v28432_v57 }
0x131c   : > { %v9976_v40 = vsel %vm1943_vm0, %v9975_v56, 0.0 }
0x131d   : > { %9977 = vadd.xlane.f32.xlu1 %v9976_v40  ;;  %v25400_v40 = vpack.c.bf16 %v10255_v32, %v10254_v51  ;;  %v19607_v51 = vld [vmem:[%s29989_s21 + $0x1a0] sm:$0xff] }
0x13aa   : > { %v9978_v26 = vpop.xlane.xlu1 %9977 }
0x13ab   : > { %v9979_v48 = vmul.f32 0.015625, %v9978_v26 }
0x13ad   : > { %v9980_v49 = vadd.f32 1e-06, %v9979_v48 }
0x13af   : > { %26493 = vrsqrt.f32 %v9980_v49 }
0x13b9   : > { %v26494_v55 = vpop.eup %26493 }
0x13ba   : > { %v9982_v28 = vmul.f32 %v26494_v55, %v28432_v57  ;;  %v19576_v57 = vld [vmem:[%s30032_s14] ss:$0 sm:$0xff]  ;;  %s30038_s14 = smov %s30037_s1 }
0x13bb   : > { %v19587_v55 = vld [vmem:[%s29989_s21 + $0x100] sm:$0xff] }
0x13bc   : > { %v9989_v34 = vmul.f32 %v19574_v45, %v9982_v28  ;;  %v19588_v45 = vld [vmem:[%s29989_s21 + $0x108] sm:$0xff]  ;;  %v19603_v28 = vld [vmem:[%s29989_s21 + $0x180] sm:$0xff] }
0x13bd   : > { %v25414_v29 = vpack.c.bf16 %v19588_v45, %v19587_v55  ;;  %v19601_v55 = vld [vmem:[%s29989_s21 + $0x170] sm:$0xff]  ;;  %v19602_v45 = vld [vmem:[%s29989_s21 + $0x178] sm:$0xff] }
0x13be   : > { %v28470_v31 = vadd.f32 %v19575_v46, %v9989_v34  ;;  %v25446_v46 = vpack.c.bf16 %v19604_v30, %v19603_v28  ;;  %v19589_v34 = vld [vmem:[%s29989_s21 + $0x110] sm:$0xff]  ;;  %v25442_v30 = vpack.c.bf16 %v19602_v45, %v19601_v55  ;;  %v19668_v55 = vld [vmem:[%s26801_s29 + $0x188] sm:$0xff] }
0x13bf   : > { %25415 = vmatprep.subr.bf16.mxu1 %v25414_v29  ;;  %v19625_v28 = vld [vmem:[%s26796_s25 + $0x130] sm:$0xff] }
0x13c0   : > { %23045 = vmatmul.mubr.msk.f32.vlgmr.msra.gmra.mrb[104].mxu0 %vm1943_vm0, %v28470_v31 }
0x13c1   : > { %25392 = vmatpush3.bf16.msra.mxu0 %v25391_v35  ;;  %23079 = vmatprep.mubr.msk.f32.mxu0 %vm26757_vm3, %v26758_v20  ;;  %v19590_v35 = vld [vmem:[%s29989_s21 + $0x118] sm:$0xff] }
0x13c2   : > { %25393 = vmatprep.subr.bf16.mxu0 %v26756_v7  ;;  %v25418_v36 = vpack.c.bf16 %v19590_v35, %v19589_v34  ;;  %v19611_v34 = vld [vmem:[%s29989_s21 + $0x1c0] sm:$0xff]  ;;  %v19612_v35 = vld [vmem:[%s29989_s21 + $0x1c8] sm:$0xff] }
0x13c5   : > { %25395 = vmatpush3.bf16.msra.mxu0 %v25394_v50  ;;  %v19606_v50 = vld [vmem:[%s29989_s21 + $0x198] sm:$0xff] }
0x13c6   : > { %25396 = vmatprep.subr.bf16.mxu0 %v26756_v7  ;;  %v25450_v43 = vpack.c.bf16 %v19606_v50, %v19605_v54  ;;  %v19635_v54 = vld [vmem:[%s26796_s25 + $0x180] sm:$0xff]  ;;  %v25462_v50 = vpack.c.bf16 %v19612_v35, %v19611_v34  ;;  %v19670_v34 = vld [vmem:[%s26801_s29 + $0x198] sm:$0xff] }
0x13c9   : > { %v22992_v56 = vpop.f32.mrb[102].mxu0  ;;  %25398 = vmatpush3.bf16.msra.mxu0 %v25397_v23  ;;  %v19592_v23 = vld [vmem:[%s29989_s21 + $0x128] sm:$0xff] }
0x13ca   : > { %v10109_v58 = vadd.f32 %v22992_v56, %v19576_v57  ;;  %v10103_v2 = vpop.f32.mrb[103].mxu0  ;;  %25399 = vmatprep.subr.bf16.mxu0 %v26756_v7  ;;  %v25422_v32 = vpack.c.bf16 %v19592_v23, %v19591_v47  ;;  %v19613_v47 = vld [vmem:[%s29989_s21 + $0x1d0] sm:$0xff]  ;;  %v19614_v23 = vld [vmem:[%s29989_s21 + $0x1d8] sm:$0xff] }
0x13cb   : > { %v10104_v8 = vadd.f32 %v19576_v57, %v10103_v2  ;;  %v19608_v57 = vld [vmem:[%s29989_s21 + $0x1a8] sm:$0xff]  ;;  %v19609_v2 = vld [vmem:[%s29989_s21 + $0x1b0] sm:$0xff] }
0x13cc   : > { %v10113_v14 = vmax.f32 %v10109_v58, 0.0  ;;  %v25454_v56 = vpack.c.bf16 %v19608_v57, %v19607_v51  ;;  %v19594_v58 = vld [vmem:[%s29989_s21 + $0x138] sm:$0xff]  ;;  %v19637_v51 = vld [vmem:[%s26796_s25 + $0x190] sm:$0xff]  ;;  %v25466_v57 = vpack.c.bf16 %v19614_v23, %v19613_v47  ;;  %v19672_v47 = vld [vmem:[%s26801_s29 + $0x1a8] sm:$0xff] }
0x13cd   : > { %v10112_v9 = vmax.f32 %v10104_v8, 0.0  ;;  %25401 = vmatpush3.bf16.msra.mxu0 %v25400_v40  ;;  %v19593_v40 = vld [vmem:[%s29989_s21 + $0x130] sm:$0xff]  ;;  %v25458_v8 = vpack.c.bf16 %v19610_v6, %v19609_v2  ;;  %v19639_v2 = vld [vmem:[%s26796_s25 + $0x1a0] sm:$0xff] }
0x13ce   : > { %25402 = vmatprep.subr.bf16.mxu0 %v26756_v7  ;;  %v25426_v5 = vpack.c.bf16 %v19594_v58, %v19593_v40  ;;  %v19615_v40 = vld [vmem:[%s29989_s21 + $0x1e0] sm:$0xff]  ;;  %v19616_v58 = vld [vmem:[%s29989_s21 + $0x1e8] sm:$0xff] }
0x13cf   : > { %23025 = vmatprep.mubr.f32.mxu1 %v10112_v9  ;;  %v19595_v9 = vld [vmem:[%s29989_s21 + $0x140] sm:$0xff]  ;;  %v25470_v6 = vpack.c.bf16 %v19616_v58, %v19615_v40  ;;  %v19674_v40 = vld [vmem:[%s26801_s29 + $0x1b8] sm:$0xff] }
0x13d0   : > { %23026 = vmatmul.mubr.f32.vlgmr.msra.gmra.mrb[106].mxu1 %v10113_v14  ;;  %v19619_v14 = vld [vmem:[%s26796_s25 + $0x100] sm:$0xff] }
0x13d1   : > { %25404 = vmatpush3.bf16.msra.mxu0 %v25403_v13  ;;  %25417 = vmatpush3.bf16.msra.mxu1 %v25414_v29  ;;  %v19596_v13 = vld [vmem:[%s29989_s21 + $0x148] sm:$0xff]  ;;  %v19626_v29 = vld [vmem:[%s26796_s25 + $0x138] sm:$0xff] }
0x13d2   : > { %25405 = vmatprep.subr.bf16.mxu0 %v26756_v7  ;;  %25419 = vmatprep.subr.bf16.mxu1 %v25418_v36  ;;  %v25430_v33 = vpack.c.bf16 %v19596_v13, %v19595_v9  ;;  %v19617_v9 = vld [vmem:[%s29989_s21 + $0x1f0] sm:$0xff]  ;;  %v19618_v13 = vld [vmem:[%s29989_s21 + $0x1f8] sm:$0xff] }
0x13d5   : > { %25407 = vmatpush3.bf16.msra.mxu0 %v25406_v15  ;;  %25421 = vmatpush3.bf16.msra.mxu1 %v25418_v36  ;;  %v25478_v15 = vpack.c.bf16 %v19620_v4, %v19619_v14  ;;  %v19636_v36 = vld [vmem:[%s26796_s25 + $0x188] sm:$0xff]  ;;  %v19641_v14 = vld [vmem:[%s26796_s25 + $0x1b0] sm:$0xff]  ;;  %v25474_v4 = vpack.c.bf16 %v19618_v13, %v19617_v9  ;;  %v19662_v13 = vld [vmem:[%s26801_s29 + $0x158] sm:$0xff] }
0x13d6   : > { %25408 = vmatprep.subr.bf16.mxu0 %v26756_v7  ;;  %25423 = vmatprep.subr.bf16.mxu1 %v25422_v32  ;;  %v19661_v9 = vld [vmem:[%s26801_s29 + $0x150] sm:$0xff] }
0x13d9   : > { %25410 = vmatpush3.bf16.msra.mxu0 %v25409_v16  ;;  %25425 = vmatpush3.bf16.msra.mxu1 %v25422_v32  ;;  %v19638_v32 = vld [vmem:[%s26796_s25 + $0x198] sm:$0xff] }
0x13da   : > { %25411 = vmatprep.subr.bf16.mxu0 %v26756_v7  ;;  %25427 = vmatprep.subr.bf16.mxu1 %v25426_v5 }
0x13dd   : > { %25413 = vmatpush3.bf16.msra.mxu0 %v25412_v18  ;;  %25429 = vmatpush3.bf16.msra.mxu1 %v25426_v5  ;;  %v19640_v5 = vld [vmem:[%s26796_s25 + $0x1a8] sm:$0xff] }
0x13de   : > { %25447 = vmatprep.subr.bf16.mxu0 %v25446_v46  ;;  %25431 = vmatprep.subr.bf16.mxu1 %v25430_v33 }
0x1493   : > { %v10342_v42 = vpop.f32.mrb[104].mxu0 }
0x1494   : > { %v10343_v60 = vadd.f32 %v19582_v59, %v10342_v42  ;;  %v23046_v61 = vpop.f32.mrb[105].mxu0 }
0x1495   : > { %v19580_v61 = vld [vmem:[%s30035_s2] ss:$0 sm:$0xff]  ;;  %s30042_s2 = sld [smem:[#allocation41_spill]] }
0x1496   : > { %v10346_v62 = vmax.f32 %v10343_v60, 0.0 }
0x1498   : > { %23080 = vmatmul.mubr.f32.vlgmr.msra.gmra.mrb[106].mxu0 %v10346_v62 }
0x1499   : > { %25449 = vmatpush3.bf16.msra.mxu0 %v25446_v46  ;;  %v25490_v46 = vpack.c.bf16 %v19626_v29, %v19625_v28  ;;  %v19645_v29 = vld [vmem:[%s26796_s25 + $0x1d0] sm:$0xff] }
0x149a   : > { %25451 = vmatprep.subr.bf16.mxu0 %v25450_v43 }
0x149d   : > { %25453 = vmatpush3.bf16.msra.mxu0 %v25450_v43  ;;  %v25510_v43 = vpack.c.bf16 %v19636_v36, %v19635_v54  ;;  %v19647_v54 = vld [vmem:[%s26796_s25 + $0x1e0] sm:$0xff]  ;;  %v19648_v36 = vld [vmem:[%s26796_s25 + $0x1e8] sm:$0xff] }
0x149e   : > { %25455 = vmatprep.subr.bf16.mxu0 %v25454_v56  ;;  %v25534_v23 = vpack.c.bf16 %v19648_v36, %v19647_v54 }
0x14a1   : > { %25457 = vmatpush3.bf16.msra.mxu0 %v25454_v56  ;;  %v25514_v56 = vpack.c.bf16 %v19638_v32, %v19637_v51  ;;  %v19649_v32 = vld [vmem:[%s26796_s25 + $0x1f0] sm:$0xff] }
0x14a2   : > { %25459 = vmatprep.subr.bf16.mxu0 %v25458_v8 }
0x14a3   : > { %v23027_v37 = vpop.f32.mrb[106].mxu1 }
0x14a4   : > { %v10192_v1 = vadd.f32 %v23027_v37, %v19579_v63  ;;  %v10186_v11 = vpop.f32.mrb[107].mxu1 }
0x14a5   : > { %v10187_v21 = vadd.f32 %v19579_v63, %v10186_v11  ;;  %25461 = vmatpush3.bf16.msra.mxu0 %v25458_v8  ;;  %v25518_v8 = vpack.c.bf16 %v19640_v5, %v19639_v2  ;;  %v19659_v5 = vld [vmem:[%s26801_s29 + $0x140] sm:$0xff] }
0x14a6   : > { %v10196_v22 = vadd.f32 %v10192_v1, %v28424_v39  ;;  %25479 = vmatprep.subr.bf16.mxu0 %v25478_v15  ;;  %v19581_v1 = vld [vmem:[%s30037_s1] ss:$0 sm:$0xff]  ;;  %s30046_s1 = sld [smem:[#allocation36_spill]] }
0x14a7   : > { %v10195_v0 = vadd.f32 %v10187_v21, %v28422_v38 }
0x14a8   : > { %v10200_v25 = vsel %vm1943_vm0, %v10196_v22, 0.0 }
0x14a9   : > { %10201 = vadd.xlane.f32.xlu1 %v10200_v25  ;;  %v10197_v27 = vsel %vm1943_vm0, %v10195_v0, 0.0  ;;  %v19621_v25 = vld [vmem:[%s26796_s25 + $0x110] sm:$0xff] }
0x14aa   : > { %10198 = vadd.xlane.f32.xlu0 %v10197_v27  ;;  %v19622_v27 = vld [vmem:[%s26796_s25 + $0x118] sm:$0xff] }
0x1536   : > { %v10202_v24 = vpop.xlane.xlu1 %10201 }
0x1537   : > { %v10204_v53 = vmul.f32 0.015625, %v10202_v24  ;;  %v10199_v52 = vpop.xlane.xlu0 %10198 }
0x1538   : > { %v10203_v41 = vmul.f32 0.015625, %v10199_v52  ;;  %v19599_v52 = vld [vmem:[%s29989_s21 + $0x160] sm:$0xff] }
0x1539   : > { %v28504_v44 = vsub.f32 %v10196_v22, %v10204_v53  ;;  %v19597_v22 = vld [vmem:[%s29989_s21 + $0x150] sm:$0xff] }
0x153a   : > { %v28506_v26 = vsub.f32 %v10195_v0, %v10203_v41  ;;  %v19598_v0 = vld [vmem:[%s29989_s21 + $0x158] sm:$0xff] }
0x153b   : > { %v10208_v38 = vmul.f32 %v28504_v44, %v28504_v44  ;;  %v25434_v41 = vpack.c.bf16 %v19598_v0, %v19597_v22  ;;  %v19656_v22 = vld [vmem:[%s26801_s29 + $0x128] sm:$0xff] }
0x153c   : > { %v10207_v39 = vmul.f32 %v28506_v26, %v28506_v26 }
0x153d   : > { %v10212_v48 = vsel %vm1943_vm0, %v10208_v38, 0.0  ;;  %v19623_v38 = vld [vmem:[%s26796_s25 + $0x120] sm:$0xff] }
0x153e   : > { %10213 = vadd.xlane.f32.xlu1 %v10212_v48  ;;  %v10209_v49 = vsel %vm1943_vm0, %v10207_v39, 0.0  ;;  %v19624_v39 = vld [vmem:[%s26796_s25 + $0x128] sm:$0xff] }
0x153f   : > { %10210 = vadd.xlane.f32.xlu0 %v10209_v49  ;;  %v25486_v49 = vpack.c.bf16 %v19624_v39, %v19623_v38  ;;  %v19643_v39 = vld [vmem:[%s26796_s25 + $0x1c0] sm:$0xff] }
0x156b   : > { %v28534_v3 = vpop.f32.mrb[106].mxu0 }
0x156c   : > { %v23081_v10 = vpop.f32.mrb[107].mxu0 }
0x156d   : > { %v19627_v10 = vld [vmem:[%s26796_s25 + $0x140] sm:$0xff] }
0x15cb   : > { %v10214_v16 = vpop.xlane.xlu1 %10213 }
0x15cc   : > { %v10216_v17 = vmul.f32 0.015625, %v10214_v16  ;;  %v10211_v19 = vpop.xlane.xlu0 %10210  ;;  %v19628_v16 = vld [vmem:[%s26796_s25 + $0x148] sm:$0xff] }
0x15cd   : > { %v10215_v18 = vmul.f32 0.015625, %v10211_v19  ;;  %v19652_v19 = vld [vmem:[%s26801_s29 + $0x108] sm:$0xff] }
0x15ce   : > { %v10218_v59 = vadd.f32 1e-06, %v10216_v17  ;;  %v19651_v17 = vld [vmem:[%s26801_s29 + $0x100] sm:$0xff] }
0x15cf   : > { %v10217_v42 = vadd.f32 1e-06, %v10215_v18  ;;  %v25494_v18 = vpack.c.bf16 %v19628_v16, %v19627_v10  ;;  %v19665_v10 = vld [vmem:[%s26801_s29 + $0x170] sm:$0xff]  ;;  %v19666_v16 = vld [vmem:[%s26801_s29 + $0x178] sm:$0xff] }
0x15d0   : > { %26495 = vrsqrt.f32 %v10218_v59  ;;  %v25542_v59 = vpack.c.bf16 %v19652_v19, %v19651_v17  ;;  %v25570_v17 = vpack.c.bf16 %v19666_v16, %v19665_v10  ;;  %v19675_v19 = vld [vmem:[%s26801_s29 + $0x1c0] sm:$0xff] }
0x15d1   : > { %26497 = vrsqrt.f32 %v10217_v42  ;;  %v19629_v42 = vld [vmem:[%s26796_s25 + $0x150] sm:$0xff] }
0x15da   : > { %v26496_v60 = vpop.eup %26495 }
0x15db   : > { %v26498_v62 = vpop.eup %26497  ;;  %v10222_v63 = vmul.f32 %v26496_v60, %v28504_v44  ;;  %v25482_v44 = vpack.c.bf16 %v19622_v27, %v19621_v25  ;;  %v19630_v60 = vld [vmem:[%s26796_s25 + $0x158] sm:$0xff]  ;;  %v19633_v27 = vld [vmem:[%s26796_s25 + $0x170] sm:$0xff] }
0x15dc   : > { %v10221_v37 = vmul.f32 %v26498_v62, %v28506_v26  ;;  %v19600_v26 = vld [vmem:[%s29989_s21 + $0x168] sm:$0xff]  ;;  %v19654_v62 = vld [vmem:[%s26801_s29 + $0x118] sm:$0xff]  ;;  %s30040_s21 = smov %s30039_s7 }
0x15dd   : > { %v10230_v11 = vmul.f32 %v19580_v61, %v10222_v63  ;;  %v25438_v48 = vpack.c.bf16 %v19600_v26, %v19599_v52  ;;  %v25498_v63 = vpack.c.bf16 %v19630_v60, %v19629_v42  ;;  %v19634_v52 = vld [vmem:[%s26796_s25 + $0x178] sm:$0xff]  ;;  %v19677_v42 = vld [vmem:[%s26801_s29 + $0x1d0] sm:$0xff] }
0x15de   : > { %v10229_v21 = vmul.f32 %v19580_v61, %v10221_v37  ;;  %v19653_v61 = vld [vmem:[%s26801_s29 + $0x110] sm:$0xff]  ;;  %v19631_v37 = vld [vmem:[%s26796_s25 + $0x160] sm:$0xff]  ;;  %v25506_v26 = vpack.c.bf16 %v19634_v52, %v19633_v27  ;;  %v19678_v60 = vld [vmem:[%s26801_s29 + $0x1d8] sm:$0xff] }
0x15df   : > { %v28546_v53 = vadd.f32 %v19581_v1, %v10230_v11  ;;  %v25546_v11 = vpack.c.bf16 %v19654_v62, %v19653_v61  ;;  %v25594_v61 = vpack.c.bf16 %v19678_v60, %v19677_v42  ;;  %v19679_v62 = vld [vmem:[%s26801_s29 + $0x1e0] sm:$0xff] }
0x15e0   : > { %v28544_v24 = vadd.f32 %v19581_v1, %v10229_v21  ;;  %v19632_v1 = vld [vmem:[%s26796_s25 + $0x168] sm:$0xff]  ;;  %v19655_v21 = vld [vmem:[%s26801_s29 + $0x120] sm:$0xff] }
0x15e1   : > { %v25502_v0 = vpack.c.bf16 %v19632_v1, %v19631_v37  ;;  %v25550_v25 = vpack.c.bf16 %v19656_v22, %v19655_v21  ;;  %v19681_v1 = vld [vmem:[%s26801_s29 + $0x1f0] sm:$0xff] }
0x15e2   : > { %23098 = vmatprep.mubr.msk.f32.mxu1 %vm1943_vm0, %v28544_v24  ;;  %23136 = vmatprep.mubr.msk.f32.mxu0 %vm1943_vm0, %v28544_v24 }
0x15e3   : > { %23099 = vmatmul.mubr.msk.f32.vlgmr.msra.gmra.mrb[108].mxu1 %vm1943_vm0, %v28546_v53  ;;  %23137 = vmatmul.mubr.msk.f32.vlgmr.msra.gmra.mrb[108].mxu0 %vm1943_vm0, %v28546_v53 }
0x15e4   : > { %25433 = vmatpush3.bf16.msra.mxu1 %v25430_v33  ;;  %25481 = vmatpush3.bf16.msra.mxu0 %v25478_v15  ;;  %v19642_v33 = vld [vmem:[%s26796_s25 + $0x1b8] sm:$0xff] }
0x15e5   : > { %23117 = vmatprep.mubr.msk.f32.mxu1 %vm1943_vm0, %v28544_v24  ;;  %23174 = vmatprep.mubr.msk.f32.mxu0 %vm1943_vm0, %v28544_v24  ;;  %v25522_v15 = vpack.c.bf16 %v19642_v33, %v19641_v14  ;;  %v25562_v14 = vpack.c.bf16 %v19662_v13, %v19661_v9  ;;  %v19663_v33 = vld [vmem:[%s26801_s29 + $0x160] sm:$0xff] }
0x15e6   : > { %25435 = vmatprep.subr.bf16.mxu1 %v25434_v41  ;;  %25483 = vmatprep.subr.bf16.mxu0 %v25482_v44 }
0x15e8   : > { %25437 = vmatpush3.bf16.msra.mxu1 %v25434_v41  ;;  %25485 = vmatpush3.bf16.msra.mxu0 %v25482_v44  ;;  %v19657_v41 = vld [vmem:[%s26801_s29 + $0x130] sm:$0xff]  ;;  %v19658_v44 = vld [vmem:[%s26801_s29 + $0x138] sm:$0xff] }
0x15e9   : > { %25439 = vmatprep.subr.bf16.mxu1 %v25438_v48  ;;  %25487 = vmatprep.subr.bf16.mxu0 %v25486_v49  ;;  %v25554_v38 = vpack.c.bf16 %v19658_v44, %v19657_v41 }
0x15ec   : > { %25441 = vmatpush3.bf16.msra.mxu1 %v25438_v48  ;;  %25489 = vmatpush3.bf16.msra.mxu0 %v25486_v49  ;;  %v19644_v48 = vld [vmem:[%s26796_s25 + $0x1c8] sm:$0xff]  ;;  %v19667_v49 = vld [vmem:[%s26801_s29 + $0x180] sm:$0xff] }
0x15ed   : > { %25443 = vmatprep.subr.bf16.mxu1 %v25442_v30  ;;  %25491 = vmatprep.subr.bf16.mxu0 %v25490_v46  ;;  %v25526_v45 = vpack.c.bf16 %v19644_v48, %v19643_v39  ;;  %v25574_v28 = vpack.c.bf16 %v19668_v55, %v19667_v49 }
0x15f0   : > { %25445 = vmatpush3.bf16.msra.mxu1 %v25442_v30  ;;  %25493 = vmatpush3.bf16.msra.mxu0 %v25490_v46  ;;  %v19646_v30 = vld [vmem:[%s26796_s25 + $0x1d8] sm:$0xff]  ;;  %v19669_v46 = vld [vmem:[%s26801_s29 + $0x190] sm:$0xff] }
0x15f1   : > { %25463 = vmatprep.subr.bf16.mxu1 %v25462_v50  ;;  %25511 = vmatprep.subr.bf16.mxu0 %v25510_v43  ;;  %v25530_v35 = vpack.c.bf16 %v19646_v30, %v19645_v29 }
0x15f3   : > { %23118 = vmatmul.mubr.msk.f32.vlgmr.msra.gmra.mrb[110].mxu1 %vm1943_vm0, %v28546_v53  ;;  %23175 = vmatmul.mubr.msk.f32.vlgmr.msra.gmra.mrb[110].mxu0 %vm1943_vm0, %v28546_v53 }
0x15f4   : > { %25465 = vmatpush3.bf16.msra.mxu1 %v25462_v50  ;;  %23155 = vmatprep.mubr.msk.f32.mxu1 %vm1943_vm0, %v28544_v24  ;;  %v25578_v50 = vpack.c.bf16 %v19670_v34, %v19669_v46 }
0x15f5   : > { %25513 = vmatpush3.bf16.msra.mxu0 %v25510_v43  ;;  %23212 = vmatprep.mubr.msk.f32.mxu0 %vm1943_vm0, %v28544_v24  ;;  %v19671_v43 = vld [vmem:[%s26801_s29 + $0x1a0] sm:$0xff] }
0x15f6   : > { %25467 = vmatprep.subr.bf16.mxu1 %v25466_v57  ;;  %25515 = vmatprep.subr.bf16.mxu0 %v25514_v56  ;;  %v25582_v51 = vpack.c.bf16 %v19672_v47, %v19671_v43 }
0x15f8   : > { %25469 = vmatpush3.bf16.msra.mxu1 %v25466_v57  ;;  %v19650_v57 = vld [vmem:[%s26796_s25 + $0x1f8] sm:$0xff] }
0x15f9   : > { %25517 = vmatpush3.bf16.msra.mxu0 %v25514_v56  ;;  %25471 = vmatprep.subr.bf16.mxu1 %v25470_v6  ;;  %v19673_v56 = vld [vmem:[%s26801_s29 + $0x1b0] sm:$0xff]  ;;  %v25538_v58 = vpack.c.bf16 %v19650_v57, %v19649_v32 }
0x15fa   : > { %25519 = vmatprep.subr.bf16.mxu0 %v25518_v8  ;;  %v25586_v2 = vpack.c.bf16 %v19674_v40, %v19673_v56 }
0x15fc   : > { %25473 = vmatpush3.bf16.msra.mxu1 %v25470_v6  ;;  %v19660_v6 = vld [vmem:[%s26801_s29 + $0x148] sm:$0xff] }
0x15fd   : > { %25521 = vmatpush3.bf16.msra.mxu0 %v25518_v8  ;;  %25475 = vmatprep.subr.bf16.mxu1 %v25474_v4  ;;  %v25558_v8 = vpack.c.bf16 %v19660_v6, %v19659_v5 }
0x15fe   : > { %25523 = vmatprep.subr.bf16.mxu0 %v25522_v15 }
0x1600   : > { %25477 = vmatpush3.bf16.msra.mxu1 %v25474_v4  ;;  %v19664_v4 = vld [vmem:[%s26801_s29 + $0x168] sm:$0xff] }
0x1601   : > { %25525 = vmatpush3.bf16.msra.mxu0 %v25522_v15  ;;  %25495 = vmatprep.subr.bf16.mxu1 %v25494_v18  ;;  %v25566_v15 = vpack.c.bf16 %v19664_v4, %v19663_v33 }
0x1602   : > { %25543 = vmatprep.subr.bf16.mxu0 %v25542_v59 }
0x1603   : > { %23156 = vmatmul.mubr.msk.f32.vlgmr.msra.gmra.mrb[112].mxu1 %vm1943_vm0, %v28546_v53 }
0x1604   : > { %23213 = vmatmul.mubr.msk.f32.vlgmr.msra.gmra.mrb[112].mxu0 %vm1943_vm0, %v28546_v53  ;;  %25497 = vmatpush3.bf16.msra.mxu1 %v25494_v18  ;;  %v19676_v18 = vld [vmem:[%s26801_s29 + $0x1c8] sm:$0xff] }
0x1605   : > { %23193 = vmatprep.mubr.msk.f32.mxu1 %vm1943_vm0, %v28544_v24  ;;  %25545 = vmatpush3.bf16.msra.mxu0 %v25542_v59  ;;  %v25590_v59 = vpack.c.bf16 %v19676_v18, %v19675_v19 }
0x1606   : > { %23250 = vmatprep.mubr.msk.f32.mxu0 %vm1943_vm0, %v28544_v24  ;;  %25499 = vmatprep.subr.bf16.mxu1 %v25498_v63 }
0x1607   : > { %25547 = vmatprep.subr.bf16.mxu0 %v25546_v11 }
0x1608   : > { %25501 = vmatpush3.bf16.msra.mxu1 %v25498_v63  ;;  %v19680_v63 = vld [vmem:[%s26801_s29 + $0x1e8] sm:$0xff] }
0x1609   : > { %25549 = vmatpush3.bf16.msra.mxu0 %v25546_v11  ;;  %25503 = vmatprep.subr.bf16.mxu1 %v25502_v0  ;;  %v25598_v37 = vpack.c.bf16 %v19680_v63, %v19679_v62  ;;  %v19682_v11 = vld [vmem:[%s26801_s29 + $0x1f8] sm:$0xff] }
0x160a   : > { %25551 = vmatprep.subr.bf16.mxu0 %v25550_v25  ;;  %v25602_v21 = vpack.c.bf16 %v19682_v11, %v19681_v1 }
0x160c   : > { %25505 = vmatpush3.bf16.msra.mxu1 %v25502_v0 }
0x160d   : > { %25553 = vmatpush3.bf16.msra.mxu0 %v25550_v25  ;;  %25507 = vmatprep.subr.bf16.mxu1 %v25506_v26 }
0x160e   : > { %25555 = vmatprep.subr.bf16.mxu0 %v25554_v38 }
0x1610   : > { %25509 = vmatpush3.bf16.msra.mxu1 %v25506_v26 }
0x1611   : > { %25557 = vmatpush3.bf16.msra.mxu0 %v25554_v38  ;;  %25527 = vmatprep.subr.bf16.mxu1 %v25526_v45 }
0x1612   : > { %25575 = vmatprep.subr.bf16.mxu0 %v25574_v28 }
0x1613   : > { %23194 = vmatmul.mubr.msk.f32.vlgmr.msra.gmra.mrb[114].mxu1 %vm1943_vm0, %v28546_v53 }
0x1614   : > { %23251 = vmatmul.mubr.msk.f32.vlgmr.msra.gmra.mrb[114].mxu0 %vm1943_vm0, %v28546_v53  ;;  %25529 = vmatpush3.bf16.msra.mxu1 %v25526_v45 }
0x1615   : > { %23231 = vmatprep.mubr.msk.f32.mxu1 %vm1943_vm0, %v28544_v24  ;;  %25577 = vmatpush3.bf16.msra.mxu0 %v25574_v28 }
0x1616   : > { %23288 = vmatprep.mubr.msk.f32.mxu0 %vm1943_vm0, %v28544_v24  ;;  %25531 = vmatprep.subr.bf16.mxu1 %v25530_v35 }
0x1617   : > { %25579 = vmatprep.subr.bf16.mxu0 %v25578_v50 }
0x1618   : > { %25533 = vmatpush3.bf16.msra.mxu1 %v25530_v35 }
0x1619   : > { %25581 = vmatpush3.bf16.msra.mxu0 %v25578_v50  ;;  %25535 = vmatprep.subr.bf16.mxu1 %v25534_v23 }
0x161a   : > { %25583 = vmatprep.subr.bf16.mxu0 %v25582_v51 }
0x161c   : > { %25537 = vmatpush3.bf16.msra.mxu1 %v25534_v23 }
0x161d   : > { %25585 = vmatpush3.bf16.msra.mxu0 %v25582_v51  ;;  %25539 = vmatprep.subr.bf16.mxu1 %v25538_v58 }
0x161e   : > { %25587 = vmatprep.subr.bf16.mxu0 %v25586_v2 }
0x1620   : > { %25541 = vmatpush3.bf16.msra.mxu1 %v25538_v58 }
0x1621   : > { %25589 = vmatpush3.bf16.msra.mxu0 %v25586_v2  ;;  %25559 = vmatprep.subr.bf16.mxu1 %v25558_v8 }
0x1623   : > { %23232 = vmatmul.mubr.msk.f32.vlgmr.msra.gmra.mrb[116].mxu1 %vm1943_vm0, %v28546_v53 }
0x1624   : > { %23289 = vmatmul.mubr.msk.f32.vlgmr.msra.gmra.mrb[116].mxu0 %vm1943_vm0, %v28546_v53  ;;  %25561 = vmatpush3.bf16.msra.mxu1 %v25558_v8 }
0x1625   : > { %23269 = vmatprep.mubr.msk.f32.mxu1 %vm1943_vm0, %v28544_v24  ;;  %25563 = vmatprep.subr.bf16.mxu1 %v25562_v14 }
0x1628   : > { %25565 = vmatpush3.bf16.msra.mxu1 %v25562_v14 }
0x1629   : > { %25567 = vmatprep.subr.bf16.mxu1 %v25566_v15 }
0x162c   : > { %25569 = vmatpush3.bf16.msra.mxu1 %v25566_v15 }
0x162d   : > { %25571 = vmatprep.subr.bf16.mxu1 %v25570_v17 }
0x1630   : > { %25573 = vmatpush3.bf16.msra.mxu1 %v25570_v17 }
0x1631   : > { %25591 = vmatprep.subr.bf16.mxu1 %v25590_v59 }
0x1633   : > { %23270 = vmatmul.mubr.msk.f32.vlgmr.msra.gmra.mrb[118].mxu1 %vm1943_vm0, %v28546_v53 }
0x1634   : > { %25593 = vmatpush3.bf16.msra.mxu1 %v25590_v59  ;;  %23307 = vmatprep.mubr.msk.f32.mxu1 %vm1943_vm0, %v28544_v24 }
0x1635   : > { %25595 = vmatprep.subr.bf16.mxu1 %v25594_v61 }
0x1638   : > { %25597 = vmatpush3.bf16.msra.mxu1 %v25594_v61 }
0x1639   : > { %25599 = vmatprep.subr.bf16.mxu1 %v25598_v37 }
0x163c   : > { %25601 = vmatpush3.bf16.msra.mxu1 %v25598_v37 }
0x163d   : > { %25603 = vmatprep.subr.bf16.mxu1 %v25602_v21 }
0x1640   : > { %25605 = vmatpush3.bf16.msra.mxu1 %v25602_v21 }
0x1643   : > { %23308 = vmatmul.mubr.msk.f32.vlgmr.msra.gmra.mrb[120].mxu1 %vm1943_vm0, %v28546_v53 }
0x16b6   : > { %v23100_v22 = vpop.f32.mrb[108].mxu1  ;;  %v23138_v0 = vpop.f32.mrb[108].mxu0 }
0x16b7   : > { %v10635_v25 = vpop.f32.mrb[109].mxu1  ;;  %v10785_v27 = vpop.f32.mrb[109].mxu0 }
0x16b8   : > { %23314 = vmatprep.mubr.msk.f32.mxu0 %vm2850_vm1, %v10635_v25 }
0x16c6   : > { %v23119_v52 = vpop.f32.mrb[110].mxu1  ;;  %v23176_v41 = vpop.f32.mrb[110].mxu0 }
0x16c7   : > { %v10710_v44 = vpop.f32.mrb[111].mxu1  ;;  %v10935_v26 = vpop.f32.mrb[111].mxu0 }
0x16c8   : > { %v25606_v38 = vpack.c.bf16 %v23176_v41, %v10935_v26  ;;  %23321 = vmatprep.mubr.msk.f32.mxu1 %vm2850_vm1, %v10710_v44 }
0x16ca   : > { %25608 = vmatprep.subr.msk.bf16.mxu0 %vm27349_vm2, %v25606_v38 }
0x16cb   : > { %25611 = vmatpush3.bf16.xpose.msk.msra.mxu0 %vm27349_vm2, %v25606_v38 }
0x16d2   : > { %23315 = vmatmul.mubr.msk.f32.vlgmr.msra.gmra.mrb[118].mxu0 %vm2850_vm1, %v23100_v22 }
0x16d3   : > { %23328 = vmatprep.mubr.msk.f32.mxu0 %vm2850_vm1, %v10785_v27 }
0x16d6   : > { %v23157_v39 = vpop.f32.mrb[112].mxu1 }
0x16d7   : > { %v23214_v48 = vpop.f32.mrb[112].mxu0  ;;  %v10860_v49 = vpop.f32.mrb[113].mxu1 }
0x16d8   : > { %v11085_v55 = vpop.f32.mrb[113].mxu0 }
0x16d9   : > { %v25618_v45 = vpack.c.bf16 %v23214_v48, %v11085_v55 }
0x16db   : > { %25620 = vmatprep.subr.msk.bf16.mxu0 %vm27349_vm2, %v25618_v45 }
0x16dc   : > { %25623 = vmatpush3.bf16.xpose.msk.msra.mxu0 %vm27349_vm2, %v25618_v45 }
0x16e3   : > { %23329 = vmatmul.mubr.msk.f32.vlgmr.msra.gmra.mrb[120].mxu0 %vm2850_vm1, %v23138_v0 }
0x16e6   : > { %v23195_v28 = vpop.f32.mrb[114].mxu1 }
0x16e7   : > { %v23252_v29 = vpop.f32.mrb[114].mxu0  ;;  %v11010_v30 = vpop.f32.mrb[115].mxu1 }
0x16e8   : > { %v25612_v46 = vpack.c.bf16 %v23195_v28, %v11010_v30  ;;  %v11235_v34 = vpop.f32.mrb[115].mxu0 }
0x16e9   : > { %v25630_v35 = vpack.c.bf16 %v23252_v29, %v11235_v34 }
0x16ea   : > { %25614 = vmatprep.subr.msk.bf16.mxu1 %vm27349_vm2, %v25612_v46 }
0x16eb   : > { %25631 = vmatprep.subr.bf16.mxu0 %v25630_v35  ;;  %25617 = vmatpush3.bf16.xpose.msk.msra.mxu1 %vm27349_vm2, %v25612_v46 }
0x16ec   : > { %25633 = vmatpush3.bf16.msra.mxu0 %v25630_v35 }
0x16f2   : > { %23322 = vmatmul.mubr.msk.f32.vlgmr.msra.gmra.mrb[122].mxu1 %vm2850_vm1, %v23119_v52 }
0x16f3   : > { %23335 = vmatprep.mubr.msk.f32.mxu1 %vm2850_vm1, %v10860_v49 }
0x16f6   : > { %v23233_v54 = vpop.f32.mrb[116].mxu1 }
0x16f7   : > { %v23290_v36 = vpop.f32.mrb[116].mxu0  ;;  %v11160_v50 = vpop.f32.mrb[117].mxu1 }
0x16f8   : > { %v25624_v43 = vpack.c.bf16 %v23233_v54, %v11160_v50  ;;  %v11385_v47 = vpop.f32.mrb[117].mxu0 }
0x16f9   : > { %v28687_v23 = vpack.c.bf16 %v23290_v36, %v11385_v47 }
0x16fa   : > { %25626 = vmatprep.subr.msk.bf16.mxu1 %vm27349_vm2, %v25624_v43 }
0x16fb   : > { %25639 = vmatprep.subr.bf16.mxu0 %v28687_v23  ;;  %25629 = vmatpush3.bf16.xpose.msk.msra.mxu1 %vm27349_vm2, %v25624_v43 }
0x1702   : > { %23336 = vmatmul.mubr.msk.f32.vlgmr.msra.gmra.mrb[124].mxu1 %vm2850_vm1, %v23157_v39 }
0x1706   : > { %v23271_v51 = vpop.f32.mrb[118].mxu1 }
0x1707   : > { %v11310_v32 = vpop.f32.mrb[119].mxu1 }
0x1708   : > { %v25634_v57 = vpack.c.bf16 %v23271_v51, %v11310_v32 }
0x170a   : > { %25635 = vmatprep.subr.bf16.mxu1 %v25634_v57 }
0x170b   : > { %25637 = vmatpush3.bf16.msra.mxu1 %v25634_v57  ;;  %v19584_v57 = vld [vmem:[%s30039_s7] ss:$0 sm:$0xff]  ;;  %s30048_s7 = sld [smem:[#allocation28_spill]] }
0x1716   : > { %v23309_v56 = vpop.f32.mrb[120].mxu1 }
0x1717   : > { %v11460_v40 = vpop.f32.mrb[121].mxu1 }
0x1718   : > { %v28695_v58 = vpack.c.bf16 %v23309_v56, %v11460_v40  ;;  %v10420_v56 = vadd.f32 %v19584_v57, %v28534_v3  ;;  %v19761_v57 = vld [vmem:[%s26821_s19 + $0x110] sm:$0xff] }
0x171a   : > { %25643 = vmatprep.subr.bf16.mxu1 %v28695_v58 }
0x17a5   : > { %v23316_v2 = vpop.f32.mrb[118].mxu0 }
0x17a6   : > { %v11547_v5 = vpop.f32.mrb[119].mxu0  ;;  %v11820_v6 = vsel %vm2850_vm1, %v23316_v2, -inf }
0x17a7   : > { %11821 = vmax.xlane.f32.xlu1 %v11820_v6  ;;  %v11817_v8 = vsel %vm2850_vm1, %v11547_v5, -inf }
0x17a8   : > { %11818 = vmax.xlane.f32.xlu0 %v11817_v8  ;;  %v10423_v8 = vadd.f32 %v10420_v56, %v28470_v31  ;;  %v19762_v56 = vld [vmem:[%s26821_s19 + $0x118] sm:$0xff] }
0x17b6   : > { %v23330_v9 = vpop.f32.mrb[120].mxu0 }
0x17b7   : > { %v11721_v13 = vpop.f32.mrb[121].mxu0  ;;  %v11832_v14 = vsel %vm2850_vm1, %v23330_v9, -inf }
0x17b8   : > { %11833 = vmax.xlane.f32.xlu1 %v11832_v14  ;;  %v11829_v33 = vsel %vm2850_vm1, %v11721_v13, -inf }
0x17b9   : > { %11830 = vmax.xlane.f32.xlu0 %v11829_v33 }
0x17c5   : > { %v23323_v4 = vpop.f32.mrb[122].mxu1 }
0x17c6   : > { %v11634_v15 = vpop.f32.mrb[123].mxu1  ;;  %v11826_v10 = vsel %vm2850_vm1, %v23323_v4, -inf }
0x17c7   : > { %11827 = vmax.xlane.f32.xlu1 %v11826_v10  ;;  %v11823_v16 = vsel %vm2850_vm1, %v11634_v15, -inf }
0x17c8   : > { %11824 = vmax.xlane.f32.xlu0 %v11823_v16 }
0x17d5   : > { %v23337_v17 = vpop.f32.mrb[124].mxu1 }
0x17d6   : > { %v11808_v19 = vpop.f32.mrb[125].mxu1  ;;  %v11838_v18 = vsel %vm2850_vm1, %v23337_v17, -inf }
0x17d7   : > { %11839 = vmax.xlane.f32.xlu1 %v11838_v18  ;;  %v11835_v59 = vsel %vm2850_vm1, %v11808_v19, -inf }
0x17d8   : > { %11836 = vmax.xlane.f32.xlu0 %v11835_v59 }
0x1834   : > { %v11822_v42 = vpop.xlane.xlu1 %11821 }
0x1835   : > { %v11842_v60 = vsub.f32 %v23316_v2, %v11822_v42  ;;  %v11819_v61 = vpop.xlane.xlu0 %11818 }
0x1836   : > { %v11841_v62 = vsub.f32 %v11547_v5, %v11819_v61 }
0x1837   : > { %v11851_v63 = vmul.f32 1.442695, %v11842_v60 }
0x1838   : > { %v11849_v37 = vmul.f32 1.442695, %v11841_v62 }
0x1839   : > { %26499 = vpow2.f32 %v11851_v63 }
0x183a   : > { %26501 = vpow2.f32 %v11849_v37 }
0x1843   : > { %v26500_v1 = vpop.eup %26499 }
0x1844   : > { %v26502_v11 = vpop.eup %26501  ;;  %v11868_v21 = vsel %vm2850_vm1, %v26500_v1, 0.0 }
0x1845   : > { %v11834_v22 = vpop.xlane.xlu1 %11833  ;;  %11869 = vadd.xlane.f32.xlu1 %v11868_v21  ;;  %v11865_v0 = vsel %vm2850_vm1, %v26502_v11, 0.0 }
0x1846   : > { %v11846_v25 = vsub.f32 %v23330_v9, %v11834_v22  ;;  %v11831_v27 = vpop.xlane.xlu0 %11830  ;;  %11866 = vadd.xlane.f32.xlu0 %v11865_v0  ;;  %v10424_v9 = vsel %vm1943_vm0, %v10423_v8, 0.0 }
0x1847   : > { %v11845_v52 = vsub.f32 %v11721_v13, %v11831_v27 }
0x1848   : > { %v11859_v41 = vmul.f32 1.442695, %v11846_v25 }
0x1849   : > { %v11857_v44 = vmul.f32 1.442695, %v11845_v52 }
0x184a   : > { %26503 = vpow2.f32 %v11859_v41 }
0x184b   : > { %26505 = vpow2.f32 %v11857_v44  ;;  %v19684_v44 = vld [vmem:[%s29988_s3 + $0x48] sm:$0xff] }
0x1854   : > { %v26504_v26 = vpop.eup %26503  ;;  %v11828_v38 = vpop.xlane.xlu1 %11827 }
0x1855   : > { %v26506_v39 = vpop.eup %26505  ;;  %v11844_v48 = vsub.f32 %v23323_v4, %v11828_v38  ;;  %v11825_v49 = vpop.xlane.xlu0 %11824  ;;  %v11880_v55 = vsel %vm2850_vm1, %v26504_v26, 0.0  ;;  %v19687_v38 = vld [vmem:[%s29988_s3 + $0x60] sm:$0xff] }
0x1856   : > { %v11843_v45 = vsub.f32 %v11634_v15, %v11825_v49  ;;  %11881 = vadd.xlane.f32.xlu1 %v11880_v55  ;;  %v11877_v28 = vsel %vm2850_vm1, %v26506_v39, 0.0  ;;  %v19685_v49 = vld [vmem:[%s29988_s3 + $0x50] sm:$0xff]  ;;  %v19686_v55 = vld [vmem:[%s29988_s3 + $0x58] sm:$0xff] }
0x1857   : > { %v11855_v29 = vmul.f32 1.442695, %v11844_v48  ;;  %11878 = vadd.xlane.f32.xlu0 %v11877_v28  ;;  %v19689_v28 = vld [vmem:[%s29988_s3 + $0x70] sm:$0xff] }
0x1858   : > { %v11853_v30 = vmul.f32 1.442695, %v11843_v45  ;;  %v25650_v45 = vpack.c.bf16 %v19686_v55, %v19685_v49  ;;  %v19771_v49 = vld [vmem:[%s26821_s19 + $0x160] sm:$0xff]  ;;  %v19772_v55 = vld [vmem:[%s26821_s19 + $0x168] sm:$0xff] }
0x1859   : > { %26507 = vpow2.f32 %v11855_v29  ;;  %v19690_v29 = vld [vmem:[%s29988_s3 + $0x78] sm:$0xff] }
0x185a   : > { %26509 = vpow2.f32 %v11853_v30  ;;  %v25658_v30 = vpack.c.bf16 %v19690_v29, %v19689_v28  ;;  %v19796_v28 = vld [vmem:[%s26826_s24 + $0x128] sm:$0xff]  ;;  %v25681_v29 = vpack.c.bf16 %v19772_v55, %v19771_v49 }
0x1863   : > { %v26508_v46 = vpop.eup %26507 }
0x1864   : > { %v26510_v34 = vpop.eup %26509  ;;  %v11840_v35 = vpop.xlane.xlu1 %11839  ;;  %v11874_v54 = vsel %vm2850_vm1, %v26508_v46, 0.0 }
0x1865   : > { %v11848_v36 = vsub.f32 %v23337_v17, %v11840_v35  ;;  %11875 = vadd.xlane.f32.xlu1 %v11874_v54  ;;  %v11837_v50 = vpop.xlane.xlu0 %11836  ;;  %v11871_v43 = vsel %vm2850_vm1, %v26510_v34, 0.0 }
0x1866   : > { %v11847_v47 = vsub.f32 %v11808_v19, %v11837_v50  ;;  %11872 = vadd.xlane.f32.xlu0 %v11871_v43  ;;  %v19759_v50 = vld [vmem:[%s26821_s19 + $0x100] sm:$0xff]  ;;  %v19760_v43 = vld [vmem:[%s26821_s19 + $0x108] sm:$0xff] }
0x1867   : > { %v11863_v51 = vmul.f32 1.442695, %v11848_v36 }
0x1868   : > { %v11861_v32 = vmul.f32 1.442695, %v11847_v47 }
0x1869   : > { %26511 = vpow2.f32 %v11863_v51  ;;  %v25663_v51 = vpack.c.bf16 %v19760_v43, %v19759_v50  ;;  %v19783_v43 = vld [vmem:[%s26821_s19 + $0x1c0] sm:$0xff] }
0x186a   : > { %26513 = vpow2.f32 %v11861_v32 }
0x1873   : > { %v26512_v40 = vpop.eup %26511 }
0x1874   : > { %v26514_v2 = vpop.eup %26513  ;;  %v11886_v5 = vsel %vm2850_vm1, %v26512_v40, 0.0 }
0x1875   : > { %11887 = vadd.xlane.f32.xlu1 %v11886_v5  ;;  %v11883_v6 = vsel %vm2850_vm1, %v26514_v2, 0.0  ;;  %v19764_v5 = vld [vmem:[%s26821_s19 + $0x128] sm:$0xff] }
0x1876   : > { %11884 = vadd.xlane.f32.xlu0 %v11883_v6 }
0x187a   : > { %10425 = vadd.xlane.f32.xlu0 %v10424_v9 }
0x18d2   : > { %v11870_v13 = vpop.xlane.xlu1 %11869 }
0x18d3   : > { %26515 = vrcp.f32 %v11870_v13  ;;  %v11867_v14 = vpop.xlane.xlu0 %11866  ;;  %v19765_v13 = vld [vmem:[%s26821_s19 + $0x130] sm:$0xff] }
0x18d4   : > { %26517 = vrcp.f32 %v11867_v14  ;;  %v19766_v14 = vld [vmem:[%s26821_s19 + $0x138] sm:$0xff] }
0x18dd   : > { %v26516_v3 = vpop.eup %26515 }
0x18de   : > { %v26518_v33 = vpop.eup %26517  ;;  %v11892_v4 = vmul.f32 %v26516_v3, %v26500_v1 }
0x18df   : > { %v11890_v15 = vmul.f32 %v26518_v33, %v26502_v11  ;;  %v25672_v33 = vpack.c.bf16 %v19766_v14, %v19765_v13  ;;  %v19787_v13 = vld [vmem:[%s26821_s19 + $0x1e0] sm:$0xff]  ;;  %v19788_v14 = vld [vmem:[%s26821_s19 + $0x1e8] sm:$0xff] }
0x18e0   : > { %19742 = vst.msk [vmem:[%s27401_s16 + $0x48] sm:$0xff] %vm2850_vm1, %v11892_v4 }
0x18e1   : > { %23342 = vmatprep.mubr.msk.f32.mxu0 %vm2850_vm1, %v11890_v15  ;;  %19741 = vst.msk [vmem:[%s27401_s16 + $0x40] sm:$0xff] %vm2850_vm1, %v11890_v15  ;;  %v19775_v15 = vld [vmem:[%s26821_s19 + $0x180] sm:$0xff] }
0x18e2   : > { %23343 = vmatmul.mubr.msk.f32.vlgmr.msra.gmra.mrb[122].mxu0 %vm2850_vm1, %v11892_v4 }
0x18e3   : > { %v11882_v31 = vpop.xlane.xlu1 %11881  ;;  %25641 = vmatpush3.bf16.msra.mxu0 %v28687_v23 }
0x18e4   : > { %26519 = vrcp.f32 %v11882_v31  ;;  %v11879_v10 = vpop.xlane.xlu0 %11878  ;;  %v19776_v31 = vld [vmem:[%s26821_s19 + $0x188] sm:$0xff] }
0x18e5   : > { %26521 = vrcp.f32 %v11879_v10  ;;  %v19586_v10 = vld [vmem:[%s30042_s2] ss:$0 sm:$0xff] }
0x18ee   : > { %v26520_v16 = vpop.eup %26519 }
0x18ef   : > { %v26522_v17 = vpop.eup %26521  ;;  %v11900_v19 = vmul.f32 %v26520_v16, %v26504_v26 }
0x18f0   : > { %v11898_v18 = vmul.f32 %v26522_v17, %v26506_v39  ;;  %v19688_v39 = vld [vmem:[%s29988_s3 + $0x68] sm:$0xff] }
0x18f1   : > { %19746 = vst.msk [vmem:[%s27401_s16 + $0x68] sm:$0xff] %vm2850_vm1, %v11900_v19  ;;  %v25654_v48 = vpack.c.bf16 %v19688_v39, %v19687_v38  ;;  %v19794_v38 = vld [vmem:[%s26826_s24 + $0x118] sm:$0xff] }
0x18f2   : > { %23356 = vmatprep.mubr.msk.f32.mxu0 %vm2850_vm1, %v11898_v18  ;;  %19745 = vst.msk [vmem:[%s27401_s16 + $0x60] sm:$0xff] %vm2850_vm1, %v11898_v18  ;;  %v11876_v59 = vpop.xlane.xlu1 %11875 }
0x18f3   : > { %26523 = vrcp.f32 %v11876_v59  ;;  %23357 = vmatmul.mubr.msk.f32.vlgmr.msra.gmra.mrb[124].mxu0 %vm2850_vm1, %v11900_v19  ;;  %v11873_v23 = vpop.xlane.xlu0 %11872  ;;  %v25687_v19 = vpack.c.bf16 %v19776_v31, %v19775_v15  ;;  %v19777_v59 = vld [vmem:[%s26821_s19 + $0x190] sm:$0xff] }
0x18f4   : > { %26525 = vrcp.f32 %v11873_v23  ;;  %v19778_v23 = vld [vmem:[%s26821_s19 + $0x198] sm:$0xff]  ;;  %v19789_v31 = vld [vmem:[%s26821_s19 + $0x1f0] sm:$0xff] }
0x18fd   : > { %v26524_v42 = vpop.eup %26523 }
0x18fe   : > { %v26526_v60 = vpop.eup %26525  ;;  %v11896_v61 = vmul.f32 %v26524_v42, %v26508_v46  ;;  %v25690_v42 = vpack.c.bf16 %v19778_v23, %v19777_v59  ;;  %v19799_v23 = vld [vmem:[%s26826_s24 + $0x140] sm:$0xff] }
0x18ff   : > { %v11894_v62 = vmul.f32 %v26526_v60, %v26510_v34  ;;  %v19779_v60 = vld [vmem:[%s26821_s19 + $0x1a0] sm:$0xff] }
0x1900   : > { %19744 = vst.msk [vmem:[%s27401_s16 + $0x58] sm:$0xff] %vm2850_vm1, %v11896_v61 }
0x1901   : > { %23349 = vmatprep.mubr.msk.f32.mxu1 %vm2850_vm1, %v11894_v62  ;;  %19743 = vst.msk [vmem:[%s27401_s16 + $0x50] sm:$0xff] %vm2850_vm1, %v11894_v62 }
0x1902   : > { %v11888_v63 = vpop.xlane.xlu1 %11887  ;;  %23350 = vmatmul.mubr.msk.f32.vlgmr.msra.gmra.mrb[126].mxu1 %vm2850_vm1, %v11896_v61  ;;  %v19780_v61 = vld [vmem:[%s26821_s19 + $0x1a8] sm:$0xff] }
0x1903   : > { %26527 = vrcp.f32 %v11888_v63  ;;  %25645 = vmatpush3.bf16.msra.mxu1 %v28695_v58  ;;  %v11885_v37 = vpop.xlane.xlu0 %11884  ;;  %v19683_v58 = vld [vmem:[%s29988_s3 + $0x40] sm:$0xff]  ;;  %s30043_s3 = smov %s30042_s2  ;;  %v25693_v62 = vpack.c.bf16 %v19780_v61, %v19779_v60  ;;  %v19781_v63 = vld [vmem:[%s26821_s19 + $0x1b0] sm:$0xff]  ;;  %v19824_v61 = vld [vmem:[%s26831_s30 + $0x108] sm:$0xff]  ;;  %s30049_s2 = sld [smem:[#allocation29_spill]] }
0x1904   : > { %26529 = vrcp.f32 %v11885_v37  ;;  %v25646_v26 = vpack.c.bf16 %v19684_v44, %v19683_v58  ;;  %25651 = vmatprep.subr.bf16.mxu1 %v25650_v45  ;;  %v19782_v37 = vld [vmem:[%s26821_s19 + $0x1b8] sm:$0xff]  ;;  %v19769_v58 = vld [vmem:[%s26821_s19 + $0x150] sm:$0xff]  ;;  %v19823_v60 = vld [vmem:[%s26831_s30 + $0x100] sm:$0xff] }
0x1905   : > { %v19770_v44 = vld [vmem:[%s26821_s19 + $0x158] sm:$0xff] }
0x1906   : > { %25647 = vmatprep.subr.bf16.mxu0 %v25646_v26  ;;  %v25678_v39 = vpack.c.bf16 %v19770_v44, %v19769_v58 }
0x1907   : > { %v10426_v1 = vpop.xlane.xlu0 %10425  ;;  %25649 = vmatpush3.bf16.msra.mxu0 %v25646_v26  ;;  %v19793_v26 = vld [vmem:[%s26826_s24 + $0x110] sm:$0xff] }
0x1908   : > { %v10427_v11 = vmul.f32 0.015625, %v10426_v1  ;;  %25655 = vmatprep.subr.bf16.mxu0 %v25654_v48  ;;  %v25696_v1 = vpack.c.bf16 %v19782_v37, %v19781_v63  ;;  %v25759_v63 = vpack.c.bf16 %v19824_v61, %v19823_v60  ;;  %v19801_v37 = vld [vmem:[%s26826_s24 + $0x150] sm:$0xff]  ;;  %v19847_v60 = vld [vmem:[%s26831_s30 + $0x1c0] sm:$0xff]  ;;  %v19848_v61 = vld [vmem:[%s26831_s30 + $0x1c8] sm:$0xff] }
0x190a   : > { %v10428_v21 = vsub.f32 %v10423_v8, %v10427_v11  ;;  %v19767_v11 = vld [vmem:[%s26821_s19 + $0x140] sm:$0xff] }
0x190c   : > { %v10429_v22 = vmul.f32 %v10428_v21, %v10428_v21 }
0x190d   : > { %v26528_v0 = vpop.eup %26527 }
0x190e   : > { %v26530_v25 = vpop.eup %26529  ;;  %v11904_v27 = vmul.f32 %v26528_v0, %v26512_v40  ;;  %v10430_v52 = vsel %vm1943_vm0, %v10429_v22, 0.0  ;;  %v25666_v40 = vpack.c.bf16 %v19762_v56, %v19761_v57  ;;  %v19791_v22 = vld [vmem:[%s26826_s24 + $0x100] sm:$0xff]  ;;  %v19792_v0 = vld [vmem:[%s26826_s24 + $0x108] sm:$0xff] }
0x190f   : > { %10431 = vadd.xlane.f32.xlu1 %v10430_v52  ;;  %v11902_v41 = vmul.f32 %v26530_v25, %v26514_v2  ;;  %v19763_v2 = vld [vmem:[%s26821_s19 + $0x120] sm:$0xff] }
0x1910   : > { %19748 = vst.msk [vmem:[%s27401_s16 + $0x78] sm:$0xff] %vm2850_vm1, %v11904_v27  ;;  %v25669_v8 = vpack.c.bf16 %v19764_v5, %v19763_v2  ;;  %v19786_v2 = vld [vmem:[%s26821_s19 + $0x1d8] sm:$0xff]  ;;  %v19809_v5 = vld [vmem:[%s26826_s24 + $0x190] sm:$0xff] }
0x1911   : > { %23363 = vmatprep.mubr.msk.f32.mxu1 %vm2850_vm1, %v11902_v41  ;;  %19747 = vst.msk [vmem:[%s27401_s16 + $0x70] sm:$0xff] %vm2850_vm1, %v11902_v41  ;;  %s30041_s16 = sld [smem:[#allocation40_spill]]  ;;  %v25711_v41 = vpack.c.bf16 %v19792_v0, %v19791_v22 }
0x1912   : > { %23364 = vmatmul.mubr.msk.f32.vlgmr.msra.gmra.mrb[128].mxu1 %vm2850_vm1, %v11904_v27 }
0x1913   : > { %25653 = vmatpush3.bf16.msra.mxu1 %v25650_v45  ;;  %v19795_v45 = vld [vmem:[%s26826_s24 + $0x120] sm:$0xff] }
0x1914   : > { %25659 = vmatprep.subr.bf16.mxu1 %v25658_v30 }
0x1917   : > { %v19585_v3 = vld [vmem:[%s30041_s16] ss:$0 sm:$0xff] }
0x199c   : > { %v10432_v35 = vpop.xlane.xlu1 %10431 }
0x199d   : > { %v10433_v54 = vmul.f32 0.015625, %v10432_v35  ;;  %v19797_v35 = vld [vmem:[%s26826_s24 + $0x130] sm:$0xff] }
0x199f   : > { %v10434_v36 = vadd.f32 1e-06, %v10433_v54  ;;  %v19798_v54 = vld [vmem:[%s26826_s24 + $0x138] sm:$0xff] }
0x19a0   : > { %v25720_v50 = vpack.c.bf16 %v19798_v54, %v19797_v35  ;;  %v19817_v35 = vld [vmem:[%s26826_s24 + $0x1d0] sm:$0xff]  ;;  %v19818_v54 = vld [vmem:[%s26826_s24 + $0x1d8] sm:$0xff] }
0x19a1   : > { %26531 = vrsqrt.f32 %v10434_v36 }
0x19ab   : > { %v26532_v6 = vpop.eup %26531 }
0x19ac   : > { %v10436_v9 = vmul.f32 %v26532_v6, %v10428_v21  ;;  %v19768_v21 = vld [vmem:[%s26821_s19 + $0x148] sm:$0xff]  ;;  %v19810_v6 = vld [vmem:[%s26826_s24 + $0x198] sm:$0xff] }
0x19ad   : > { %v25675_v27 = vpack.c.bf16 %v19768_v21, %v19767_v11  ;;  %v19825_v11 = vld [vmem:[%s26831_s30 + $0x110] sm:$0xff]  ;;  %v19826_v21 = vld [vmem:[%s26831_s30 + $0x118] sm:$0xff] }
0x19ae   : > { %v10443_v4 = vmul.f32 %v19585_v3, %v10436_v9  ;;  %v25738_v9 = vpack.c.bf16 %v19810_v6, %v19809_v5  ;;  %v19811_v3 = vld [vmem:[%s26826_s24 + $0x1a0] sm:$0xff]  ;;  %v25762_v0 = vpack.c.bf16 %v19826_v21, %v19825_v11  ;;  %v19821_v5 = vld [vmem:[%s26826_s24 + $0x1f0] sm:$0xff]  ;;  %v19822_v6 = vld [vmem:[%s26826_s24 + $0x1f8] sm:$0xff] }
0x19af   : > { %v19851_v11 = vld [vmem:[%s26831_s30 + $0x1e0] sm:$0xff]  ;;  %v19852_v21 = vld [vmem:[%s26831_s30 + $0x1e8] sm:$0xff] }
0x19b0   : > { %v28775_v18 = vadd.f32 %v19586_v10, %v10443_v4  ;;  %v25705_v4 = vpack.c.bf16 %v19788_v14, %v19787_v13  ;;  %v19790_v10 = vld [vmem:[%s26821_s19 + $0x1f8] sm:$0xff]  ;;  %v25756_v13 = vpack.c.bf16 %v19822_v6, %v19821_v5 }
0x19b5   : > { %v23344_v46 = vpop.f32.mrb[122].mxu0 }
0x19b6   : > { %v11977_v34 = vpop.f32.mrb[123].mxu0 }
0x19b7   : > { %23370 = vmatprep.mubr.msk.f32.mxu0 %vm2850_vm1, %v11977_v34  ;;  %v19774_v34 = vld [vmem:[%s26821_s19 + $0x178] sm:$0xff] }
0x19b8   : > { %23371 = vmatmul.mubr.msk.f32.vlgmr.msra.gmra.mrb[126].mxu0 %vm2850_vm1, %v23344_v46  ;;  %v19773_v46 = vld [vmem:[%s26821_s19 + $0x170] sm:$0xff] }
0x19b9   : > { %25657 = vmatpush3.bf16.msra.mxu0 %v25654_v48  ;;  %v25714_v48 = vpack.c.bf16 %v19794_v38, %v19793_v26  ;;  %v25684_v36 = vpack.c.bf16 %v19774_v34, %v19773_v46  ;;  %v19805_v26 = vld [vmem:[%s26826_s24 + $0x170] sm:$0xff]  ;;  %v19806_v38 = vld [vmem:[%s26826_s24 + $0x178] sm:$0xff] }
0x19ba   : > { %25662 = vmatprep.subr.bf16.mxu0 %v26756_v7  ;;  %v25732_v49 = vpack.c.bf16 %v19806_v38, %v19805_v26 }
0x19c6   : > { %v23358_v47 = vpop.f32.mrb[124].mxu0 }
0x19c7   : > { %v12139_v32 = vpop.f32.mrb[125].mxu0 }
0x19c8   : > { %23384 = vmatprep.mubr.msk.f32.mxu0 %vm2850_vm1, %v12139_v32  ;;  %v19808_v32 = vld [vmem:[%s26826_s24 + $0x188] sm:$0xff] }
0x19c9   : > { %23385 = vmatmul.mubr.msk.f32.vlgmr.msra.gmra.mrb[128].mxu0 %vm2850_vm1, %v23358_v47  ;;  %v19784_v47 = vld [vmem:[%s26821_s19 + $0x1c8] sm:$0xff] }
0x19ca   : > { %25664 = vmatpush3.bf16.msra.mxu0 %v25663_v51  ;;  %23410 = vmatprep.mubr.msk.f32.mxu0 %vm26757_vm3, %v26758_v20  ;;  %v19807_v51 = vld [vmem:[%s26826_s24 + $0x180] sm:$0xff]  ;;  %v25699_v57 = vpack.c.bf16 %v19784_v47, %v19783_v43  ;;  %v25750_v43 = vpack.c.bf16 %v19818_v54, %v19817_v35 }
0x19cb   : > { %25665 = vmatprep.subr.bf16.mxu0 %v26756_v7  ;;  %v25735_v56 = vpack.c.bf16 %v19808_v32, %v19807_v51  ;;  %v19819_v51 = vld [vmem:[%s26826_s24 + $0x1e0] sm:$0xff]  ;;  %v19820_v32 = vld [vmem:[%s26826_s24 + $0x1e8] sm:$0xff] }
0x19ce   : > { %25667 = vmatpush3.bf16.msra.mxu0 %v25666_v40  ;;  %v19785_v40 = vld [vmem:[%s26821_s19 + $0x1d0] sm:$0xff] }
0x19cf   : > { %25668 = vmatprep.subr.bf16.mxu0 %v26756_v7 }
0x19d2   : > { %25670 = vmatpush3.bf16.msra.mxu0 %v25669_v8  ;;  %v25702_v8 = vpack.c.bf16 %v19786_v2, %v19785_v40  ;;  %v25753_v40 = vpack.c.bf16 %v19820_v32, %v19819_v51 }
0x19d3   : > { %25671 = vmatprep.subr.bf16.mxu0 %v26756_v7 }
0x19d5   : > { %v23351_v16 = vpop.f32.mrb[126].mxu1 }
0x19d6   : > { %25673 = vmatpush3.bf16.msra.mxu0 %v25672_v33  ;;  %v12058_v17 = vpop.f32.mrb[127].mxu1  ;;  %v19812_v33 = vld [vmem:[%s26826_s24 + $0x1a8] sm:$0xff] }
0x19d7   : > { %23377 = vmatprep.mubr.msk.f32.mxu1 %vm2850_vm1, %v12058_v17  ;;  %25686 = vmatprep.subr.bf16.mxu0 %v26756_v7  ;;  %v25741_v15 = vpack.c.bf16 %v19812_v33, %v19811_v3  ;;  %v19814_v17 = vld [vmem:[%s26826_s24 + $0x1b8] sm:$0xff]  ;;  %v19831_v3 = vld [vmem:[%s26831_s30 + $0x140] sm:$0xff]  ;;  %v19832_v33 = vld [vmem:[%s26831_s30 + $0x148] sm:$0xff] }
0x19d8   : > { %23378 = vmatmul.mubr.msk.f32.vlgmr.msra.gmra.mrb[130].mxu1 %vm2850_vm1, %v23351_v16  ;;  %v19813_v16 = vld [vmem:[%s26826_s24 + $0x1b0] sm:$0xff] }
0x19d9   : > { %23411 = vmatmul.mubr.msk.f32.vlgmr.msra.gmra.mrb[130].mxu0 %vm1943_vm0, %v28775_v18  ;;  %25661 = vmatpush3.bf16.msra.mxu1 %v25658_v30  ;;  %v25717_v30 = vpack.c.bf16 %v19796_v28, %v19795_v45  ;;  %v25744_v59 = vpack.c.bf16 %v19814_v17, %v19813_v16  ;;  %v19815_v45 = vld [vmem:[%s26826_s24 + $0x1c0] sm:$0xff]  ;;  %v19816_v28 = vld [vmem:[%s26826_s24 + $0x1c8] sm:$0xff] }
0x19da   : > { %25688 = vmatpush3.bf16.msra.mxu0 %v25687_v19  ;;  %23448 = vmatprep.mubr.msk.f32.mxu0 %vm26757_vm3, %v26758_v20  ;;  %v25708_v19 = vpack.c.bf16 %v19790_v10, %v19789_v31  ;;  %v25747_v46 = vpack.c.bf16 %v19816_v28, %v19815_v45  ;;  %v19834_v31 = vld [vmem:[%s26831_s30 + $0x158] sm:$0xff]  ;;  %v19835_v16 = vld [vmem:[%s26831_s30 + $0x160] sm:$0xff]  ;;  %v19836_v17 = vld [vmem:[%s26831_s30 + $0x168] sm:$0xff] }
0x19db   : > { %25689 = vmatprep.subr.bf16.mxu0 %v26756_v7  ;;  %25674 = vmatprep.subr.bf16.mxu1 %v26756_v7 }
0x19de   : > { %25691 = vmatpush3.bf16.msra.mxu0 %v25690_v42  ;;  %v19800_v42 = vld [vmem:[%s26826_s24 + $0x148] sm:$0xff] }
0x19df   : > { %25692 = vmatprep.subr.bf16.mxu0 %v26756_v7 }
0x19e2   : > { %25694 = vmatpush3.bf16.msra.mxu0 %v25693_v62  ;;  %v25723_v62 = vpack.c.bf16 %v19800_v42, %v19799_v23  ;;  %v19838_v23 = vld [vmem:[%s26831_s30 + $0x178] sm:$0xff] }
0x19e3   : > { %25695 = vmatprep.subr.bf16.mxu0 %v26756_v7 }
0x19e5   : > { %v23365_v25 = vpop.f32.mrb[128].mxu1 }
0x19e6   : > { %25697 = vmatpush3.bf16.msra.mxu0 %v25696_v1  ;;  %v12220_v52 = vpop.f32.mrb[129].mxu1  ;;  %v19802_v1 = vld [vmem:[%s26826_s24 + $0x158] sm:$0xff] }
0x19e7   : > { %23391 = vmatprep.mubr.msk.f32.mxu1 %vm2850_vm1, %v12220_v52  ;;  %25710 = vmatprep.subr.bf16.mxu0 %v26756_v7  ;;  %v25726_v22 = vpack.c.bf16 %v19802_v1, %v19801_v37  ;;  %v19827_v52 = vld [vmem:[%s26831_s30 + $0x120] sm:$0xff]  ;;  %v19850_v37 = vld [vmem:[%s26831_s30 + $0x1d8] sm:$0xff] }
0x19e8   : > { %23392 = vmatmul.mubr.msk.f32.vlgmr.msra.gmra.mrb[132].mxu1 %vm2850_vm1, %v23365_v25  ;;  %v19803_v25 = vld [vmem:[%s26826_s24 + $0x160] sm:$0xff] }
0x19e9   : > { %23449 = vmatmul.mubr.msk.f32.vlgmr.msra.gmra.mrb[132].mxu0 %vm1943_vm0, %v28775_v18  ;;  %25676 = vmatpush3.bf16.msra.mxu1 %v25675_v27  ;;  %v19804_v27 = vld [vmem:[%s26826_s24 + $0x168] sm:$0xff] }
0x19ea   : > { %25712 = vmatpush3.bf16.msra.mxu0 %v25711_v41  ;;  %25677 = vmatprep.subr.bf16.mxu1 %v26756_v7  ;;  %v19828_v41 = vld [vmem:[%s26831_s30 + $0x128] sm:$0xff]  ;;  %v25729_v58 = vpack.c.bf16 %v19804_v27, %v19803_v25  ;;  %v19854_v25 = vld [vmem:[%s26831_s30 + $0x1f8] sm:$0xff] }
0x19eb   : > { %25713 = vmatprep.subr.bf16.mxu0 %v26756_v7  ;;  %23429 = vmatprep.mubr.msk.f32.mxu1 %vm26757_vm3, %v26758_v20  ;;  %v25765_v44 = vpack.c.bf16 %v19828_v41, %v19827_v52 }
0x19ec   : > { %23486 = vmatprep.mubr.msk.f32.mxu0 %vm26757_vm3, %v26758_v20 }
0x19ed   : > { %25679 = vmatpush3.bf16.msra.mxu1 %v25678_v39  ;;  %v19829_v39 = vld [vmem:[%s26831_s30 + $0x130] sm:$0xff] }
0x19ee   : > { %25715 = vmatpush3.bf16.msra.mxu0 %v25714_v48  ;;  %25680 = vmatprep.subr.bf16.mxu1 %v26756_v7  ;;  %v19830_v48 = vld [vmem:[%s26831_s30 + $0x138] sm:$0xff] }
0x19ef   : > { %25716 = vmatprep.subr.bf16.mxu0 %v26756_v7  ;;  %v25768_v55 = vpack.c.bf16 %v19830_v48, %v19829_v39 }
0x19f1   : > { %25682 = vmatpush3.bf16.msra.mxu1 %v25681_v29  ;;  %v19839_v29 = vld [vmem:[%s26831_s30 + $0x180] sm:$0xff] }
0x19f2   : > { %25718 = vmatpush3.bf16.msra.mxu0 %v25717_v30  ;;  %25683 = vmatprep.subr.bf16.mxu1 %v26756_v7  ;;  %v19840_v30 = vld [vmem:[%s26831_s30 + $0x188] sm:$0xff] }
0x19f3   : > { %25719 = vmatprep.subr.bf16.mxu0 %v26756_v7  ;;  %v25783_v34 = vpack.c.bf16 %v19840_v30, %v19839_v29 }
0x19f5   : > { %25685 = vmatpush3.bf16.msra.mxu1 %v25684_v36  ;;  %v19841_v36 = vld [vmem:[%s26831_s30 + $0x190] sm:$0xff] }
0x19f6   : > { %25721 = vmatpush3.bf16.msra.mxu0 %v25720_v50  ;;  %25698 = vmatprep.subr.bf16.mxu1 %v26756_v7  ;;  %v19842_v50 = vld [vmem:[%s26831_s30 + $0x198] sm:$0xff] }
0x19f7   : > { %25734 = vmatprep.subr.bf16.mxu0 %v26756_v7  ;;  %v25786_v47 = vpack.c.bf16 %v19842_v50, %v19841_v36 }
0x19f8   : > { %23430 = vmatmul.mubr.msk.f32.vlgmr.msra.gmra.mrb[134].mxu1 %vm1943_vm0, %v28775_v18 }
0x19f9   : > { %23487 = vmatmul.mubr.msk.f32.vlgmr.msra.gmra.mrb[134].mxu0 %vm1943_vm0, %v28775_v18  ;;  %25700 = vmatpush3.bf16.msra.mxu1 %v25699_v57  ;;  %v19843_v57 = vld [vmem:[%s26831_s30 + $0x1a0] sm:$0xff] }
0x19fa   : > { %25736 = vmatpush3.bf16.msra.mxu0 %v25735_v56  ;;  %25701 = vmatprep.subr.bf16.mxu1 %v26756_v7  ;;  %v19844_v56 = vld [vmem:[%s26831_s30 + $0x1a8] sm:$0xff] }
0x19fb   : > { %25737 = vmatprep.subr.bf16.mxu0 %v26756_v7  ;;  %23467 = vmatprep.mubr.msk.f32.mxu1 %vm26757_vm3, %v26758_v20  ;;  %v25789_v2 = vpack.c.bf16 %v19844_v56, %v19843_v57 }
0x19fc   : > { %23524 = vmatprep.mubr.msk.f32.mxu0 %vm26757_vm3, %v26758_v20 }
0x19fd   : > { %25703 = vmatpush3.bf16.msra.mxu1 %v25702_v8  ;;  %v19845_v8 = vld [vmem:[%s26831_s30 + $0x1b0] sm:$0xff] }
0x19fe   : > { %25739 = vmatpush3.bf16.msra.mxu0 %v25738_v9  ;;  %25704 = vmatprep.subr.bf16.mxu1 %v26756_v7  ;;  %v19846_v9 = vld [vmem:[%s26831_s30 + $0x1b8] sm:$0xff] }
0x19ff   : > { %25740 = vmatprep.subr.bf16.mxu0 %v26756_v7  ;;  %v25792_v14 = vpack.c.bf16 %v19846_v9, %v19845_v8 }
0x1a01   : > { %25706 = vmatpush3.bf16.msra.mxu1 %v25705_v4  ;;  %v25771_v4 = vpack.c.bf16 %v19832_v33, %v19831_v3 }
0x1a02   : > { %25742 = vmatpush3.bf16.msra.mxu0 %v25741_v15  ;;  %25707 = vmatprep.subr.bf16.mxu1 %v26756_v7  ;;  %v19833_v15 = vld [vmem:[%s26831_s30 + $0x150] sm:$0xff] }
0x1a03   : > { %25743 = vmatprep.subr.bf16.mxu0 %v26756_v7  ;;  %v25774_v10 = vpack.c.bf16 %v19834_v31, %v19833_v15 }
0x1a05   : > { %25709 = vmatpush3.bf16.msra.mxu1 %v25708_v19  ;;  %v25777_v19 = vpack.c.bf16 %v19836_v17, %v19835_v16 }
0x1a06   : > { %25745 = vmatpush3.bf16.msra.mxu0 %v25744_v59  ;;  %25722 = vmatprep.subr.bf16.mxu1 %v26756_v7  ;;  %v19837_v59 = vld [vmem:[%s26831_s30 + $0x170] sm:$0xff] }
0x1a07   : > { %25758 = vmatprep.subr.bf16.mxu0 %v26756_v7  ;;  %v25780_v42 = vpack.c.bf16 %v19838_v23, %v19837_v59 }
0x1a08   : > { %23468 = vmatmul.mubr.msk.f32.vlgmr.msra.gmra.mrb[136].mxu1 %vm1943_vm0, %v28775_v18 }
0x1a09   : > { %23525 = vmatmul.mubr.msk.f32.vlgmr.msra.gmra.mrb[136].mxu0 %vm1943_vm0, %v28775_v18  ;;  %25724 = vmatpush3.bf16.msra.mxu1 %v25723_v62  ;;  %v25795_v62 = vpack.c.bf16 %v19848_v61, %v19847_v60 }
0x1a0a   : > { %25760 = vmatpush3.bf16.msra.mxu0 %v25759_v63  ;;  %25725 = vmatprep.subr.bf16.mxu1 %v26756_v7  ;;  %v19849_v63 = vld [vmem:[%s26831_s30 + $0x1d0] sm:$0xff] }
0x1a0b   : > { %25761 = vmatprep.subr.bf16.mxu0 %v26756_v7  ;;  %23505 = vmatprep.mubr.msk.f32.mxu1 %vm26757_vm3, %v26758_v20  ;;  %v25798_v1 = vpack.c.bf16 %v19850_v37, %v19849_v63 }
0x1a0c   : > { %23562 = vmatprep.mubr.msk.f32.mxu0 %vm26757_vm3, %v26758_v20 }
0x1a0d   : > { %25727 = vmatpush3.bf16.msra.mxu1 %v25726_v22  ;;  %v25801_v22 = vpack.c.bf16 %v19852_v21, %v19851_v11 }
0x1a0e   : > { %25763 = vmatpush3.bf16.msra.mxu0 %v25762_v0  ;;  %25728 = vmatprep.subr.bf16.mxu1 %v26756_v7  ;;  %v19853_v0 = vld [vmem:[%s26831_s30 + $0x1f0] sm:$0xff] }
0x1a0f   : > { %25764 = vmatprep.subr.bf16.mxu0 %v26756_v7  ;;  %v25804_v27 = vpack.c.bf16 %v19854_v25, %v19853_v0 }
0x1a11   : > { %25730 = vmatpush3.bf16.msra.mxu1 %v25729_v58 }
0x1a12   : > { %25766 = vmatpush3.bf16.msra.mxu0 %v25765_v44  ;;  %25731 = vmatprep.subr.bf16.mxu1 %v26756_v7 }
0x1a13   : > { %25767 = vmatprep.subr.bf16.mxu0 %v26756_v7 }
0x1a15   : > { %25733 = vmatpush3.bf16.msra.mxu1 %v25732_v49 }
0x1a16   : > { %25769 = vmatpush3.bf16.msra.mxu0 %v25768_v55  ;;  %25746 = vmatprep.subr.bf16.mxu1 %v26756_v7 }
0x1a17   : > { %25782 = vmatprep.subr.bf16.mxu0 %v26756_v7 }
0x1a18   : > { %23506 = vmatmul.mubr.msk.f32.vlgmr.msra.gmra.mrb[138].mxu1 %vm1943_vm0, %v28775_v18 }
0x1a19   : > { %23563 = vmatmul.mubr.msk.f32.vlgmr.msra.gmra.mrb[138].mxu0 %vm1943_vm0, %v28775_v18  ;;  %25748 = vmatpush3.bf16.msra.mxu1 %v25747_v46 }
0x1a1a   : > { %25784 = vmatpush3.bf16.msra.mxu0 %v25783_v34  ;;  %25749 = vmatprep.subr.bf16.mxu1 %v26756_v7 }
0x1a1b   : > { %25785 = vmatprep.subr.bf16.mxu0 %v26756_v7  ;;  %23543 = vmatprep.mubr.msk.f32.mxu1 %vm26757_vm3, %v26758_v20 }
0x1a1c   : > { %23600 = vmatprep.mubr.msk.f32.mxu0 %vm26757_vm3, %v26758_v20 }
0x1a1d   : > { %25751 = vmatpush3.bf16.msra.mxu1 %v25750_v43 }
0x1a1e   : > { %25787 = vmatpush3.bf16.msra.mxu0 %v25786_v47  ;;  %25752 = vmatprep.subr.bf16.mxu1 %v26756_v7 }
0x1a1f   : > { %25788 = vmatprep.subr.bf16.mxu0 %v26756_v7 }
0x1a21   : > { %25754 = vmatpush3.bf16.msra.mxu1 %v25753_v40 }
0x1a22   : > { %25790 = vmatpush3.bf16.msra.mxu0 %v25789_v2  ;;  %25755 = vmatprep.subr.bf16.mxu1 %v26756_v7 }
0x1a23   : > { %25791 = vmatprep.subr.bf16.mxu0 %v26756_v7 }
0x1a25   : > { %25757 = vmatpush3.bf16.msra.mxu1 %v25756_v13 }
0x1a26   : > { %25793 = vmatpush3.bf16.msra.mxu0 %v25792_v14  ;;  %25770 = vmatprep.subr.bf16.mxu1 %v26756_v7 }
0x1a27   : > { %23622 = vmatprep.subr.mxu0 %v26758_v20 }
0x1a28   : > { %23544 = vmatmul.mubr.msk.f32.vlgmr.msra.gmra.mrb[140].mxu1 %vm1943_vm0, %v28775_v18 }
0x1a29   : > { %23601 = vmatmul.mubr.msk.f32.vlgmr.msra.gmra.mrb[140].mxu0 %vm1943_vm0, %v28775_v18  ;;  %25772 = vmatpush3.bf16.msra.mxu1 %v25771_v4 }
0x1a2a   : > { %25773 = vmatprep.subr.bf16.mxu1 %v26756_v7  ;;  %23581 = vmatprep.mubr.msk.f32.mxu1 %vm26757_vm3, %v26758_v20 }
0x1a2b   : > { %23624 = vmatprep.mubr.msk.f32.mxu0 %vm26757_vm3, %v26758_v20 }
0x1a2d   : > { %25775 = vmatpush3.bf16.msra.mxu1 %v25774_v10 }
0x1a2e   : > { %25776 = vmatprep.subr.bf16.mxu1 %v26756_v7 }
0x1a31   : > { %25778 = vmatpush3.bf16.msra.mxu1 %v25777_v19 }
0x1a32   : > { %25779 = vmatprep.subr.bf16.mxu1 %v26756_v7 }
0x1a35   : > { %25781 = vmatpush3.bf16.msra.mxu1 %v25780_v42 }
0x1a36   : > { %25794 = vmatprep.subr.bf16.mxu1 %v26756_v7 }
0x1a38   : > { %23582 = vmatmul.mubr.msk.f32.vlgmr.msra.gmra.mrb[142].mxu1 %vm1943_vm0, %v28775_v18 }
0x1a39   : > { %25796 = vmatpush3.bf16.msra.mxu1 %v25795_v62  ;;  %23619 = vmatprep.mubr.msk.f32.mxu1 %vm26757_vm3, %v26758_v20 }
0x1a3a   : > { %25797 = vmatprep.subr.bf16.mxu1 %v26756_v7 }
0x1a3d   : > { %25799 = vmatpush3.bf16.msra.mxu1 %v25798_v1 }
0x1a3e   : > { %25800 = vmatprep.subr.bf16.mxu1 %v26756_v7 }
0x1a41   : > { %25802 = vmatpush3.bf16.msra.mxu1 %v25801_v22 }
0x1a42   : > { %25803 = vmatprep.subr.bf16.mxu1 %v26756_v7 }
0x1a45   : > { %25805 = vmatpush3.bf16.msra.mxu1 %v25804_v27 }
0x1a46   : > { %23627 = vmatprep.subr.mxu1 %v26758_v20 }
0x1a48   : > { %23620 = vmatmul.mubr.msk.f32.vlgmr.msra.gmra.mrb[144].mxu1 %vm1943_vm0, %v28775_v18 }
0x1a49   : > { %23629 = vmatprep.mubr.msk.f32.mxu1 %vm26757_vm3, %v26758_v20 }
0x1a8b   : > { %v23372_v52 = vpop.f32.mrb[126].mxu0 }
0x1a8c   : > { %v12310_v41 = vpop.f32.mrb[127].mxu0  ;;  %v12569_v38 = vsel %vm1943_vm0, %v23372_v52, 0.0 }
0x1a8d   : > { %v12562_v55 = vsel %vm1943_vm0, %v12310_v41, 0.0 }
0x1a9c   : > { %v23386_v58 = vpop.f32.mrb[128].mxu0 }
0x1a9d   : > { %v12472_v44 = vpop.f32.mrb[129].mxu0  ;;  %v12572_v30 = vsel %vm1943_vm0, %v23386_v58, 0.0 }
0x1a9e   : > { %v12565_v34 = vsel %vm1943_vm0, %v12472_v44, 0.0 }
0x1aab   : > { %v23379_v26 = vpop.f32.mrb[130].mxu1 }
0x1aac   : > { %v12801_v39 = vpop.f32.mrb[130].mxu0  ;;  %v12570_v48 = vsel %vm1943_vm0, %v23379_v26, 0.0  ;;  %v12391_v49 = vpop.f32.mrb[131].mxu1 }
0x1aad   : > { %v12571_v45 = vadd.f32 %v12570_v48, %v12569_v38  ;;  %v23412_v28 = vpop.f32.mrb[131].mxu0  ;;  %v12563_v29 = vsel %vm1943_vm0, %v12391_v49, 0.0 }
0x1aae   : > { %v12564_v46 = vadd.f32 %v12563_v29, %v12562_v55 }
0x1aaf   : > { %v12573_v35 = vadd.f32 %v12572_v30, %v12571_v45 }
0x1ab0   : > { %v12566_v54 = vadd.f32 %v12565_v34, %v12564_v46 }
0x1abb   : > { %v23393_v36 = vpop.f32.mrb[132].mxu1 }
0x1abc   : > { %v12941_v50 = vpop.f32.mrb[132].mxu0  ;;  %v12574_v43 = vsel %vm1943_vm0, %v23393_v36, 0.0  ;;  %v12553_v47 = vpop.f32.mrb[133].mxu1 }
0x1abd   : > { %v28970_v51 = vadd.f32 %v12574_v43, %v12573_v35  ;;  %v23450_v32 = vpop.f32.mrb[133].mxu0  ;;  %v12567_v57 = vsel %vm1943_vm0, %v12553_v47, 0.0 }
0x1abe   : > { %v28973_v56 = vadd.f32 %v12567_v57, %v12566_v54 }
0x1ac0   : > { %v12576_v29 = vadd.f32 %v28973_v56, %v28544_v24  ;;  %v12577_v24 = vadd.f32 %v28970_v51, %v28546_v53 }
0x1ac2   : > { %v12578_v46 = vsel %vm1943_vm0, %v12576_v29, 0.0  ;;  %v12581_v32 = vsel %vm1943_vm0, %v12577_v24, 0.0 }
0x1acb   : > { %v12871_v40 = vpop.f32.mrb[134].mxu1 }
0x1acc   : > { %v13081_v2 = vpop.f32.mrb[134].mxu0  ;;  %v23431_v5 = vpop.f32.mrb[135].mxu1 }
0x1acd   : > { %v23488_v6 = vpop.f32.mrb[135].mxu0  ;;  %23623 = vmatpush3.xpose.msk.msra.mxu0 %vm2850_vm1, %v13081_v2 }
0x1ace   : > { %23632 = vmatprep.subr.mxu0 %v26758_v20 }
0x1ad0   : > { %23625 = vmatmul.mubr.msk.f32.vlgmr.msra.gmra.mrb[142].mxu0 %vm2850_vm1, %v12801_v39 }
0x1ad1   : > { %23634 = vmatprep.mubr.msk.f32.mxu0 %vm26757_vm3, %v26758_v20 }
0x1adb   : > { %v13011_v8 = vpop.f32.mrb[136].mxu1 }
0x1adc   : > { %v13221_v9 = vpop.f32.mrb[136].mxu0  ;;  %v23469_v13 = vpop.f32.mrb[137].mxu1 }
0x1add   : > { %v23526_v14 = vpop.f32.mrb[137].mxu0  ;;  %23633 = vmatpush3.xpose.msk.msra.mxu0 %vm2850_vm1, %v13221_v9 }
0x1ade   : > { %23642 = vmatprep.subr.mxu0 %v26758_v20 }
0x1ae0   : > { %23635 = vmatmul.mubr.msk.f32.vlgmr.msra.gmra.mrb[144].mxu0 %vm2850_vm1, %v12941_v50 }
0x1ae1   : > { %23644 = vmatprep.mubr.msk.f32.mxu0 %vm26757_vm3, %v26758_v20 }
0x1aeb   : > { %v13151_v3 = vpop.f32.mrb[138].mxu1 }
0x1aec   : > { %v13361_v33 = vpop.f32.mrb[138].mxu0  ;;  %v23507_v4 = vpop.f32.mrb[139].mxu1  ;;  %23628 = vmatpush3.xpose.msk.msra.mxu1 %vm2850_vm1, %v13151_v3 }
0x1aed   : > { %v23564_v15 = vpop.f32.mrb[139].mxu0  ;;  %23643 = vmatpush3.msra.mxu0 %v13361_v33  ;;  %23637 = vmatprep.subr.mxu1 %v26758_v20 }
0x1aee   : > { %23652 = vmatprep.subr.mxu0 %v26758_v20 }
0x1aef   : > { %23630 = vmatmul.mubr.msk.f32.vlgmr.msra.gmra.mrb[146].mxu1 %vm2850_vm1, %v12871_v40 }
0x1af0   : > { %23639 = vmatprep.mubr.msk.f32.mxu1 %vm26757_vm3, %v26758_v20 }
0x1afb   : > { %v13291_v31 = vpop.f32.mrb[140].mxu1 }
0x1afc   : > { %v28991_v10 = vpop.f32.mrb[140].mxu0  ;;  %v23545_v16 = vpop.f32.mrb[141].mxu1  ;;  %23638 = vmatpush3.xpose.msk.msra.mxu1 %vm2850_vm1, %v13291_v31 }
0x1afd   : > { %v23602_v17 = vpop.f32.mrb[141].mxu0  ;;  %23647 = vmatprep.subr.mxu1 %v26758_v20 }
0x1aff   : > { %23640 = vmatmul.mubr.msk.f32.vlgmr.msra.gmra.mrb[148].mxu1 %vm2850_vm1, %v13011_v8 }
0x1b00   : > { %23649 = vmatprep.mubr.msk.f32.mxu1 %vm26757_vm3, %v26758_v20 }
0x1b0b   : > { %v13431_v19 = vpop.f32.mrb[142].mxu1 }
0x1b0c   : > { %v23583_v59 = vpop.f32.mrb[143].mxu1  ;;  %23648 = vmatpush3.msra.mxu1 %v13431_v19 }
0x1b0d   : > { %23657 = vmatprep.subr.mxu1 %v26758_v20 }
0x1b1b   : > { %v28999_v23 = vpop.f32.mrb[144].mxu1 }
0x1b1c   : > { %v23621_v42 = vpop.f32.mrb[145].mxu1 }
0x1b1d   : > { %v19856_v42 = vld [vmem:[%s29987_s6 + $0x48] sm:$0xff] }
0x1ba3   : > { %v13647_v60 = vpop.f32.mrb[142].mxu0 }
0x1ba4   : > { %v23626_v61 = vpop.f32.mrb[143].mxu0  ;;  %v13879_v62 = vsel %vm5255_vm4, %v13647_v60, -inf }
0x1ba5   : > { %13880 = vmax.xlane.f32.xlu0 %v13879_v62  ;;  %v19857_v61 = vld [vmem:[%s29987_s6 + $0x50] sm:$0xff]  ;;  %v19858_v62 = vld [vmem:[%s29987_s6 + $0x58] sm:$0xff] }
0x1bb3   : > { %v13799_v63 = vpop.f32.mrb[144].mxu0 }
0x1bb4   : > { %v23636_v37 = vpop.f32.mrb[145].mxu0  ;;  %v13885_v1 = vsel %vm5255_vm4, %v13799_v63, -inf }
0x1bb5   : > { %13886 = vmax.xlane.f32.xlu0 %v13885_v1 }
0x1bc2   : > { %v13723_v11 = vpop.f32.mrb[146].mxu1 }
0x1bc3   : > { %v23631_v21 = vpop.f32.mrb[147].mxu1  ;;  %v13882_v22 = vsel %vm5255_vm4, %v13723_v11, -inf }
0x1bc4   : > { %13883 = vmax.xlane.f32.xlu1 %v13882_v22  ;;  %v19859_v21 = vld [vmem:[%s29987_s6 + $0x60] sm:$0xff]  ;;  %v19860_v22 = vld [vmem:[%s29987_s6 + $0x68] sm:$0xff] }
0x1bd2   : > { %v13875_v0 = vpop.f32.mrb[148].mxu1 }
0x1bd3   : > { %v23641_v25 = vpop.f32.mrb[149].mxu1  ;;  %v13888_v27 = vsel %vm5255_vm4, %v13875_v0, -inf }
0x1bd4   : > { %13889 = vmax.xlane.f32.xlu1 %v13888_v27  ;;  %v19900_v25 = vld [vmem:[%s26851_s27 + $0x108] sm:$0xff]  ;;  %v25813_v27 = vpack.c.bf16 %v19860_v22, %v19859_v21  ;;  %v19911_v22 = vld [vmem:[%s26851_s27 + $0x160] sm:$0xff] }
0x1c32   : > { %v13881_v52 = vpop.xlane.xlu0 %13880 }
0x1c33   : > { %v13891_v41 = vsub.f32 %v13647_v60, %v13881_v52 }
0x1c35   : > { %v13895_v58 = vmul.f32 1.442695, %v13891_v41 }
0x1c37   : > { %26533 = vpow2.f32 %v13895_v58 }
0x1c41   : > { %v26534_v44 = vpop.eup %26533 }
0x1c42   : > { %v13887_v26 = vpop.xlane.xlu0 %13886  ;;  %v13903_v38 = vsel %vm5255_vm4, %v26534_v44, 0.0 }
0x1c43   : > { %v13893_v39 = vsub.f32 %v13799_v63, %v13887_v26  ;;  %13904 = vadd.xlane.f32.xlu0 %v13903_v38  ;;  %v25810_v63 = vpack.c.bf16 %v19858_v62, %v19857_v61  ;;  %v19909_v62 = vld [vmem:[%s26851_s27 + $0x150] sm:$0xff] }
0x1c45   : > { %v13899_v48 = vmul.f32 1.442695, %v13893_v39 }
0x1c47   : > { %26535 = vpow2.f32 %v13899_v48 }
0x1c51   : > { %v26536_v49 = vpop.eup %26535  ;;  %v13884_v55 = vpop.xlane.xlu1 %13883 }
0x1c52   : > { %v13892_v45 = vsub.f32 %v13723_v11, %v13884_v55  ;;  %v13909_v28 = vsel %vm5255_vm4, %v26536_v49, 0.0 }
0x1c53   : > { %13910 = vadd.xlane.f32.xlu0 %v13909_v28  ;;  %v19902_v28 = vld [vmem:[%s26851_s27 + $0x118] sm:$0xff] }
0x1c54   : > { %v13897_v30 = vmul.f32 1.442695, %v13892_v45  ;;  %v19901_v45 = vld [vmem:[%s26851_s27 + $0x110] sm:$0xff] }
0x1c56   : > { %26537 = vpow2.f32 %v13897_v30  ;;  %v25822_v30 = vpack.c.bf16 %v19902_v28, %v19901_v45  ;;  %v19923_v45 = vld [vmem:[%s26851_s27 + $0x1c0] sm:$0xff]  ;;  %v19924_v28 = vld [vmem:[%s26851_s27 + $0x1c8] sm:$0xff] }
0x1c57   : > { %12579 = vadd.xlane.f32.xlu0 %v12578_v46 }
0x1c60   : > { %v26538_v34 = vpop.eup %26537 }
0x1c61   : > { %v13890_v35 = vpop.xlane.xlu1 %13889  ;;  %v13906_v54 = vsel %vm5255_vm4, %v26538_v34, 0.0 }
0x1c62   : > { %v13894_v36 = vsub.f32 %v13875_v0, %v13890_v35  ;;  %13907 = vadd.xlane.f32.xlu1 %v13906_v54  ;;  %v19899_v0 = vld [vmem:[%s26851_s27 + $0x100] sm:$0xff]  ;;  %v19904_v54 = vld [vmem:[%s26851_s27 + $0x128] sm:$0xff] }
0x1c63   : > { %v25818_v41 = vpack.c.bf16 %v19900_v25, %v19899_v0  ;;  %v19903_v35 = vld [vmem:[%s26851_s27 + $0x120] sm:$0xff]  ;;  %v19912_v0 = vld [vmem:[%s26851_s27 + $0x168] sm:$0xff] }
0x1c64   : > { %v13901_v50 = vmul.f32 1.442695, %v13894_v36 }
0x1c66   : > { %26539 = vpow2.f32 %v13901_v50  ;;  %v25826_v50 = vpack.c.bf16 %v19904_v54, %v19903_v35  ;;  %v19925_v54 = vld [vmem:[%s26851_s27 + $0x1d0] sm:$0xff] }
0x1c70   : > { %v26540_v43 = vpop.eup %26539 }
0x1c71   : > { %v13912_v47 = vsel %vm5255_vm4, %v26540_v43, 0.0 }
0x1c72   : > { %13913 = vadd.xlane.f32.xlu1 %v13912_v47  ;;  %v19905_v47 = vld [vmem:[%s26851_s27 + $0x130] sm:$0xff] }
0x1c76   : > { %12582 = vadd.xlane.f32.xlu1 %v12581_v32 }
0x1cd0   : > { %v13905_v57 = vpop.xlane.xlu0 %13904 }
0x1cd1   : > { %26541 = vrcp.f32 %v13905_v57 }
0x1cdb   : > { %v26542_v56 = vpop.eup %26541 }
0x1cdc   : > { %v13916_v40 = vmul.f32 %v26542_v56, %v26534_v44  ;;  %v19915_v56 = vld [vmem:[%s26851_s27 + $0x180] sm:$0xff] }
0x1cde   : > { %19889 = vst.msk [vmem:[%s27706_s5 + $0x20] sm:$0xff] %vm5255_vm4, %v13916_v40  ;;  %23645 = vmatmul.mubr.msk.f32.vlgmr.msra.gmra.mrb[146].mxu0 %vm5255_vm4, %v13916_v40  ;;  %v19916_v40 = vld [vmem:[%s26851_s27 + $0x188] sm:$0xff] }
0x1cdf   : > { %23653 = vmatpush3.msra.mxu0 %v28991_v10  ;;  %23654 = vmatprep.mubr.msk.f32.mxu0 %vm26757_vm3, %v26758_v20 }
0x1ce0   : > { %v13911_v2 = vpop.xlane.xlu0 %13910  ;;  %25806 = vmatprep.subr.bf16.mxu0 %v26756_v7 }
0x1ce1   : > { %26543 = vrcp.f32 %v13911_v2  ;;  %v19861_v2 = vld [vmem:[%s29987_s6 + $0x70] sm:$0xff] }
0x1ce4   : > { %v12580_v53 = vpop.xlane.xlu0 %12579 }
0x1ce5   : > { %v12584_v51 = vmul.f32 0.015625, %v12580_v53  ;;  %v19862_v53 = vld [vmem:[%s29987_s6 + $0x78] sm:$0xff] }
0x1ce7   : > { %v12586_v5 = vsub.f32 %v12576_v29, %v12584_v51  ;;  %v19758_v29 = vld [vmem:[%s30009_s10 + $0x1] ss:$0 sm:$0xff] }
0x1ce9   : > { %v12588_v6 = vmul.f32 %v12586_v5, %v12586_v5 }
0x1ceb   : > { %v26544_v8 = vpop.eup %26543  ;;  %v12590_v9 = vsel %vm1943_vm0, %v12588_v6, 0.0  ;;  %v19917_v6 = vld [vmem:[%s26851_s27 + $0x190] sm:$0xff] }
0x1cec   : > { %v13920_v13 = vmul.f32 %v26544_v8, %v26536_v49  ;;  %12591 = vadd.xlane.f32.xlu0 %v12590_v9  ;;  %v19757_v49 = vld [vmem:[%s29986_s8 + $0x1] ss:$0 sm:$0xff]  ;;  %v19918_v8 = vld [vmem:[%s26851_s27 + $0x198] sm:$0xff]  ;;  %v25816_v9 = vpack.c.bf16 %v19862_v53, %v19861_v2 }
0x1cee   : > { %19891 = vst.msk [vmem:[%s27706_s5 + $0x30] sm:$0xff] %vm5255_vm4, %v13920_v13  ;;  %23655 = vmatmul.mubr.msk.f32.vlgmr.msra.gmra.mrb[148].mxu0 %vm5255_vm4, %v13920_v13  ;;  %v19907_v13 = vld [vmem:[%s26851_s27 + $0x140] sm:$0xff] }
0x1cef   : > { %v13908_v14 = vpop.xlane.xlu1 %13907  ;;  %23666 = vmatprep.mubr.msk.f32.mxu0 %vm26757_vm3, %v26758_v20 }
0x1cf0   : > { %26545 = vrcp.f32 %v13908_v14  ;;  %v19908_v14 = vld [vmem:[%s26851_s27 + $0x148] sm:$0xff] }
0x1cfa   : > { %v26546_v3 = vpop.eup %26545 }
0x1cfb   : > { %v13918_v33 = vmul.f32 %v26546_v3, %v26538_v34 }
0x1cfd   : > { %19890 = vst.msk [vmem:[%s27706_s5 + $0x28] sm:$0xff] %vm5255_vm4, %v13918_v33  ;;  %23650 = vmatmul.mubr.msk.f32.vlgmr.msra.gmra.mrb[150].mxu1 %vm5255_vm4, %v13918_v33 }
0x1cfe   : > { %23658 = vmatpush3.msra.mxu1 %v28999_v23  ;;  %23659 = vmatprep.mubr.msk.f32.mxu1 %vm26757_vm3, %v26758_v20  ;;  %v19855_v23 = vld [vmem:[%s29987_s6 + $0x40] sm:$0xff]  ;;  %s30047_s6 = smov %s30046_s1 }
0x1cff   : > { %v13914_v4 = vpop.xlane.xlu1 %13913  ;;  %25809 = vmatprep.subr.bf16.mxu1 %v26756_v7  ;;  %v25807_v60 = vpack.c.bf16 %v19856_v42, %v19855_v23  ;;  %v19931_v42 = vld [vmem:[%s30010_s9 + $0x100] sm:$0xff] }
0x1d00   : > { %26547 = vrcp.f32 %v13914_v4  ;;  %v25854_v4 = vpack.c.bf16 %v19918_v8, %v19917_v6  ;;  %v19953_v6 = vld [vmem:[%s30010_s9 + $0x1b0] sm:$0xff]  ;;  %v19954_v8 = vld [vmem:[%s30010_s9 + $0x1b8] sm:$0xff] }
0x1d01   : > { %25808 = vmatpush3.bf16.msra.mxu0 %v25807_v60  ;;  %v19932_v60 = vld [vmem:[%s30010_s9 + $0x108] sm:$0xff] }
0x1d02   : > { %25812 = vmatprep.subr.bf16.mxu0 %v26756_v7  ;;  %v25882_v61 = vpack.c.bf16 %v19932_v60, %v19931_v42  ;;  %v19943_v42 = vld [vmem:[%s30010_s9 + $0x160] sm:$0xff]  ;;  %v19944_v60 = vld [vmem:[%s30010_s9 + $0x168] sm:$0xff] }
0x1d03   : > { %v12583_v15 = vpop.xlane.xlu1 %12582 }
0x1d04   : > { %v12585_v31 = vmul.f32 0.015625, %v12583_v15 }
0x1d06   : > { %v12587_v10 = vsub.f32 %v12577_v24, %v12585_v31  ;;  %v19906_v24 = vld [vmem:[%s26851_s27 + $0x138] sm:$0xff]  ;;  %v19919_v31 = vld [vmem:[%s26851_s27 + $0x1a0] sm:$0xff] }
0x1d07   : > { %v25830_v57 = vpack.c.bf16 %v19906_v24, %v19905_v47  ;;  %v19927_v24 = vld [vmem:[%s26851_s27 + $0x1e0] sm:$0xff] }
0x1d08   : > { %v12589_v16 = vmul.f32 %v12587_v10, %v12587_v10 }
0x1d0a   : > { %v26548_v17 = vpop.eup %26547  ;;  %v12593_v19 = vsel %vm1943_vm0, %v12589_v16, 0.0  ;;  %v25834_v16 = vpack.c.bf16 %v19908_v14, %v19907_v13  ;;  %v25926_v13 = vpack.c.bf16 %v19954_v8, %v19953_v6  ;;  %v19939_v14 = vld [vmem:[%s30010_s9 + $0x140] sm:$0xff]  ;;  %v19976_v8 = vld [vmem:[%s30011_s12 + $0x168] sm:$0xff] }
0x1d0b   : > { %v13922_v59 = vmul.f32 %v26548_v17, %v26540_v43  ;;  %12594 = vadd.xlane.f32.xlu1 %v12593_v19  ;;  %v19921_v19 = vld [vmem:[%s26851_s27 + $0x1b0] sm:$0xff]  ;;  %v19975_v6 = vld [vmem:[%s30011_s12 + $0x160] sm:$0xff] }
0x1d0d   : > { %19892 = vst.msk [vmem:[%s27706_s5 + $0x38] sm:$0xff] %vm5255_vm4, %v13922_v59  ;;  %23660 = vmatmul.mubr.msk.f32.vlgmr.msra.gmra.mrb[152].mxu1 %vm5255_vm4, %v13922_v59  ;;  %v19922_v59 = vld [vmem:[%s26851_s27 + $0x1b8] sm:$0xff]  ;;  %s30044_s5 = sld [smem:[#allocation26_spill]] }
0x1d0e   : > { %23673 = vmatprep.mubr.msk.f32.mxu1 %vm26757_vm3, %v26758_v20  ;;  %25811 = vmatpush3.bf16.msra.mxu1 %v25810_v63  ;;  %v25862_v23 = vpack.c.bf16 %v19922_v59, %v19921_v19  ;;  %v19910_v63 = vld [vmem:[%s26851_s27 + $0x158] sm:$0xff]  ;;  %v19965_v19 = vld [vmem:[%s30011_s12 + $0x110] sm:$0xff] }
0x1d0f   : > { %25815 = vmatprep.subr.bf16.mxu1 %v26756_v7  ;;  %v25838_v21 = vpack.c.bf16 %v19910_v63, %v19909_v62  ;;  %v19966_v59 = vld [vmem:[%s30011_s12 + $0x118] sm:$0xff]  ;;  %v19967_v62 = vld [vmem:[%s30011_s12 + $0x120] sm:$0xff]  ;;  %v19968_v63 = vld [vmem:[%s30011_s12 + $0x128] sm:$0xff] }
0x1d79   : > { %v12592_v37 = vpop.xlane.xlu0 %12591 }
0x1d7a   : > { %v12596_v1 = vmul.f32 0.015625, %v12592_v37  ;;  %v19933_v37 = vld [vmem:[%s30010_s9 + $0x110] sm:$0xff] }
0x1d7c   : > { %v12598_v11 = vadd.f32 1e-06, %v12596_v1  ;;  %v19934_v1 = vld [vmem:[%s30010_s9 + $0x118] sm:$0xff] }
0x1d7e   : > { %26549 = vrsqrt.f32 %v12598_v11 }
0x1d88   : > { %v26550_v38 = vpop.eup %26549 }
0x1d89   : > { %v12602_v48 = vmul.f32 %v26550_v38, %v12586_v5  ;;  %v25850_v5 = vpack.c.bf16 %v19916_v40, %v19915_v56  ;;  %v19914_v38 = vld [vmem:[%s26851_s27 + $0x178] sm:$0xff]  ;;  %v19951_v56 = vld [vmem:[%s30010_s9 + $0x1a0] sm:$0xff]  ;;  %v19952_v40 = vld [vmem:[%s30010_s9 + $0x1a8] sm:$0xff] }
0x1d8a   : > { %v25922_v53 = vpack.c.bf16 %v19952_v40, %v19951_v56  ;;  %v19971_v56 = vld [vmem:[%s30011_s12 + $0x140] sm:$0xff]  ;;  %v19972_v40 = vld [vmem:[%s30011_s12 + $0x148] sm:$0xff] }
0x1d8b   : > { %v12610_v55 = vmul.f32 %v19757_v49, %v12602_v48  ;;  %v19938_v48 = vld [vmem:[%s30010_s9 + $0x138] sm:$0xff] }
0x1d8d   : > { %v29058_v46 = vadd.f32 %v19758_v29, %v12610_v55 }
0x1d98   : > { %v12595_v52 = vpop.xlane.xlu1 %12594 }
0x1d99   : > { %v12597_v26 = vmul.f32 0.015625, %v12595_v52  ;;  %v19935_v52 = vld [vmem:[%s30010_s9 + $0x120] sm:$0xff] }
0x1d9b   : > { %v12599_v39 = vadd.f32 1e-06, %v12597_v26  ;;  %v19913_v26 = vld [vmem:[%s26851_s27 + $0x170] sm:$0xff] }
0x1d9d   : > { %26551 = vrsqrt.f32 %v12599_v39  ;;  %v19937_v39 = vld [vmem:[%s30010_s9 + $0x130] sm:$0xff] }
0x1d9e   : > { %v25894_v55 = vpack.c.bf16 %v19938_v48, %v19937_v39  ;;  %v19957_v39 = vld [vmem:[%s30010_s9 + $0x1d0] sm:$0xff]  ;;  %v19958_v48 = vld [vmem:[%s30010_s9 + $0x1d8] sm:$0xff] }
0x1da7   : > { %v26552_v43 = vpop.eup %26551 }
0x1da8   : > { %v12603_v32 = vmul.f32 %v26552_v43, %v12587_v10  ;;  %v19920_v10 = vld [vmem:[%s26851_s27 + $0x1a8] sm:$0xff]  ;;  %v19950_v43 = vld [vmem:[%s30010_s9 + $0x198] sm:$0xff] }
0x1da9   : > { %v25858_v17 = vpack.c.bf16 %v19920_v10, %v19919_v31 }
0x1daa   : > { %v12611_v51 = vmul.f32 %v19757_v49, %v12603_v32  ;;  %v25846_v49 = vpack.c.bf16 %v19914_v38, %v19913_v26  ;;  %v19928_v32 = vld [vmem:[%s26851_s27 + $0x1e8] sm:$0xff] }
0x1dab   : > { %v25874_v2 = vpack.c.bf16 %v19928_v32, %v19927_v24  ;;  %v19986_v24 = vld [vmem:[%s30011_s12 + $0x1b8] sm:$0xff] }
0x1dac   : > { %v29075_v3 = vadd.f32 %v19758_v29, %v12611_v51  ;;  %v19947_v29 = vld [vmem:[%s30010_s9 + $0x180] sm:$0xff]  ;;  %v19929_v51 = vld [vmem:[%s26851_s27 + $0x1f0] sm:$0xff] }
0x1db1   : > { %v13992_v58 = vpop.f32.mrb[146].mxu0 }
0x1db2   : > { %v23646_v44 = vpop.f32.mrb[147].mxu0  ;;  %23667 = vmatmul.mubr.msk.f32.vlgmr.msra.gmra.mrb[150].mxu0 %vm2850_vm1, %v13992_v58  ;;  %v25842_v58 = vpack.c.bf16 %v19912_v0, %v19911_v22  ;;  %v19969_v22 = vld [vmem:[%s30011_s12 + $0x130] sm:$0xff]  ;;  %v19970_v0 = vld [vmem:[%s30011_s12 + $0x138] sm:$0xff] }
0x1db3   : > { %25814 = vmatpush3.bf16.msra.mxu0 %v25813_v27  ;;  %23680 = vmatprep.mubr.msk.f32.mxu0 %vm26757_vm3, %v26758_v20  ;;  %v25886_v27 = vpack.c.bf16 %v19934_v1, %v19933_v37  ;;  %v25906_v37 = vpack.c.bf16 %v19944_v60, %v19943_v42  ;;  %v25954_v1 = vpack.c.bf16 %v19968_v63, %v19967_v62  ;;  %v19993_v42 = vld [vmem:[%s30011_s12 + $0x1f0] sm:$0xff]  ;;  %v19994_v60 = vld [vmem:[%s30011_s12 + $0x1f8] sm:$0xff] }
0x1db4   : > { %25819 = vmatprep.subr.bf16.mxu0 %v25818_v41 }
0x1dc1   : > { %v14138_v34 = vpop.f32.mrb[148].mxu0 }
0x1dc2   : > { %v23656_v36 = vpop.f32.mrb[149].mxu0  ;;  %23681 = vmatmul.mubr.msk.f32.vlgmr.msra.gmra.mrb[152].mxu0 %vm2850_vm1, %v14138_v34  ;;  %v25866_v34 = vpack.c.bf16 %v19924_v28, %v19923_v45  ;;  %v25934_v45 = vpack.c.bf16 %v19958_v48, %v19957_v39  ;;  %v19959_v28 = vld [vmem:[%s30010_s9 + $0x1e0] sm:$0xff] }
0x1dc3   : > { %25821 = vmatpush3.bf16.msra.mxu0 %v25818_v41  ;;  %23706 = vmatprep.mubr.msk.f32.mxu0 %vm1943_vm0, %v29058_v46  ;;  %v19936_v41 = vld [vmem:[%s30010_s9 + $0x128] sm:$0xff]  ;;  %v19926_v36 = vld [vmem:[%s26851_s27 + $0x1d8] sm:$0xff] }
0x1dc4   : > { %25823 = vmatprep.subr.bf16.mxu0 %v25822_v30  ;;  %v25890_v44 = vpack.c.bf16 %v19936_v41, %v19935_v52  ;;  %v25870_v47 = vpack.c.bf16 %v19926_v36, %v19925_v54  ;;  %v19955_v52 = vld [vmem:[%s30010_s9 + $0x1c0] sm:$0xff]  ;;  %v19956_v41 = vld [vmem:[%s30010_s9 + $0x1c8] sm:$0xff] }
0x1dc5   : > { %v25930_v26 = vpack.c.bf16 %v19956_v41, %v19955_v52 }
0x1dc7   : > { %25825 = vmatpush3.bf16.msra.mxu0 %v25822_v30  ;;  %v19948_v30 = vld [vmem:[%s30010_s9 + $0x188] sm:$0xff] }
0x1dc8   : > { %25827 = vmatprep.subr.bf16.mxu0 %v25826_v50  ;;  %v25914_v35 = vpack.c.bf16 %v19948_v30, %v19947_v29  ;;  %v19960_v29 = vld [vmem:[%s30010_s9 + $0x1e8] sm:$0xff] }
0x1dc9   : > { %v25938_v54 = vpack.c.bf16 %v19960_v29, %v19959_v28 }
0x1dcb   : > { %25829 = vmatpush3.bf16.msra.mxu0 %v25826_v50  ;;  %v19949_v50 = vld [vmem:[%s30010_s9 + $0x190] sm:$0xff] }
0x1dcc   : > { %25831 = vmatprep.subr.bf16.mxu0 %v25830_v57 }
0x1dcf   : > { %25833 = vmatpush3.bf16.msra.mxu0 %v25830_v57  ;;  %v25918_v57 = vpack.c.bf16 %v19950_v43, %v19949_v50  ;;  %v19961_v50 = vld [vmem:[%s30010_s9 + $0x1f0] sm:$0xff]  ;;  %v19962_v43 = vld [vmem:[%s30010_s9 + $0x1f8] sm:$0xff] }
0x1dd0   : > { %v14065_v33 = vpop.f32.mrb[150].mxu1  ;;  %25851 = vmatprep.subr.bf16.mxu0 %v25850_v5  ;;  %v25942_v32 = vpack.c.bf16 %v19962_v43, %v19961_v50 }
0x1dd1   : > { %v23651_v15 = vpop.f32.mrb[151].mxu1  ;;  %23674 = vmatmul.mubr.msk.f32.vlgmr.msra.gmra.mrb[154].mxu1 %vm2850_vm1, %v14065_v33  ;;  %v19940_v33 = vld [vmem:[%s30010_s9 + $0x148] sm:$0xff] }
0x1dd2   : > { %23707 = vmatmul.mubr.msk.f32.vlgmr.msra.gmra.mrb[154].mxu0 %vm1943_vm0, %v29075_v3  ;;  %25817 = vmatpush3.bf16.msra.mxu1 %v25816_v9  ;;  %v19964_v15 = vld [vmem:[%s30011_s12 + $0x108] sm:$0xff]  ;;  %v25898_v31 = vpack.c.bf16 %v19940_v33, %v19939_v14  ;;  %v19978_v14 = vld [vmem:[%s30011_s12 + $0x178] sm:$0xff] }
0x1dd3   : > { %25853 = vmatpush3.bf16.msra.mxu0 %v25850_v5  ;;  %23744 = vmatprep.mubr.msk.f32.mxu0 %vm1943_vm0, %v29058_v46  ;;  %v19930_v5 = vld [vmem:[%s26851_s27 + $0x1f8] sm:$0xff] }
0x1dd4   : > { %25855 = vmatprep.subr.bf16.mxu0 %v25854_v4  ;;  %23687 = vmatprep.mubr.msk.f32.mxu1 %vm26757_vm3, %v26758_v20  ;;  %v25878_v9 = vpack.c.bf16 %v19930_v5, %v19929_v51  ;;  %v19974_v51 = vld [vmem:[%s30011_s12 + $0x158] sm:$0xff] }
0x1dd5   : > { %25835 = vmatprep.subr.bf16.mxu1 %v25834_v16 }
0x1dd7   : > { %25857 = vmatpush3.bf16.msra.mxu0 %v25854_v4  ;;  %v19963_v4 = vld [vmem:[%s30011_s12 + $0x100] sm:$0xff] }
0x1dd8   : > { %25859 = vmatprep.subr.bf16.mxu0 %v25858_v17  ;;  %v25946_v10 = vpack.c.bf16 %v19964_v15, %v19963_v4  ;;  %v19987_v4 = vld [vmem:[%s30011_s12 + $0x1c0] sm:$0xff]  ;;  %v19988_v15 = vld [vmem:[%s30011_s12 + $0x1c8] sm:$0xff] }
0x1ddb   : > { %25861 = vmatpush3.bf16.msra.mxu0 %v25858_v17  ;;  %v19942_v17 = vld [vmem:[%s30010_s9 + $0x158] sm:$0xff] }
0x1ddc   : > { %25863 = vmatprep.subr.bf16.mxu0 %v25862_v23 }
0x1ddf   : > { %25865 = vmatpush3.bf16.msra.mxu0 %v25862_v23 }
0x1de0   : > { %v14211_v11 = vpop.f32.mrb[152].mxu1  ;;  %25883 = vmatprep.subr.bf16.mxu0 %v25882_v61 }
0x1de1   : > { %v23661_v25 = vpop.f32.mrb[153].mxu1  ;;  %23688 = vmatmul.mubr.msk.f32.vlgmr.msra.gmra.mrb[156].mxu1 %vm2850_vm1, %v14211_v11  ;;  %v19945_v11 = vld [vmem:[%s30010_s9 + $0x170] sm:$0xff] }
0x1de2   : > { %23745 = vmatmul.mubr.msk.f32.vlgmr.msra.gmra.mrb[156].mxu0 %vm1943_vm0, %v29075_v3  ;;  %25837 = vmatpush3.bf16.msra.mxu1 %v25834_v16  ;;  %v19941_v16 = vld [vmem:[%s30010_s9 + $0x150] sm:$0xff] }
0x1de3   : > { %25885 = vmatpush3.bf16.msra.mxu0 %v25882_v61  ;;  %23782 = vmatprep.mubr.msk.f32.mxu0 %vm1943_vm0, %v29058_v46  ;;  %v25902_v23 = vpack.c.bf16 %v19942_v17, %v19941_v16  ;;  %v25950_v61 = vpack.c.bf16 %v19966_v59, %v19965_v19  ;;  %v19990_v16 = vld [vmem:[%s30011_s12 + $0x1d8] sm:$0xff]  ;;  %v19991_v19 = vld [vmem:[%s30011_s12 + $0x1e0] sm:$0xff]  ;;  %v19992_v59 = vld [vmem:[%s30011_s12 + $0x1e8] sm:$0xff] }
0x1de4   : > { %23725 = vmatprep.mubr.msk.f32.mxu1 %vm1943_vm0, %v29058_v46  ;;  %25839 = vmatprep.subr.bf16.mxu1 %v25838_v21 }
0x1de5   : > { %25887 = vmatprep.subr.bf16.mxu0 %v25886_v27 }
0x1de6   : > { %25841 = vmatpush3.bf16.msra.mxu1 %v25838_v21  ;;  %v19946_v21 = vld [vmem:[%s30010_s9 + $0x178] sm:$0xff] }
0x1de7   : > { %25889 = vmatpush3.bf16.msra.mxu0 %v25886_v27  ;;  %25843 = vmatprep.subr.bf16.mxu1 %v25842_v58  ;;  %v25910_v25 = vpack.c.bf16 %v19946_v21, %v19945_v11  ;;  %v25958_v27 = vpack.c.bf16 %v19970_v0, %v19969_v22 }
0x1de8   : > { %25891 = vmatprep.subr.bf16.mxu0 %v25890_v44 }
0x1dea   : > { %25845 = vmatpush3.bf16.msra.mxu1 %v25842_v58  ;;  %v19979_v58 = vld [vmem:[%s30011_s12 + $0x180] sm:$0xff] }
0x1deb   : > { %25893 = vmatpush3.bf16.msra.mxu0 %v25890_v44  ;;  %25847 = vmatprep.subr.bf16.mxu1 %v25846_v49  ;;  %v19980_v44 = vld [vmem:[%s30011_s12 + $0x188] sm:$0xff] }
0x1dec   : > { %25895 = vmatprep.subr.bf16.mxu0 %v25894_v55  ;;  %v25978_v38 = vpack.c.bf16 %v19980_v44, %v19979_v58 }
0x1dee   : > { %25849 = vmatpush3.bf16.msra.mxu1 %v25846_v49  ;;  %v19981_v49 = vld [vmem:[%s30011_s12 + $0x190] sm:$0xff] }
0x1def   : > { %25897 = vmatpush3.bf16.msra.mxu0 %v25894_v55  ;;  %25867 = vmatprep.subr.bf16.mxu1 %v25866_v34  ;;  %v19982_v55 = vld [vmem:[%s30011_s12 + $0x198] sm:$0xff] }
0x1df0   : > { %25915 = vmatprep.subr.bf16.mxu0 %v25914_v35  ;;  %v25982_v30 = vpack.c.bf16 %v19982_v55, %v19981_v49 }
0x1df1   : > { %23726 = vmatmul.mubr.msk.f32.vlgmr.msra.gmra.mrb[158].mxu1 %vm1943_vm0, %v29075_v3 }
0x1df2   : > { %23783 = vmatmul.mubr.msk.f32.vlgmr.msra.gmra.mrb[158].mxu0 %vm1943_vm0, %v29075_v3  ;;  %25869 = vmatpush3.bf16.msra.mxu1 %v25866_v34  ;;  %v19983_v34 = vld [vmem:[%s30011_s12 + $0x1a0] sm:$0xff] }
0x1df3   : > { %23763 = vmatprep.mubr.msk.f32.mxu1 %vm1943_vm0, %v29058_v46  ;;  %25917 = vmatpush3.bf16.msra.mxu0 %v25914_v35  ;;  %v19984_v35 = vld [vmem:[%s30011_s12 + $0x1a8] sm:$0xff] }
0x1df4   : > { %23820 = vmatprep.mubr.msk.f32.mxu0 %vm1943_vm0, %v29058_v46  ;;  %25871 = vmatprep.subr.bf16.mxu1 %v25870_v47  ;;  %v25986_v36 = vpack.c.bf16 %v19984_v35, %v19983_v34 }
0x1df5   : > { %25919 = vmatprep.subr.bf16.mxu0 %v25918_v57 }
0x1df6   : > { %25873 = vmatpush3.bf16.msra.mxu1 %v25870_v47  ;;  %v19985_v47 = vld [vmem:[%s30011_s12 + $0x1b0] sm:$0xff] }
0x1df7   : > { %25921 = vmatpush3.bf16.msra.mxu0 %v25918_v57  ;;  %25875 = vmatprep.subr.bf16.mxu1 %v25874_v2  ;;  %v25990_v57 = vpack.c.bf16 %v19986_v24, %v19985_v47 }
0x1df8   : > { %25923 = vmatprep.subr.bf16.mxu0 %v25922_v53 }
0x1dfa   : > { %25877 = vmatpush3.bf16.msra.mxu1 %v25874_v2  ;;  %v25962_v2 = vpack.c.bf16 %v19972_v40, %v19971_v56 }
0x1dfb   : > { %25925 = vmatpush3.bf16.msra.mxu0 %v25922_v53  ;;  %25879 = vmatprep.subr.bf16.mxu1 %v25878_v9  ;;  %v19973_v53 = vld [vmem:[%s30011_s12 + $0x150] sm:$0xff] }
0x1dfc   : > { %25927 = vmatprep.subr.bf16.mxu0 %v25926_v13  ;;  %v25966_v5 = vpack.c.bf16 %v19974_v51, %v19973_v53 }
0x1dfe   : > { %25881 = vmatpush3.bf16.msra.mxu1 %v25878_v9  ;;  %v25970_v9 = vpack.c.bf16 %v19976_v8, %v19975_v6 }
0x1dff   : > { %25929 = vmatpush3.bf16.msra.mxu0 %v25926_v13  ;;  %25899 = vmatprep.subr.bf16.mxu1 %v25898_v31  ;;  %v19977_v13 = vld [vmem:[%s30011_s12 + $0x170] sm:$0xff] }
0x1e00   : > { %25947 = vmatprep.subr.bf16.mxu0 %v25946_v10  ;;  %v25974_v33 = vpack.c.bf16 %v19978_v14, %v19977_v13 }
0x1e01   : > { %23764 = vmatmul.mubr.msk.f32.vlgmr.msra.gmra.mrb[160].mxu1 %vm1943_vm0, %v29075_v3 }
0x1e02   : > { %23821 = vmatmul.mubr.msk.f32.vlgmr.msra.gmra.mrb[160].mxu0 %vm1943_vm0, %v29075_v3  ;;  %25901 = vmatpush3.bf16.msra.mxu1 %v25898_v31  ;;  %v25994_v31 = vpack.c.bf16 %v19988_v15, %v19987_v4 }
0x1e03   : > { %23801 = vmatprep.mubr.msk.f32.mxu1 %vm1943_vm0, %v29058_v46  ;;  %25949 = vmatpush3.bf16.msra.mxu0 %v25946_v10  ;;  %v19989_v10 = vld [vmem:[%s30011_s12 + $0x1d0] sm:$0xff] }
0x1e04   : > { %23858 = vmatprep.mubr.msk.f32.mxu0 %vm1943_vm0, %v29058_v46  ;;  %25903 = vmatprep.subr.bf16.mxu1 %v25902_v23  ;;  %v25998_v17 = vpack.c.bf16 %v19990_v16, %v19989_v10 }
0x1e05   : > { %25951 = vmatprep.subr.bf16.mxu0 %v25950_v61 }
0x1e06   : > { %25905 = vmatpush3.bf16.msra.mxu1 %v25902_v23  ;;  %v26002_v23 = vpack.c.bf16 %v19992_v59, %v19991_v19  ;;  %v20003_v59 = vld [vmem:[%s30012_s15 + $0x100] sm:$0xff] }
0x1e07   : > { %25953 = vmatpush3.bf16.msra.mxu0 %v25950_v61  ;;  %25907 = vmatprep.subr.bf16.mxu1 %v25906_v37  ;;  %v26006_v61 = vpack.c.bf16 %v19994_v60, %v19993_v42  ;;  %v20011_v42 = vld [vmem:[%s30012_s15 + $0x140] sm:$0xff] }
0x1e08   : > { %25955 = vmatprep.subr.bf16.mxu0 %v25954_v1 }
0x1e0a   : > { %25909 = vmatpush3.bf16.msra.mxu1 %v25906_v37 }
0x1e0b   : > { %25957 = vmatpush3.bf16.msra.mxu0 %v25954_v1  ;;  %25911 = vmatprep.subr.bf16.mxu1 %v25910_v25 }
0x1e0c   : > { %25959 = vmatprep.subr.bf16.mxu0 %v25958_v27 }
0x1e0e   : > { %25913 = vmatpush3.bf16.msra.mxu1 %v25910_v25 }
0x1e0f   : > { %25961 = vmatpush3.bf16.msra.mxu0 %v25958_v27  ;;  %25931 = vmatprep.subr.bf16.mxu1 %v25930_v26 }
0x1e10   : > { %25979 = vmatprep.subr.bf16.mxu0 %v25978_v38 }
0x1e11   : > { %23802 = vmatmul.mubr.msk.f32.vlgmr.msra.gmra.mrb[162].mxu1 %vm1943_vm0, %v29075_v3 }
0x1e12   : > { %23859 = vmatmul.mubr.msk.f32.vlgmr.msra.gmra.mrb[162].mxu0 %vm1943_vm0, %v29075_v3  ;;  %25933 = vmatpush3.bf16.msra.mxu1 %v25930_v26 }
0x1e13   : > { %23839 = vmatprep.mubr.msk.f32.mxu1 %vm1943_vm0, %v29058_v46  ;;  %25981 = vmatpush3.bf16.msra.mxu0 %v25978_v38 }
0x1e14   : > { %23896 = vmatprep.mubr.msk.f32.mxu0 %vm1943_vm0, %v29058_v46  ;;  %25935 = vmatprep.subr.bf16.mxu1 %v25934_v45 }
0x1e15   : > { %25983 = vmatprep.subr.bf16.mxu0 %v25982_v30 }
0x1e16   : > { %25937 = vmatpush3.bf16.msra.mxu1 %v25934_v45 }
0x1e17   : > { %25985 = vmatpush3.bf16.msra.mxu0 %v25982_v30  ;;  %25939 = vmatprep.subr.bf16.mxu1 %v25938_v54 }
0x1e18   : > { %25987 = vmatprep.subr.bf16.mxu0 %v25986_v36 }
0x1e1a   : > { %25941 = vmatpush3.bf16.msra.mxu1 %v25938_v54 }
0x1e1b   : > { %25989 = vmatpush3.bf16.msra.mxu0 %v25986_v36  ;;  %25943 = vmatprep.subr.bf16.mxu1 %v25942_v32 }
0x1e1c   : > { %25991 = vmatprep.subr.bf16.mxu0 %v25990_v57 }
0x1e1e   : > { %25945 = vmatpush3.bf16.msra.mxu1 %v25942_v32 }
0x1e1f   : > { %25993 = vmatpush3.bf16.msra.mxu0 %v25990_v57  ;;  %25963 = vmatprep.subr.bf16.mxu1 %v25962_v2 }
0x1e20   : > { %26010 = vmatprep.subr.bf16.mxu0 %v26756_v7 }
0x1e21   : > { %23840 = vmatmul.mubr.msk.f32.vlgmr.msra.gmra.mrb[164].mxu1 %vm1943_vm0, %v29075_v3 }
0x1e22   : > { %23897 = vmatmul.mubr.msk.f32.vlgmr.msra.gmra.mrb[164].mxu0 %vm1943_vm0, %v29075_v3  ;;  %25965 = vmatpush3.bf16.msra.mxu1 %v25962_v2 }
0x1e23   : > { %23877 = vmatprep.mubr.msk.f32.mxu1 %vm1943_vm0, %v29058_v46  ;;  %25967 = vmatprep.subr.bf16.mxu1 %v25966_v5 }
0x1e24   : > { %23934 = vmatprep.mubr.msk.f32.mxu0 %vm26757_vm3, %v26758_v20 }
0x1e26   : > { %25969 = vmatpush3.bf16.msra.mxu1 %v25966_v5 }
0x1e27   : > { %25971 = vmatprep.subr.bf16.mxu1 %v25970_v9 }
0x1e2a   : > { %25973 = vmatpush3.bf16.msra.mxu1 %v25970_v9 }
0x1e2b   : > { %25975 = vmatprep.subr.bf16.mxu1 %v25974_v33 }
0x1e2e   : > { %25977 = vmatpush3.bf16.msra.mxu1 %v25974_v33 }
0x1e2f   : > { %25995 = vmatprep.subr.bf16.mxu1 %v25994_v31 }
0x1e31   : > { %23878 = vmatmul.mubr.msk.f32.vlgmr.msra.gmra.mrb[166].mxu1 %vm1943_vm0, %v29075_v3 }
0x1e32   : > { %25997 = vmatpush3.bf16.msra.mxu1 %v25994_v31  ;;  %23915 = vmatprep.mubr.msk.f32.mxu1 %vm1943_vm0, %v29058_v46 }
0x1e33   : > { %25999 = vmatprep.subr.bf16.mxu1 %v25998_v17 }
0x1e36   : > { %26001 = vmatpush3.bf16.msra.mxu1 %v25998_v17 }
0x1e37   : > { %26003 = vmatprep.subr.bf16.mxu1 %v26002_v23 }
0x1e3a   : > { %26005 = vmatpush3.bf16.msra.mxu1 %v26002_v23  ;;  %v20004_v23 = vld [vmem:[%s30012_s15 + $0x108] sm:$0xff] }
0x1e3b   : > { %26007 = vmatprep.subr.bf16.mxu1 %v26006_v61  ;;  %v26011_v60 = vpack.c.bf16 %v20004_v23, %v20003_v59 }
0x1e3d   : > { %26012 = vmatpush3.bf16.msra.mxu0 %v26011_v60  ;;  %v20019_v60 = vld [vmem:[%s30012_s15 + $0x180] sm:$0xff] }
0x1e3e   : > { %26009 = vmatpush3.bf16.msra.mxu1 %v26006_v61  ;;  %v20012_v61 = vld [vmem:[%s30012_s15 + $0x148] sm:$0xff]  ;;  %26013 = vmatprep.subr.bf16.mxu0 %v26756_v7 }
0x1e3f   : > { %26022 = vmatprep.subr.bf16.mxu1 %v26756_v7 }
0x1e41   : > { %23916 = vmatmul.mubr.msk.f32.vlgmr.msra.gmra.mrb[168].mxu1 %vm1943_vm0, %v29075_v3 }
0x1e42   : > { %23953 = vmatprep.mubr.msk.f32.mxu1 %vm26757_vm3, %v26758_v20 }
0x1e85   : > { %v14289_v62 = vpop.f32.mrb[150].mxu0 }
0x1e86   : > { %v23668_v63 = vpop.f32.mrb[151].mxu0  ;;  %v14512_v21 = vsel %vm1943_vm0, %v14289_v62, 0.0  ;;  %v26023_v62 = vpack.c.bf16 %v20012_v61, %v20011_v42  ;;  %v19897_v42 = vld [vmem:[%s30013_s13 + $0x1] ss:$0 sm:$0xff] }
0x1e87   : > { %v20005_v63 = vld [vmem:[%s30012_s15 + $0x110] sm:$0xff] }
0x1e88   : > { %26024 = vmatpush3.bf16.msra.mxu1 %v26023_v62  ;;  %v20020_v62 = vld [vmem:[%s30012_s15 + $0x188] sm:$0xff] }
0x1e89   : > { %26025 = vmatprep.subr.bf16.mxu1 %v26756_v7 }
0x1e95   : > { %v14435_v37 = vpop.f32.mrb[152].mxu0 }
0x1e96   : > { %v23682_v1 = vpop.f32.mrb[153].mxu0  ;;  %v14515_v41 = vsel %vm1943_vm0, %v14435_v37, 0.0  ;;  %v20006_v37 = vld [vmem:[%s30012_s15 + $0x118] sm:$0xff] }
0x1e97   : > { %v20013_v1 = vld [vmem:[%s30012_s15 + $0x150] sm:$0xff] }
0x1ea4   : > { %v14362_v11 = vpop.f32.mrb[154].mxu1 }
0x1ea5   : > { %v29216_v22 = vpop.f32.mrb[154].mxu0  ;;  %v14513_v0 = vsel %vm1943_vm0, %v14362_v11, 0.0  ;;  %v23675_v25 = vpop.f32.mrb[155].mxu1  ;;  %v26014_v11 = vpack.c.bf16 %v20006_v37, %v20005_v63  ;;  %v20027_v63 = vld [vmem:[%s30012_s15 + $0x1c0] sm:$0xff]  ;;  %v20028_v37 = vld [vmem:[%s30012_s15 + $0x1c8] sm:$0xff] }
0x1ea6   : > { %v14514_v27 = vadd.f32 %v14513_v0, %v14512_v21  ;;  %v29219_v52 = vpop.f32.mrb[155].mxu0  ;;  %v20014_v21 = vld [vmem:[%s30012_s15 + $0x158] sm:$0xff]  ;;  %v20007_v25 = vld [vmem:[%s30012_s15 + $0x120] sm:$0xff] }
0x1ea7   : > { %v26026_v0 = vpack.c.bf16 %v20014_v21, %v20013_v1  ;;  %26015 = vmatpush3.bf16.msra.mxu0 %v26014_v11  ;;  %v19898_v1 = vld [vmem:[%s30014_s17 + $0x1] ss:$0 sm:$0xff]  ;;  %v26035_v21 = vpack.c.bf16 %v20020_v62, %v20019_v60  ;;  %v20036_v62 = vld [vmem:[%s30015_s20 + $0x108] sm:$0xff] }
0x1ea8   : > { %v14516_v58 = vadd.f32 %v14515_v41, %v14514_v27  ;;  %26016 = vmatprep.subr.bf16.mxu0 %v26756_v7  ;;  %v20008_v27 = vld [vmem:[%s30012_s15 + $0x128] sm:$0xff]  ;;  %v20015_v41 = vld [vmem:[%s30012_s15 + $0x160] sm:$0xff] }
0x1ea9   : > { %26027 = vmatpush3.bf16.msra.mxu1 %v26026_v0  ;;  %v26047_v0 = vpack.c.bf16 %v20028_v37, %v20027_v63  ;;  %v20043_v63 = vld [vmem:[%s30015_s20 + $0x140] sm:$0xff]  ;;  %v20044_v37 = vld [vmem:[%s30015_s20 + $0x148] sm:$0xff] }
0x1eaa   : > { %26028 = vmatprep.subr.bf16.mxu1 %v26756_v7 }
0x1eb4   : > { %v14508_v44 = vpop.f32.mrb[156].mxu1 }
0x1eb5   : > { %v29222_v26 = vpop.f32.mrb[156].mxu0  ;;  %v14517_v38 = vsel %vm1943_vm0, %v14508_v44, 0.0  ;;  %v23689_v39 = vpop.f32.mrb[157].mxu1  ;;  %v20016_v44 = vld [vmem:[%s30012_s15 + $0x168] sm:$0xff] }
0x1eb6   : > { %v14518_v48 = vadd.f32 %v14517_v38, %v14516_v58  ;;  %v29225_v49 = vpop.f32.mrb[157].mxu0  ;;  %v26017_v58 = vpack.c.bf16 %v20008_v27, %v20007_v25  ;;  %v26029_v38 = vpack.c.bf16 %v20016_v44, %v20015_v41  ;;  %v20009_v39 = vld [vmem:[%s30012_s15 + $0x130] sm:$0xff]  ;;  %v20022_v41 = vld [vmem:[%s30012_s15 + $0x198] sm:$0xff] }
0x1eb7   : > { %v20021_v25 = vld [vmem:[%s30012_s15 + $0x190] sm:$0xff]  ;;  %v20030_v44 = vld [vmem:[%s30012_s15 + $0x1d8] sm:$0xff] }
0x1eb8   : > { %v14519_v55 = vadd.f32 %v14518_v48, %v28775_v18  ;;  %26018 = vmatpush3.bf16.msra.mxu0 %v26017_v58  ;;  %26030 = vmatpush3.bf16.msra.mxu1 %v26029_v38  ;;  %v20010_v48 = vld [vmem:[%s30012_s15 + $0x138] sm:$0xff]  ;;  %v20029_v58 = vld [vmem:[%s30012_s15 + $0x1d0] sm:$0xff] }
0x1eb9   : > { %26019 = vmatprep.subr.bf16.mxu0 %v26756_v7  ;;  %26031 = vmatprep.subr.bf16.mxu1 %v26756_v7  ;;  %v26050_v38 = vpack.c.bf16 %v20030_v44, %v20029_v58 }
0x1eba   : > { %v14520_v45 = vsel %vm1943_vm0, %v14519_v55, 0.0 }
0x1ebb   : > { %14521 = vadd.xlane.f32.xlu0 %v14520_v45  ;;  %v26020_v45 = vpack.c.bf16 %v20010_v48, %v20009_v39  ;;  %v20023_v39 = vld [vmem:[%s30012_s15 + $0x1a0] sm:$0xff]  ;;  %v20024_v48 = vld [vmem:[%s30012_s15 + $0x1a8] sm:$0xff] }
0x1ebd   : > { %26021 = vmatpush3.bf16.msra.mxu0 %v26020_v45  ;;  %v20032_v45 = vld [vmem:[%s30012_s15 + $0x1e8] sm:$0xff] }
0x1ebe   : > { %26034 = vmatprep.subr.bf16.mxu0 %v26756_v7 }
0x1ec4   : > { %v29229_v28 = vpop.f32.mrb[158].mxu1 }
0x1ec5   : > { %v29231_v29 = vpop.f32.mrb[158].mxu0  ;;  %v29233_v30 = vpop.f32.mrb[159].mxu1 }
0x1ec6   : > { %v29235_v34 = vpop.f32.mrb[159].mxu0 }
0x1ec7   : > { %v26155_v35 = vpack.c.bf16 %v29231_v29, %v29235_v34 }
0x1ed4   : > { %v29239_v54 = vpop.f32.mrb[160].mxu1 }
0x1ed5   : > { %v29241_v36 = vpop.f32.mrb[160].mxu0  ;;  %v29243_v50 = vpop.f32.mrb[161].mxu1 }
0x1ed6   : > { %v29245_v18 = vpop.f32.mrb[161].mxu0 }
0x1ed7   : > { %v26163_v43 = vpack.c.bf16 %v29241_v36, %v29245_v18 }
0x1ee4   : > { %v29249_v47 = vpop.f32.mrb[162].mxu1 }
0x1ee5   : > { %v29251_v24 = vpop.f32.mrb[162].mxu0  ;;  %v29253_v32 = vpop.f32.mrb[163].mxu1 }
0x1ee6   : > { %v26159_v57 = vpack.c.bf16 %v29249_v47, %v29253_v32  ;;  %v29257_v56 = vpop.f32.mrb[163].mxu0 }
0x1ee7   : > { %v26171_v40 = vpack.c.bf16 %v29251_v24, %v29257_v56 }
0x1ef4   : > { %v29261_v2 = vpop.f32.mrb[164].mxu1 }
0x1ef5   : > { %v29263_v53 = vpop.f32.mrb[164].mxu0  ;;  %v29265_v51 = vpop.f32.mrb[165].mxu1 }
0x1ef6   : > { %v26167_v5 = vpack.c.bf16 %v29261_v2, %v29265_v51  ;;  %v29269_v6 = vpop.f32.mrb[165].mxu0 }
0x1ef7   : > { %v26177_v8 = vpack.c.bf16 %v29263_v53, %v29269_v6 }
0x1f04   : > { %v29273_v9 = vpop.f32.mrb[166].mxu1 }
0x1f05   : > { %v29275_v13 = vpop.f32.mrb[167].mxu1 }
0x1f06   : > { %v26174_v14 = vpack.c.bf16 %v29273_v9, %v29275_v13 }
0x1f14   : > { %v29279_v33 = vpop.f32.mrb[168].mxu1 }
0x1f15   : > { %v29281_v4 = vpop.f32.mrb[169].mxu1 }
0x1f16   : > { %v26180_v15 = vpack.c.bf16 %v29279_v33, %v29281_v4 }
0x1f48   : > { %v14522_v31 = vpop.xlane.xlu0 %14521 }
0x1f49   : > { %v14523_v10 = vmul.f32 0.015625, %v14522_v31  ;;  %v20018_v31 = vld [vmem:[%s30012_s15 + $0x178] sm:$0xff] }
0x1f4b   : > { %v14524_v16 = vsub.f32 %v14519_v55, %v14523_v10  ;;  %v20017_v55 = vld [vmem:[%s30012_s15 + $0x170] sm:$0xff] }
0x1f4c   : > { %v26032_v10 = vpack.c.bf16 %v20018_v31, %v20017_v55  ;;  %v20031_v55 = vld [vmem:[%s30012_s15 + $0x1e0] sm:$0xff]  ;;  %v26041_v31 = vpack.c.bf16 %v20024_v48, %v20023_v39  ;;  %v20048_v48 = vld [vmem:[%s30015_s20 + $0x168] sm:$0xff] }
0x1f4d   : > { %v14525_v17 = vmul.f32 %v14524_v16, %v14524_v16  ;;  %v20047_v39 = vld [vmem:[%s30015_s20 + $0x160] sm:$0xff] }
0x1f4e   : > { %26033 = vmatpush3.bf16.msra.mxu1 %v26032_v10  ;;  %v26053_v10 = vpack.c.bf16 %v20032_v45, %v20031_v55  ;;  %v26077_v45 = vpack.c.bf16 %v20048_v48, %v20047_v39 }
0x1f4f   : > { %v14526_v19 = vsel %vm1943_vm0, %v14525_v17, 0.0  ;;  %26046 = vmatprep.subr.bf16.mxu1 %v26756_v7 }
0x1f50   : > { %14527 = vadd.xlane.f32.xlu1 %v14526_v19 }
0x1fdd   : > { %v14528_v17 = vpop.xlane.xlu1 %14527 }
0x1fde   : > { %v14529_v19 = vmul.f32 0.015625, %v14528_v17  ;;  %v20025_v17 = vld [vmem:[%s30012_s15 + $0x1b0] sm:$0xff] }
0x1fe0   : > { %v14530_v59 = vadd.f32 1e-06, %v14529_v19  ;;  %v20026_v19 = vld [vmem:[%s30012_s15 + $0x1b8] sm:$0xff] }
0x1fe2   : > { %26553 = vrsqrt.f32 %v14530_v59  ;;  %v20033_v59 = vld [vmem:[%s30012_s15 + $0x1f0] sm:$0xff] }
0x1fec   : > { %v26554_v23 = vpop.eup %26553 }
0x1fed   : > { %v14532_v61 = vmul.f32 %v26554_v23, %v14524_v16  ;;  %v26038_v16 = vpack.c.bf16 %v20022_v41, %v20021_v25  ;;  %v20034_v23 = vld [vmem:[%s30012_s15 + $0x1f8] sm:$0xff]  ;;  %v20045_v25 = vld [vmem:[%s30015_s20 + $0x150] sm:$0xff] }
0x1fee   : > { %v26056_v60 = vpack.c.bf16 %v20034_v23, %v20033_v59  ;;  %v20046_v41 = vld [vmem:[%s30015_s20 + $0x158] sm:$0xff] }
0x1fef   : > { %v14539_v11 = vmul.f32 %v19897_v42, %v14532_v61  ;;  %v26044_v42 = vpack.c.bf16 %v20026_v19, %v20025_v17  ;;  %v20035_v61 = vld [vmem:[%s30015_s20 + $0x100] sm:$0xff]  ;;  %v26074_v44 = vpack.c.bf16 %v20046_v41, %v20045_v25  ;;  %v20049_v17 = vld [vmem:[%s30015_s20 + $0x170] sm:$0xff]  ;;  %v20050_v19 = vld [vmem:[%s30015_s20 + $0x178] sm:$0xff] }
0x1ff0   : > { %v26080_v23 = vpack.c.bf16 %v20050_v19, %v20049_v17 }
0x1ff1   : > { %v29317_v27 = vadd.f32 %v19898_v1, %v14539_v11  ;;  %v26059_v1 = vpack.c.bf16 %v20036_v62, %v20035_v61  ;;  %v26071_v11 = vpack.c.bf16 %v20044_v37, %v20043_v63  ;;  %v20059_v61 = vld [vmem:[%s30015_s20 + $0x1c0] sm:$0xff]  ;;  %v20060_v62 = vld [vmem:[%s30015_s20 + $0x1c8] sm:$0xff] }
0x1ff2   : > { %v26095_v37 = vpack.c.bf16 %v20060_v62, %v20059_v61 }
0x1ff3   : > { %23935 = vmatmul.mubr.msk.f32.vlgmr.msra.gmra.mrb[166].mxu0 %vm1943_vm0, %v29317_v27  ;;  %23954 = vmatmul.mubr.msk.f32.vlgmr.msra.gmra.mrb[170].mxu1 %vm1943_vm0, %v29317_v27 }
0x1ff4   : > { %26036 = vmatpush3.bf16.msra.mxu0 %v26035_v21  ;;  %26048 = vmatpush3.bf16.msra.mxu1 %v26047_v0  ;;  %v20037_v21 = vld [vmem:[%s30015_s20 + $0x110] sm:$0xff]  ;;  %v20038_v0 = vld [vmem:[%s30015_s20 + $0x118] sm:$0xff] }
0x1ff5   : > { %26037 = vmatprep.subr.bf16.mxu0 %v26756_v7  ;;  %26049 = vmatprep.subr.bf16.mxu1 %v26756_v7  ;;  %v26062_v58 = vpack.c.bf16 %v20038_v0, %v20037_v21  ;;  %v20061_v21 = vld [vmem:[%s30015_s20 + $0x1d0] sm:$0xff]  ;;  %v20062_v0 = vld [vmem:[%s30015_s20 + $0x1d8] sm:$0xff] }
0x1ff6   : > { %23972 = vmatprep.mubr.msk.f32.mxu0 %vm26757_vm3, %v26758_v20  ;;  %23991 = vmatprep.mubr.msk.f32.mxu1 %vm26757_vm3, %v26758_v20  ;;  %v26098_v41 = vpack.c.bf16 %v20062_v0, %v20061_v21 }
0x1ff8   : > { %26039 = vmatpush3.bf16.msra.mxu0 %v26038_v16  ;;  %26051 = vmatpush3.bf16.msra.mxu1 %v26050_v38  ;;  %v20039_v16 = vld [vmem:[%s30015_s20 + $0x120] sm:$0xff]  ;;  %v20040_v38 = vld [vmem:[%s30015_s20 + $0x128] sm:$0xff] }
0x1ff9   : > { %26040 = vmatprep.subr.bf16.mxu0 %v26756_v7  ;;  %26052 = vmatprep.subr.bf16.mxu1 %v26756_v7  ;;  %v26065_v55 = vpack.c.bf16 %v20040_v38, %v20039_v16  ;;  %v20063_v16 = vld [vmem:[%s30015_s20 + $0x1e0] sm:$0xff]  ;;  %v20064_v38 = vld [vmem:[%s30015_s20 + $0x1e8] sm:$0xff] }
0x1ffa   : > { %v26101_v48 = vpack.c.bf16 %v20064_v38, %v20063_v16 }
0x1ffc   : > { %26042 = vmatpush3.bf16.msra.mxu0 %v26041_v31  ;;  %26054 = vmatpush3.bf16.msra.mxu1 %v26053_v10  ;;  %v20041_v31 = vld [vmem:[%s30015_s20 + $0x130] sm:$0xff]  ;;  %v20042_v10 = vld [vmem:[%s30015_s20 + $0x138] sm:$0xff] }
0x1ffd   : > { %26043 = vmatprep.subr.bf16.mxu0 %v26756_v7  ;;  %26055 = vmatprep.subr.bf16.mxu1 %v26756_v7  ;;  %v26068_v59 = vpack.c.bf16 %v20042_v10, %v20041_v31  ;;  %v20065_v31 = vld [vmem:[%s30015_s20 + $0x1f0] sm:$0xff]  ;;  %v20066_v10 = vld [vmem:[%s30015_s20 + $0x1f8] sm:$0xff] }
0x1ffe   : > { %v26104_v19 = vpack.c.bf16 %v20066_v10, %v20065_v31 }
0x2000   : > { %26045 = vmatpush3.bf16.msra.mxu0 %v26044_v42  ;;  %26057 = vmatpush3.bf16.msra.mxu1 %v26056_v60  ;;  %v20051_v42 = vld [vmem:[%s30015_s20 + $0x180] sm:$0xff]  ;;  %v20052_v60 = vld [vmem:[%s30015_s20 + $0x188] sm:$0xff] }
0x2001   : > { %26058 = vmatprep.subr.bf16.mxu0 %v26756_v7  ;;  %26070 = vmatprep.subr.bf16.mxu1 %v26756_v7  ;;  %v26083_v63 = vpack.c.bf16 %v20052_v60, %v20051_v42  ;;  %v20075_v42 = vld [vmem:[%s30016_s18 + $0x140] sm:$0xff]  ;;  %v20076_v60 = vld [vmem:[%s30016_s18 + $0x148] sm:$0xff] }
0x2002   : > { %v26119_v62 = vpack.c.bf16 %v20076_v60, %v20075_v42 }
0x2003   : > { %23973 = vmatmul.mubr.msk.f32.vlgmr.msra.gmra.mrb[168].mxu0 %vm1943_vm0, %v29317_v27  ;;  %23992 = vmatmul.mubr.msk.f32.vlgmr.msra.gmra.mrb[172].mxu1 %vm1943_vm0, %v29317_v27 }
0x2004   : > { %26060 = vmatpush3.bf16.msra.mxu0 %v26059_v1  ;;  %26072 = vmatpush3.bf16.msra.mxu1 %v26071_v11  ;;  %v20053_v1 = vld [vmem:[%s30015_s20 + $0x190] sm:$0xff]  ;;  %v20054_v11 = vld [vmem:[%s30015_s20 + $0x198] sm:$0xff] }
0x2005   : > { %26061 = vmatprep.subr.bf16.mxu0 %v26756_v7  ;;  %26073 = vmatprep.subr.bf16.mxu1 %v26756_v7  ;;  %v26086_v25 = vpack.c.bf16 %v20054_v11, %v20053_v1  ;;  %v20077_v1 = vld [vmem:[%s30016_s18 + $0x150] sm:$0xff]  ;;  %v20078_v11 = vld [vmem:[%s30016_s18 + $0x158] sm:$0xff] }
0x2006   : > { %24010 = vmatprep.mubr.msk.f32.mxu0 %vm26757_vm3, %v26758_v20  ;;  %24029 = vmatprep.mubr.msk.f32.mxu1 %vm26757_vm3, %v26758_v20  ;;  %v26122_v0 = vpack.c.bf16 %v20078_v11, %v20077_v1 }
0x2008   : > { %26063 = vmatpush3.bf16.msra.mxu0 %v26062_v58  ;;  %26075 = vmatpush3.bf16.msra.mxu1 %v26074_v44  ;;  %v20055_v58 = vld [vmem:[%s30015_s20 + $0x1a0] sm:$0xff]  ;;  %v20056_v44 = vld [vmem:[%s30015_s20 + $0x1a8] sm:$0xff] }
0x2009   : > { %26064 = vmatprep.subr.bf16.mxu0 %v26756_v7  ;;  %26076 = vmatprep.subr.bf16.mxu1 %v26756_v7  ;;  %v26089_v39 = vpack.c.bf16 %v20056_v44, %v20055_v58  ;;  %v20079_v58 = vld [vmem:[%s30016_s18 + $0x160] sm:$0xff]  ;;  %v20080_v44 = vld [vmem:[%s30016_s18 + $0x168] sm:$0xff] }
0x200a   : > { %v26125_v38 = vpack.c.bf16 %v20080_v44, %v20079_v58 }
0x200c   : > { %26066 = vmatpush3.bf16.msra.mxu0 %v26065_v55  ;;  %26078 = vmatpush3.bf16.msra.mxu1 %v26077_v45  ;;  %v20057_v55 = vld [vmem:[%s30015_s20 + $0x1b0] sm:$0xff]  ;;  %v20058_v45 = vld [vmem:[%s30015_s20 + $0x1b8] sm:$0xff] }
0x200d   : > { %26067 = vmatprep.subr.bf16.mxu0 %v26756_v7  ;;  %26079 = vmatprep.subr.bf16.mxu1 %v26756_v7  ;;  %v26092_v17 = vpack.c.bf16 %v20058_v45, %v20057_v55  ;;  %v20081_v55 = vld [vmem:[%s30016_s18 + $0x170] sm:$0xff]  ;;  %v20082_v45 = vld [vmem:[%s30016_s18 + $0x178] sm:$0xff] }
0x200e   : > { %v26128_v10 = vpack.c.bf16 %v20082_v45, %v20081_v55 }
0x2010   : > { %26069 = vmatpush3.bf16.msra.mxu0 %v26068_v59  ;;  %26081 = vmatpush3.bf16.msra.mxu1 %v26080_v23  ;;  %v20067_v59 = vld [vmem:[%s30016_s18 + $0x100] sm:$0xff]  ;;  %v20068_v23 = vld [vmem:[%s30016_s18 + $0x108] sm:$0xff] }
0x2011   : > { %26082 = vmatprep.subr.bf16.mxu0 %v26756_v7  ;;  %26094 = vmatprep.subr.bf16.mxu1 %v26756_v7  ;;  %v26107_v61 = vpack.c.bf16 %v20068_v23, %v20067_v59  ;;  %v20091_v59 = vld [vmem:[%s30016_s18 + $0x1c0] sm:$0xff]  ;;  %v20092_v23 = vld [vmem:[%s30016_s18 + $0x1c8] sm:$0xff] }
0x2012   : > { %v26143_v60 = vpack.c.bf16 %v20092_v23, %v20091_v59 }
0x2013   : > { %24011 = vmatmul.mubr.msk.f32.vlgmr.msra.gmra.mrb[170].mxu0 %vm1943_vm0, %v29317_v27  ;;  %24030 = vmatmul.mubr.msk.f32.vlgmr.msra.gmra.mrb[174].mxu1 %vm1943_vm0, %v29317_v27 }
0x2014   : > { %26084 = vmatpush3.bf16.msra.mxu0 %v26083_v63  ;;  %26096 = vmatpush3.bf16.msra.mxu1 %v26095_v37  ;;  %v20069_v63 = vld [vmem:[%s30016_s18 + $0x110] sm:$0xff]  ;;  %v20070_v37 = vld [vmem:[%s30016_s18 + $0x118] sm:$0xff] }
0x2015   : > { %26085 = vmatprep.subr.bf16.mxu0 %v26756_v7  ;;  %26097 = vmatprep.subr.bf16.mxu1 %v26756_v7  ;;  %v26110_v21 = vpack.c.bf16 %v20070_v37, %v20069_v63  ;;  %v20093_v63 = vld [vmem:[%s30016_s18 + $0x1d0] sm:$0xff]  ;;  %v20094_v37 = vld [vmem:[%s30016_s18 + $0x1d8] sm:$0xff] }
0x2016   : > { %24048 = vmatprep.mubr.msk.f32.mxu0 %vm26757_vm3, %v26758_v20  ;;  %24067 = vmatprep.mubr.msk.f32.mxu1 %vm26757_vm3, %v26758_v20  ;;  %v26146_v11 = vpack.c.bf16 %v20094_v37, %v20093_v63 }
0x2018   : > { %26087 = vmatpush3.bf16.msra.mxu0 %v26086_v25  ;;  %26099 = vmatpush3.bf16.msra.mxu1 %v26098_v41  ;;  %v20071_v25 = vld [vmem:[%s30016_s18 + $0x120] sm:$0xff]  ;;  %v20072_v41 = vld [vmem:[%s30016_s18 + $0x128] sm:$0xff] }
0x2019   : > { %26088 = vmatprep.subr.bf16.mxu0 %v26756_v7  ;;  %26100 = vmatprep.subr.bf16.mxu1 %v26756_v7  ;;  %v26113_v16 = vpack.c.bf16 %v20072_v41, %v20071_v25  ;;  %v20095_v25 = vld [vmem:[%s30016_s18 + $0x1e0] sm:$0xff]  ;;  %v20096_v41 = vld [vmem:[%s30016_s18 + $0x1e8] sm:$0xff] }
0x201a   : > { %v26149_v44 = vpack.c.bf16 %v20096_v41, %v20095_v25 }
0x201c   : > { %26090 = vmatpush3.bf16.msra.mxu0 %v26089_v39  ;;  %26102 = vmatpush3.bf16.msra.mxu1 %v26101_v48  ;;  %v20073_v39 = vld [vmem:[%s30016_s18 + $0x130] sm:$0xff]  ;;  %v20074_v48 = vld [vmem:[%s30016_s18 + $0x138] sm:$0xff] }
0x201d   : > { %26091 = vmatprep.subr.bf16.mxu0 %v26756_v7  ;;  %26103 = vmatprep.subr.bf16.mxu1 %v26756_v7  ;;  %v26116_v31 = vpack.c.bf16 %v20074_v48, %v20073_v39  ;;  %v20097_v39 = vld [vmem:[%s30016_s18 + $0x1f0] sm:$0xff]  ;;  %v20098_v48 = vld [vmem:[%s30016_s18 + $0x1f8] sm:$0xff] }
0x201e   : > { %v26152_v45 = vpack.c.bf16 %v20098_v48, %v20097_v39 }
0x2020   : > { %26093 = vmatpush3.bf16.msra.mxu0 %v26092_v17  ;;  %26105 = vmatpush3.bf16.msra.mxu1 %v26104_v19  ;;  %v20083_v17 = vld [vmem:[%s30016_s18 + $0x180] sm:$0xff]  ;;  %v20084_v19 = vld [vmem:[%s30016_s18 + $0x188] sm:$0xff] }
0x2021   : > { %26106 = vmatprep.subr.bf16.mxu0 %v26756_v7  ;;  %26118 = vmatprep.subr.bf16.mxu1 %v26756_v7  ;;  %v26131_v42 = vpack.c.bf16 %v20084_v19, %v20083_v17 }
0x2023   : > { %24049 = vmatmul.mubr.msk.f32.vlgmr.msra.gmra.mrb[172].mxu0 %vm1943_vm0, %v29317_v27  ;;  %24068 = vmatmul.mubr.msk.f32.vlgmr.msra.gmra.mrb[176].mxu1 %vm1943_vm0, %v29317_v27 }
0x2024   : > { %26108 = vmatpush3.bf16.msra.mxu0 %v26107_v61  ;;  %26120 = vmatpush3.bf16.msra.mxu1 %v26119_v62  ;;  %v20085_v61 = vld [vmem:[%s30016_s18 + $0x190] sm:$0xff]  ;;  %v20086_v62 = vld [vmem:[%s30016_s18 + $0x198] sm:$0xff] }
0x2025   : > { %26109 = vmatprep.subr.bf16.mxu0 %v26756_v7  ;;  %26121 = vmatprep.subr.bf16.mxu1 %v26756_v7  ;;  %v26134_v1 = vpack.c.bf16 %v20086_v62, %v20085_v61 }
0x2026   : > { %24086 = vmatprep.mubr.msk.f32.mxu0 %vm26757_vm3, %v26758_v20  ;;  %24105 = vmatprep.mubr.msk.f32.mxu1 %vm26757_vm3, %v26758_v20 }
0x2028   : > { %26111 = vmatpush3.bf16.msra.mxu0 %v26110_v21  ;;  %26123 = vmatpush3.bf16.msra.mxu1 %v26122_v0  ;;  %v20087_v21 = vld [vmem:[%s30016_s18 + $0x1a0] sm:$0xff]  ;;  %v20088_v0 = vld [vmem:[%s30016_s18 + $0x1a8] sm:$0xff] }
0x2029   : > { %26112 = vmatprep.subr.bf16.mxu0 %v26756_v7  ;;  %26124 = vmatprep.subr.bf16.mxu1 %v26756_v7  ;;  %v26137_v58 = vpack.c.bf16 %v20088_v0, %v20087_v21 }
0x202c   : > { %26114 = vmatpush3.bf16.msra.mxu0 %v26113_v16  ;;  %26126 = vmatpush3.bf16.msra.mxu1 %v26125_v38  ;;  %v20089_v16 = vld [vmem:[%s30016_s18 + $0x1b0] sm:$0xff]  ;;  %v20090_v38 = vld [vmem:[%s30016_s18 + $0x1b8] sm:$0xff] }
0x202d   : > { %26115 = vmatprep.subr.bf16.mxu0 %v26756_v7  ;;  %26127 = vmatprep.subr.bf16.mxu1 %v26756_v7  ;;  %v26140_v55 = vpack.c.bf16 %v20090_v38, %v20089_v16 }
0x2030   : > { %26117 = vmatpush3.bf16.msra.mxu0 %v26116_v31  ;;  %26129 = vmatpush3.bf16.msra.mxu1 %v26128_v10 }
0x2031   : > { %26130 = vmatprep.subr.bf16.mxu0 %v26756_v7  ;;  %26142 = vmatprep.subr.bf16.mxu1 %v26756_v7 }
0x2033   : > { %24087 = vmatmul.mubr.msk.f32.vlgmr.msra.gmra.mrb[174].mxu0 %vm1943_vm0, %v29317_v27  ;;  %24106 = vmatmul.mubr.msk.f32.vlgmr.msra.gmra.mrb[178].mxu1 %vm1943_vm0, %v29317_v27 }
0x2034   : > { %26132 = vmatpush3.bf16.msra.mxu0 %v26131_v42  ;;  %26144 = vmatpush3.bf16.msra.mxu1 %v26143_v60 }
0x2035   : > { %26133 = vmatprep.subr.bf16.mxu0 %v26756_v7  ;;  %26145 = vmatprep.subr.bf16.mxu1 %v26756_v7 }
0x2036   : > { %24124 = vmatprep.mubr.msk.f32.mxu0 %vm26757_vm3, %v26758_v20  ;;  %24143 = vmatprep.mubr.msk.f32.mxu1 %vm26757_vm3, %v26758_v20 }
0x2038   : > { %26135 = vmatpush3.bf16.msra.mxu0 %v26134_v1  ;;  %26147 = vmatpush3.bf16.msra.mxu1 %v26146_v11 }
0x2039   : > { %26136 = vmatprep.subr.bf16.mxu0 %v26756_v7  ;;  %26148 = vmatprep.subr.bf16.mxu1 %v26756_v7 }
0x203c   : > { %26138 = vmatpush3.bf16.msra.mxu0 %v26137_v58  ;;  %26150 = vmatpush3.bf16.msra.mxu1 %v26149_v44 }
0x203d   : > { %26139 = vmatprep.subr.bf16.mxu0 %v26756_v7  ;;  %26151 = vmatprep.subr.bf16.mxu1 %v26756_v7 }
0x2040   : > { %26141 = vmatpush3.bf16.msra.mxu0 %v26140_v55  ;;  %26153 = vmatpush3.bf16.msra.mxu1 %v26152_v45 }
0x2043   : > { %24125 = vmatmul.mubr.msk.f32.vlgmr.msra.gmra.mrb[176].mxu0 %vm1943_vm0, %v29317_v27  ;;  %24144 = vmatmul.mubr.msk.f32.vlgmr.msra.gmra.mrb[180].mxu1 %vm1943_vm0, %v29317_v27 }
0x2044   : > { %24148 = vmatprep.mubr.msk.f32.mxu0 %vm2850_vm1, %v29219_v52  ;;  %24153 = vmatprep.mubr.msk.f32.mxu1 %vm2850_vm1, %v29233_v30 }
0x20c6   : > { %v29480_v31 = vpop.f32.mrb[166].mxu0  ;;  %v29482_v10 = vpop.f32.mrb[170].mxu1 }
0x20c7   : > { %v23936_v17 = vpop.f32.mrb[167].mxu0  ;;  %v23955_v19 = vpop.f32.mrb[171].mxu1 }
0x20d6   : > { %v29484_v59 = vpop.f32.mrb[168].mxu0  ;;  %v29486_v23 = vpop.f32.mrb[172].mxu1 }
0x20d7   : > { %v23974_v42 = vpop.f32.mrb[169].mxu0  ;;  %v23993_v60 = vpop.f32.mrb[173].mxu1 }
0x20e6   : > { %v16026_v61 = vpop.f32.mrb[170].mxu0  ;;  %v16096_v62 = vpop.f32.mrb[174].mxu1 }
0x20e7   : > { %v24012_v63 = vpop.f32.mrb[171].mxu0  ;;  %v24031_v37 = vpop.f32.mrb[175].mxu1  ;;  %24146 = vmatprep.subr.msk.mxu0 %vm2850_vm1, %v16026_v61  ;;  %24151 = vmatprep.subr.msk.mxu1 %vm2850_vm1, %v16096_v62 }
0x20e8   : > { %24147 = vmatpush3.xpose.msk.msra.mxu0 %vm2850_vm1, %v16026_v61  ;;  %24152 = vmatpush3.xpose.msk.msra.mxu1 %vm2850_vm1, %v16096_v62 }
0x20eb   : > { %24149 = vmatmul.mubr.msk.f32.vlgmr.msra.gmra.mrb[178].mxu0 %vm2850_vm1, %v29216_v22  ;;  %24154 = vmatmul.mubr.msk.f32.vlgmr.msra.gmra.mrb[182].mxu1 %vm2850_vm1, %v29229_v28 }
0x20ec   : > { %24158 = vmatprep.mubr.msk.f32.mxu0 %vm2850_vm1, %v29225_v49  ;;  %24163 = vmatprep.mubr.msk.f32.mxu1 %vm2850_vm1, %v29243_v50 }
0x20f6   : > { %v16166_v52 = vpop.f32.mrb[172].mxu0  ;;  %v16236_v30 = vpop.f32.mrb[176].mxu1 }
0x20f7   : > { %v24050_v1 = vpop.f32.mrb[173].mxu0  ;;  %v24069_v11 = vpop.f32.mrb[177].mxu1  ;;  %24156 = vmatprep.subr.msk.mxu0 %vm2850_vm1, %v16166_v52  ;;  %24161 = vmatprep.subr.msk.mxu1 %vm2850_vm1, %v16236_v30 }
0x20f8   : > { %24157 = vmatpush3.xpose.msk.msra.mxu0 %vm2850_vm1, %v16166_v52  ;;  %24162 = vmatpush3.xpose.msk.msra.mxu1 %vm2850_vm1, %v16236_v30 }
0x20fb   : > { %24159 = vmatmul.mubr.msk.f32.vlgmr.msra.gmra.mrb[180].mxu0 %vm2850_vm1, %v29222_v26  ;;  %24164 = vmatmul.mubr.msk.f32.vlgmr.msra.gmra.mrb[184].mxu1 %vm2850_vm1, %v29239_v54 }
0x2106   : > { %v16306_v22 = vpop.f32.mrb[174].mxu0  ;;  %v16376_v49 = vpop.f32.mrb[178].mxu1 }
0x2107   : > { %v24088_v28 = vpop.f32.mrb[175].mxu0  ;;  %v24107_v50 = vpop.f32.mrb[179].mxu1  ;;  %24166 = vmatprep.subr.mxu0 %v16306_v22  ;;  %24171 = vmatprep.subr.mxu1 %v16376_v49 }
0x2108   : > { %24167 = vmatpush3.msra.mxu0 %v16306_v22  ;;  %24172 = vmatpush3.msra.mxu1 %v16376_v49 }
0x2116   : > { %v29508_v21 = vpop.f32.mrb[176].mxu0  ;;  %v29510_v0 = vpop.f32.mrb[180].mxu1 }
0x2117   : > { %v24126_v25 = vpop.f32.mrb[177].mxu0  ;;  %v24145_v41 = vpop.f32.mrb[181].mxu1  ;;  %24176 = vmatprep.subr.mxu0 %v29508_v21  ;;  %24181 = vmatprep.subr.mxu1 %v29510_v0 }
0x21be   : > { %v24150_v26 = vpop.f32.mrb[178].mxu0  ;;  %v24155_v54 = vpop.f32.mrb[182].mxu1 }
0x21bf   : > { %v16595_v58 = vpop.f32.mrb[179].mxu0  ;;  %v16679_v44 = vpop.f32.mrb[183].mxu1  ;;  %v16859_v16 = vsel %vm5255_vm4, %v24150_v26, -inf  ;;  %v16865_v39 = vsel %vm5255_vm4, %v24155_v54, -inf }
0x21c0   : > { %16860 = vmax.xlane.f32.xlu1 %v16859_v16  ;;  %v16856_v38 = vsel %vm5255_vm4, %v16595_v58, -inf  ;;  %v16862_v48 = vsel %vm5255_vm4, %v16679_v44, -inf }
0x21c1   : > { %16857 = vmax.xlane.f32.xlu0 %v16856_v38 }
0x21c4   : > { %16866 = vmax.xlane.f32.xlu1 %v16865_v39 }
0x21c5   : > { %16863 = vmax.xlane.f32.xlu0 %v16862_v48 }
0x21ce   : > { %v24160_v55 = vpop.f32.mrb[180].mxu0  ;;  %v24165_v45 = vpop.f32.mrb[184].mxu1 }
0x21cf   : > { %v16763_v17 = vpop.f32.mrb[181].mxu0  ;;  %v16847_v19 = vpop.f32.mrb[185].mxu1  ;;  %v16871_v42 = vsel %vm5255_vm4, %v24160_v55, -inf  ;;  %v16877_v61 = vsel %vm5255_vm4, %v24165_v45, -inf }
0x21d0   : > { %16872 = vmax.xlane.f32.xlu1 %v16871_v42  ;;  %v16868_v60 = vsel %vm5255_vm4, %v16763_v17, -inf  ;;  %v16874_v62 = vsel %vm5255_vm4, %v16847_v19, -inf }
0x21d1   : > { %16869 = vmax.xlane.f32.xlu0 %v16868_v60 }
0x21d4   : > { %16878 = vmax.xlane.f32.xlu1 %v16877_v61 }
0x21d5   : > { %16875 = vmax.xlane.f32.xlu0 %v16874_v62 }
0x224d   : > { %v16861_v63 = vpop.xlane.xlu1 %16860 }
0x224e   : > { %v16881_v37 = vsub.f32 %v24150_v26, %v16861_v63  ;;  %v16858_v52 = vpop.xlane.xlu0 %16857 }
0x224f   : > { %v16880_v30 = vsub.f32 %v16595_v58, %v16858_v52 }
0x2250   : > { %v16890_v1 = vmul.f32 1.442695, %v16881_v37 }
0x2251   : > { %v16888_v11 = vmul.f32 1.442695, %v16880_v30  ;;  %v16867_v22 = vpop.xlane.xlu1 %16866 }
0x2252   : > { %26555 = vpow2.f32 %v16890_v1  ;;  %v16883_v49 = vsub.f32 %v24155_v54, %v16867_v22  ;;  %v16864_v28 = vpop.xlane.xlu0 %16863 }
0x2253   : > { %26557 = vpow2.f32 %v16888_v11  ;;  %v16882_v50 = vsub.f32 %v16679_v44, %v16864_v28 }
0x2254   : > { %v16894_v25 = vmul.f32 1.442695, %v16883_v49 }
0x2255   : > { %v16892_v41 = vmul.f32 1.442695, %v16882_v50 }
0x2256   : > { %26559 = vpow2.f32 %v16894_v25 }
0x2257   : > { %26561 = vpow2.f32 %v16892_v41 }
0x225c   : > { %v26556_v16 = vpop.eup %26555 }
0x225d   : > { %v26558_v38 = vpop.eup %26557  ;;  %v16873_v39 = vpop.xlane.xlu1 %16872  ;;  %v16907_v48 = vsel %vm5255_vm4, %v26556_v16, 0.0 }
0x225e   : > { %v16885_v26 = vsub.f32 %v24160_v55, %v16873_v39  ;;  %16908 = vadd.xlane.f32.xlu1 %v16907_v48  ;;  %v16870_v58 = vpop.xlane.xlu0 %16869  ;;  %v16904_v42 = vsel %vm5255_vm4, %v26558_v38, 0.0 }
0x225f   : > { %v16884_v60 = vsub.f32 %v16763_v17, %v16870_v58  ;;  %16905 = vadd.xlane.f32.xlu0 %v16904_v42 }
0x2260   : > { %v26560_v54 = vpop.eup %26559  ;;  %v16898_v61 = vmul.f32 1.442695, %v16885_v26 }
0x2261   : > { %v26562_v62 = vpop.eup %26561  ;;  %v16896_v44 = vmul.f32 1.442695, %v16884_v60  ;;  %v16879_v63 = vpop.xlane.xlu1 %16878  ;;  %v16913_v37 = vsel %vm5255_vm4, %v26560_v54, 0.0 }
0x2262   : > { %26563 = vpow2.f32 %v16898_v61  ;;  %v16887_v52 = vsub.f32 %v24165_v45, %v16879_v63  ;;  %16914 = vadd.xlane.f32.xlu1 %v16913_v37  ;;  %v16876_v30 = vpop.xlane.xlu0 %16875  ;;  %v16910_v1 = vsel %vm5255_vm4, %v26562_v62, 0.0 }
0x2263   : > { %26565 = vpow2.f32 %v16896_v44  ;;  %v16886_v55 = vsub.f32 %v16847_v19, %v16876_v30  ;;  %16911 = vadd.xlane.f32.xlu0 %v16910_v1 }
0x2264   : > { %v16902_v11 = vmul.f32 1.442695, %v16887_v52 }
0x2265   : > { %v16900_v22 = vmul.f32 1.442695, %v16886_v55 }
0x2266   : > { %26567 = vpow2.f32 %v16902_v11 }
0x2267   : > { %26569 = vpow2.f32 %v16900_v22 }
0x226c   : > { %v26564_v17 = vpop.eup %26563 }
0x226d   : > { %v26566_v49 = vpop.eup %26565  ;;  %v16919_v28 = vsel %vm5255_vm4, %v26564_v17, 0.0 }
0x226e   : > { %16920 = vadd.xlane.f32.xlu1 %v16919_v28  ;;  %v16916_v50 = vsel %vm5255_vm4, %v26566_v49, 0.0 }
0x226f   : > { %16917 = vadd.xlane.f32.xlu0 %v16916_v50 }
0x2270   : > { %v26568_v45 = vpop.eup %26567 }
0x2271   : > { %v26570_v25 = vpop.eup %26569  ;;  %v16925_v41 = vsel %vm5255_vm4, %v26568_v45, 0.0 }
0x2272   : > { %16926 = vadd.xlane.f32.xlu1 %v16925_v41  ;;  %v16922_v19 = vsel %vm5255_vm4, %v26570_v25, 0.0 }
0x2273   : > { %16923 = vadd.xlane.f32.xlu0 %v16922_v19 }
0x22eb   : > { %v16909_v39 = vpop.xlane.xlu1 %16908 }
0x22ec   : > { %26571 = vrcp.f32 %v16909_v39  ;;  %v16906_v48 = vpop.xlane.xlu0 %16905 }
0x22ed   : > { %26573 = vrcp.f32 %v16906_v48 }
0x22ef   : > { %v16915_v26 = vpop.xlane.xlu1 %16914 }
0x22f0   : > { %26575 = vrcp.f32 %v16915_v26  ;;  %v16912_v58 = vpop.xlane.xlu0 %16911 }
0x22f1   : > { %26577 = vrcp.f32 %v16912_v58 }
0x22f6   : > { %v26572_v42 = vpop.eup %26571 }
0x22f7   : > { %v26574_v60 = vpop.eup %26573  ;;  %v16931_v44 = vmul.f32 %v26572_v42, %v26556_v16 }
0x22f8   : > { %v16929_v61 = vmul.f32 %v26574_v60, %v26558_v38 }
0x22fa   : > { %v26576_v63 = vpop.eup %26575  ;;  %24168 = vmatprep.mubr.msk.f32.mxu0 %vm5255_vm4, %v16929_v61 }
0x22fb   : > { %v26578_v37 = vpop.eup %26577  ;;  %v16921_v52 = vpop.xlane.xlu1 %16920  ;;  %24169 = vmatmul.mubr.msk.f32.vlgmr.msra.gmra.mrb[182].mxu0 %vm5255_vm4, %v16931_v44  ;;  %v16935_v55 = vmul.f32 %v26576_v63, %v26560_v54 }
0x22fc   : > { %26579 = vrcp.f32 %v16921_v52  ;;  %24177 = vmatpush3.msra.mxu0 %v29508_v21  ;;  %v16918_v30 = vpop.xlane.xlu0 %16917  ;;  %v16933_v1 = vmul.f32 %v26578_v37, %v26562_v62 }
0x22fd   : > { %26581 = vrcp.f32 %v16918_v30  ;;  %26154 = vmatprep.subr.bf16.mxu0 %v26756_v7 }
0x22fe   : > { %24173 = vmatprep.mubr.msk.f32.mxu1 %vm5255_vm4, %v16933_v1 }
0x22ff   : > { %v16927_v38 = vpop.xlane.xlu1 %16926  ;;  %24174 = vmatmul.mubr.msk.f32.vlgmr.msra.gmra.mrb[186].mxu1 %vm5255_vm4, %v16935_v55 }
0x2300   : > { %26583 = vrcp.f32 %v16927_v38  ;;  %24182 = vmatpush3.msra.mxu1 %v29510_v0  ;;  %v16924_v16 = vpop.xlane.xlu0 %16923  ;;  %v19995_v38 = vld [vmem:[%s30018_s11 + $0x40] sm:$0xff] }
0x2301   : > { %26585 = vrcp.f32 %v16924_v16  ;;  %26158 = vmatprep.subr.bf16.mxu1 %v26756_v7  ;;  %v19996_v16 = vld [vmem:[%s30018_s11 + $0x48] sm:$0xff] }
0x2306   : > { %v26580_v11 = vpop.eup %26579 }
0x2307   : > { %v26582_v21 = vpop.eup %26581  ;;  %v16939_v62 = vmul.f32 %v26580_v11, %v26564_v17 }
0x2308   : > { %v16937_v22 = vmul.f32 %v26582_v21, %v26566_v49 }
0x230a   : > { %v26584_v54 = vpop.eup %26583  ;;  %24178 = vmatprep.mubr.msk.f32.mxu0 %vm5255_vm4, %v16937_v22 }
0x230b   : > { %v26586_v28 = vpop.eup %26585  ;;  %24179 = vmatmul.mubr.msk.f32.vlgmr.msra.gmra.mrb[184].mxu0 %vm5255_vm4, %v16939_v62  ;;  %v16943_v50 = vmul.f32 %v26584_v54, %v26568_v45  ;;  %v26182_v62 = vpack.c.bf16 %v19996_v16, %v19995_v38  ;;  %v19997_v54 = vld [vmem:[%s30018_s11 + $0x50] sm:$0xff] }
0x230c   : > { %26157 = vmatpush3.bf16.xpose.msk.msra.mxu0 %vm27349_vm2, %v26155_v35  ;;  %v16941_v0 = vmul.f32 %v26586_v28, %v26570_v25  ;;  %24190 = vmatprep.mubr.msk.f32.mxu0 %vm26757_vm3, %v26758_v20  ;;  %v19998_v28 = vld [vmem:[%s30018_s11 + $0x58] sm:$0xff] }
0x230d   : > { %26162 = vmatprep.subr.bf16.mxu0 %v26756_v7 }
0x230e   : > { %24183 = vmatprep.mubr.msk.f32.mxu1 %vm5255_vm4, %v16941_v0 }
0x230f   : > { %24184 = vmatmul.mubr.msk.f32.vlgmr.msra.gmra.mrb[188].mxu1 %vm5255_vm4, %v16943_v50 }
0x2310   : > { %26161 = vmatpush3.bf16.xpose.msk.msra.mxu1 %vm27349_vm2, %v26159_v57  ;;  %24197 = vmatprep.mubr.msk.f32.mxu1 %vm26757_vm3, %v26758_v20 }
0x2311   : > { %26166 = vmatprep.subr.bf16.mxu1 %v26756_v7 }
0x2313   : > { %24191 = vmatmul.mubr.msk.f32.vlgmr.msra.gmra.mrb[186].mxu0 %vm2850_vm1, %v29480_v31 }
0x2314   : > { %26165 = vmatpush3.bf16.xpose.msk.msra.mxu0 %vm27349_vm2, %v26163_v43  ;;  %24204 = vmatprep.mubr.msk.f32.mxu0 %vm26757_vm3, %v26758_v20 }
0x2315   : > { %26170 = vmatprep.subr.bf16.mxu0 %v26756_v7 }
0x2317   : > { %24198 = vmatmul.mubr.msk.f32.vlgmr.msra.gmra.mrb[190].mxu1 %vm2850_vm1, %v29482_v10 }
0x2318   : > { %26169 = vmatpush3.bf16.xpose.msk.msra.mxu1 %vm27349_vm2, %v26167_v5  ;;  %24211 = vmatprep.mubr.msk.f32.mxu1 %vm26757_vm3, %v26758_v20 }
0x2319   : > { %26173 = vmatprep.subr.bf16.mxu1 %v26756_v7 }
0x231b   : > { %24205 = vmatmul.mubr.msk.f32.vlgmr.msra.gmra.mrb[188].mxu0 %vm2850_vm1, %v29484_v59 }
0x231c   : > { %26172 = vmatpush3.bf16.msra.mxu0 %v26171_v40  ;;  %24218 = vmatprep.mubr.msk.f32.mxu0 %vm26757_vm3, %v26758_v20 }
0x231d   : > { %26176 = vmatprep.subr.bf16.mxu0 %v26756_v7 }
0x231f   : > { %24212 = vmatmul.mubr.msk.f32.vlgmr.msra.gmra.mrb[192].mxu1 %vm2850_vm1, %v29486_v23 }
0x2320   : > { %26175 = vmatpush3.bf16.msra.mxu1 %v26174_v14  ;;  %24225 = vmatprep.mubr.msk.f32.mxu1 %vm26757_vm3, %v26758_v20 }
0x2321   : > { %26179 = vmatprep.subr.bf16.mxu1 %v26756_v7 }
0x23ce   : > { %v29594_v12 = vpop.f32.mrb[182].mxu0 }
0x23cf   : > { %v29596_v29 = vpop.f32.mrb[183].mxu0 }
0x23d2   : > { %v29598_v34 = vpop.f32.mrb[186].mxu1 }
0x23d3   : > { %v29600_v35 = vpop.f32.mrb[187].mxu1 }
0x23de   : > { %v29602_v36 = vpop.f32.mrb[184].mxu0 }
0x23df   : > { %v29604_v18 = vpop.f32.mrb[185].mxu0 }
0x23e2   : > { %v29606_v43 = vpop.f32.mrb[188].mxu1 }
0x23e3   : > { %v29608_v47 = vpop.f32.mrb[189].mxu1 }
0x23e6   : > { %v17343_v24 = vpop.f32.mrb[186].mxu0 }
0x23e7   : > { %v24192_v32 = vpop.f32.mrb[187].mxu0  ;;  %v17584_v57 = vsel %vm2850_vm1, %v17343_v24, -inf }
0x23e8   : > { %17585 = vmax.xlane.f32.xlu0 %v17584_v57  ;;  %v19999_v32 = vld [vmem:[%s30018_s11 + $0x60] sm:$0xff]  ;;  %v20000_v57 = vld [vmem:[%s30018_s11 + $0x68] sm:$0xff] }
0x23e9   : > { %v26190_v6 = vpack.c.bf16 %v20000_v57, %v19999_v32 }
0x23ea   : > { %v17422_v56 = vpop.f32.mrb[190].mxu1 }
0x23eb   : > { %v24199_v40 = vpop.f32.mrb[191].mxu1  ;;  %v17587_v2 = vsel %vm2850_vm1, %v17422_v56, -inf }
0x23ec   : > { %17588 = vmax.xlane.f32.xlu1 %v17587_v2  ;;  %v20002_v40 = vld [vmem:[%s30018_s11 + $0x78] sm:$0xff] }
0x23ee   : > { %v17501_v51 = vpop.f32.mrb[188].mxu0 }
0x23ef   : > { %v24206_v5 = vpop.f32.mrb[189].mxu0  ;;  %v17590_v9 = vsel %vm2850_vm1, %v17501_v51, -inf }
0x23f0   : > { %17591 = vmax.xlane.f32.xlu0 %v17590_v9  ;;  %v20105_v5 = vld [vmem:[%s30022_s23 + $0x70] sm:$0xff]  ;;  %v20106_v9 = vld [vmem:[%s30022_s23 + $0x78] sm:$0xff] }
0x23f2   : > { %v17580_v13 = vpop.f32.mrb[192].mxu1 }
0x23f3   : > { %v24213_v14 = vpop.f32.mrb[193].mxu1  ;;  %v17593_v31 = vsel %vm2850_vm1, %v17580_v13, -inf }
0x23f4   : > { %17594 = vmax.xlane.f32.xlu1 %v17593_v31 }
0x2475   : > { %v17586_v10 = vpop.xlane.xlu0 %17585 }
0x2476   : > { %v17596_v59 = vsub.f32 %v17343_v24, %v17586_v10  ;;  %v26186_v24 = vpack.c.bf16 %v19998_v28, %v19997_v54 }
0x2478   : > { %v17600_v23 = vmul.f32 1.442695, %v17596_v59 }
0x2479   : > { %v17589_v17 = vpop.xlane.xlu1 %17588 }
0x247a   : > { %26587 = vpow2.f32 %v17600_v23  ;;  %v17597_v49 = vsub.f32 %v17422_v56, %v17589_v17 }
0x247c   : > { %v17602_v45 = vmul.f32 1.442695, %v17597_v49 }
0x247d   : > { %v17592_v25 = vpop.xlane.xlu0 %17591 }
0x247e   : > { %26589 = vpow2.f32 %v17602_v45  ;;  %v17598_v41 = vsub.f32 %v17501_v51, %v17592_v25  ;;  %v20100_v51 = vld [vmem:[%s30022_s23 + $0x48] sm:$0xff] }
0x2480   : > { %v17604_v19 = vmul.f32 1.442695, %v17598_v41 }
0x2481   : > { %v17595_v39 = vpop.xlane.xlu1 %17594 }
0x2482   : > { %26591 = vpow2.f32 %v17604_v19  ;;  %v17599_v48 = vsub.f32 %v17580_v13, %v17595_v39 }
0x2484   : > { %v26588_v26 = vpop.eup %26587  ;;  %v17606_v58 = vmul.f32 1.442695, %v17599_v48 }
0x2485   : > { %v17608_v42 = vsel %vm2850_vm1, %v26588_v26, 0.0 }
0x2486   : > { %26593 = vpow2.f32 %v17606_v58  ;;  %17609 = vadd.xlane.f32.xlu0 %v17608_v42 }
0x2488   : > { %v26590_v60 = vpop.eup %26589 }
0x2489   : > { %v17611_v61 = vsel %vm2850_vm1, %v26590_v60, 0.0 }
0x248a   : > { %17612 = vadd.xlane.f32.xlu1 %v17611_v61 }
0x248c   : > { %v26592_v44 = vpop.eup %26591 }
0x248d   : > { %v17614_v63 = vsel %vm2850_vm1, %v26592_v44, 0.0 }
0x248e   : > { %17615 = vadd.xlane.f32.xlu0 %v17614_v63 }
0x2490   : > { %v26594_v37 = vpop.eup %26593 }
0x2491   : > { %v17617_v52 = vsel %vm2850_vm1, %v26594_v37, 0.0 }
0x2492   : > { %17618 = vadd.xlane.f32.xlu1 %v17617_v52 }
0x2513   : > { %v17610_v30 = vpop.xlane.xlu0 %17609 }
0x2514   : > { %26595 = vrcp.f32 %v17610_v30 }
0x2517   : > { %v17613_v1 = vpop.xlane.xlu1 %17612 }
0x2518   : > { %26597 = vrcp.f32 %v17613_v1 }
0x251b   : > { %v17616_v55 = vpop.xlane.xlu0 %17615 }
0x251c   : > { %26599 = vrcp.f32 %v17616_v55 }
0x251e   : > { %v26596_v11 = vpop.eup %26595 }
0x251f   : > { %v17621_v21 = vmul.f32 %v26596_v11, %v26588_v26  ;;  %v17619_v22 = vpop.xlane.xlu1 %17618 }
0x2520   : > { %26601 = vrcp.f32 %v17619_v22 }
0x2521   : > { %20183 = vst.msk [vmem:[%s28321_s28 + $0x20] sm:$0xff] %vm2850_vm1, %v17621_v21  ;;  %24219 = vmatmul.mubr.msk.f32.vlgmr.msra.gmra.mrb[190].mxu0 %vm2850_vm1, %v17621_v21 }
0x2522   : > { %v26598_v0 = vpop.eup %26597  ;;  %26178 = vmatpush3.bf16.msra.mxu0 %v26177_v8  ;;  %24232 = vmatprep.mubr.msk.f32.mxu0 %vm26757_vm3, %v26758_v20  ;;  %v20001_v8 = vld [vmem:[%s30018_s11 + $0x70] sm:$0xff] }
0x2523   : > { %v17623_v50 = vmul.f32 %v26598_v0, %v26590_v60  ;;  %26183 = vmatprep.subr.bf16.mxu0 %v26182_v62  ;;  %v26194_v4 = vpack.c.bf16 %v20002_v40, %v20001_v8 }
0x2525   : > { %20184 = vst.msk [vmem:[%s28321_s28 + $0x28] sm:$0xff] %vm2850_vm1, %v17623_v50  ;;  %24226 = vmatmul.mubr.msk.f32.vlgmr.msra.gmra.mrb[194].mxu1 %vm2850_vm1, %v17623_v50 }
0x2526   : > { %v26600_v56 = vpop.eup %26599  ;;  %26181 = vmatpush3.bf16.msra.mxu1 %v26180_v15  ;;  %24239 = vmatprep.mubr.msk.f32.mxu1 %vm26757_vm3, %v26758_v20  ;;  %v20099_v15 = vld [vmem:[%s30022_s23 + $0x40] sm:$0xff] }
0x2527   : > { %v17625_v53 = vmul.f32 %v26600_v56, %v26592_v44  ;;  %26187 = vmatprep.subr.bf16.mxu1 %v26186_v24 }
0x2529   : > { %20185 = vst.msk [vmem:[%s28321_s28 + $0x30] sm:$0xff] %vm2850_vm1, %v17625_v53  ;;  %24233 = vmatmul.mubr.msk.f32.vlgmr.msra.gmra.mrb[192].mxu0 %vm2850_vm1, %v17625_v53 }
0x252a   : > { %v26602_v2 = vpop.eup %26601  ;;  %26185 = vmatpush3.bf16.msra.mxu0 %v26182_v62  ;;  %24246 = vmatprep.mubr.msk.f32.mxu0 %vm2850_vm1, %v29596_v29  ;;  %v26199_v29 = vpack.c.bf16 %v20100_v51, %v20099_v15 }
0x252b   : > { %v17627_v33 = vmul.f32 %v26602_v2, %v26594_v37  ;;  %26191 = vmatprep.subr.bf16.mxu0 %v26190_v6 }
0x252d   : > { %20186 = vst.msk [vmem:[%s28321_s28 + $0x38] sm:$0xff] %vm2850_vm1, %v17627_v33  ;;  %24240 = vmatmul.mubr.msk.f32.vlgmr.msra.gmra.mrb[196].mxu1 %vm2850_vm1, %v17627_v33  ;;  %24247 = vmatmul.mubr.msk.f32.vlgmr.msra.gmra.mrb[194].mxu0 %vm2850_vm1, %v29594_v12  ;;  %v20101_v12 = vld [vmem:[%s30022_s23 + $0x50] sm:$0xff]  ;;  %s30045_s28 = sld [smem:[#allocation27_spill]] }
0x252e   : > { %26189 = vmatpush3.bf16.msra.mxu1 %v26186_v24  ;;  %24253 = vmatprep.mubr.msk.f32.mxu1 %vm2850_vm1, %v29600_v35 }
0x252f   : > { %26193 = vmatpush3.bf16.msra.mxu0 %v26190_v6  ;;  %24260 = vmatprep.mubr.msk.f32.mxu0 %vm2850_vm1, %v29604_v18  ;;  %v20104_v18 = vld [vmem:[%s30022_s23 + $0x68] sm:$0xff] }
0x2530   : > { %26195 = vmatprep.subr.bf16.mxu1 %v26194_v4  ;;  %26198 = vmatprep.subr.bf16.mxu0 %v26756_v7 }
0x2531   : > { %24254 = vmatmul.mubr.msk.f32.vlgmr.msra.gmra.mrb[198].mxu1 %vm2850_vm1, %v29598_v34  ;;  %v20102_v34 = vld [vmem:[%s30022_s23 + $0x58] sm:$0xff] }
0x2532   : > { %24261 = vmatmul.mubr.msk.f32.vlgmr.msra.gmra.mrb[196].mxu0 %vm2850_vm1, %v29602_v36  ;;  %26197 = vmatpush3.bf16.msra.mxu1 %v26194_v4  ;;  %v26202_v35 = vpack.c.bf16 %v20102_v34, %v20101_v12  ;;  %v20103_v36 = vld [vmem:[%s30022_s23 + $0x60] sm:$0xff] }
0x2533   : > { %24267 = vmatprep.mubr.msk.f32.mxu1 %vm2850_vm1, %v29608_v47  ;;  %26200 = vmatpush3.bf16.msra.mxu0 %v26199_v29  ;;  %v26205_v47 = vpack.c.bf16 %v20104_v18, %v20103_v36 }
0x2534   : > { %24274 = vmatprep.mubr.msk.f32.mxu0 %vm26757_vm3, %v26758_v20  ;;  %26201 = vmatprep.subr.bf16.mxu1 %v26756_v7 }
0x2535   : > { %24268 = vmatmul.mubr.msk.f32.vlgmr.msra.gmra.mrb[200].mxu1 %vm2850_vm1, %v29606_v43  ;;  %26204 = vmatprep.subr.bf16.mxu0 %v26756_v7  ;;  %v26208_v43 = vpack.c.bf16 %v20106_v9, %v20105_v5 }
0x2536   : > { %24281 = vmatprep.mubr.msk.f32.mxu1 %vm26757_vm3, %v26758_v20  ;;  %26203 = vmatpush3.bf16.msra.mxu1 %v26202_v35 }
0x2537   : > { %26207 = vmatprep.subr.bf16.mxu1 %v26756_v7 }
0x25f4   : > { %v17697_v13 = vpop.f32.mrb[190].mxu0 }
0x25f5   : > { %v24220_v14 = vpop.f32.mrb[191].mxu0  ;;  %24275 = vmatmul.mubr.msk.f32.vlgmr.msra.gmra.mrb[198].mxu0 %vm2850_vm1, %v17697_v13 }
0x25f6   : > { %26206 = vmatpush3.bf16.msra.mxu0 %v26205_v47  ;;  %24288 = vmatprep.mubr.msk.f32.mxu0 %vm26757_vm3, %v26758_v20  ;;  %v20203_v14 = vld [vmem:[%s30023_s26 + $0x40] sm:$0xff] }
0x25f8   : > { %v17770_v31 = vpop.f32.mrb[194].mxu1 }
0x25f9   : > { %v24227_v10 = vpop.f32.mrb[195].mxu1  ;;  %24282 = vmatmul.mubr.msk.f32.vlgmr.msra.gmra.mrb[202].mxu1 %vm2850_vm1, %v17770_v31 }
0x25fa   : > { %26209 = vmatpush3.bf16.msra.mxu1 %v26208_v43  ;;  %24295 = vmatprep.mubr.msk.f32.mxu1 %vm26757_vm3, %v26758_v20  ;;  %v20204_v43 = vld [vmem:[%s30023_s26 + $0x48] sm:$0xff]  ;;  %v20205_v10 = vld [vmem:[%s30023_s26 + $0x50] sm:$0xff] }
0x25fb   : > { %v26210_v31 = vpack.c.bf16 %v20204_v43, %v20203_v14  ;;  %v20224_v43 = vld [vmem:[%s30026_s22 + $0xe0] sm:$0xff] }
0x25fc   : > { %v17843_v59 = vpop.f32.mrb[192].mxu0 }
0x25fd   : > { %v24234_v23 = vpop.f32.mrb[193].mxu0  ;;  %24289 = vmatmul.mubr.msk.f32.vlgmr.msra.gmra.mrb[200].mxu0 %vm2850_vm1, %v17843_v59  ;;  %26211 = vmatprep.subr.bf16.mxu0 %v26210_v31  ;;  %v20206_v59 = vld [vmem:[%s30023_s26 + $0x58] sm:$0xff] }
0x25fe   : > { %26213 = vmatpush3.bf16.msra.mxu0 %v26210_v31  ;;  %v26214_v23 = vpack.c.bf16 %v20206_v59, %v20205_v10  ;;  %v20225_v31 = vld [vmem:[%s30026_s22 + $0xe8] sm:$0xff]  ;;  %v20226_v59 = vld [vmem:[%s30026_s22 + $0xf0] sm:$0xff] }
0x25ff   : > { %v26250_v10 = vpack.c.bf16 %v20225_v31, %v20224_v43 }
0x2600   : > { %v17916_v17 = vpop.f32.mrb[196].mxu1  ;;  %v24248_v49 = vpop.f32.mrb[194].mxu0  ;;  %26215 = vmatprep.subr.bf16.mxu0 %v26214_v23 }
0x2601   : > { %v24241_v45 = vpop.f32.mrb[197].mxu1  ;;  %v17997_v25 = vpop.f32.mrb[195].mxu0  ;;  %24296 = vmatmul.mubr.msk.f32.vlgmr.msra.gmra.mrb[204].mxu1 %vm2850_vm1, %v17916_v17  ;;  %v18256_v19 = vsel %vm1943_vm0, %v24248_v49, 0.0  ;;  %v20208_v17 = vld [vmem:[%s30023_s26 + $0x68] sm:$0xff] }
0x2602   : > { %v18249_v58 = vsel %vm1943_vm0, %v17997_v25, 0.0  ;;  %26217 = vmatpush3.bf16.msra.mxu0 %v26214_v23  ;;  %v20209_v45 = vld [vmem:[%s30023_s26 + $0x70] sm:$0xff]  ;;  %v20210_v25 = vld [vmem:[%s30023_s26 + $0x78] sm:$0xff] }
0x2603   : > { %v20227_v23 = vld [vmem:[%s30026_s22 + $0xf8] sm:$0xff] }
0x2604   : > { %v24255_v41 = vpop.f32.mrb[198].mxu1 }
0x2605   : > { %v18257_v39 = vsel %vm1943_vm0, %v24255_v41, 0.0  ;;  %v24262_v48 = vpop.f32.mrb[196].mxu0  ;;  %v18078_v26 = vpop.f32.mrb[199].mxu1  ;;  %v26222_v41 = vpack.c.bf16 %v20210_v25, %v20209_v45 }
0x2606   : > { %v18258_v42 = vadd.f32 %v18257_v39, %v18256_v19  ;;  %v18250_v60 = vsel %vm1943_vm0, %v18078_v26, 0.0  ;;  %v18159_v61 = vpop.f32.mrb[197].mxu0  ;;  %v18259_v44 = vsel %vm1943_vm0, %v24262_v48, 0.0 }
0x2607   : > { %v18251_v63 = vadd.f32 %v18250_v60, %v18249_v58  ;;  %v18252_v52 = vsel %vm1943_vm0, %v18159_v61, 0.0  ;;  %v20195_v58 = vld [vmem:[%s30044_s5 + $0x1] ss:$0 sm:$0xff]  ;;  %s30050_s5 = sld [smem:[#allocation31_spill]] }
0x2608   : > { %v18260_v37 = vadd.f32 %v18259_v44, %v18258_v42  ;;  %v24269_v30 = vpop.f32.mrb[200].mxu1  ;;  %v20196_v60 = vld [vmem:[%s30045_s28 + $0x1] ss:$0 sm:$0xff]  ;;  %s30051_s28 = sld [smem:[#allocation37_spill]] }
0x2609   : > { %v18253_v1 = vadd.f32 %v18252_v52, %v18251_v63  ;;  %v18261_v55 = vsel %vm1943_vm0, %v24269_v30, 0.0  ;;  %v18240_v38 = vpop.f32.mrb[201].mxu1 }
0x260a   : > { %v18262_v16 = vadd.f32 %v18261_v55, %v18260_v37  ;;  %v18254_v11 = vsel %vm1943_vm0, %v18240_v38, 0.0 }
0x260b   : > { %v18255_v21 = vadd.f32 %v18254_v11, %v18253_v1 }
0x260c   : > { %v18264_v22 = vadd.f32 %v18262_v16, %v29075_v3 }
0x260d   : > { %v18263_v62 = vadd.f32 %v18255_v21, %v29058_v46 }
0x260e   : > { %v18268_v54 = vsel %vm1943_vm0, %v18264_v22, 0.0 }
0x260f   : > { %18269 = vadd.xlane.f32.xlu1 %v18268_v54  ;;  %v18265_v28 = vsel %vm1943_vm0, %v18263_v62, 0.0  ;;  %v20237_v54 = vld [vmem:[%s30046_s1 + $0x40] sm:$0xff]  ;;  %s30052_s1 = sld [smem:[#allocation33_spill]] }
0x2610   : > { %18266 = vadd.xlane.f32.xlu0 %v18265_v28  ;;  %v20238_v28 = vld [vmem:[%s30047_s6 + $0x48] sm:$0xff] }
0x269c   : > { %v18270_v2 = vpop.xlane.xlu1 %18269 }
0x269d   : > { %v18267_v0 = vpop.xlane.xlu0 %18266  ;;  %v18272_v51 = vmul.f32 0.015625, %v18270_v2  ;;  %v20214_v2 = vld [vmem:[%s30026_s22 + $0x90] sm:$0xff] }
0x269e   : > { %v18271_v50 = vmul.f32 0.015625, %v18267_v0  ;;  %v26259_v0 = vpack.c.bf16 %v20238_v28, %v20237_v54  ;;  %v20257_v54 = vld [vmem:[%s30030_s0 + $0xd8] sm:$0xff] }
0x269f   : > { %v18274_v36 = vsub.f32 %v18264_v22, %v18272_v51  ;;  %v20216_v51 = vld [vmem:[%s30026_s22 + $0xa0] sm:$0xff] }
0x26a0   : > { %v18273_v24 = vsub.f32 %v18263_v62, %v18271_v50  ;;  %v20239_v50 = vld [vmem:[%s30047_s6 + $0x50] sm:$0xff] }
0x26a1   : > { %v18276_v9 = vmul.f32 %v18274_v36, %v18274_v36 }
0x26a2   : > { %v18275_v32 = vmul.f32 %v18273_v24, %v18273_v24 }
0x26a3   : > { %v18280_v13 = vsel %vm1943_vm0, %v18276_v9, 0.0  ;;  %v20222_v9 = vld [vmem:[%s30026_s22 + $0xd0] sm:$0xff] }
0x26a4   : > { %v18277_v57 = vsel %vm1943_vm0, %v18275_v32, 0.0 }
0x26a5   : > { %18278 = vadd.xlane.f32.xlu1 %v18277_v57  ;;  %v20241_v57 = vld [vmem:[%s30047_s6 + $0x60] sm:$0xff] }
0x26c8   : > { %v18376_v56 = vpop.f32.mrb[198].mxu0 }
0x26c9   : > { %v24276_v53 = vpop.f32.mrb[199].mxu0  ;;  %v18599_v3 = vsel %vm1943_vm0, %v18376_v56, 0.0  ;;  %v20242_v56 = vld [vmem:[%s30047_s6 + $0x68] sm:$0xff] }
0x26ca   : > { %v26265_v53 = vpack.c.bf16 %v20242_v56, %v20241_v57 }
0x26cc   : > { %v18449_v6 = vpop.f32.mrb[202].mxu1 }
0x26cd   : > { %v18600_v46 = vsel %vm1943_vm0, %v18449_v6, 0.0  ;;  %v24283_v8 = vpop.f32.mrb[203].mxu1  ;;  %v20243_v6 = vld [vmem:[%s30047_s6 + $0x70] sm:$0xff] }
0x26ce   : > { %v18601_v40 = vadd.f32 %v18600_v46, %v18599_v3  ;;  %v20244_v3 = vld [vmem:[%s30047_s6 + $0x78] sm:$0xff]  ;;  %v20212_v8 = vld [vmem:[%s30026_s22 + $0x80] sm:$0xff] }
0x26cf   : > { %v26268_v46 = vpack.c.bf16 %v20244_v3, %v20243_v6 }
0x26d0   : > { %v18522_v33 = vpop.f32.mrb[200].mxu0 }
0x26d1   : > { %v18602_v4 = vsel %vm1943_vm0, %v18522_v33, 0.0  ;;  %v24290_v15 = vpop.f32.mrb[201].mxu0 }
0x26d2   : > { %v18603_v29 = vadd.f32 %v18602_v4, %v18601_v40  ;;  %v20213_v40 = vld [vmem:[%s30026_s22 + $0x88] sm:$0xff]  ;;  %v20215_v4 = vld [vmem:[%s30026_s22 + $0x98] sm:$0xff] }
0x26d3   : > { %v26226_v33 = vpack.c.bf16 %v20213_v40, %v20212_v8  ;;  %v26230_v15 = vpack.c.bf16 %v20215_v4, %v20214_v2  ;;  %v20260_v8 = vld [vmem:[%s30030_s0 + $0xf0] sm:$0xff]  ;;  %v20261_v40 = vld [vmem:[%s30030_s0 + $0xf8] sm:$0xff] }
0x26d4   : > { %v18595_v12 = vpop.f32.mrb[204].mxu1  ;;  %v26292_v2 = vpack.c.bf16 %v20261_v40, %v20260_v8 }
0x26d5   : > { %v18604_v34 = vsel %vm1943_vm0, %v18595_v12, 0.0  ;;  %v24297_v35 = vpop.f32.mrb[205].mxu1  ;;  %26227 = vmatprep.subr.bf16.mxu1 %v26226_v33 }
0x26d6   : > { %v18605_v18 = vadd.f32 %v18604_v34, %v18603_v29  ;;  %v20217_v29 = vld [vmem:[%s30026_s22 + $0xa8] sm:$0xff]  ;;  %26229 = vmatpush3.bf16.msra.mxu1 %v26226_v33  ;;  %v20218_v34 = vld [vmem:[%s30026_s22 + $0xb0] sm:$0xff]  ;;  %v20219_v35 = vld [vmem:[%s30026_s22 + $0xb8] sm:$0xff] }
0x26d7   : > { %26231 = vmatprep.subr.bf16.mxu1 %v26230_v15  ;;  %v26234_v12 = vpack.c.bf16 %v20217_v29, %v20216_v51  ;;  %v20265_v33 = vld [vmem:[%s30051_s28 + $0x1] ss:$0 sm:$0xff]  ;;  %s30055_s28 = sld [smem:[#allocation42_spill]] }
0x26d8   : > { %v18606_v47 = vadd.f32 %v18605_v18, %v29317_v27  ;;  %v20207_v27 = vld [vmem:[%s30023_s26 + $0x60] sm:$0xff] }
0x26d9   : > { %v26218_v49 = vpack.c.bf16 %v20208_v17, %v20207_v27  ;;  %v20220_v18 = vld [vmem:[%s30026_s22 + $0xc0] sm:$0xff]  ;;  %v26254_v27 = vpack.c.bf16 %v20227_v23, %v20226_v59 }
0x26da   : > { %v18607_v5 = vsel %vm1943_vm0, %v18606_v47, 0.0  ;;  %26233 = vmatpush3.bf16.msra.mxu1 %v26230_v15  ;;  %v20234_v29 = vld [vmem:[%s30052_s1 + $0x1] ss:$0 sm:$0xff] }
0x26db   : > { %18608 = vadd.xlane.f32.xlu0 %v18607_v5  ;;  %26219 = vmatprep.subr.bf16.mxu0 %v26218_v49 }
0x26dc   : > { %26221 = vmatpush3.bf16.msra.mxu0 %v26218_v49  ;;  %26235 = vmatprep.subr.bf16.mxu1 %v26234_v12 }
0x26dd   : > { %26223 = vmatprep.subr.bf16.mxu0 %v26222_v41 }
0x26de   : > { %26237 = vmatpush3.bf16.msra.mxu1 %v26234_v12 }
0x26df   : > { %18281 = vadd.xlane.f32.xlu0 %v18280_v13  ;;  %v20223_v13 = vld [vmem:[%s30026_s22 + $0xd8] sm:$0xff] }
0x26e0   : > { %26225 = vmatpush3.bf16.msra.mxu0 %v26222_v41  ;;  %v26246_v14 = vpack.c.bf16 %v20223_v13, %v20222_v9  ;;  %v20201_v41 = vld [vmem:[%s30048_s7 + $0x1] ss:$0 sm:$0xff]  ;;  %s30053_s7 = sld [smem:[#allocation48_spill]] }
0x26e1   : > { %26258 = vmatprep.subr.bf16.mxu0 %v26756_v7  ;;  %v20267_v13 = vld [vmem:[%s30040_s21 + $0x1] ss:$0 sm:$0xff] }
0x2732   : > { %v18279_v19 = vpop.xlane.xlu1 %18278 }
0x2733   : > { %v18283_v39 = vmul.f32 0.015625, %v18279_v19 }
0x2735   : > { %v18285_v48 = vadd.f32 1e-06, %v18283_v39  ;;  %v20246_v39 = vld [vmem:[%s30030_s0 + $0x80] sm:$0xff] }
0x2737   : > { %26603 = vrsqrt.f32 %v18285_v48  ;;  %v20247_v48 = vld [vmem:[%s30030_s0 + $0x88] sm:$0xff] }
0x2741   : > { %v26604_v26 = vpop.eup %26603 }
0x2742   : > { %v18289_v42 = vmul.f32 %v26604_v26, %v18273_v24  ;;  %v20240_v24 = vld [vmem:[%s30047_s6 + $0x58] sm:$0xff]  ;;  %v20202_v26 = vld [vmem:[%s30049_s2 + $0x1] ss:$0 sm:$0xff]  ;;  %s30054_s2 = sld [smem:[#allocation51_spill]] }
0x2743   : > { %v26262_v32 = vpack.c.bf16 %v20240_v24, %v20239_v50  ;;  %v20259_v50 = vld [vmem:[%s30030_s0 + $0xe8] sm:$0xff] }
0x2744   : > { %v18297_v61 = vmul.f32 %v20195_v58, %v18289_v42  ;;  %v26271_v42 = vpack.c.bf16 %v20247_v48, %v20246_v39 }
0x2746   : > { %v29719_v44 = vadd.f32 %v20196_v60, %v18297_v61  ;;  %v20248_v61 = vld [vmem:[%s30030_s0 + $0x90] sm:$0xff] }
0x2748   : > { %24314 = vmatprep.mubr.msk.f32.mxu0 %vm1943_vm0, %v29719_v44 }
0x2768   : > { %v18609_v63 = vpop.xlane.xlu0 %18608 }
0x2769   : > { %v18610_v37 = vmul.f32 0.015625, %v18609_v63  ;;  %v20249_v63 = vld [vmem:[%s30030_s0 + $0x98] sm:$0xff] }
0x276b   : > { %v29723_v52 = vsub.f32 %v18606_v47, %v18610_v37  ;;  %v20221_v47 = vld [vmem:[%s30026_s22 + $0xc8] sm:$0xff]  ;;  %v26274_v37 = vpack.c.bf16 %v20249_v63, %v20248_v61 }
0x276c   : > { %v18282_v30 = vpop.xlane.xlu0 %18281  ;;  %v26242_v5 = vpack.c.bf16 %v20221_v47, %v20220_v18 }
0x276d   : > { %v18284_v1 = vmul.f32 0.015625, %v18282_v30  ;;  %v18612_v55 = vmul.f32 %v29723_v52, %v29723_v52  ;;  %v20251_v30 = vld [vmem:[%s30030_s0 + $0xa8] sm:$0xff] }
0x276f   : > { %v18286_v38 = vadd.f32 1e-06, %v18284_v1  ;;  %v18613_v16 = vsel %vm1943_vm0, %v18612_v55, 0.0  ;;  %v20252_v55 = vld [vmem:[%s30030_s0 + $0xb0] sm:$0xff] }
0x2770   : > { %18614 = vadd.xlane.f32.xlu1 %v18613_v16 }
0x2771   : > { %26605 = vrsqrt.f32 %v18286_v38  ;;  %v20253_v38 = vld [vmem:[%s30030_s0 + $0xb8] sm:$0xff] }
0x2772   : > { %v26280_v16 = vpack.c.bf16 %v20253_v38, %v20252_v55  ;;  %v20235_v55 = vld [vmem:[%s30036_s4 + $0x1] ss:$0 sm:$0xff] }
0x277b   : > { %v26606_v11 = vpop.eup %26605 }
0x277c   : > { %v18290_v21 = vmul.f32 %v26606_v11, %v18274_v36  ;;  %v26238_v36 = vpack.c.bf16 %v20219_v35, %v20218_v34  ;;  %v20254_v11 = vld [vmem:[%s30030_s0 + $0xc0] sm:$0xff] }
0x277e   : > { %v18298_v22 = vmul.f32 %v20195_v58, %v18290_v21  ;;  %26239 = vmatprep.subr.bf16.mxu1 %v26238_v36 }
0x277f   : > { %26241 = vmatpush3.bf16.msra.mxu1 %v26238_v36 }
0x2780   : > { %v29728_v62 = vadd.f32 %v20196_v60, %v18298_v22  ;;  %26243 = vmatprep.subr.bf16.mxu1 %v26242_v5  ;;  %v20256_v22 = vld [vmem:[%s30030_s0 + $0xd0] sm:$0xff] }
0x2781   : > { %v26286_v28 = vpack.c.bf16 %v20257_v54, %v20256_v22 }
0x2782   : > { %24315 = vmatmul.mubr.msk.f32.vlgmr.msra.gmra.mrb[202].mxu0 %vm1943_vm0, %v29728_v62 }
0x2783   : > { %24368 = vmatprep.mubr.msk.f32.mxu0 %vm26757_vm3, %v26758_v20  ;;  %26260 = vmatpush3.bf16.msra.mxu0 %v26259_v0  ;;  %v20258_v0 = vld [vmem:[%s30030_s0 + $0xe0] sm:$0xff] }
0x2784   : > { %26261 = vmatprep.subr.bf16.mxu0 %v26756_v7  ;;  %26245 = vmatpush3.bf16.msra.mxu1 %v26242_v5  ;;  %v26289_v24 = vpack.c.bf16 %v20259_v50, %v20258_v0 }
0x2785   : > { %26247 = vmatprep.subr.bf16.mxu1 %v26246_v14 }
0x2787   : > { %26263 = vmatpush3.bf16.msra.mxu0 %v26262_v32  ;;  %v20231_v32 = vld [vmem:[%s30050_s5 + $0x1] ss:$0 sm:$0xff]  ;;  %s29812_s5 = sand.u32 1, %s30053_s7   ;;  %s20281_s7 = sshll.u32 %s30054_s2, 8 }
0x2788   : > { %26264 = vmatprep.subr.bf16.mxu0 %v26756_v7  ;;  %26249 = vmatpush3.bf16.msra.mxu1 %v26246_v14  ;;  %s19388_s1 = sshll.u32 %s29812_s5, 4  ;;  %s29821_s9 = scalar_lea.hbm %s30055_s28, %s20281_s7 }
0x2789   : > { %26251 = vmatprep.subr.bf16.mxu1 %v26250_v10  ;;  %s1332_s8 = scalar_lea.vmem [#allocation2], %s19388_s1  ;;  %s19104_s10 = scalar_lea.sflag [#allocation3], %s29812_s5 }
0x278a   : > { %s19137_s4 = sshll.u32 %s1332_s8, 4  ;;  %s26759_s1 = smov [#allocation2]   ;;  %s29823_s4 = int_to_ptr.vmem [resolvable:$true] %s19137_s4 }
0x278b   : > { %26266 = vmatpush3.bf16.msra.mxu0 %v26265_v53  ;;  %s26616_s11 = scalar_lea.vmem %s29823_s4, 256  ;;  %s26620_s12 = sshll.u32 %s26759_s1, 4  ;;  %s26621_s12 = int_to_ptr.vmem [resolvable:$false] %s26620_s12 }
0x278c   : > { %26267 = vmatprep.subr.bf16.mxu0 %v26756_v7  ;;  %26253 = vmatpush3.bf16.msra.mxu1 %v26250_v10  ;;  %p26617_p11 = scmp.ne.s32.totalorder %s29823_s4, %s26616_s11  ;;  %s26622_s13 = scalar_lea.vmem %s26621_s12, 512 }
0x278d   : > { %26255 = vmatprep.subr.bf16.mxu1 %v26254_v27  ;;  %p26623_p0 = scmp.lt.s32.totalorder %s29823_s4, %s26621_s12  ;;  %p26624_p1 = scmp.lt.s32.totalorder %s26622_s13, %s26616_s11 }
0x278e   : > { %p26618_p12 = pnand %p26617_p11, %p27031_p5 }
0x278f   : > { %26269 = vmatpush3.bf16.msra.mxu0 %v26268_v46  ;;  %p26625_p2 = por %p26624_p1, %p26623_p0 }
0x2790   : > { %26270 = vmatprep.subr.bf16.mxu0 %v26756_v7  ;;  %26257 = vmatpush3.bf16.msra.mxu1 %v26254_v27  ;;  %p26619_p13 = pneg %p26618_p12 }
0x2792   : > { %p26626_p3 = pnand %p26625_p2, %p26619_p13 }
0x27fd   : > { %v18615_v17 = vpop.xlane.xlu1 %18614 }
0x27fe   : > { %v18616_v49 = vmul.f32 0.015625, %v18615_v17 }
0x2800   : > { %v18617_v45 = vadd.f32 1e-06, %v18616_v49 }
0x2802   : > { %26607 = vrsqrt.f32 %v18617_v45 }
0x280c   : > { %v26608_v25 = vpop.eup %26607 }
0x280d   : > { %v18619_v19 = vmul.f32 %v26608_v25, %v29723_v52  ;;  %v20250_v52 = vld [vmem:[%s30030_s0 + $0xa0] sm:$0xff] }
0x280e   : > { %v26277_v1 = vpack.c.bf16 %v20251_v30, %v20250_v52 }
0x280f   : > { %v18626_v58 = vmul.f32 %v20201_v41, %v18619_v19 }
0x2811   : > { %v29767_v60 = vadd.f32 %v20202_v26, %v18626_v58 }
0x2813   : > { %24369 = vmatmul.mubr.msk.f32.vlgmr.msra.gmra.mrb[204].mxu0 %vm1943_vm0, %v29767_v60 }
0x2814   : > { %26272 = vmatpush3.bf16.msra.mxu0 %v26271_v42  ;;  %24403 = vmatprep.mubr.msk.f32.mxu0 %vm26757_vm3, %v26758_v20  ;;  %v20255_v20 = vld [vmem:[%s30030_s0 + $0xc8] sm:$0xff]  ;;  %s30056_s0 = smov %s30055_s28 }
0x2815   : > { %26273 = vmatprep.subr.bf16.mxu0 %v26756_v7  ;;  %v26283_v21 = vpack.c.bf16 %v20255_v20, %v20254_v11  ;;  %v20236_v11 = vld [vmem:[%s30038_s14 + $0x1] ss:$0 sm:$0xff] }
0x2818   : > { %26275 = vmatpush3.bf16.msra.mxu0 %v26274_v37 }
0x2819   : > { %26276 = vmatprep.subr.bf16.mxu0 %v26756_v7 }
0x281c   : > { %26278 = vmatpush3.bf16.msra.mxu0 %v26277_v1 }
0x281d   : > { %26279 = vmatprep.subr.bf16.mxu0 %v26756_v7 }
0x2820   : > { %26281 = vmatpush3.bf16.msra.mxu0 %v26280_v16 }
0x2821   : > { %26282 = vmatprep.subr.bf16.mxu0 %v26756_v7 }
0x2824   : > { %26284 = vmatpush3.bf16.msra.mxu0 %v26283_v21 }
0x2825   : > { %26285 = vmatprep.subr.bf16.mxu0 %v26756_v7 }
0x2828   : > { %26287 = vmatpush3.bf16.msra.mxu0 %v26286_v28 }
0x2829   : > { %26288 = vmatprep.subr.bf16.mxu0 %v26756_v7 }
0x282c   : > { %26290 = vmatpush3.bf16.msra.mxu0 %v26289_v24 }
0x282d   : > { %26291 = vmatprep.subr.bf16.mxu0 %v26756_v7 }
0x2830   : > { %26293 = vmatpush3.bf16.msra.mxu0 %v26292_v2 }
0x2855   : > { %v24316_v57 = vpop.f32.mrb[202].mxu0 }
0x2856   : > { %v18752_v56 = vadd.f32 %v24316_v57, %v20231_v32  ;;  %v18746_v53 = vpop.f32.mrb[203].mxu0 }
0x2857   : > { %v18747_v6 = vadd.f32 %v20231_v32, %v18746_v53 }
0x2858   : > { %v18756_v46 = vmax.f32 %v18752_v56, 0.0 }
0x2859   : > { %v18755_v3 = vmax.f32 %v18747_v6, 0.0 }
0x285b   : > { %24349 = vmatprep.mubr.f32.mxu1 %v18755_v3 }
0x285c   : > { %24350 = vmatmul.mubr.f32.vlgmr.msra.gmra.mrb[206].mxu1 %v18756_v46 }
0x28e6   : > { %v18991_v4 = vpop.f32.mrb[204].mxu0 }
0x28e7   : > { %v18992_v15 = vadd.f32 %v20265_v33, %v18991_v4  ;;  %v24370_v51 = vpop.f32.mrb[205].mxu0 }
0x28e9   : > { %v18995_v7 = vmax.f32 %v18992_v15, 0.0 }
0x28eb   : > { %24404 = vmatmul.mubr.f32.vlgmr.msra.gmra.mrb[206].mxu0 %v18995_v7 }
0x292f   : > { %v24351_v12 = vpop.f32.mrb[206].mxu1 }
0x2930   : > { %v18835_v34 = vadd.f32 %v24351_v12, %v20234_v29  ;;  %v18829_v35 = vpop.f32.mrb[207].mxu1 }
0x2931   : > { %v18830_v36 = vadd.f32 %v20234_v29, %v18829_v35 }
0x2932   : > { %v18839_v18 = vadd.f32 %v18835_v34, %v29728_v62 }
0x2933   : > { %v18838_v47 = vadd.f32 %v18830_v36, %v29719_v44 }
0x2934   : > { %v18843_v5 = vsel %vm1943_vm0, %v18839_v18, 0.0 }
0x2935   : > { %18844 = vadd.xlane.f32.xlu1 %v18843_v5  ;;  %v18840_v9 = vsel %vm1943_vm0, %v18838_v47, 0.0 }
0x2936   : > { %18841 = vadd.xlane.f32.xlu0 %v18840_v9 }
0x29be   : > { %v19068_v14 = vpop.f32.mrb[206].mxu0 }
0x29bf   : > { %v19069_v43 = vadd.f32 %v20267_v13, %v19068_v14  ;;  %v24405_v31 = vpop.f32.mrb[207].mxu0 }
0x29c1   : > { %v19072_v10 = vadd.f32 %v19069_v43, %v29767_v60 }
0x29c2   : > { %v18845_v59 = vpop.xlane.xlu1 %18844 }
0x29c3   : > { %v18847_v23 = vmul.f32 0.015625, %v18845_v59  ;;  %v18842_v27 = vpop.xlane.xlu0 %18841  ;;  %v19073_v17 = vsel %vm1943_vm0, %v19072_v10, 0.0 }
0x29c4   : > { %v18846_v62 = vmul.f32 0.015625, %v18842_v27  ;;  %19074 = vadd.xlane.f32.xlu0 %v19073_v17 }
0x29c5   : > { %v18849_v44 = vsub.f32 %v18839_v18, %v18847_v23 }
0x29c6   : > { %v18848_v49 = vsub.f32 %v18838_v47, %v18846_v62 }
0x29c7   : > { %v18851_v45 = vmul.f32 %v18849_v44, %v18849_v44 }
0x29c8   : > { %v18850_v25 = vmul.f32 %v18848_v49, %v18848_v49 }
0x29c9   : > { %v18855_v41 = vsel %vm1943_vm0, %v18851_v45, 0.0 }
0x29ca   : > { %18856 = vadd.xlane.f32.xlu0 %v18855_v41  ;;  %v18852_v19 = vsel %vm1943_vm0, %v18850_v25, 0.0 }
0x29cb   : > { %18853 = vadd.xlane.f32.xlu1 %v18852_v19 }
0x2a51   : > { %v19075_v39 = vpop.xlane.xlu0 %19074 }
0x2a52   : > { %v19076_v48 = vmul.f32 0.015625, %v19075_v39 }
0x2a54   : > { %v29806_v26 = vsub.f32 %v19072_v10, %v19076_v48 }
0x2a56   : > { %v19078_v58 = vmul.f32 %v29806_v26, %v29806_v26 }
0x2a57   : > { %v18857_v42 = vpop.xlane.xlu0 %18856 }
0x2a58   : > { %v18859_v60 = vmul.f32 0.015625, %v18857_v42  ;;  %v18854_v61 = vpop.xlane.xlu1 %18853  ;;  %v19079_v63 = vsel %vm1943_vm0, %v19078_v58, 0.0 }
0x2a59   : > { %v18858_v37 = vmul.f32 0.015625, %v18854_v61  ;;  %19080 = vadd.xlane.f32.xlu1 %v19079_v63 }
0x2a5a   : > { %v18861_v52 = vadd.f32 1e-06, %v18859_v60 }
0x2a5b   : > { %v18860_v30 = vadd.f32 1e-06, %v18858_v37 }
0x2a5c   : > { %26609 = vrsqrt.f32 %v18861_v52 }
0x2a5d   : > { %26611 = vrsqrt.f32 %v18860_v30 }
0x2a66   : > { %v26610_v1 = vpop.eup %26609 }
0x2a67   : > { %v26612_v38 = vpop.eup %26611  ;;  %v18865_v16 = vmul.f32 %v26610_v1, %v18849_v44 }
0x2a68   : > { %v18864_v20 = vmul.f32 %v26612_v38, %v18848_v49 }
0x2a69   : > { %v18873_v21 = vmul.f32 %v20235_v55, %v18865_v16 }
0x2a6a   : > { %v18872_v22 = vmul.f32 %v20235_v55, %v18864_v20 }
0x2a6b   : > { %v18881_v54 = vadd.f32 %v20236_v11, %v18873_v21 }
0x2a6c   : > { %v18880_v28 = vadd.f32 %v20236_v11, %v18872_v22 }
0x2a6d   : > { %19101 = vst.msk [vmem:[%s1332_s8 + $0x8] sm:$0xff] %vm1943_vm0, %v18881_v54 }
0x2a6e   : > { %19100 = vst.msk [vmem:[%s1332_s8] sm:$0xff] %vm1943_vm0, %v18880_v28 }
0x2a6f   : > { %26629 = shalt.err (!%p26626_p3)
}
0x2a70   : > { %s26630_s8 = scalar_lea.hbm %s29821_s9, 256  ;;  %s26634_s28 = scalar_lea.hbm %s30056_s0, 512 }
0x2a71   : > { %p26631_p4 = scmp.ne.s32.totalorder %s29821_s9, %s26630_s8  ;;  %p26635_p9 = scmp.lt.u32.totalorder %s29821_s9, %s30056_s0 }
0x2a72   : > { %p26636_p10 = scmp.lt.u32.totalorder %s26634_s28, %s26630_s8  ;;  %p26638_p12 = scmp.lt.u32.totalorder %s26630_s8, %s29821_s9 }
0x2a73   : > { %p26632_p7 = pnand %p26631_p4, %p27031_p5 }
0x2a74   : > { %p26637_p11 = por %p26636_p10, %p26635_p9 }
0x2a75   : > { %p26633_p8 = pneg %p26632_p7 }
0x2a76   : > { %p26639_p0 = por %p26638_p12, %p26637_p11 }
0x2a78   : > { %p26640_p13 = pnand %p26639_p0, %p26633_p8 }
0x2a7a   : > { %26643 = shalt.err (!%p26640_p13)
}
0x2a7b   : > { %s26760_s13 = smov 128   ;;  %s26761_s12 = smov 8   ;;  %v20268_v57 = vld [vmem:[%s30041_s16 + $0x1] ss:$0 sm:$0xff] }
0x2a7c   : > { %s30058_s11 = sld [smem:[#allocation43_spill]]  ;;  %s19389_s7 = sshll.u32 %s29812_s5, 3  ;;  %v20269_v53 = vld [vmem:[%s30043_s3 + $0x1] ss:$0 sm:$0xff] }
0x2a7d   : > { %26294 = dma.vmem_to_hbm [thread:$0]  (%p27031_p5), %s29823_s4, 256, %s29821_s9, %s19104_s10, %s26760_s13, %s26760_s13, %s26761_s12  }
0x2a7e   : > { %s20274_s1 = sshll.u32 %s30054_s2, 7  ;;  %s1339_s8 = scalar_lea.vmem [#allocation4], %s19389_s7 }
0x2a7f   : > { %s19153_s28 = sshll.u32 %s1339_s8, 4  ;;  %s19109_s9 = scalar_lea.sflag [#allocation5], %s29812_s5  ;;  %s29853_s28 = int_to_ptr.vmem [resolvable:$true] %s19153_s28 }
0x2a80   : > { %s26644_s4 = scalar_lea.vmem %s29853_s28, 128  ;;  %s26762_s10 = smov [#allocation4]  }
0x2a81   : > { %p26645_p1 = scmp.ne.s32.totalorder %s29853_s28, %s26644_s4  ;;  %s26648_s2 = sshll.u32 %s26762_s10, 4  ;;  %s26649_s2 = int_to_ptr.vmem [resolvable:$false] %s26648_s2 }
0x2a82   : > { %s29851_s0 = scalar_lea.hbm %s30058_s11, %s20274_s1  ;;  %s26650_s13 = scalar_lea.vmem %s26649_s2, 256 }
0x2a83   : > { %p26646_p2 = pnand %p26645_p1, %p27031_p5  ;;  %p26651_p4 = scmp.lt.s32.totalorder %s29853_s28, %s26649_s2 }
0x2a84   : > { %p26652_p7 = scmp.lt.s32.totalorder %s26650_s13, %s26644_s4 }
0x2a85   : > { %p26647_p3 = pneg %p26646_p2 }
0x2a86   : > { %p26653_p8 = por %p26652_p7, %p26651_p4 }
0x2a88   : > { %p26654_p9 = pnand %p26653_p8, %p26647_p3 }
0x2ae6   : > { %v19081_v0 = vpop.xlane.xlu1 %19080 }
0x2ae7   : > { %v19082_v50 = vmul.f32 0.015625, %v19081_v0 }
0x2ae9   : > { %v19083_v24 = vadd.f32 1e-06, %v19082_v50 }
0x2aeb   : > { %26613 = vrsqrt.f32 %v19083_v24 }
0x2af5   : > { %v26614_v32 = vpop.eup %26613 }
0x2af6   : > { %v19085_v56 = vmul.f32 %v26614_v32, %v29806_v26 }
0x2af8   : > { %v19092_v6 = vmul.f32 %v20268_v57, %v19085_v56 }
0x2afa   : > { %v19099_v3 = vadd.f32 %v20269_v53, %v19092_v6 }
0x2afc   : > { %19102 = vst.msk [vmem:[%s1339_s8] sm:$0xff] %vm1943_vm0, %v19099_v3 }
0x2afd   : > { %26657 = shalt.err (!%p26654_p9)
}
0x2afe   : > { %s26658_s5 = scalar_lea.hbm %s29851_s0, 128  ;;  %s26662_s12 = scalar_lea.hbm %s30058_s11, 256 }
0x2aff   : > { %p26659_p10 = scmp.ne.s32.totalorder %s29851_s0, %s26658_s5  ;;  %p26663_p0 = scmp.lt.u32.totalorder %s29851_s0, %s30058_s11 }
0x2b00   : > { %p26664_p13 = scmp.lt.u32.totalorder %s26662_s12, %s26658_s5  ;;  %p26666_p2 = scmp.lt.u32.totalorder %s26658_s5, %s29851_s0 }
0x2b01   : > { %p26660_p11 = pnand %p26659_p10, %p27031_p5 }
0x2b02   : > { %p26665_p1 = por %p26664_p13, %p26663_p0 }
0x2b03   : > { %p26661_p12 = pneg %p26660_p11 }
0x2b04   : > { %p26667_p4 = por %p26666_p2, %p26665_p1 }
0x2b06   : > { %p26668_p3 = pnand %p26667_p4, %p26661_p12 }
0x2b08   : > { %26671 = shalt.err (!%p26668_p3)
}
0x2b09   : > { %26295 = dma.vmem_to_hbm [thread:$0]  (%p27031_p5), %s29853_s28, 128, %s29851_s0, %s19109_s9  }
0x2b0a PF: > { %s30059_s7 = sld [smem:[#allocation50_spill]]  ;;  %s30060_s1 = sld [smem:[#allocation47_spill]] }
0x2b10   : > { %p26305_p7 = scmp.ge.s32.totalorder %s30059_s7, 2  ;;  %s19174_s4 = sand.u32 1, %s30060_s1  }
0x2b11   : > { %s19175_s10 = scalar_lea.sflag [#allocation3], %s19174_s4 }
0x2b12   : > { %p26299_p8 = pnand %p26305_p7, %p27035_p6 }
0x2b14   : > { %26689 = dma.done.wait (!%p26299_p8), %s19175_s10, 256  }
0x2b15   : > { %26691 = vsyncadd (!%p26299_p8), %s19175_s10, 4294967040  ;;  %s19184_s2 = scalar_lea.sflag [#allocation5], %s19174_s4 }
0x2b16   : > { %26693 = dma.done.wait (!%p26299_p8), %s19184_s2, 128  }
0x2b17   : > { %26695 = vsyncadd (!%p26299_p8), %s19184_s2, 4294967168  ;;  %s30062_s7 = sld [smem:[#allocation52_spill]]  ;;  %s30063_s28 = sld [smem:[#allocation48_spill]] }
0x2b18   : > { %s30064_s1 = sld [smem:[#allocation49_spill]]  ;;  %s30065_s2 = sld [smem:[#allocation53_spill]] }
0x2b1d   : > { %p103_p5 = scmp.ge.s32.totalorder %s30062_s7, 4  }
0x2b1f   :  { %105 = sbr.rel (!%p103_p5) target bundleno = 93 (0x5d), region = 354 }
0x2b26   :  { %19213 = vsyncpa [#allocation3], 1 }
0x2b27   :  { %19215 = vsyncpa [#allocation3 + $0x1], 1 }
0x2b28   :  { %19216 = vsyncpa [#allocation5], 1 }
0x2b29   :  { %19218 = vsyncpa [#allocation5 + $0x1], 1 }

</bundles_post_ra>
